<compile_context>
chip_gen: v5e
topology: v5e:2x2
jax: 0.10.0
libtpu: 0.0.40
codegen_flags: <defaults>
</compile_context>

<pallas_src>
import jax
import jax.numpy as jnp
from jax.experimental import pallas as pl
from jax.experimental.pallas import tpu as pltpu


def _round_up(v, m):
    return ((v + m - 1) // m) * m


# --------------------------------------------------------------------------
# Kernel 1: direction-fused bidirectional LSTM (one serial loop of T steps).
# Gate order matches PyTorch: i, f, g, o, each padded to Hp lanes.
# --------------------------------------------------------------------------
def _bilstm_kernel(x_ref, mask_ref, wihf_ref, wihb_ref, whhf_ref, whhb_ref,
                   bf_ref, bb_ref, outf_ref, outb_ref,
                   hf_scr, hb_scr, cf_scr, cb_scr, xpf_scr, xpb_scr):
    # x_ref:    (T*Bp, D)    f32   time-major, batch padded to Bp (mult of 8)
    # mask_ref: (T, Bp, 1)   f32
    # wih*:     (D, 4Hp)     bf16  per-direction, gate columns padded to Hp
    # whh*:     (Hp, 4Hp)    f32   per-direction (f32 on the serial chain)
    # b*:       (1, 4Hp)     f32
    # out*:     (T, Bp, Hp)  f32   per-direction outputs (lane-dense stores)
    T, Bp, Hp = outf_ref.shape

    # ---- hoisted input projection (bf16 MXU), all timesteps, both dirs ----
    x_bf = x_ref[...].astype(jnp.bfloat16)
    xpf_scr[...] = (jnp.dot(x_bf, wihf_ref[...],
                            preferred_element_type=jnp.float32) + bf_ref[...])
    xpb_scr[...] = (jnp.dot(x_bf, wihb_ref[...],
                            preferred_element_type=jnp.float32) + bb_ref[...])

    hf_scr[...] = jnp.zeros_like(hf_scr)
    hb_scr[...] = jnp.zeros_like(hb_scr)
    cf_scr[...] = jnp.zeros_like(cf_scr)
    cb_scr[...] = jnp.zeros_like(cb_scr)

    def lstm_cell(z, c_prev):
        # every slice is a full 128-lane-aligned block (Hp multiple of 128)
        i_g = jax.nn.sigmoid(z[:, 0 * Hp:1 * Hp])
        f_g = jax.nn.sigmoid(z[:, 1 * Hp:2 * Hp])
        g_g = jnp.tanh(z[:, 2 * Hp:3 * Hp])
        o_g = jax.nn.sigmoid(z[:, 3 * Hp:4 * Hp])
        c_new = f_g * c_prev + i_g * g_g
        h_new = o_g * jnp.tanh(c_new)
        return h_new, c_new

    def step(s, carry):
        # fused directions: forward processes t = s, backward t = T-1-s
        t_f = s
        t_b = T - 1 - s
        row_f = pl.multiple_of(t_f * Bp, Bp)
        row_b = pl.multiple_of(t_b * Bp, Bp)

        h_pf, h_pb = hf_scr[...], hb_scr[...]
        c_pf, c_pb = cf_scr[...], cb_scr[...]

        # recurrent matmuls stay f32 (tiny, latency-bound, error must not
        # compound over T steps)
        z_f = xpf_scr[pl.ds(row_f, Bp), :] + jnp.dot(
            h_pf, whhf_ref[...], preferred_element_type=jnp.float32)
        z_b = xpb_scr[pl.ds(row_b, Bp), :] + jnp.dot(
            h_pb, whhb_ref[...], preferred_element_type=jnp.float32)

        h_f, c_f = lstm_cell(z_f, c_pf)
        h_b, c_b = lstm_cell(z_b, c_pb)

        # masked recurrence == pack_padded_sequence: padded steps freeze the
        # state (backward dir effectively starts at t = len-1) and emit 0.
        m_f = mask_ref[t_f] > 0.0                     # (Bp, 1) bool
        m_b = mask_ref[t_b] > 0.0

        hf_scr[...] = jnp.where(m_f, h_f, h_pf)
        cf_scr[...] = jnp.where(m_f, c_f, c_pf)
        hb_scr[...] = jnp.where(m_b, h_b, h_pb)
        cb_scr[...] = jnp.where(m_b, c_b, c_pb)

        outf_ref[t_f] = jnp.where(m_f, h_f, 0.0)      # full-width (Hp) stores
        outb_ref[t_b] = jnp.where(m_b, h_b, 0.0)
        return carry

    # bounded unroll: full unroll for tiny T, partial for long sequences
    jax.lax.fori_loop(0, T, step, 0, unroll=min(8, T))


def run_bilstm(x_flat, mask_tm, wih_f, wih_b, whh_f, whh_b, b_f, b_b, Hp):
    T, Bp, _ = mask_tm.shape
    TB, D = x_flat.shape
    G = 4 * Hp
    return pl.pallas_call(
        _bilstm_kernel,
        out_shape=(jax.ShapeDtypeStruct((T, Bp, Hp), jnp.float32),
                   jax.ShapeDtypeStruct((T, Bp, Hp), jnp.float32)),
        grid=(1,),
        in_specs=[
            pl.BlockSpec((TB, D), lambda i: (0, 0)),
            pl.BlockSpec((T, Bp, 1), lambda i: (0, 0, 0)),
            pl.BlockSpec((D, G), lambda i: (0, 0)),
            pl.BlockSpec((D, G), lambda i: (0, 0)),
            pl.BlockSpec((Hp, G), lambda i: (0, 0)),
            pl.BlockSpec((Hp, G), lambda i: (0, 0)),
            pl.BlockSpec((1, G), lambda i: (0, 0)),
            pl.BlockSpec((1, G), lambda i: (0, 0)),
        ],
        out_specs=(pl.BlockSpec((T, Bp, Hp), lambda i: (0, 0, 0)),
                   pl.BlockSpec((T, Bp, Hp), lambda i: (0, 0, 0))),
        scratch_shapes=[
            pltpu.VMEM((Bp, Hp), jnp.float32),     # h fwd
            pltpu.VMEM((Bp, Hp), jnp.float32),     # h bwd
            pltpu.VMEM((Bp, Hp), jnp.float32),     # c fwd
            pltpu.VMEM((Bp, Hp), jnp.float32),     # c bwd
            pltpu.VMEM((TB, G), jnp.float32),      # hoisted x-projection fwd
            pltpu.VMEM((TB, G), jnp.float32),      # hoisted x-projection bwd
        ],
        compiler_params=pltpu.CompilerParams(
            dimension_semantics=("arbitrary",),
            vmem_limit_bytes=48 * 1024 * 1024),
    )(x_flat, mask_tm, wih_f, wih_b, whh_f, whh_b, b_f, b_b)


# --------------------------------------------------------------------------
# Kernel 2a: sim_head (Linear-ReLU-Linear), row-tiled, lane-padded output.
# --------------------------------------------------------------------------
def _sim_head_kernel(y_ref, w1_ref, b1_ref, w2_ref, b2_ref, s_ref):
    # y: (TR, D) f32; w1: (D, Dp) bf16; b1: (1, Dp); w2: (Dp, Hsp) bf16;
    # b2: (1, Hsp); s: (TR, Hsp) f32
    y = y_ref[...].astype(jnp.bfloat16)
    h1 = jnp.maximum(
        jnp.dot(y, w1_ref[...], preferred_element_type=jnp.float32)
        + b1_ref[...], 0.0)
    s_ref[...] = (jnp.dot(h1.astype(jnp.bfloat16), w2_ref[...],
                          preferred_element_type=jnp.float32) + b2_ref[...])


def run_sim_head(y_pad, w1p, b1p, w2p, b2p, TR):
    B, Tp, D = y_pad.shape
    Dp = w1p.shape[1]
    Hsp = w2p.shape[1]
    n_rt = Tp // TR
    return pl.pallas_call(
        _sim_head_kernel,
        out_shape=jax.ShapeDtypeStruct((B, Tp, Hsp), jnp.float32),
        grid=(B, n_rt),
        in_specs=[
            pl.BlockSpec((None, TR, D), lambda b, r: (b, r, 0)),
            pl.BlockSpec((D, Dp), lambda b, r: (0, 0)),
            pl.BlockSpec((1, Dp), lambda b, r: (0, 0)),
            pl.BlockSpec((Dp, Hsp), lambda b, r: (0, 0)),
            pl.BlockSpec((1, Hsp), lambda b, r: (0, 0)),
        ],
        out_specs=pl.BlockSpec((None, TR, Hsp), lambda b, r: (b, r, 0)),
        compiler_params=pltpu.CompilerParams(
            dimension_semantics=("parallel", "parallel"),
            vmem_limit_bytes=48 * 1024 * 1024),
    )(y_pad, w1p, b1p, w2p, b2p)


# --------------------------------------------------------------------------
# Kernel 2b: row-tiled affinity logits + masked BCE, accumulated per batch.
# grid = (B, n_row_tiles); reduction axis (row tiles) is last / "arbitrary".
# --------------------------------------------------------------------------
def _affinity_bce_kernel(s_row_ref, s_all_ref, mrow_ref, mcol_ref,
                         spkrow_ref, spkcol_ref, sum_ref, cnt_ref):
    r = pl.program_id(1)

    @pl.when(r == 0)
    def _():
        sum_ref[...] = jnp.zeros_like(sum_ref)
        cnt_ref[...] = jnp.zeros_like(cnt_ref)

    s_r = s_row_ref[...].astype(jnp.bfloat16)         # (TR, Hsp)
    s_a = s_all_ref[...].astype(jnp.bfloat16)         # (Tp, Hsp)
    z = jax.lax.dot_general(s_r, s_a, (((1,), (1,)), ((), ())),
                            preferred_element_type=jnp.float32)   # (TR, Tp)

    # row/column copies come from the wrapper -> no in-kernel transposes.
    # speaker IDs compared as f32 (exact for realistic ID ranges).
    label = (spkrow_ref[...] == spkcol_ref[...]).astype(jnp.float32)  # (TR,Tp)
    valid = mrow_ref[...] * mcol_ref[...]                             # (TR,Tp)

    # BCE with logits: softplus(z) - label*z  (== BCELoss(sigmoid(z), label))
    softplus = jnp.maximum(z, 0.0) + jnp.log(1.0 + jnp.exp(-jnp.abs(z)))
    bce = softplus - label * z

    sum_ref[...] += jnp.sum(bce * valid, axis=(0, 1), keepdims=True)
    cnt_ref[...] += jnp.sum(valid, axis=(0, 1), keepdims=True)


def run_affinity_bce(s, mask_rows, mask_cols, spk_rows, spk_cols, TR):
    B, Tp, Hsp = s.shape
    n_rt = Tp // TR
    return pl.pallas_call(
        _affinity_bce_kernel,
        out_shape=(jax.ShapeDtypeStruct((B, 1, 1), jnp.float32),
                   jax.ShapeDtypeStruct((B, 1, 1), jnp.float32)),
        grid=(B, n_rt),
        in_specs=[
            pl.BlockSpec((None, TR, Hsp), lambda b, r: (b, r, 0)),   # s rows
            pl.BlockSpec((None, Tp, Hsp), lambda b, r: (b, 0, 0)),   # s (all)
            pl.BlockSpec((None, TR, 1), lambda b, r: (b, r, 0)),     # mask rows
            pl.BlockSpec((None, 1, Tp), lambda b, r: (b, 0, 0)),     # mask cols
            pl.BlockSpec((None, TR, 1), lambda b, r: (b, r, 0)),     # spk rows
            pl.BlockSpec((None, 1, Tp), lambda b, r: (b, 0, 0)),     # spk cols
        ],
        out_specs=(pl.BlockSpec((None, 1, 1), lambda b, r: (b, 0, 0)),
                   pl.BlockSpec((None, 1, 1), lambda b, r: (b, 0, 0))),
        compiler_params=pltpu.CompilerParams(
            dimension_semantics=("parallel", "arbitrary"),
            vmem_limit_bytes=48 * 1024 * 1024),
    )(s, s, mask_rows, mask_cols, spk_rows, spk_cols)


# --------------------------------------------------------------------------
# Parameter setup (PyTorch-compatible raw layout) + kernel packing/padding.
# --------------------------------------------------------------------------
def init_params(key, dim):
    H = dim // 2
    keys = jax.random.split(key, 12)

    def nrm(k, shape, scale=0.1):
        return scale * jax.random.normal(k, shape, dtype=jnp.float32)

    def lstm_dir(k1, k2, k3, k4):
        wih = nrm(k1, (4 * H, dim))     # PyTorch weight_ih: (4H, D), gates i,f,g,o
        whh = nrm(k2, (4 * H, H))       # PyTorch weight_hh: (4H, H)
        bih = nrm(k3, (4 * H,))
        bhh = nrm(k4, (4 * H,))
        return wih.T, whh.T, (bih + bhh).reshape(1, 4 * H)

    wf, uf, bf = lstm_dir(keys[0], keys[1], keys[2], keys[3])
    wb, ub, bb = lstm_dir(keys[4], keys[5], keys[6], keys[7])

    return dict(
        wih=jnp.stack([wf, wb]),        # (2, D, 4H)
        whh=jnp.stack([uf, ub]),        # (2, H, 4H)
        b=jnp.stack([bf, bb]),          # (2, 1, 4H)
        w1=nrm(keys[8], (dim, dim)),    # sim_head Linear 1 (x @ W)
        b1=nrm(keys[9], (1, dim)),
        w2=nrm(keys[10], (dim, dim // 2)),
        b2=nrm(keys[11], (1, dim // 2)),
    )


def _pad_gate_cols(w, H, Hp):
    # (..., 4H) -> (..., 4Hp): pad each of the i,f,g,o gate blocks to Hp lanes
    blocks = []
    for k in range(4):
        blk = w[..., k * H:(k + 1) * H]
        pad = [(0, 0)] * (w.ndim - 1) + [(0, Hp - H)]
        blocks.append(jnp.pad(blk, pad))
    return jnp.concatenate(blocks, axis=-1)


def pack_params(params):
    wih, whh, b = params['wih'], params['whh'], params['b']
    D = wih.shape[1]
    H = whh.shape[1]
    Hp = _round_up(H, 128)

    wih_f = _pad_gate_cols(wih[0], H, Hp).astype(jnp.bfloat16)          # (D, 4Hp)
    wih_b = _pad_gate_cols(wih[1], H, Hp).astype(jnp.bfloat16)
    whh_f = jnp.pad(_pad_gate_cols(whh[0], H, Hp), ((0, Hp - H), (0, 0)))  # (Hp,4Hp)
    whh_b = jnp.pad(_pad_gate_cols(whh[1], H, Hp), ((0, Hp - H), (0, 0)))
    b_f = _pad_gate_cols(b[0], H, Hp)                                    # (1, 4Hp)
    b_b = _pad_gate_cols(b[1], H, Hp)

    # sim_head: pad hidden & output widths to 128 lanes (zero padding keeps
    # the padded lanes exactly zero through ReLU and the affinity contraction)
    w1, b1, w2, b2 = params['w1'], params['b1'], params['w2'], params['b2']
    Dp = _round_up(D, 128)
    Hs = w2.shape[-1]
    Hsp = _round_up(Hs, 128)
    w1p = jnp.pad(w1, ((0, 0), (0, Dp - D))).astype(jnp.bfloat16)        # (D, Dp)
    b1p = jnp.pad(b1, ((0, 0), (0, Dp - D)))
    w2p = jnp.pad(w2, ((0, Dp - D), (0, Hsp - Hs))).astype(jnp.bfloat16)  # (Dp,Hsp)
    b2p = jnp.pad(b2, ((0, 0), (0, Hsp - Hs)))

    return dict(D=D, H=H, Hp=Hp, Dp=Dp, Hs=Hs, Hsp=Hsp,
                wih_f=wih_f, wih_b=wih_b, whh_f=whh_f, whh_b=whh_b,
                b_f=b_f, b_b=b_b, w1=w1p, b1=b1p, w2=w2p, b2=b2p)


# --------------------------------------------------------------------------
# Forward pass (glue in plain JAX, hot paths in the Pallas kernels).
# --------------------------------------------------------------------------
def encode_bilstm(packed, x, context_mask):
    B, T, D = x.shape
    H, Hp = packed['H'], packed['Hp']
    mask_f = context_mask.astype(jnp.float32)

    Bp = _round_up(B, 8)                              # pad batch to sublane mult
    pad = Bp - B
    x_tm = jnp.pad(jnp.transpose(x, (1, 0, 2)), ((0, 0), (0, pad), (0, 0)))
    mask_tm = jnp.pad(jnp.transpose(mask_f, (1, 0)),
                      ((0, 0), (0, pad)))[:, :, None]              # (T, Bp, 1)

    out_f, out_b = run_bilstm(x_tm.reshape(T * Bp, D), mask_tm,
                              packed['wih_f'], packed['wih_b'],
                              packed['whh_f'], packed['whh_b'],
                              packed['b_f'], packed['b_b'], Hp)    # (T, Bp, Hp)
    y = jnp.concatenate([out_f[..., :H], out_b[..., :H]], axis=-1)  # (T, Bp, 2H)
    return jnp.transpose(y, (1, 0, 2))[:B]                          # (B, T, 2H)


def clusterer_forward(packed, x, context_mask, speakers):
    B, T, _ = x.shape
    mask_f = context_mask.astype(jnp.float32)
    y = encode_bilstm(packed, x, context_mask)

    # pad the time axis for the row-tiled affinity/BCE kernels
    Tp = _round_up(T, 8)
    if Tp > 128:
        Tp = _round_up(T, 128)
    TR = min(Tp, 128)
    padT = Tp - T
    y_pad = jnp.pad(y, ((0, 0), (0, padT), (0, 0)))
    m_pad = jnp.pad(mask_f, ((0, 0), (0, padT)))
    spk_pad = jnp.pad(speakers.astype(jnp.float32), ((0, 0), (0, padT)))

    s = run_sim_head(y_pad, packed['w1'], packed['b1'],
                     packed['w2'], packed['b2'], TR)               # (B, Tp, Hsp)

    sums, cnts = run_affinity_bce(
        s, m_pad[:, :, None], m_pad[:, None, :],
        spk_pad[:, :, None], spk_pad[:, None, :], TR)
    loss = jnp.sum(sums) / jnp.maximum(jnp.sum(cnts), 1.0)

    # TODO(synk): SpectralClusterer.predict (host numpy eigendecomposition) has
    # no Pallas equivalent; return zero placeholder for pred_speakers.
    pred_speakers = jnp.zeros_like(speakers)
    return pred_speakers, loss


# --------------------------------------------------------------------------
# Pure-JAX f32 reference (same math, no Pallas) for a sanity check.
# --------------------------------------------------------------------------
def _ref_bilstm(x, mask_f, wih_s, whh_s, b_s):
    B, T, D = x.shape
    H = whh_s.shape[1]
    halves = []
    for d in range(2):
        h = jnp.zeros((B, H), jnp.float32)
        c = jnp.zeros((B, H), jnp.float32)
        outs = [None] * T
        order = range(T) if d == 0 else range(T - 1, -1, -1)
        for t in order:
            z = x[:, t, :] @ wih_s[d] + h @ whh_s[d] + b_s[d]
            i_g = jax.nn.sigmoid(z[:, 0 * H:1 * H])
            f_g = jax.nn.sigmoid(z[:, 1 * H:2 * H])
            g_g = jnp.tanh(z[:, 2 * H:3 * H])
            o_g = jax.nn.sigmoid(z[:, 3 * H:4 * H])
            c_new = f_g * c + i_g * g_g
            h_new = o_g * jnp.tanh(c_new)
            m = mask_f[:, t][:, None]
            h = m * h_new + (1.0 - m) * h
            c = m * c_new + (1.0 - m) * c
            outs[t] = m * h_new
        halves.append(jnp.stack(outs, axis=1))
    return jnp.concatenate(halves, axis=-1)        # (B, T, 2H)


def reference_loss(params, x, context_mask, speakers):
    B = x.shape[0]
    mask_f = context_mask.astype(jnp.float32)
    y = _ref_bilstm(x, mask_f, params['wih'], params['whh'], params['b'])

    total, count = 0.0, 0.0
    for i in range(B):
        h1 = jnp.maximum(y[i] @ params['w1'] + params['b1'], 0.0)
        s = h1 @ params['w2'] + params['b2']
        aff = jax.nn.sigmoid(s @ s.T)
        spk = speakers[i].astype(jnp.float32)
        label = (spk[:, None] == spk[None, :]).astype(jnp.float32)
        m = mask_f[i]
        valid = m[:, None] * m[None, :]
        log_a = jnp.maximum(jnp.log(aff), -100.0)          # PyTorch BCELoss clamp
        log_1a = jnp.maximum(jnp.log(1.0 - aff), -100.0)
        bce = -(label * log_a + (1.0 - label) * log_1a)
        total = total + jnp.sum(bce * valid)
        count = count + jnp.sum(valid)
    return total / jnp.maximum(count, 1.0), y


if __name__ == "__main__":
    key = jax.random.PRNGKey(0)
    B, T, dim = 2, 8, 32
    kx, kp, ks = jax.random.split(key, 3)

    x = jax.random.normal(kx, (B, T, dim), dtype=jnp.float32)
    lengths = jnp.array([8, 5], dtype=jnp.int32)                 # prefix-valid masks
    context_mask = jnp.arange(T)[None, :] < lengths[:, None]     # (B, T) bool
    speakers = jax.random.randint(ks, (B, T), 0, 3, dtype=jnp.int32)

    params = init_params(kp, dim)
    packed = pack_params(params)

    pred_speakers, loss = clusterer_forward(packed, x, context_mask, speakers)
    loss = jax.block_until_ready(loss)
    pred_speakers = jax.block_until_ready(pred_speakers)

    y_kernel = jax.block_until_ready(encode_bilstm(packed, x, context_mask))
    ref_loss, y_ref = reference_loss(params, x, context_mask, speakers)

    mask3 = context_mask.astype(jnp.float32)[:, :, None]
    assert bool(jnp.isfinite(loss)), "loss is not finite"
    assert jnp.allclose(y_kernel * mask3, y_ref * mask3, rtol=5e-2, atol=3e-2), \
        "bi-LSTM outputs diverge from reference"
    assert jnp.allclose(loss, ref_loss, rtol=5e-2, atol=2e-2), \
        (float(loss), float(ref_loss))
    print("KERNEL_OK")
</pallas_src>

<mosaic_0001>
module attributes {stable_mosaic.version = 11 : i64} {
  func.func @_bilstm_kernel(%arg0: i32, %arg1: memref<64x32xf32, #tpu.memory_space<vmem>>, %arg2: memref<8x8x1xf32, #tpu.memory_space<vmem>>, %arg3: memref<32x512xbf16, #tpu.memory_space<vmem>>, %arg4: memref<32x512xbf16, #tpu.memory_space<vmem>>, %arg5: memref<128x512xf32, #tpu.memory_space<vmem>>, %arg6: memref<128x512xf32, #tpu.memory_space<vmem>>, %arg7: memref<1x512xf32, #tpu.memory_space<vmem>>, %arg8: memref<1x512xf32, #tpu.memory_space<vmem>>, %arg9: memref<8x8x128xf32, #tpu.memory_space<vmem>>, %arg10: memref<8x8x128xf32, #tpu.memory_space<vmem>>, %arg11: memref<8x128xf32, #tpu.memory_space<vmem>>, %arg12: memref<8x128xf32, #tpu.memory_space<vmem>>, %arg13: memref<8x128xf32, #tpu.memory_space<vmem>>, %arg14: memref<8x128xf32, #tpu.memory_space<vmem>>, %arg15: memref<64x512xf32, #tpu.memory_space<vmem>>, %arg16: memref<64x512xf32, #tpu.memory_space<vmem>>) attributes {dimension_semantics = [#tpu.dimension_semantics<arbitrary>], iteration_bounds = array<i64: 1>, scalar_prefetch = 0 : i64, scratch_operands = 6 : i64, tpu.core_type = #tpu.core_type<tc>, window_params = [{pipeline_mode = #tpu.pipeline_mode<synchronous>, transform_indices = @transform_0, window_bounds = array<i64: 64, 32>}, {pipeline_mode = #tpu.pipeline_mode<synchronous>, transform_indices = @transform_1, window_bounds = array<i64: 8, 8, 1>}, {pipeline_mode = #tpu.pipeline_mode<synchronous>, transform_indices = @transform_2, window_bounds = array<i64: 32, 512>}, {pipeline_mode = #tpu.pipeline_mode<synchronous>, transform_indices = @transform_3, window_bounds = array<i64: 32, 512>}, {pipeline_mode = #tpu.pipeline_mode<synchronous>, transform_indices = @transform_4, window_bounds = array<i64: 128, 512>}, {pipeline_mode = #tpu.pipeline_mode<synchronous>, transform_indices = @transform_5, window_bounds = array<i64: 128, 512>}, {pipeline_mode = #tpu.pipeline_mode<synchronous>, transform_indices = @transform_6, window_bounds = array<i64: 1, 512>}, {pipeline_mode = #tpu.pipeline_mode<synchronous>, transform_indices = @transform_7, window_bounds = array<i64: 1, 512>}, {pipeline_mode = #tpu.pipeline_mode<synchronous>, transform_indices = @transform_8, window_bounds = array<i64: 8, 8, 128>}, {pipeline_mode = #tpu.pipeline_mode<synchronous>, transform_indices = @transform_9, window_bounds = array<i64: 8, 8, 128>}]} {
    %c0 = arith.constant 0 : index
    %c0_0 = arith.constant 0 : index
    %0 = vector.load %arg1[%c0, %c0_0] : memref<64x32xf32, #tpu.memory_space<vmem>>, vector<64x32xf32>
    %1 = arith.truncf %0 : vector<64x32xf32> to vector<64x32xbf16>
    %c0_1 = arith.constant 0 : index
    %c0_2 = arith.constant 0 : index
    %2 = vector.load %arg3[%c0_1, %c0_2] : memref<32x512xbf16, #tpu.memory_space<vmem>>, vector<32x512xbf16>
    %cst = arith.constant dense<0.000000e+00> : vector<64x512xf32>
    %3 = tpu.matmul %1, %2, %cst {dimension_numbers = #tpu.dot_dimension_numbers<[1], [0], [0], [1], [0, 0, 1, 1], [], []>} : vector<64x32xbf16>, vector<32x512xbf16>, vector<64x512xf32> -> vector<64x512xf32>
    %c0_3 = arith.constant 0 : index
    %c0_4 = arith.constant 0 : index
    %4 = vector.load %arg7[%c0_3, %c0_4] : memref<1x512xf32, #tpu.memory_space<vmem>>, vector<1x512xf32>
    %5 = vector.broadcast %4 : vector<1x512xf32> to vector<64x512xf32>
    %6 = arith.addf %3, %5 : vector<64x512xf32>
    %c0_5 = arith.constant 0 : index
    %c0_6 = arith.constant 0 : index
    %7 = vector.load %arg15[%c0_5, %c0_6] : memref<64x512xf32, #tpu.memory_space<vmem>>, vector<64x512xf32>
    tpu.vector_store %arg15[%c0_5, %c0_6], %6 {strides = array<i32>} : memref<64x512xf32, #tpu.memory_space<vmem>>, vector<64x512xf32>,
    %c0_7 = arith.constant 0 : index
    %c0_8 = arith.constant 0 : index
    %8 = vector.load %arg4[%c0_7, %c0_8] : memref<32x512xbf16, #tpu.memory_space<vmem>>, vector<32x512xbf16>
    %cst_9 = arith.constant dense<0.000000e+00> : vector<64x512xf32>
    %9 = tpu.matmul %1, %8, %cst_9 {dimension_numbers = #tpu.dot_dimension_numbers<[1], [0], [0], [1], [0, 0, 1, 1], [], []>} : vector<64x32xbf16>, vector<32x512xbf16>, vector<64x512xf32> -> vector<64x512xf32>
    %c0_10 = arith.constant 0 : index
    %c0_11 = arith.constant 0 : index
    %10 = vector.load %arg8[%c0_10, %c0_11] : memref<1x512xf32, #tpu.memory_space<vmem>>, vector<1x512xf32>
    %11 = vector.broadcast %10 : vector<1x512xf32> to vector<64x512xf32>
    %12 = arith.addf %9, %11 : vector<64x512xf32>
    %c0_12 = arith.constant 0 : index
    %c0_13 = arith.constant 0 : index
    %13 = vector.load %arg16[%c0_12, %c0_13] : memref<64x512xf32, #tpu.memory_space<vmem>>, vector<64x512xf32>
    tpu.vector_store %arg16[%c0_12, %c0_13], %12 {strides = array<i32>} : memref<64x512xf32, #tpu.memory_space<vmem>>, vector<64x512xf32>,
    %cst_14 = arith.constant 0.000000e+00 : f32
    %14 = vector.broadcast %cst_14 : f32 to vector<8x128xf32>
    %c0_15 = arith.constant 0 : index
    %c0_16 = arith.constant 0 : index
    %15 = vector.load %arg11[%c0_15, %c0_16] : memref<8x128xf32, #tpu.memory_space<vmem>>, vector<8x128xf32>
    tpu.vector_store %arg11[%c0_15, %c0_16], %14 {strides = array<i32>} : memref<8x128xf32, #tpu.memory_space<vmem>>, vector<8x128xf32>,
    %cst_17 = arith.constant 0.000000e+00 : f32
    %16 = vector.broadcast %cst_17 : f32 to vector<8x128xf32>
    %c0_18 = arith.constant 0 : index
    %c0_19 = arith.constant 0 : index
    %17 = vector.load %arg12[%c0_18, %c0_19] : memref<8x128xf32, #tpu.memory_space<vmem>>, vector<8x128xf32>
    tpu.vector_store %arg12[%c0_18, %c0_19], %16 {strides = array<i32>} : memref<8x128xf32, #tpu.memory_space<vmem>>, vector<8x128xf32>,
    %cst_20 = arith.constant 0.000000e+00 : f32
    %18 = vector.broadcast %cst_20 : f32 to vector<8x128xf32>
    %c0_21 = arith.constant 0 : index
    %c0_22 = arith.constant 0 : index
    %19 = vector.load %arg13[%c0_21, %c0_22] : memref<8x128xf32, #tpu.memory_space<vmem>>, vector<8x128xf32>
    tpu.vector_store %arg13[%c0_21, %c0_22], %18 {strides = array<i32>} : memref<8x128xf32, #tpu.memory_space<vmem>>, vector<8x128xf32>,
    %cst_23 = arith.constant 0.000000e+00 : f32
    %20 = vector.broadcast %cst_23 : f32 to vector<8x128xf32>
    %c0_24 = arith.constant 0 : index
    %c0_25 = arith.constant 0 : index
    %21 = vector.load %arg14[%c0_24, %c0_25] : memref<8x128xf32, #tpu.memory_space<vmem>>, vector<8x128xf32>
    tpu.vector_store %arg14[%c0_24, %c0_25], %20 {strides = array<i32>} : memref<8x128xf32, #tpu.memory_space<vmem>>, vector<8x128xf32>,
    %c0_i32 = arith.constant 0 : i32
    %c7_i32 = arith.constant 7 : i32
    %22 = arith.subi %c7_i32, %c0_i32 : i32
    %c8_i32 = arith.constant 8 : i32
    %23 = arith.muli %c0_i32, %c8_i32 : i32
    %24 = tpu.assume_multiple %23, 8 : i32
    %c8_i32_26 = arith.constant 8 : i32
    %25 = arith.muli %22, %c8_i32_26 : i32
    %26 = tpu.assume_multiple %25, 8 : i32
    %c0_27 = arith.constant 0 : index
    %c0_28 = arith.constant 0 : index
    %27 = vector.load %arg11[%c0_27, %c0_28] : memref<8x128xf32, #tpu.memory_space<vmem>>, vector<8x128xf32>
    %c0_29 = arith.constant 0 : index
    %c0_30 = arith.constant 0 : index
    %28 = vector.load %arg12[%c0_29, %c0_30] : memref<8x128xf32, #tpu.memory_space<vmem>>, vector<8x128xf32>
    %c0_31 = arith.constant 0 : index
    %c0_32 = arith.constant 0 : index
    %29 = vector.load %arg13[%c0_31, %c0_32] : memref<8x128xf32, #tpu.memory_space<vmem>>, vector<8x128xf32>
    %c0_33 = arith.constant 0 : index
    %c0_34 = arith.constant 0 : index
    %30 = vector.load %arg14[%c0_33, %c0_34] : memref<8x128xf32, #tpu.memory_space<vmem>>, vector<8x128xf32>
    %31 = arith.index_cast %24 : i32 to index
    %c0_35 = arith.constant 0 : index
    %32 = vector.load %arg15[%31, %c0_35] : memref<64x512xf32, #tpu.memory_space<vmem>>, vector<8x512xf32>
    %c0_36 = arith.constant 0 : index
    %c0_37 = arith.constant 0 : index
    %33 = vector.load %arg5[%c0_36, %c0_37] : memref<128x512xf32, #tpu.memory_space<vmem>>, vector<128x512xf32>
    %cst_38 = arith.constant dense<0.000000e+00> : vector<8x512xf32>
    %34 = tpu.matmul %27, %33, %cst_38 {dimension_numbers = #tpu.dot_dimension_numbers<[1], [0], [0], [1], [0, 0, 1, 1], [], []>} : vector<8x128xf32>, vector<128x512xf32>, vector<8x512xf32> -> vector<8x512xf32>
    %35 = arith.addf %32, %34 : vector<8x512xf32>
    %36 = arith.index_cast %26 : i32 to index
    %c0_39 = arith.constant 0 : index
    %37 = vector.load %arg16[%36, %c0_39] : memref<64x512xf32, #tpu.memory_space<vmem>>, vector<8x512xf32>
    %c0_40 = arith.constant 0 : index
    %c0_41 = arith.constant 0 : index
    %38 = vector.load %arg6[%c0_40, %c0_41] : memref<128x512xf32, #tpu.memory_space<vmem>>, vector<128x512xf32>
    %cst_42 = arith.constant dense<0.000000e+00> : vector<8x512xf32>
    %39 = tpu.matmul %28, %38, %cst_42 {dimension_numbers = #tpu.dot_dimension_numbers<[1], [0], [0], [1], [0, 0, 1, 1], [], []>} : vector<8x128xf32>, vector<128x512xf32>, vector<8x512xf32> -> vector<8x512xf32>
    %40 = arith.addf %37, %39 : vector<8x512xf32>
    %41 = vector.extract_strided_slice %35 {offsets = [0, 0], sizes = [8, 128], strides = [1, 1]} : vector<8x512xf32> to vector<8x128xf32>
    %42 = arith.negf %41 : vector<8x128xf32>
    %43 = math.exp %42 : vector<8x128xf32>
    %cst_43 = arith.constant 1.000000e+00 : f32
    %44 = vector.broadcast %cst_43 : f32 to vector<8x128xf32>
    %45 = arith.addf %44, %43 : vector<8x128xf32>
    %46 = arith.divf %44, %45 : vector<8x128xf32>
    %47 = vector.extract_strided_slice %35 {offsets = [0, 128], sizes = [8, 128], strides = [1, 1]} : vector<8x512xf32> to vector<8x128xf32>
    %48 = arith.negf %47 : vector<8x128xf32>
    %49 = math.exp %48 : vector<8x128xf32>
    %cst_44 = arith.constant 1.000000e+00 : f32
    %50 = vector.broadcast %cst_44 : f32 to vector<8x128xf32>
    %51 = arith.addf %50, %49 : vector<8x128xf32>
    %52 = arith.divf %50, %51 : vector<8x128xf32>
    %53 = vector.extract_strided_slice %35 {offsets = [0, 256], sizes = [8, 128], strides = [1, 1]} : vector<8x512xf32> to vector<8x128xf32>
    %54 = math.tanh %53 : vector<8x128xf32>
    %55 = vector.extract_strided_slice %35 {offsets = [0, 384], sizes = [8, 128], strides = [1, 1]} : vector<8x512xf32> to vector<8x128xf32>
    %56 = arith.negf %55 : vector<8x128xf32>
    %57 = math.exp %56 : vector<8x128xf32>
    %cst_45 = arith.constant 1.000000e+00 : f32
    %58 = vector.broadcast %cst_45 : f32 to vector<8x128xf32>
    %59 = arith.addf %58, %57 : vector<8x128xf32>
    %60 = arith.divf %58, %59 : vector<8x128xf32>
    %61 = arith.mulf %52, %29 : vector<8x128xf32>
    %62 = arith.mulf %46, %54 : vector<8x128xf32>
    %63 = arith.addf %61, %62 : vector<8x128xf32>
    %64 = math.tanh %63 : vector<8x128xf32>
    %65 = arith.mulf %60, %64 : vector<8x128xf32>
    %66 = vector.extract_strided_slice %40 {offsets = [0, 0], sizes = [8, 128], strides = [1, 1]} : vector<8x512xf32> to vector<8x128xf32>
    %67 = arith.negf %66 : vector<8x128xf32>
    %68 = math.exp %67 : vector<8x128xf32>
    %cst_46 = arith.constant 1.000000e+00 : f32
    %69 = vector.broadcast %cst_46 : f32 to vector<8x128xf32>
    %70 = arith.addf %69, %68 : vector<8x128xf32>
    %71 = arith.divf %69, %70 : vector<8x128xf32>
    %72 = vector.extract_strided_slice %40 {offsets = [0, 128], sizes = [8, 128], strides = [1, 1]} : vector<8x512xf32> to vector<8x128xf32>
    %73 = arith.negf %72 : vector<8x128xf32>
    %74 = math.exp %73 : vector<8x128xf32>
    %cst_47 = arith.constant 1.000000e+00 : f32
    %75 = vector.broadcast %cst_47 : f32 to vector<8x128xf32>
    %76 = arith.addf %75, %74 : vector<8x128xf32>
    %77 = arith.divf %75, %76 : vector<8x128xf32>
    %78 = vector.extract_strided_slice %40 {offsets = [0, 256], sizes = [8, 128], strides = [1, 1]} : vector<8x512xf32> to vector<8x128xf32>
    %79 = math.tanh %78 : vector<8x128xf32>
    %80 = vector.extract_strided_slice %40 {offsets = [0, 384], sizes = [8, 128], strides = [1, 1]} : vector<8x512xf32> to vector<8x128xf32>
    %81 = arith.negf %80 : vector<8x128xf32>
    %82 = math.exp %81 : vector<8x128xf32>
    %cst_48 = arith.constant 1.000000e+00 : f32
    %83 = vector.broadcast %cst_48 : f32 to vector<8x128xf32>
    %84 = arith.addf %83, %82 : vector<8x128xf32>
    %85 = arith.divf %83, %84 : vector<8x128xf32>
    %86 = arith.mulf %77, %30 : vector<8x128xf32>
    %87 = arith.mulf %71, %79 : vector<8x128xf32>
    %88 = arith.addf %86, %87 : vector<8x128xf32>
    %89 = math.tanh %88 : vector<8x128xf32>
    %90 = arith.mulf %85, %89 : vector<8x128xf32>
    %91 = arith.index_cast %c0_i32 : i32 to index
    %c0_49 = arith.constant 0 : index
    %c0_50 = arith.constant 0 : index
    %92 = vector.load %arg2[%91, %c0_49, %c0_50] : memref<8x8x1xf32, #tpu.memory_space<vmem>>, vector<1x8x1xf32>
    %93 = vector.shape_cast %92 : vector<1x8x1xf32> to vector<8x1xf32>
    %cst_51 = arith.constant 0.000000e+00 : f32
    %94 = vector.broadcast %cst_51 : f32 to vector<8x1xf32>
    %95 = arith.cmpf ogt, %93, %94 : vector<8x1xf32>
    %96 = arith.index_cast %22 : i32 to index
    %c0_52 = arith.constant 0 : index
    %c0_53 = arith.constant 0 : index
    %97 = vector.load %arg2[%96, %c0_52, %c0_53] : memref<8x8x1xf32, #tpu.memory_space<vmem>>, vector<1x8x1xf32>
    %98 = vector.shape_cast %97 : vector<1x8x1xf32> to vector<8x1xf32>
    %cst_54 = arith.constant 0.000000e+00 : f32
    %99 = vector.broadcast %cst_54 : f32 to vector<8x1xf32>
    %100 = arith.cmpf ogt, %98, %99 : vector<8x1xf32>
    %101 = vector.shape_cast %95 : vector<8x1xi1> to vector<8x1xi1>
    %102 = vector.broadcast %101 : vector<8x1xi1> to vector<8x128xi1>
    %103 = arith.select %102, %65, %27 : vector<8x128xi1>, vector<8x128xf32>
    %c0_55 = arith.constant 0 : index
    %c0_56 = arith.constant 0 : index
    %104 = vector.load %arg11[%c0_55, %c0_56] : memref<8x128xf32, #tpu.memory_space<vmem>>, vector<8x128xf32>
    tpu.vector_store %arg11[%c0_55, %c0_56], %103 {strides = array<i32>} : memref<8x128xf32, #tpu.memory_space<vmem>>, vector<8x128xf32>,
    %105 = vector.shape_cast %95 : vector<8x1xi1> to vector<8x1xi1>
    %106 = vector.broadcast %105 : vector<8x1xi1> to vector<8x128xi1>
    %107 = arith.select %106, %63, %29 : vector<8x128xi1>, vector<8x128xf32>
    %c0_57 = arith.constant 0 : index
    %c0_58 = arith.constant 0 : index
    %108 = vector.load %arg13[%c0_57, %c0_58] : memref<8x128xf32, #tpu.memory_space<vmem>>, vector<8x128xf32>
    tpu.vector_store %arg13[%c0_57, %c0_58], %107 {strides = array<i32>} : memref<8x128xf32, #tpu.memory_space<vmem>>, vector<8x128xf32>,
    %109 = vector.shape_cast %100 : vector<8x1xi1> to vector<8x1xi1>
    %110 = vector.broadcast %109 : vector<8x1xi1> to vector<8x128xi1>
    %111 = arith.select %110, %90, %28 : vector<8x128xi1>, vector<8x128xf32>
    %c0_59 = arith.constant 0 : index
    %c0_60 = arith.constant 0 : index
    %112 = vector.load %arg12[%c0_59, %c0_60] : memref<8x128xf32, #tpu.memory_space<vmem>>, vector<8x128xf32>
    tpu.vector_store %arg12[%c0_59, %c0_60], %111 {strides = array<i32>} : memref<8x128xf32, #tpu.memory_space<vmem>>, vector<8x128xf32>,
    %113 = vector.shape_cast %100 : vector<8x1xi1> to vector<8x1xi1>
    %114 = vector.broadcast %113 : vector<8x1xi1> to vector<8x128xi1>
    %115 = arith.select %114, %88, %30 : vector<8x128xi1>, vector<8x128xf32>
    %c0_61 = arith.constant 0 : index
    %c0_62 = arith.constant 0 : index
    %116 = vector.load %arg14[%c0_61, %c0_62] : memref<8x128xf32, #tpu.memory_space<vmem>>, vector<8x128xf32>
    tpu.vector_store %arg14[%c0_61, %c0_62], %115 {strides = array<i32>} : memref<8x128xf32, #tpu.memory_space<vmem>>, vector<8x128xf32>,
    %cst_63 = arith.constant 0.000000e+00 : f32
    %117 = vector.shape_cast %95 : vector<8x1xi1> to vector<8x1xi1>
    %118 = vector.broadcast %117 : vector<8x1xi1> to vector<8x128xi1>
    %119 = vector.broadcast %cst_63 : f32 to vector<8x128xf32>
    %120 = arith.select %118, %65, %119 : vector<8x128xi1>, vector<8x128xf32>
    %121 = arith.index_cast %c0_i32 : i32 to index
    %c0_64 = arith.constant 0 : index
    %c0_65 = arith.constant 0 : index
    %122 = vector.load %arg9[%121, %c0_64, %c0_65] : memref<8x8x128xf32, #tpu.memory_space<vmem>>, vector<1x8x128xf32>
    %123 = vector.shape_cast %122 : vector<1x8x128xf32> to vector<8x128xf32>
    %124 = vector.shape_cast %120 : vector<8x128xf32> to vector<1x8x128xf32>
    tpu.vector_store %arg9[%121, %c0_64, %c0_65], %124 {strides = array<i32>} : memref<8x8x128xf32, #tpu.memory_space<vmem>>, vector<1x8x128xf32>,
    %cst_66 = arith.constant 0.000000e+00 : f32
    %125 = vector.shape_cast %100 : vector<8x1xi1> to vector<8x1xi1>
    %126 = vector.broadcast %125 : vector<8x1xi1> to vector<8x128xi1>
    %127 = vector.broadcast %cst_66 : f32 to vector<8x128xf32>
    %128 = arith.select %126, %90, %127 : vector<8x128xi1>, vector<8x128xf32>
    %129 = arith.index_cast %22 : i32 to index
    %c0_67 = arith.constant 0 : index
    %c0_68 = arith.constant 0 : index
    %130 = vector.load %arg10[%129, %c0_67, %c0_68] : memref<8x8x128xf32, #tpu.memory_space<vmem>>, vector<1x8x128xf32>
    %131 = vector.shape_cast %130 : vector<1x8x128xf32> to vector<8x128xf32>
    %132 = vector.shape_cast %128 : vector<8x128xf32> to vector<1x8x128xf32>
    tpu.vector_store %arg10[%129, %c0_67, %c0_68], %132 {strides = array<i32>} : memref<8x8x128xf32, #tpu.memory_space<vmem>>, vector<1x8x128xf32>,
    %c1_i32 = arith.constant 1 : i32
    %c7_i32_69 = arith.constant 7 : i32
    %133 = arith.subi %c7_i32_69, %c1_i32 : i32
    %c8_i32_70 = arith.constant 8 : i32
    %134 = arith.muli %c1_i32, %c8_i32_70 : i32
    %135 = tpu.assume_multiple %134, 8 : i32
    %c8_i32_71 = arith.constant 8 : i32
    %136 = arith.muli %133, %c8_i32_71 : i32
    %137 = tpu.assume_multiple %136, 8 : i32
    %c0_72 = arith.constant 0 : index
    %c0_73 = arith.constant 0 : index
    %138 = vector.load %arg11[%c0_72, %c0_73] : memref<8x128xf32, #tpu.memory_space<vmem>>, vector<8x128xf32>
    %c0_74 = arith.constant 0 : index
    %c0_75 = arith.constant 0 : index
    %139 = vector.load %arg12[%c0_74, %c0_75] : memref<8x128xf32, #tpu.memory_space<vmem>>, vector<8x128xf32>
    %c0_76 = arith.constant 0 : index
    %c0_77 = arith.constant 0 : index
    %140 = vector.load %arg13[%c0_76, %c0_77] : memref<8x128xf32, #tpu.memory_space<vmem>>, vector<8x128xf32>
    %c0_78 = arith.constant 0 : index
    %c0_79 = arith.constant 0 : index
    %141 = vector.load %arg14[%c0_78, %c0_79] : memref<8x128xf32, #tpu.memory_space<vmem>>, vector<8x128xf32>
    %142 = arith.index_cast %135 : i32 to index
    %c0_80 = arith.constant 0 : index
    %143 = vector.load %arg15[%142, %c0_80] : memref<64x512xf32, #tpu.memory_space<vmem>>, vector<8x512xf32>
    %c0_81 = arith.constant 0 : index
    %c0_82 = arith.constant 0 : index
    %144 = vector.load %arg5[%c0_81, %c0_82] : memref<128x512xf32, #tpu.memory_space<vmem>>, vector<128x512xf32>
    %cst_83 = arith.constant dense<0.000000e+00> : vector<8x512xf32>
    %145 = tpu.matmul %138, %144, %cst_83 {dimension_numbers = #tpu.dot_dimension_numbers<[1], [0], [0], [1], [0, 0, 1, 1], [], []>} : vector<8x128xf32>, vector<128x512xf32>, vector<8x512xf32> -> vector<8x512xf32>
    %146 = arith.addf %143, %145 : vector<8x512xf32>
    %147 = arith.index_cast %137 : i32 to index
    %c0_84 = arith.constant 0 : index
    %148 = vector.load %arg16[%147, %c0_84] : memref<64x512xf32, #tpu.memory_space<vmem>>, vector<8x512xf32>
    %c0_85 = arith.constant 0 : index
    %c0_86 = arith.constant 0 : index
    %149 = vector.load %arg6[%c0_85, %c0_86] : memref<128x512xf32, #tpu.memory_space<vmem>>, vector<128x512xf32>
    %cst_87 = arith.constant dense<0.000000e+00> : vector<8x512xf32>
    %150 = tpu.matmul %139, %149, %cst_87 {dimension_numbers = #tpu.dot_dimension_numbers<[1], [0], [0], [1], [0, 0, 1, 1], [], []>} : vector<8x128xf32>, vector<128x512xf32>, vector<8x512xf32> -> vector<8x512xf32>
    %151 = arith.addf %148, %150 : vector<8x512xf32>
    %152 = vector.extract_strided_slice %146 {offsets = [0, 0], sizes = [8, 128], strides = [1, 1]} : vector<8x512xf32> to vector<8x128xf32>
    %153 = arith.negf %152 : vector<8x128xf32>
    %154 = math.exp %153 : vector<8x128xf32>
    %cst_88 = arith.constant 1.000000e+00 : f32
    %155 = vector.broadcast %cst_88 : f32 to vector<8x128xf32>
    %156 = arith.addf %155, %154 : vector<8x128xf32>
    %157 = arith.divf %155, %156 : vector<8x128xf32>
    %158 = vector.extract_strided_slice %146 {offsets = [0, 128], sizes = [8, 128], strides = [1, 1]} : vector<8x512xf32> to vector<8x128xf32>
    %159 = arith.negf %158 : vector<8x128xf32>
    %160 = math.exp %159 : vector<8x128xf32>
    %cst_89 = arith.constant 1.000000e+00 : f32
    %161 = vector.broadcast %cst_89 : f32 to vector<8x128xf32>
    %162 = arith.addf %161, %160 : vector<8x128xf32>
    %163 = arith.divf %161, %162 : vector<8x128xf32>
    %164 = vector.extract_strided_slice %146 {offsets = [0, 256], sizes = [8, 128], strides = [1, 1]} : vector<8x512xf32> to vector<8x128xf32>
    %165 = math.tanh %164 : vector<8x128xf32>
    %166 = vector.extract_strided_slice %146 {offsets = [0, 384], sizes = [8, 128], strides = [1, 1]} : vector<8x512xf32> to vector<8x128xf32>
    %167 = arith.negf %166 : vector<8x128xf32>
    %168 = math.exp %167 : vector<8x128xf32>
    %cst_90 = arith.constant 1.000000e+00 : f32
    %169 = vector.broadcast %cst_90 : f32 to vector<8x128xf32>
    %170 = arith.addf %169, %168 : vector<8x128xf32>
    %171 = arith.divf %169, %170 : vector<8x128xf32>
    %172 = arith.mulf %163, %140 : vector<8x128xf32>
    %173 = arith.mulf %157, %165 : vector<8x128xf32>
    %174 = arith.addf %172, %173 : vector<8x128xf32>
    %175 = math.tanh %174 : vector<8x128xf32>
    %176 = arith.mulf %171, %175 : vector<8x128xf32>
    %177 = vector.extract_strided_slice %151 {offsets = [0, 0], sizes = [8, 128], strides = [1, 1]} : vector<8x512xf32> to vector<8x128xf32>
    %178 = arith.negf %177 : vector<8x128xf32>
    %179 = math.exp %178 : vector<8x128xf32>
    %cst_91 = arith.constant 1.000000e+00 : f32
    %180 = vector.broadcast %cst_91 : f32 to vector<8x128xf32>
    %181 = arith.addf %180, %179 : vector<8x128xf32>
    %182 = arith.divf %180, %181 : vector<8x128xf32>
    %183 = vector.extract_strided_slice %151 {offsets = [0, 128], sizes = [8, 128], strides = [1, 1]} : vector<8x512xf32> to vector<8x128xf32>
    %184 = arith.negf %183 : vector<8x128xf32>
    %185 = math.exp %184 : vector<8x128xf32>
    %cst_92 = arith.constant 1.000000e+00 : f32
    %186 = vector.broadcast %cst_92 : f32 to vector<8x128xf32>
    %187 = arith.addf %186, %185 : vector<8x128xf32>
    %188 = arith.divf %186, %187 : vector<8x128xf32>
    %189 = vector.extract_strided_slice %151 {offsets = [0, 256], sizes = [8, 128], strides = [1, 1]} : vector<8x512xf32> to vector<8x128xf32>
    %190 = math.tanh %189 : vector<8x128xf32>
    %191 = vector.extract_strided_slice %151 {offsets = [0, 384], sizes = [8, 128], strides = [1, 1]} : vector<8x512xf32> to vector<8x128xf32>
    %192 = arith.negf %191 : vector<8x128xf32>
    %193 = math.exp %192 : vector<8x128xf32>
    %cst_93 = arith.constant 1.000000e+00 : f32
    %194 = vector.broadcast %cst_93 : f32 to vector<8x128xf32>
    %195 = arith.addf %194, %193 : vector<8x128xf32>
    %196 = arith.divf %194, %195 : vector<8x128xf32>
    %197 = arith.mulf %188, %141 : vector<8x128xf32>
    %198 = arith.mulf %182, %190 : vector<8x128xf32>
    %199 = arith.addf %197, %198 : vector<8x128xf32>
    %200 = math.tanh %199 : vector<8x128xf32>
    %201 = arith.mulf %196, %200 : vector<8x128xf32>
    %202 = arith.index_cast %c1_i32 : i32 to index
    %c0_94 = arith.constant 0 : index
    %c0_95 = arith.constant 0 : index
    %203 = vector.load %arg2[%202, %c0_94, %c0_95] : memref<8x8x1xf32, #tpu.memory_space<vmem>>, vector<1x8x1xf32>
    %204 = vector.shape_cast %203 : vector<1x8x1xf32> to vector<8x1xf32>
    %cst_96 = arith.constant 0.000000e+00 : f32
    %205 = vector.broadcast %cst_96 : f32 to vector<8x1xf32>
    %206 = arith.cmpf ogt, %204, %205 : vector<8x1xf32>
    %207 = arith.index_cast %133 : i32 to index
    %c0_97 = arith.constant 0 : index
    %c0_98 = arith.constant 0 : index
    %208 = vector.load %arg2[%207, %c0_97, %c0_98] : memref<8x8x1xf32, #tpu.memory_space<vmem>>, vector<1x8x1xf32>
    %209 = vector.shape_cast %208 : vector<1x8x1xf32> to vector<8x1xf32>
    %cst_99 = arith.constant 0.000000e+00 : f32
    %210 = vector.broadcast %cst_99 : f32 to vector<8x1xf32>
    %211 = arith.cmpf ogt, %209, %210 : vector<8x1xf32>
    %212 = vector.shape_cast %206 : vector<8x1xi1> to vector<8x1xi1>
    %213 = vector.broadcast %212 : vector<8x1xi1> to vector<8x128xi1>
    %214 = arith.select %213, %176, %138 : vector<8x128xi1>, vector<8x128xf32>
    %c0_100 = arith.constant 0 : index
    %c0_101 = arith.constant 0 : index
    %215 = vector.load %arg11[%c0_100, %c0_101] : memref<8x128xf32, #tpu.memory_space<vmem>>, vector<8x128xf32>
    tpu.vector_store %arg11[%c0_100, %c0_101], %214 {strides = array<i32>} : memref<8x128xf32, #tpu.memory_space<vmem>>, vector<8x128xf32>,
    %216 = vector.shape_cast %206 : vector<8x1xi1> to vector<8x1xi1>
    %217 = vector.broadcast %216 : vector<8x1xi1> to vector<8x128xi1>
    %218 = arith.select %217, %174, %140 : vector<8x128xi1>, vector<8x128xf32>
    %c0_102 = arith.constant 0 : index
    %c0_103 = arith.constant 0 : index
    %219 = vector.load %arg13[%c0_102, %c0_103] : memref<8x128xf32, #tpu.memory_space<vmem>>, vector<8x128xf32>
    tpu.vector_store %arg13[%c0_102, %c0_103], %218 {strides = array<i32>} : memref<8x128xf32, #tpu.memory_space<vmem>>, vector<8x128xf32>,
    %220 = vector.shape_cast %211 : vector<8x1xi1> to vector<8x1xi1>
    %221 = vector.broadcast %220 : vector<8x1xi1> to vector<8x128xi1>
    %222 = arith.select %221, %201, %139 : vector<8x128xi1>, vector<8x128xf32>
    %c0_104 = arith.constant 0 : index
    %c0_105 = arith.constant 0 : index
    %223 = vector.load %arg12[%c0_104, %c0_105] : memref<8x128xf32, #tpu.memory_space<vmem>>, vector<8x128xf32>
    tpu.vector_store %arg12[%c0_104, %c0_105], %222 {strides = array<i32>} : memref<8x128xf32, #tpu.memory_space<vmem>>, vector<8x128xf32>,
    %224 = vector.shape_cast %211 : vector<8x1xi1> to vector<8x1xi1>
    %225 = vector.broadcast %224 : vector<8x1xi1> to vector<8x128xi1>
    %226 = arith.select %225, %199, %141 : vector<8x128xi1>, vector<8x128xf32>
    %c0_106 = arith.constant 0 : index
    %c0_107 = arith.constant 0 : index
    %227 = vector.load %arg14[%c0_106, %c0_107] : memref<8x128xf32, #tpu.memory_space<vmem>>, vector<8x128xf32>
    tpu.vector_store %arg14[%c0_106, %c0_107], %226 {strides = array<i32>} : memref<8x128xf32, #tpu.memory_space<vmem>>, vector<8x128xf32>,
    %cst_108 = arith.constant 0.000000e+00 : f32
    %228 = vector.shape_cast %206 : vector<8x1xi1> to vector<8x1xi1>
    %229 = vector.broadcast %228 : vector<8x1xi1> to vector<8x128xi1>
    %230 = vector.broadcast %cst_108 : f32 to vector<8x128xf32>
    %231 = arith.select %229, %176, %230 : vector<8x128xi1>, vector<8x128xf32>
    %232 = arith.index_cast %c1_i32 : i32 to index
    %c0_109 = arith.constant 0 : index
    %c0_110 = arith.constant 0 : index
    %233 = vector.load %arg9[%232, %c0_109, %c0_110] : memref<8x8x128xf32, #tpu.memory_space<vmem>>, vector<1x8x128xf32>
    %234 = vector.shape_cast %233 : vector<1x8x128xf32> to vector<8x128xf32>
    %235 = vector.shape_cast %231 : vector<8x128xf32> to vector<1x8x128xf32>
    tpu.vector_store %arg9[%232, %c0_109, %c0_110], %235 {strides = array<i32>} : memref<8x8x128xf32, #tpu.memory_space<vmem>>, vector<1x8x128xf32>,
    %cst_111 = arith.constant 0.000000e+00 : f32
    %236 = vector.shape_cast %211 : vector<8x1xi1> to vector<8x1xi1>
    %237 = vector.broadcast %236 : vector<8x1xi1> to vector<8x128xi1>
    %238 = vector.broadcast %cst_111 : f32 to vector<8x128xf32>
    %239 = arith.select %237, %201, %238 : vector<8x128xi1>, vector<8x128xf32>
    %240 = arith.index_cast %133 : i32 to index
    %c0_112 = arith.constant 0 : index
    %c0_113 = arith.constant 0 : index
    %241 = vector.load %arg10[%240, %c0_112, %c0_113] : memref<8x8x128xf32, #tpu.memory_space<vmem>>, vector<1x8x128xf32>
    %242 = vector.shape_cast %241 : vector<1x8x128xf32> to vector<8x128xf32>
    %243 = vector.shape_cast %239 : vector<8x128xf32> to vector<1x8x128xf32>
    tpu.vector_store %arg10[%240, %c0_112, %c0_113], %243 {strides = array<i32>} : memref<8x8x128xf32, #tpu.memory_space<vmem>>, vector<1x8x128xf32>,
    %c2_i32 = arith.constant 2 : i32
    %c7_i32_114 = arith.constant 7 : i32
    %244 = arith.subi %c7_i32_114, %c2_i32 : i32
    %c8_i32_115 = arith.constant 8 : i32
    %245 = arith.muli %c2_i32, %c8_i32_115 : i32
    %246 = tpu.assume_multiple %245, 8 : i32
    %c8_i32_116 = arith.constant 8 : i32
    %247 = arith.muli %244, %c8_i32_116 : i32
    %248 = tpu.assume_multiple %247, 8 : i32
    %c0_117 = arith.constant 0 : index
    %c0_118 = arith.constant 0 : index
    %249 = vector.load %arg11[%c0_117, %c0_118] : memref<8x128xf32, #tpu.memory_space<vmem>>, vector<8x128xf32>
    %c0_119 = arith.constant 0 : index
    %c0_120 = arith.constant 0 : index
    %250 = vector.load %arg12[%c0_119, %c0_120] : memref<8x128xf32, #tpu.memory_space<vmem>>, vector<8x128xf32>
    %c0_121 = arith.constant 0 : index
    %c0_122 = arith.constant 0 : index
    %251 = vector.load %arg13[%c0_121, %c0_122] : memref<8x128xf32, #tpu.memory_space<vmem>>, vector<8x128xf32>
    %c0_123 = arith.constant 0 : index
    %c0_124 = arith.constant 0 : index
    %252 = vector.load %arg14[%c0_123, %c0_124] : memref<8x128xf32, #tpu.memory_space<vmem>>, vector<8x128xf32>
    %253 = arith.index_cast %246 : i32 to index
    %c0_125 = arith.constant 0 : index
    %254 = vector.load %arg15[%253, %c0_125] : memref<64x512xf32, #tpu.memory_space<vmem>>, vector<8x512xf32>
    %c0_126 = arith.constant 0 : index
    %c0_127 = arith.constant 0 : index
    %255 = vector.load %arg5[%c0_126, %c0_127] : memref<128x512xf32, #tpu.memory_space<vmem>>, vector<128x512xf32>
    %cst_128 = arith.constant dense<0.000000e+00> : vector<8x512xf32>
    %256 = tpu.matmul %249, %255, %cst_128 {dimension_numbers = #tpu.dot_dimension_numbers<[1], [0], [0], [1], [0, 0, 1, 1], [], []>} : vector<8x128xf32>, vector<128x512xf32>, vector<8x512xf32> -> vector<8x512xf32>
    %257 = arith.addf %254, %256 : vector<8x512xf32>
    %258 = arith.index_cast %248 : i32 to index
    %c0_129 = arith.constant 0 : index
    %259 = vector.load %arg16[%258, %c0_129] : memref<64x512xf32, #tpu.memory_space<vmem>>, vector<8x512xf32>
    %c0_130 = arith.constant 0 : index
    %c0_131 = arith.constant 0 : index
    %260 = vector.load %arg6[%c0_130, %c0_131] : memref<128x512xf32, #tpu.memory_space<vmem>>, vector<128x512xf32>
    %cst_132 = arith.constant dense<0.000000e+00> : vector<8x512xf32>
    %261 = tpu.matmul %250, %260, %cst_132 {dimension_numbers = #tpu.dot_dimension_numbers<[1], [0], [0], [1], [0, 0, 1, 1], [], []>} : vector<8x128xf32>, vector<128x512xf32>, vector<8x512xf32> -> vector<8x512xf32>
    %262 = arith.addf %259, %261 : vector<8x512xf32>
    %263 = vector.extract_strided_slice %257 {offsets = [0, 0], sizes = [8, 128], strides = [1, 1]} : vector<8x512xf32> to vector<8x128xf32>
    %264 = arith.negf %263 : vector<8x128xf32>
    %265 = math.exp %264 : vector<8x128xf32>
    %cst_133 = arith.constant 1.000000e+00 : f32
    %266 = vector.broadcast %cst_133 : f32 to vector<8x128xf32>
    %267 = arith.addf %266, %265 : vector<8x128xf32>
    %268 = arith.divf %266, %267 : vector<8x128xf32>
    %269 = vector.extract_strided_slice %257 {offsets = [0, 128], sizes = [8, 128], strides = [1, 1]} : vector<8x512xf32> to vector<8x128xf32>
    %270 = arith.negf %269 : vector<8x128xf32>
    %271 = math.exp %270 : vector<8x128xf32>
    %cst_134 = arith.constant 1.000000e+00 : f32
    %272 = vector.broadcast %cst_134 : f32 to vector<8x128xf32>
    %273 = arith.addf %272, %271 : vector<8x128xf32>
    %274 = arith.divf %272, %273 : vector<8x128xf32>
    %275 = vector.extract_strided_slice %257 {offsets = [0, 256], sizes = [8, 128], strides = [1, 1]} : vector<8x512xf32> to vector<8x128xf32>
    %276 = math.tanh %275 : vector<8x128xf32>
    %277 = vector.extract_strided_slice %257 {offsets = [0, 384], sizes = [8, 128], strides = [1, 1]} : vector<8x512xf32> to vector<8x128xf32>
    %278 = arith.negf %277 : vector<8x128xf32>
    %279 = math.exp %278 : vector<8x128xf32>
    %cst_135 = arith.constant 1.000000e+00 : f32
    %280 = vector.broadcast %cst_135 : f32 to vector<8x128xf32>
    %281 = arith.addf %280, %279 : vector<8x128xf32>
    %282 = arith.divf %280, %281 : vector<8x128xf32>
    %283 = arith.mulf %274, %251 : vector<8x128xf32>
    %284 = arith.mulf %268, %276 : vector<8x128xf32>
    %285 = arith.addf %283, %284 : vector<8x128xf32>
    %286 = math.tanh %285 : vector<8x128xf32>
    %287 = arith.mulf %282, %286 : vector<8x128xf32>
    %288 = vector.extract_strided_slice %262 {offsets = [0, 0], sizes = [8, 128], strides = [1, 1]} : vector<8x512xf32> to vector<8x128xf32>
    %289 = arith.negf %288 : vector<8x128xf32>
    %290 = math.exp %289 : vector<8x128xf32>
    %cst_136 = arith.constant 1.000000e+00 : f32
    %291 = vector.broadcast %cst_136 : f32 to vector<8x128xf32>
    %292 = arith.addf %291, %290 : vector<8x128xf32>
    %293 = arith.divf %291, %292 : vector<8x128xf32>
    %294 = vector.extract_strided_slice %262 {offsets = [0, 128], sizes = [8, 128], strides = [1, 1]} : vector<8x512xf32> to vector<8x128xf32>
    %295 = arith.negf %294 : vector<8x128xf32>
    %296 = math.exp %295 : vector<8x128xf32>
    %cst_137 = arith.constant 1.000000e+00 : f32
    %297 = vector.broadcast %cst_137 : f32 to vector<8x128xf32>
    %298 = arith.addf %297, %296 : vector<8x128xf32>
    %299 = arith.divf %297, %298 : vector<8x128xf32>
    %300 = vector.extract_strided_slice %262 {offsets = [0, 256], sizes = [8, 128], strides = [1, 1]} : vector<8x512xf32> to vector<8x128xf32>
    %301 = math.tanh %300 : vector<8x128xf32>
    %302 = vector.extract_strided_slice %262 {offsets = [0, 384], sizes = [8, 128], strides = [1, 1]} : vector<8x512xf32> to vector<8x128xf32>
    %303 = arith.negf %302 : vector<8x128xf32>
    %304 = math.exp %303 : vector<8x128xf32>
    %cst_138 = arith.constant 1.000000e+00 : f32
    %305 = vector.broadcast %cst_138 : f32 to vector<8x128xf32>
    %306 = arith.addf %305, %304 : vector<8x128xf32>
    %307 = arith.divf %305, %306 : vector<8x128xf32>
    %308 = arith.mulf %299, %252 : vector<8x128xf32>
    %309 = arith.mulf %293, %301 : vector<8x128xf32>
    %310 = arith.addf %308, %309 : vector<8x128xf32>
    %311 = math.tanh %310 : vector<8x128xf32>
    %312 = arith.mulf %307, %311 : vector<8x128xf32>
    %313 = arith.index_cast %c2_i32 : i32 to index
    %c0_139 = arith.constant 0 : index
    %c0_140 = arith.constant 0 : index
    %314 = vector.load %arg2[%313, %c0_139, %c0_140] : memref<8x8x1xf32, #tpu.memory_space<vmem>>, vector<1x8x1xf32>
    %315 = vector.shape_cast %314 : vector<1x8x1xf32> to vector<8x1xf32>
    %cst_141 = arith.constant 0.000000e+00 : f32
    %316 = vector.broadcast %cst_141 : f32 to vector<8x1xf32>
    %317 = arith.cmpf ogt, %315, %316 : vector<8x1xf32>
    %318 = arith.index_cast %244 : i32 to index
    %c0_142 = arith.constant 0 : index
    %c0_143 = arith.constant 0 : index
    %319 = vector.load %arg2[%318, %c0_142, %c0_143] : memref<8x8x1xf32, #tpu.memory_space<vmem>>, vector<1x8x1xf32>
    %320 = vector.shape_cast %319 : vector<1x8x1xf32> to vector<8x1xf32>
    %cst_144 = arith.constant 0.000000e+00 : f32
    %321 = vector.broadcast %cst_144 : f32 to vector<8x1xf32>
    %322 = arith.cmpf ogt, %320, %321 : vector<8x1xf32>
    %323 = vector.shape_cast %317 : vector<8x1xi1> to vector<8x1xi1>
    %324 = vector.broadcast %323 : vector<8x1xi1> to vector<8x128xi1>
    %325 = arith.select %324, %287, %249 : vector<8x128xi1>, vector<8x128xf32>
    %c0_145 = arith.constant 0 : index
    %c0_146 = arith.constant 0 : index
    %326 = vector.load %arg11[%c0_145, %c0_146] : memref<8x128xf32, #tpu.memory_space<vmem>>, vector<8x128xf32>
    tpu.vector_store %arg11[%c0_145, %c0_146], %325 {strides = array<i32>} : memref<8x128xf32, #tpu.memory_space<vmem>>, vector<8x128xf32>,
    %327 = vector.shape_cast %317 : vector<8x1xi1> to vector<8x1xi1>
    %328 = vector.broadcast %327 : vector<8x1xi1> to vector<8x128xi1>
    %329 = arith.select %328, %285, %251 : vector<8x128xi1>, vector<8x128xf32>
    %c0_147 = arith.constant 0 : index
    %c0_148 = arith.constant 0 : index
    %330 = vector.load %arg13[%c0_147, %c0_148] : memref<8x128xf32, #tpu.memory_space<vmem>>, vector<8x128xf32>
    tpu.vector_store %arg13[%c0_147, %c0_148], %329 {strides = array<i32>} : memref<8x128xf32, #tpu.memory_space<vmem>>, vector<8x128xf32>,
    %331 = vector.shape_cast %322 : vector<8x1xi1> to vector<8x1xi1>
    %332 = vector.broadcast %331 : vector<8x1xi1> to vector<8x128xi1>
    %333 = arith.select %332, %312, %250 : vector<8x128xi1>, vector<8x128xf32>
    %c0_149 = arith.constant 0 : index
    %c0_150 = arith.constant 0 : index
    %334 = vector.load %arg12[%c0_149, %c0_150] : memref<8x128xf32, #tpu.memory_space<vmem>>, vector<8x128xf32>
    tpu.vector_store %arg12[%c0_149, %c0_150], %333 {strides = array<i32>} : memref<8x128xf32, #tpu.memory_space<vmem>>, vector<8x128xf32>,
    %335 = vector.shape_cast %322 : vector<8x1xi1> to vector<8x1xi1>
    %336 = vector.broadcast %335 : vector<8x1xi1> to vector<8x128xi1>
    %337 = arith.select %336, %310, %252 : vector<8x128xi1>, vector<8x128xf32>
    %c0_151 = arith.constant 0 : index
    %c0_152 = arith.constant 0 : index
    %338 = vector.load %arg14[%c0_151, %c0_152] : memref<8x128xf32, #tpu.memory_space<vmem>>, vector<8x128xf32>
    tpu.vector_store %arg14[%c0_151, %c0_152], %337 {strides = array<i32>} : memref<8x128xf32, #tpu.memory_space<vmem>>, vector<8x128xf32>,
    %cst_153 = arith.constant 0.000000e+00 : f32
    %339 = vector.shape_cast %317 : vector<8x1xi1> to vector<8x1xi1>
    %340 = vector.broadcast %339 : vector<8x1xi1> to vector<8x128xi1>
    %341 = vector.broadcast %cst_153 : f32 to vector<8x128xf32>
    %342 = arith.select %340, %287, %341 : vector<8x128xi1>, vector<8x128xf32>
    %343 = arith.index_cast %c2_i32 : i32 to index
    %c0_154 = arith.constant 0 : index
    %c0_155 = arith.constant 0 : index
    %344 = vector.load %arg9[%343, %c0_154, %c0_155] : memref<8x8x128xf32, #tpu.memory_space<vmem>>, vector<1x8x128xf32>
    %345 = vector.shape_cast %344 : vector<1x8x128xf32> to vector<8x128xf32>
    %346 = vector.shape_cast %342 : vector<8x128xf32> to vector<1x8x128xf32>
    tpu.vector_store %arg9[%343, %c0_154, %c0_155], %346 {strides = array<i32>} : memref<8x8x128xf32, #tpu.memory_space<vmem>>, vector<1x8x128xf32>,
    %cst_156 = arith.constant 0.000000e+00 : f32
    %347 = vector.shape_cast %322 : vector<8x1xi1> to vector<8x1xi1>
    %348 = vector.broadcast %347 : vector<8x1xi1> to vector<8x128xi1>
    %349 = vector.broadcast %cst_156 : f32 to vector<8x128xf32>
    %350 = arith.select %348, %312, %349 : vector<8x128xi1>, vector<8x128xf32>
    %351 = arith.index_cast %244 : i32 to index
    %c0_157 = arith.constant 0 : index
    %c0_158 = arith.constant 0 : index
    %352 = vector.load %arg10[%351, %c0_157, %c0_158] : memref<8x8x128xf32, #tpu.memory_space<vmem>>, vector<1x8x128xf32>
    %353 = vector.shape_cast %352 : vector<1x8x128xf32> to vector<8x128xf32>
    %354 = vector.shape_cast %350 : vector<8x128xf32> to vector<1x8x128xf32>
    tpu.vector_store %arg10[%351, %c0_157, %c0_158], %354 {strides = array<i32>} : memref<8x8x128xf32, #tpu.memory_space<vmem>>, vector<1x8x128xf32>,
    %c3_i32 = arith.constant 3 : i32
    %c7_i32_159 = arith.constant 7 : i32
    %355 = arith.subi %c7_i32_159, %c3_i32 : i32
    %c8_i32_160 = arith.constant 8 : i32
    %356 = arith.muli %c3_i32, %c8_i32_160 : i32
    %357 = tpu.assume_multiple %356, 8 : i32
    %c8_i32_161 = arith.constant 8 : i32
    %358 = arith.muli %355, %c8_i32_161 : i32
    %359 = tpu.assume_multiple %358, 8 : i32
    %c0_162 = arith.constant 0 : index
    %c0_163 = arith.constant 0 : index
    %360 = vector.load %arg11[%c0_162, %c0_163] : memref<8x128xf32, #tpu.memory_space<vmem>>, vector<8x128xf32>
    %c0_164 = arith.constant 0 : index
    %c0_165 = arith.constant 0 : index
    %361 = vector.load %arg12[%c0_164, %c0_165] : memref<8x128xf32, #tpu.memory_space<vmem>>, vector<8x128xf32>
    %c0_166 = arith.constant 0 : index
    %c0_167 = arith.constant 0 : index
    %362 = vector.load %arg13[%c0_166, %c0_167] : memref<8x128xf32, #tpu.memory_space<vmem>>, vector<8x128xf32>
    %c0_168 = arith.constant 0 : index
    %c0_169 = arith.constant 0 : index
    %363 = vector.load %arg14[%c0_168, %c0_169] : memref<8x128xf32, #tpu.memory_space<vmem>>, vector<8x128xf32>
    %364 = arith.index_cast %357 : i32 to index
    %c0_170 = arith.constant 0 : index
    %365 = vector.load %arg15[%364, %c0_170] : memref<64x512xf32, #tpu.memory_space<vmem>>, vector<8x512xf32>
    %c0_171 = arith.constant 0 : index
    %c0_172 = arith.constant 0 : index
    %366 = vector.load %arg5[%c0_171, %c0_172] : memref<128x512xf32, #tpu.memory_space<vmem>>, vector<128x512xf32>
    %cst_173 = arith.constant dense<0.000000e+00> : vector<8x512xf32>
    %367 = tpu.matmul %360, %366, %cst_173 {dimension_numbers = #tpu.dot_dimension_numbers<[1], [0], [0], [1], [0, 0, 1, 1], [], []>} : vector<8x128xf32>, vector<128x512xf32>, vector<8x512xf32> -> vector<8x512xf32>
    %368 = arith.addf %365, %367 : vector<8x512xf32>
    %369 = arith.index_cast %359 : i32 to index
    %c0_174 = arith.constant 0 : index
    %370 = vector.load %arg16[%369, %c0_174] : memref<64x512xf32, #tpu.memory_space<vmem>>, vector<8x512xf32>
    %c0_175 = arith.constant 0 : index
    %c0_176 = arith.constant 0 : index
    %371 = vector.load %arg6[%c0_175, %c0_176] : memref<128x512xf32, #tpu.memory_space<vmem>>, vector<128x512xf32>
    %cst_177 = arith.constant dense<0.000000e+00> : vector<8x512xf32>
    %372 = tpu.matmul %361, %371, %cst_177 {dimension_numbers = #tpu.dot_dimension_numbers<[1], [0], [0], [1], [0, 0, 1, 1], [], []>} : vector<8x128xf32>, vector<128x512xf32>, vector<8x512xf32> -> vector<8x512xf32>
    %373 = arith.addf %370, %372 : vector<8x512xf32>
    %374 = vector.extract_strided_slice %368 {offsets = [0, 0], sizes = [8, 128], strides = [1, 1]} : vector<8x512xf32> to vector<8x128xf32>
    %375 = arith.negf %374 : vector<8x128xf32>
    %376 = math.exp %375 : vector<8x128xf32>
    %cst_178 = arith.constant 1.000000e+00 : f32
    %377 = vector.broadcast %cst_178 : f32 to vector<8x128xf32>
    %378 = arith.addf %377, %376 : vector<8x128xf32>
    %379 = arith.divf %377, %378 : vector<8x128xf32>
    %380 = vector.extract_strided_slice %368 {offsets = [0, 128], sizes = [8, 128], strides = [1, 1]} : vector<8x512xf32> to vector<8x128xf32>
    %381 = arith.negf %380 : vector<8x128xf32>
    %382 = math.exp %381 : vector<8x128xf32>
    %cst_179 = arith.constant 1.000000e+00 : f32
    %383 = vector.broadcast %cst_179 : f32 to vector<8x128xf32>
    %384 = arith.addf %383, %382 : vector<8x128xf32>
    %385 = arith.divf %383, %384 : vector<8x128xf32>
    %386 = vector.extract_strided_slice %368 {offsets = [0, 256], sizes = [8, 128], strides = [1, 1]} : vector<8x512xf32> to vector<8x128xf32>
    %387 = math.tanh %386 : vector<8x128xf32>
    %388 = vector.extract_strided_slice %368 {offsets = [0, 384], sizes = [8, 128], strides = [1, 1]} : vector<8x512xf32> to vector<8x128xf32>
    %389 = arith.negf %388 : vector<8x128xf32>
    %390 = math.exp %389 : vector<8x128xf32>
    %cst_180 = arith.constant 1.000000e+00 : f32
    %391 = vector.broadcast %cst_180 : f32 to vector<8x128xf32>
    %392 = arith.addf %391, %390 : vector<8x128xf32>
    %393 = arith.divf %391, %392 : vector<8x128xf32>
    %394 = arith.mulf %385, %362 : vector<8x128xf32>
    %395 = arith.mulf %379, %387 : vector<8x128xf32>
    %396 = arith.addf %394, %395 : vector<8x128xf32>
    %397 = math.tanh %396 : vector<8x128xf32>
    %398 = arith.mulf %393, %397 : vector<8x128xf32>
    %399 = vector.extract_strided_slice %373 {offsets = [0, 0], sizes = [8, 128], strides = [1, 1]} : vector<8x512xf32> to vector<8x128xf32>
    %400 = arith.negf %399 : vector<8x128xf32>
    %401 = math.exp %400 : vector<8x128xf32>
    %cst_181 = arith.constant 1.000000e+00 : f32
    %402 = vector.broadcast %cst_181 : f32 to vector<8x128xf32>
    %403 = arith.addf %402, %401 : vector<8x128xf32>
    %404 = arith.divf %402, %403 : vector<8x128xf32>
    %405 = vector.extract_strided_slice %373 {offsets = [0, 128], sizes = [8, 128], strides = [1, 1]} : vector<8x512xf32> to vector<8x128xf32>
    %406 = arith.negf %405 : vector<8x128xf32>
    %407 = math.exp %406 : vector<8x128xf32>
    %cst_182 = arith.constant 1.000000e+00 : f32
    %408 = vector.broadcast %cst_182 : f32 to vector<8x128xf32>
    %409 = arith.addf %408, %407 : vector<8x128xf32>
    %410 = arith.divf %408, %409 : vector<8x128xf32>
    %411 = vector.extract_strided_slice %373 {offsets = [0, 256], sizes = [8, 128], strides = [1, 1]} : vector<8x512xf32> to vector<8x128xf32>
    %412 = math.tanh %411 : vector<8x128xf32>
    %413 = vector.extract_strided_slice %373 {offsets = [0, 384], sizes = [8, 128], strides = [1, 1]} : vector<8x512xf32> to vector<8x128xf32>
    %414 = arith.negf %413 : vector<8x128xf32>
    %415 = math.exp %414 : vector<8x128xf32>
    %cst_183 = arith.constant 1.000000e+00 : f32
    %416 = vector.broadcast %cst_183 : f32 to vector<8x128xf32>
    %417 = arith.addf %416, %415 : vector<8x128xf32>
    %418 = arith.divf %416, %417 : vector<8x128xf32>
    %419 = arith.mulf %410, %363 : vector<8x128xf32>
    %420 = arith.mulf %404, %412 : vector<8x128xf32>
    %421 = arith.addf %419, %420 : vector<8x128xf32>
    %422 = math.tanh %421 : vector<8x128xf32>
    %423 = arith.mulf %418, %422 : vector<8x128xf32>
    %424 = arith.index_cast %c3_i32 : i32 to index
    %c0_184 = arith.constant 0 : index
    %c0_185 = arith.constant 0 : index
    %425 = vector.load %arg2[%424, %c0_184, %c0_185] : memref<8x8x1xf32, #tpu.memory_space<vmem>>, vector<1x8x1xf32>
    %426 = vector.shape_cast %425 : vector<1x8x1xf32> to vector<8x1xf32>
    %cst_186 = arith.constant 0.000000e+00 : f32
    %427 = vector.broadcast %cst_186 : f32 to vector<8x1xf32>
    %428 = arith.cmpf ogt, %426, %427 : vector<8x1xf32>
    %429 = arith.index_cast %355 : i32 to index
    %c0_187 = arith.constant 0 : index
    %c0_188 = arith.constant 0 : index
    %430 = vector.load %arg2[%429, %c0_187, %c0_188] : memref<8x8x1xf32, #tpu.memory_space<vmem>>, vector<1x8x1xf32>
    %431 = vector.shape_cast %430 : vector<1x8x1xf32> to vector<8x1xf32>
    %cst_189 = arith.constant 0.000000e+00 : f32
    %432 = vector.broadcast %cst_189 : f32 to vector<8x1xf32>
    %433 = arith.cmpf ogt, %431, %432 : vector<8x1xf32>
    %434 = vector.shape_cast %428 : vector<8x1xi1> to vector<8x1xi1>
    %435 = vector.broadcast %434 : vector<8x1xi1> to vector<8x128xi1>
    %436 = arith.select %435, %398, %360 : vector<8x128xi1>, vector<8x128xf32>
    %c0_190 = arith.constant 0 : index
    %c0_191 = arith.constant 0 : index
    %437 = vector.load %arg11[%c0_190, %c0_191] : memref<8x128xf32, #tpu.memory_space<vmem>>, vector<8x128xf32>
    tpu.vector_store %arg11[%c0_190, %c0_191], %436 {strides = array<i32>} : memref<8x128xf32, #tpu.memory_space<vmem>>, vector<8x128xf32>,
    %438 = vector.shape_cast %428 : vector<8x1xi1> to vector<8x1xi1>
    %439 = vector.broadcast %438 : vector<8x1xi1> to vector<8x128xi1>
    %440 = arith.select %439, %396, %362 : vector<8x128xi1>, vector<8x128xf32>
    %c0_192 = arith.constant 0 : index
    %c0_193 = arith.constant 0 : index
    %441 = vector.load %arg13[%c0_192, %c0_193] : memref<8x128xf32, #tpu.memory_space<vmem>>, vector<8x128xf32>
    tpu.vector_store %arg13[%c0_192, %c0_193], %440 {strides = array<i32>} : memref<8x128xf32, #tpu.memory_space<vmem>>, vector<8x128xf32>,
    %442 = vector.shape_cast %433 : vector<8x1xi1> to vector<8x1xi1>
    %443 = vector.broadcast %442 : vector<8x1xi1> to vector<8x128xi1>
    %444 = arith.select %443, %423, %361 : vector<8x128xi1>, vector<8x128xf32>
    %c0_194 = arith.constant 0 : index
    %c0_195 = arith.constant 0 : index
    %445 = vector.load %arg12[%c0_194, %c0_195] : memref<8x128xf32, #tpu.memory_space<vmem>>, vector<8x128xf32>
    tpu.vector_store %arg12[%c0_194, %c0_195], %444 {strides = array<i32>} : memref<8x128xf32, #tpu.memory_space<vmem>>, vector<8x128xf32>,
    %446 = vector.shape_cast %433 : vector<8x1xi1> to vector<8x1xi1>
    %447 = vector.broadcast %446 : vector<8x1xi1> to vector<8x128xi1>
    %448 = arith.select %447, %421, %363 : vector<8x128xi1>, vector<8x128xf32>
    %c0_196 = arith.constant 0 : index
    %c0_197 = arith.constant 0 : index
    %449 = vector.load %arg14[%c0_196, %c0_197] : memref<8x128xf32, #tpu.memory_space<vmem>>, vector<8x128xf32>
    tpu.vector_store %arg14[%c0_196, %c0_197], %448 {strides = array<i32>} : memref<8x128xf32, #tpu.memory_space<vmem>>, vector<8x128xf32>,
    %cst_198 = arith.constant 0.000000e+00 : f32
    %450 = vector.shape_cast %428 : vector<8x1xi1> to vector<8x1xi1>
    %451 = vector.broadcast %450 : vector<8x1xi1> to vector<8x128xi1>
    %452 = vector.broadcast %cst_198 : f32 to vector<8x128xf32>
    %453 = arith.select %451, %398, %452 : vector<8x128xi1>, vector<8x128xf32>
    %454 = arith.index_cast %c3_i32 : i32 to index
    %c0_199 = arith.constant 0 : index
    %c0_200 = arith.constant 0 : index
    %455 = vector.load %arg9[%454, %c0_199, %c0_200] : memref<8x8x128xf32, #tpu.memory_space<vmem>>, vector<1x8x128xf32>
    %456 = vector.shape_cast %455 : vector<1x8x128xf32> to vector<8x128xf32>
    %457 = vector.shape_cast %453 : vector<8x128xf32> to vector<1x8x128xf32>
    tpu.vector_store %arg9[%454, %c0_199, %c0_200], %457 {strides = array<i32>} : memref<8x8x128xf32, #tpu.memory_space<vmem>>, vector<1x8x128xf32>,
    %cst_201 = arith.constant 0.000000e+00 : f32
    %458 = vector.shape_cast %433 : vector<8x1xi1> to vector<8x1xi1>
    %459 = vector.broadcast %458 : vector<8x1xi1> to vector<8x128xi1>
    %460 = vector.broadcast %cst_201 : f32 to vector<8x128xf32>
    %461 = arith.select %459, %423, %460 : vector<8x128xi1>, vector<8x128xf32>
    %462 = arith.index_cast %355 : i32 to index
    %c0_202 = arith.constant 0 : index
    %c0_203 = arith.constant 0 : index
    %463 = vector.load %arg10[%462, %c0_202, %c0_203] : memref<8x8x128xf32, #tpu.memory_space<vmem>>, vector<1x8x128xf32>
    %464 = vector.shape_cast %463 : vector<1x8x128xf32> to vector<8x128xf32>
    %465 = vector.shape_cast %461 : vector<8x128xf32> to vector<1x8x128xf32>
    tpu.vector_store %arg10[%462, %c0_202, %c0_203], %465 {strides = array<i32>} : memref<8x8x128xf32, #tpu.memory_space<vmem>>, vector<1x8x128xf32>,
    %c4_i32 = arith.constant 4 : i32
    %c7_i32_204 = arith.constant 7 : i32
    %466 = arith.subi %c7_i32_204, %c4_i32 : i32
    %c8_i32_205 = arith.constant 8 : i32
    %467 = arith.muli %c4_i32, %c8_i32_205 : i32
    %468 = tpu.assume_multiple %467, 8 : i32
    %c8_i32_206 = arith.constant 8 : i32
    %469 = arith.muli %466, %c8_i32_206 : i32
    %470 = tpu.assume_multiple %469, 8 : i32
    %c0_207 = arith.constant 0 : index
    %c0_208 = arith.constant 0 : index
    %471 = vector.load %arg11[%c0_207, %c0_208] : memref<8x128xf32, #tpu.memory_space<vmem>>, vector<8x128xf32>
    %c0_209 = arith.constant 0 : index
    %c0_210 = arith.constant 0 : index
    %472 = vector.load %arg12[%c0_209, %c0_210] : memref<8x128xf32, #tpu.memory_space<vmem>>, vector<8x128xf32>
    %c0_211 = arith.constant 0 : index
    %c0_212 = arith.constant 0 : index
    %473 = vector.load %arg13[%c0_211, %c0_212] : memref<8x128xf32, #tpu.memory_space<vmem>>, vector<8x128xf32>
    %c0_213 = arith.constant 0 : index
    %c0_214 = arith.constant 0 : index
    %474 = vector.load %arg14[%c0_213, %c0_214] : memref<8x128xf32, #tpu.memory_space<vmem>>, vector<8x128xf32>
    %475 = arith.index_cast %468 : i32 to index
    %c0_215 = arith.constant 0 : index
    %476 = vector.load %arg15[%475, %c0_215] : memref<64x512xf32, #tpu.memory_space<vmem>>, vector<8x512xf32>
    %c0_216 = arith.constant 0 : index
    %c0_217 = arith.constant 0 : index
    %477 = vector.load %arg5[%c0_216, %c0_217] : memref<128x512xf32, #tpu.memory_space<vmem>>, vector<128x512xf32>
    %cst_218 = arith.constant dense<0.000000e+00> : vector<8x512xf32>
    %478 = tpu.matmul %471, %477, %cst_218 {dimension_numbers = #tpu.dot_dimension_numbers<[1], [0], [0], [1], [0, 0, 1, 1], [], []>} : vector<8x128xf32>, vector<128x512xf32>, vector<8x512xf32> -> vector<8x512xf32>
    %479 = arith.addf %476, %478 : vector<8x512xf32>
    %480 = arith.index_cast %470 : i32 to index
    %c0_219 = arith.constant 0 : index
    %481 = vector.load %arg16[%480, %c0_219] : memref<64x512xf32, #tpu.memory_space<vmem>>, vector<8x512xf32>
    %c0_220 = arith.constant 0 : index
    %c0_221 = arith.constant 0 : index
    %482 = vector.load %arg6[%c0_220, %c0_221] : memref<128x512xf32, #tpu.memory_space<vmem>>, vector<128x512xf32>
    %cst_222 = arith.constant dense<0.000000e+00> : vector<8x512xf32>
    %483 = tpu.matmul %472, %482, %cst_222 {dimension_numbers = #tpu.dot_dimension_numbers<[1], [0], [0], [1], [0, 0, 1, 1], [], []>} : vector<8x128xf32>, vector<128x512xf32>, vector<8x512xf32> -> vector<8x512xf32>
    %484 = arith.addf %481, %483 : vector<8x512xf32>
    %485 = vector.extract_strided_slice %479 {offsets = [0, 0], sizes = [8, 128], strides = [1, 1]} : vector<8x512xf32> to vector<8x128xf32>
    %486 = arith.negf %485 : vector<8x128xf32>
    %487 = math.exp %486 : vector<8x128xf32>
    %cst_223 = arith.constant 1.000000e+00 : f32
    %488 = vector.broadcast %cst_223 : f32 to vector<8x128xf32>
    %489 = arith.addf %488, %487 : vector<8x128xf32>
    %490 = arith.divf %488, %489 : vector<8x128xf32>
    %491 = vector.extract_strided_slice %479 {offsets = [0, 128], sizes = [8, 128], strides = [1, 1]} : vector<8x512xf32> to vector<8x128xf32>
    %492 = arith.negf %491 : vector<8x128xf32>
    %493 = math.exp %492 : vector<8x128xf32>
    %cst_224 = arith.constant 1.000000e+00 : f32
    %494 = vector.broadcast %cst_224 : f32 to vector<8x128xf32>
    %495 = arith.addf %494, %493 : vector<8x128xf32>
    %496 = arith.divf %494, %495 : vector<8x128xf32>
    %497 = vector.extract_strided_slice %479 {offsets = [0, 256], sizes = [8, 128], strides = [1, 1]} : vector<8x512xf32> to vector<8x128xf32>
    %498 = math.tanh %497 : vector<8x128xf32>
    %499 = vector.extract_strided_slice %479 {offsets = [0, 384], sizes = [8, 128], strides = [1, 1]} : vector<8x512xf32> to vector<8x128xf32>
    %500 = arith.negf %499 : vector<8x128xf32>
    %501 = math.exp %500 : vector<8x128xf32>
    %cst_225 = arith.constant 1.000000e+00 : f32
    %502 = vector.broadcast %cst_225 : f32 to vector<8x128xf32>
    %503 = arith.addf %502, %501 : vector<8x128xf32>
    %504 = arith.divf %502, %503 : vector<8x128xf32>
    %505 = arith.mulf %496, %473 : vector<8x128xf32>
    %506 = arith.mulf %490, %498 : vector<8x128xf32>
    %507 = arith.addf %505, %506 : vector<8x128xf32>
    %508 = math.tanh %507 : vector<8x128xf32>
    %509 = arith.mulf %504, %508 : vector<8x128xf32>
    %510 = vector.extract_strided_slice %484 {offsets = [0, 0], sizes = [8, 128], strides = [1, 1]} : vector<8x512xf32> to vector<8x128xf32>
    %511 = arith.negf %510 : vector<8x128xf32>
    %512 = math.exp %511 : vector<8x128xf32>
    %cst_226 = arith.constant 1.000000e+00 : f32
    %513 = vector.broadcast %cst_226 : f32 to vector<8x128xf32>
    %514 = arith.addf %513, %512 : vector<8x128xf32>
    %515 = arith.divf %513, %514 : vector<8x128xf32>
    %516 = vector.extract_strided_slice %484 {offsets = [0, 128], sizes = [8, 128], strides = [1, 1]} : vector<8x512xf32> to vector<8x128xf32>
    %517 = arith.negf %516 : vector<8x128xf32>
    %518 = math.exp %517 : vector<8x128xf32>
    %cst_227 = arith.constant 1.000000e+00 : f32
    %519 = vector.broadcast %cst_227 : f32 to vector<8x128xf32>
    %520 = arith.addf %519, %518 : vector<8x128xf32>
    %521 = arith.divf %519, %520 : vector<8x128xf32>
    %522 = vector.extract_strided_slice %484 {offsets = [0, 256], sizes = [8, 128], strides = [1, 1]} : vector<8x512xf32> to vector<8x128xf32>
    %523 = math.tanh %522 : vector<8x128xf32>
    %524 = vector.extract_strided_slice %484 {offsets = [0, 384], sizes = [8, 128], strides = [1, 1]} : vector<8x512xf32> to vector<8x128xf32>
    %525 = arith.negf %524 : vector<8x128xf32>
    %526 = math.exp %525 : vector<8x128xf32>
    %cst_228 = arith.constant 1.000000e+00 : f32
    %527 = vector.broadcast %cst_228 : f32 to vector<8x128xf32>
    %528 = arith.addf %527, %526 : vector<8x128xf32>
    %529 = arith.divf %527, %528 : vector<8x128xf32>
    %530 = arith.mulf %521, %474 : vector<8x128xf32>
    %531 = arith.mulf %515, %523 : vector<8x128xf32>
    %532 = arith.addf %530, %531 : vector<8x128xf32>
    %533 = math.tanh %532 : vector<8x128xf32>
    %534 = arith.mulf %529, %533 : vector<8x128xf32>
    %535 = arith.index_cast %c4_i32 : i32 to index
    %c0_229 = arith.constant 0 : index
    %c0_230 = arith.constant 0 : index
    %536 = vector.load %arg2[%535, %c0_229, %c0_230] : memref<8x8x1xf32, #tpu.memory_space<vmem>>, vector<1x8x1xf32>
    %537 = vector.shape_cast %536 : vector<1x8x1xf32> to vector<8x1xf32>
    %cst_231 = arith.constant 0.000000e+00 : f32
    %538 = vector.broadcast %cst_231 : f32 to vector<8x1xf32>
    %539 = arith.cmpf ogt, %537, %538 : vector<8x1xf32>
    %540 = arith.index_cast %466 : i32 to index
    %c0_232 = arith.constant 0 : index
    %c0_233 = arith.constant 0 : index
    %541 = vector.load %arg2[%540, %c0_232, %c0_233] : memref<8x8x1xf32, #tpu.memory_space<vmem>>, vector<1x8x1xf32>
    %542 = vector.shape_cast %541 : vector<1x8x1xf32> to vector<8x1xf32>
    %cst_234 = arith.constant 0.000000e+00 : f32
    %543 = vector.broadcast %cst_234 : f32 to vector<8x1xf32>
    %544 = arith.cmpf ogt, %542, %543 : vector<8x1xf32>
    %545 = vector.shape_cast %539 : vector<8x1xi1> to vector<8x1xi1>
    %546 = vector.broadcast %545 : vector<8x1xi1> to vector<8x128xi1>
    %547 = arith.select %546, %509, %471 : vector<8x128xi1>, vector<8x128xf32>
    %c0_235 = arith.constant 0 : index
    %c0_236 = arith.constant 0 : index
    %548 = vector.load %arg11[%c0_235, %c0_236] : memref<8x128xf32, #tpu.memory_space<vmem>>, vector<8x128xf32>
    tpu.vector_store %arg11[%c0_235, %c0_236], %547 {strides = array<i32>} : memref<8x128xf32, #tpu.memory_space<vmem>>, vector<8x128xf32>,
    %549 = vector.shape_cast %539 : vector<8x1xi1> to vector<8x1xi1>
    %550 = vector.broadcast %549 : vector<8x1xi1> to vector<8x128xi1>
    %551 = arith.select %550, %507, %473 : vector<8x128xi1>, vector<8x128xf32>
    %c0_237 = arith.constant 0 : index
    %c0_238 = arith.constant 0 : index
    %552 = vector.load %arg13[%c0_237, %c0_238] : memref<8x128xf32, #tpu.memory_space<vmem>>, vector<8x128xf32>
    tpu.vector_store %arg13[%c0_237, %c0_238], %551 {strides = array<i32>} : memref<8x128xf32, #tpu.memory_space<vmem>>, vector<8x128xf32>,
    %553 = vector.shape_cast %544 : vector<8x1xi1> to vector<8x1xi1>
    %554 = vector.broadcast %553 : vector<8x1xi1> to vector<8x128xi1>
    %555 = arith.select %554, %534, %472 : vector<8x128xi1>, vector<8x128xf32>
    %c0_239 = arith.constant 0 : index
    %c0_240 = arith.constant 0 : index
    %556 = vector.load %arg12[%c0_239, %c0_240] : memref<8x128xf32, #tpu.memory_space<vmem>>, vector<8x128xf32>
    tpu.vector_store %arg12[%c0_239, %c0_240], %555 {strides = array<i32>} : memref<8x128xf32, #tpu.memory_space<vmem>>, vector<8x128xf32>,
    %557 = vector.shape_cast %544 : vector<8x1xi1> to vector<8x1xi1>
    %558 = vector.broadcast %557 : vector<8x1xi1> to vector<8x128xi1>
    %559 = arith.select %558, %532, %474 : vector<8x128xi1>, vector<8x128xf32>
    %c0_241 = arith.constant 0 : index
    %c0_242 = arith.constant 0 : index
    %560 = vector.load %arg14[%c0_241, %c0_242] : memref<8x128xf32, #tpu.memory_space<vmem>>, vector<8x128xf32>
    tpu.vector_store %arg14[%c0_241, %c0_242], %559 {strides = array<i32>} : memref<8x128xf32, #tpu.memory_space<vmem>>, vector<8x128xf32>,
    %cst_243 = arith.constant 0.000000e+00 : f32
    %561 = vector.shape_cast %539 : vector<8x1xi1> to vector<8x1xi1>
    %562 = vector.broadcast %561 : vector<8x1xi1> to vector<8x128xi1>
    %563 = vector.broadcast %cst_243 : f32 to vector<8x128xf32>
    %564 = arith.select %562, %509, %563 : vector<8x128xi1>, vector<8x128xf32>
    %565 = arith.index_cast %c4_i32 : i32 to index
    %c0_244 = arith.constant 0 : index
    %c0_245 = arith.constant 0 : index
    %566 = vector.load %arg9[%565, %c0_244, %c0_245] : memref<8x8x128xf32, #tpu.memory_space<vmem>>, vector<1x8x128xf32>
    %567 = vector.shape_cast %566 : vector<1x8x128xf32> to vector<8x128xf32>
    %568 = vector.shape_cast %564 : vector<8x128xf32> to vector<1x8x128xf32>
    tpu.vector_store %arg9[%565, %c0_244, %c0_245], %568 {strides = array<i32>} : memref<8x8x128xf32, #tpu.memory_space<vmem>>, vector<1x8x128xf32>,
    %cst_246 = arith.constant 0.000000e+00 : f32
    %569 = vector.shape_cast %544 : vector<8x1xi1> to vector<8x1xi1>
    %570 = vector.broadcast %569 : vector<8x1xi1> to vector<8x128xi1>
    %571 = vector.broadcast %cst_246 : f32 to vector<8x128xf32>
    %572 = arith.select %570, %534, %571 : vector<8x128xi1>, vector<8x128xf32>
    %573 = arith.index_cast %466 : i32 to index
    %c0_247 = arith.constant 0 : index
    %c0_248 = arith.constant 0 : index
    %574 = vector.load %arg10[%573, %c0_247, %c0_248] : memref<8x8x128xf32, #tpu.memory_space<vmem>>, vector<1x8x128xf32>
    %575 = vector.shape_cast %574 : vector<1x8x128xf32> to vector<8x128xf32>
    %576 = vector.shape_cast %572 : vector<8x128xf32> to vector<1x8x128xf32>
    tpu.vector_store %arg10[%573, %c0_247, %c0_248], %576 {strides = array<i32>} : memref<8x8x128xf32, #tpu.memory_space<vmem>>, vector<1x8x128xf32>,
    %c5_i32 = arith.constant 5 : i32
    %c7_i32_249 = arith.constant 7 : i32
    %577 = arith.subi %c7_i32_249, %c5_i32 : i32
    %c8_i32_250 = arith.constant 8 : i32
    %578 = arith.muli %c5_i32, %c8_i32_250 : i32
    %579 = tpu.assume_multiple %578, 8 : i32
    %c8_i32_251 = arith.constant 8 : i32
    %580 = arith.muli %577, %c8_i32_251 : i32
    %581 = tpu.assume_multiple %580, 8 : i32
    %c0_252 = arith.constant 0 : index
    %c0_253 = arith.constant 0 : index
    %582 = vector.load %arg11[%c0_252, %c0_253] : memref<8x128xf32, #tpu.memory_space<vmem>>, vector<8x128xf32>
    %c0_254 = arith.constant 0 : index
    %c0_255 = arith.constant 0 : index
    %583 = vector.load %arg12[%c0_254, %c0_255] : memref<8x128xf32, #tpu.memory_space<vmem>>, vector<8x128xf32>
    %c0_256 = arith.constant 0 : index
    %c0_257 = arith.constant 0 : index
    %584 = vector.load %arg13[%c0_256, %c0_257] : memref<8x128xf32, #tpu.memory_space<vmem>>, vector<8x128xf32>
    %c0_258 = arith.constant 0 : index
    %c0_259 = arith.constant 0 : index
    %585 = vector.load %arg14[%c0_258, %c0_259] : memref<8x128xf32, #tpu.memory_space<vmem>>, vector<8x128xf32>
    %586 = arith.index_cast %579 : i32 to index
    %c0_260 = arith.constant 0 : index
    %587 = vector.load %arg15[%586, %c0_260] : memref<64x512xf32, #tpu.memory_space<vmem>>, vector<8x512xf32>
    %c0_261 = arith.constant 0 : index
    %c0_262 = arith.constant 0 : index
    %588 = vector.load %arg5[%c0_261, %c0_262] : memref<128x512xf32, #tpu.memory_space<vmem>>, vector<128x512xf32>
    %cst_263 = arith.constant dense<0.000000e+00> : vector<8x512xf32>
    %589 = tpu.matmul %582, %588, %cst_263 {dimension_numbers = #tpu.dot_dimension_numbers<[1], [0], [0], [1], [0, 0, 1, 1], [], []>} : vector<8x128xf32>, vector<128x512xf32>, vector<8x512xf32> -> vector<8x512xf32>
    %590 = arith.addf %587, %589 : vector<8x512xf32>
    %591 = arith.index_cast %581 : i32 to index
    %c0_264 = arith.constant 0 : index
    %592 = vector.load %arg16[%591, %c0_264] : memref<64x512xf32, #tpu.memory_space<vmem>>, vector<8x512xf32>
    %c0_265 = arith.constant 0 : index
    %c0_266 = arith.constant 0 : index
    %593 = vector.load %arg6[%c0_265, %c0_266] : memref<128x512xf32, #tpu.memory_space<vmem>>, vector<128x512xf32>
    %cst_267 = arith.constant dense<0.000000e+00> : vector<8x512xf32>
    %594 = tpu.matmul %583, %593, %cst_267 {dimension_numbers = #tpu.dot_dimension_numbers<[1], [0], [0], [1], [0, 0, 1, 1], [], []>} : vector<8x128xf32>, vector<128x512xf32>, vector<8x512xf32> -> vector<8x512xf32>
    %595 = arith.addf %592, %594 : vector<8x512xf32>
    %596 = vector.extract_strided_slice %590 {offsets = [0, 0], sizes = [8, 128], strides = [1, 1]} : vector<8x512xf32> to vector<8x128xf32>
    %597 = arith.negf %596 : vector<8x128xf32>
    %598 = math.exp %597 : vector<8x128xf32>
    %cst_268 = arith.constant 1.000000e+00 : f32
    %599 = vector.broadcast %cst_268 : f32 to vector<8x128xf32>
    %600 = arith.addf %599, %598 : vector<8x128xf32>
    %601 = arith.divf %599, %600 : vector<8x128xf32>
    %602 = vector.extract_strided_slice %590 {offsets = [0, 128], sizes = [8, 128], strides = [1, 1]} : vector<8x512xf32> to vector<8x128xf32>
    %603 = arith.negf %602 : vector<8x128xf32>
    %604 = math.exp %603 : vector<8x128xf32>
    %cst_269 = arith.constant 1.000000e+00 : f32
    %605 = vector.broadcast %cst_269 : f32 to vector<8x128xf32>
    %606 = arith.addf %605, %604 : vector<8x128xf32>
    %607 = arith.divf %605, %606 : vector<8x128xf32>
    %608 = vector.extract_strided_slice %590 {offsets = [0, 256], sizes = [8, 128], strides = [1, 1]} : vector<8x512xf32> to vector<8x128xf32>
    %609 = math.tanh %608 : vector<8x128xf32>
    %610 = vector.extract_strided_slice %590 {offsets = [0, 384], sizes = [8, 128], strides = [1, 1]} : vector<8x512xf32> to vector<8x128xf32>
    %611 = arith.negf %610 : vector<8x128xf32>
    %612 = math.exp %611 : vector<8x128xf32>
    %cst_270 = arith.constant 1.000000e+00 : f32
    %613 = vector.broadcast %cst_270 : f32 to vector<8x128xf32>
    %614 = arith.addf %613, %612 : vector<8x128xf32>
    %615 = arith.divf %613, %614 : vector<8x128xf32>
    %616 = arith.mulf %607, %584 : vector<8x128xf32>
    %617 = arith.mulf %601, %609 : vector<8x128xf32>
    %618 = arith.addf %616, %617 : vector<8x128xf32>
    %619 = math.tanh %618 : vector<8x128xf32>
    %620 = arith.mulf %615, %619 : vector<8x128xf32>
    %621 = vector.extract_strided_slice %595 {offsets = [0, 0], sizes = [8, 128], strides = [1, 1]} : vector<8x512xf32> to vector<8x128xf32>
    %622 = arith.negf %621 : vector<8x128xf32>
    %623 = math.exp %622 : vector<8x128xf32>
    %cst_271 = arith.constant 1.000000e+00 : f32
    %624 = vector.broadcast %cst_271 : f32 to vector<8x128xf32>
    %625 = arith.addf %624, %623 : vector<8x128xf32>
    %626 = arith.divf %624, %625 : vector<8x128xf32>
    %627 = vector.extract_strided_slice %595 {offsets = [0, 128], sizes = [8, 128], strides = [1, 1]} : vector<8x512xf32> to vector<8x128xf32>
    %628 = arith.negf %627 : vector<8x128xf32>
    %629 = math.exp %628 : vector<8x128xf32>
    %cst_272 = arith.constant 1.000000e+00 : f32
    %630 = vector.broadcast %cst_272 : f32 to vector<8x128xf32>
    %631 = arith.addf %630, %629 : vector<8x128xf32>
    %632 = arith.divf %630, %631 : vector<8x128xf32>
    %633 = vector.extract_strided_slice %595 {offsets = [0, 256], sizes = [8, 128], strides = [1, 1]} : vector<8x512xf32> to vector<8x128xf32>
    %634 = math.tanh %633 : vector<8x128xf32>
    %635 = vector.extract_strided_slice %595 {offsets = [0, 384], sizes = [8, 128], strides = [1, 1]} : vector<8x512xf32> to vector<8x128xf32>
    %636 = arith.negf %635 : vector<8x128xf32>
    %637 = math.exp %636 : vector<8x128xf32>
    %cst_273 = arith.constant 1.000000e+00 : f32
    %638 = vector.broadcast %cst_273 : f32 to vector<8x128xf32>
    %639 = arith.addf %638, %637 : vector<8x128xf32>
    %640 = arith.divf %638, %639 : vector<8x128xf32>
    %641 = arith.mulf %632, %585 : vector<8x128xf32>
    %642 = arith.mulf %626, %634 : vector<8x128xf32>
    %643 = arith.addf %641, %642 : vector<8x128xf32>
    %644 = math.tanh %643 : vector<8x128xf32>
    %645 = arith.mulf %640, %644 : vector<8x128xf32>
    %646 = arith.index_cast %c5_i32 : i32 to index
    %c0_274 = arith.constant 0 : index
    %c0_275 = arith.constant 0 : index
    %647 = vector.load %arg2[%646, %c0_274, %c0_275] : memref<8x8x1xf32, #tpu.memory_space<vmem>>, vector<1x8x1xf32>
    %648 = vector.shape_cast %647 : vector<1x8x1xf32> to vector<8x1xf32>
    %cst_276 = arith.constant 0.000000e+00 : f32
    %649 = vector.broadcast %cst_276 : f32 to vector<8x1xf32>
    %650 = arith.cmpf ogt, %648, %649 : vector<8x1xf32>
    %651 = arith.index_cast %577 : i32 to index
    %c0_277 = arith.constant 0 : index
    %c0_278 = arith.constant 0 : index
    %652 = vector.load %arg2[%651, %c0_277, %c0_278] : memref<8x8x1xf32, #tpu.memory_space<vmem>>, vector<1x8x1xf32>
    %653 = vector.shape_cast %652 : vector<1x8x1xf32> to vector<8x1xf32>
    %cst_279 = arith.constant 0.000000e+00 : f32
    %654 = vector.broadcast %cst_279 : f32 to vector<8x1xf32>
    %655 = arith.cmpf ogt, %653, %654 : vector<8x1xf32>
    %656 = vector.shape_cast %650 : vector<8x1xi1> to vector<8x1xi1>
    %657 = vector.broadcast %656 : vector<8x1xi1> to vector<8x128xi1>
    %658 = arith.select %657, %620, %582 : vector<8x128xi1>, vector<8x128xf32>
    %c0_280 = arith.constant 0 : index
    %c0_281 = arith.constant 0 : index
    %659 = vector.load %arg11[%c0_280, %c0_281] : memref<8x128xf32, #tpu.memory_space<vmem>>, vector<8x128xf32>
    tpu.vector_store %arg11[%c0_280, %c0_281], %658 {strides = array<i32>} : memref<8x128xf32, #tpu.memory_space<vmem>>, vector<8x128xf32>,
    %660 = vector.shape_cast %650 : vector<8x1xi1> to vector<8x1xi1>
    %661 = vector.broadcast %660 : vector<8x1xi1> to vector<8x128xi1>
    %662 = arith.select %661, %618, %584 : vector<8x128xi1>, vector<8x128xf32>
    %c0_282 = arith.constant 0 : index
    %c0_283 = arith.constant 0 : index
    %663 = vector.load %arg13[%c0_282, %c0_283] : memref<8x128xf32, #tpu.memory_space<vmem>>, vector<8x128xf32>
    tpu.vector_store %arg13[%c0_282, %c0_283], %662 {strides = array<i32>} : memref<8x128xf32, #tpu.memory_space<vmem>>, vector<8x128xf32>,
    %664 = vector.shape_cast %655 : vector<8x1xi1> to vector<8x1xi1>
    %665 = vector.broadcast %664 : vector<8x1xi1> to vector<8x128xi1>
    %666 = arith.select %665, %645, %583 : vector<8x128xi1>, vector<8x128xf32>
    %c0_284 = arith.constant 0 : index
    %c0_285 = arith.constant 0 : index
    %667 = vector.load %arg12[%c0_284, %c0_285] : memref<8x128xf32, #tpu.memory_space<vmem>>, vector<8x128xf32>
    tpu.vector_store %arg12[%c0_284, %c0_285], %666 {strides = array<i32>} : memref<8x128xf32, #tpu.memory_space<vmem>>, vector<8x128xf32>,
    %668 = vector.shape_cast %655 : vector<8x1xi1> to vector<8x1xi1>
    %669 = vector.broadcast %668 : vector<8x1xi1> to vector<8x128xi1>
    %670 = arith.select %669, %643, %585 : vector<8x128xi1>, vector<8x128xf32>
    %c0_286 = arith.constant 0 : index
    %c0_287 = arith.constant 0 : index
    %671 = vector.load %arg14[%c0_286, %c0_287] : memref<8x128xf32, #tpu.memory_space<vmem>>, vector<8x128xf32>
    tpu.vector_store %arg14[%c0_286, %c0_287], %670 {strides = array<i32>} : memref<8x128xf32, #tpu.memory_space<vmem>>, vector<8x128xf32>,
    %cst_288 = arith.constant 0.000000e+00 : f32
    %672 = vector.shape_cast %650 : vector<8x1xi1> to vector<8x1xi1>
    %673 = vector.broadcast %672 : vector<8x1xi1> to vector<8x128xi1>
    %674 = vector.broadcast %cst_288 : f32 to vector<8x128xf32>
    %675 = arith.select %673, %620, %674 : vector<8x128xi1>, vector<8x128xf32>
    %676 = arith.index_cast %c5_i32 : i32 to index
    %c0_289 = arith.constant 0 : index
    %c0_290 = arith.constant 0 : index
    %677 = vector.load %arg9[%676, %c0_289, %c0_290] : memref<8x8x128xf32, #tpu.memory_space<vmem>>, vector<1x8x128xf32>
    %678 = vector.shape_cast %677 : vector<1x8x128xf32> to vector<8x128xf32>
    %679 = vector.shape_cast %675 : vector<8x128xf32> to vector<1x8x128xf32>
    tpu.vector_store %arg9[%676, %c0_289, %c0_290], %679 {strides = array<i32>} : memref<8x8x128xf32, #tpu.memory_space<vmem>>, vector<1x8x128xf32>,
    %cst_291 = arith.constant 0.000000e+00 : f32
    %680 = vector.shape_cast %655 : vector<8x1xi1> to vector<8x1xi1>
    %681 = vector.broadcast %680 : vector<8x1xi1> to vector<8x128xi1>
    %682 = vector.broadcast %cst_291 : f32 to vector<8x128xf32>
    %683 = arith.select %681, %645, %682 : vector<8x128xi1>, vector<8x128xf32>
    %684 = arith.index_cast %577 : i32 to index
    %c0_292 = arith.constant 0 : index
    %c0_293 = arith.constant 0 : index
    %685 = vector.load %arg10[%684, %c0_292, %c0_293] : memref<8x8x128xf32, #tpu.memory_space<vmem>>, vector<1x8x128xf32>
    %686 = vector.shape_cast %685 : vector<1x8x128xf32> to vector<8x128xf32>
    %687 = vector.shape_cast %683 : vector<8x128xf32> to vector<1x8x128xf32>
    tpu.vector_store %arg10[%684, %c0_292, %c0_293], %687 {strides = array<i32>} : memref<8x8x128xf32, #tpu.memory_space<vmem>>, vector<1x8x128xf32>,
    %c6_i32 = arith.constant 6 : i32
    %c7_i32_294 = arith.constant 7 : i32
    %688 = arith.subi %c7_i32_294, %c6_i32 : i32
    %c8_i32_295 = arith.constant 8 : i32
    %689 = arith.muli %c6_i32, %c8_i32_295 : i32
    %690 = tpu.assume_multiple %689, 8 : i32
    %c8_i32_296 = arith.constant 8 : i32
    %691 = arith.muli %688, %c8_i32_296 : i32
    %692 = tpu.assume_multiple %691, 8 : i32
    %c0_297 = arith.constant 0 : index
    %c0_298 = arith.constant 0 : index
    %693 = vector.load %arg11[%c0_297, %c0_298] : memref<8x128xf32, #tpu.memory_space<vmem>>, vector<8x128xf32>
    %c0_299 = arith.constant 0 : index
    %c0_300 = arith.constant 0 : index
    %694 = vector.load %arg12[%c0_299, %c0_300] : memref<8x128xf32, #tpu.memory_space<vmem>>, vector<8x128xf32>
    %c0_301 = arith.constant 0 : index
    %c0_302 = arith.constant 0 : index
    %695 = vector.load %arg13[%c0_301, %c0_302] : memref<8x128xf32, #tpu.memory_space<vmem>>, vector<8x128xf32>
    %c0_303 = arith.constant 0 : index
    %c0_304 = arith.constant 0 : index
    %696 = vector.load %arg14[%c0_303, %c0_304] : memref<8x128xf32, #tpu.memory_space<vmem>>, vector<8x128xf32>
    %697 = arith.index_cast %690 : i32 to index
    %c0_305 = arith.constant 0 : index
    %698 = vector.load %arg15[%697, %c0_305] : memref<64x512xf32, #tpu.memory_space<vmem>>, vector<8x512xf32>
    %c0_306 = arith.constant 0 : index
    %c0_307 = arith.constant 0 : index
    %699 = vector.load %arg5[%c0_306, %c0_307] : memref<128x512xf32, #tpu.memory_space<vmem>>, vector<128x512xf32>
    %cst_308 = arith.constant dense<0.000000e+00> : vector<8x512xf32>
    %700 = tpu.matmul %693, %699, %cst_308 {dimension_numbers = #tpu.dot_dimension_numbers<[1], [0], [0], [1], [0, 0, 1, 1], [], []>} : vector<8x128xf32>, vector<128x512xf32>, vector<8x512xf32> -> vector<8x512xf32>
    %701 = arith.addf %698, %700 : vector<8x512xf32>
    %702 = arith.index_cast %692 : i32 to index
    %c0_309 = arith.constant 0 : index
    %703 = vector.load %arg16[%702, %c0_309] : memref<64x512xf32, #tpu.memory_space<vmem>>, vector<8x512xf32>
    %c0_310 = arith.constant 0 : index
    %c0_311 = arith.constant 0 : index
    %704 = vector.load %arg6[%c0_310, %c0_311] : memref<128x512xf32, #tpu.memory_space<vmem>>, vector<128x512xf32>
    %cst_312 = arith.constant dense<0.000000e+00> : vector<8x512xf32>
    %705 = tpu.matmul %694, %704, %cst_312 {dimension_numbers = #tpu.dot_dimension_numbers<[1], [0], [0], [1], [0, 0, 1, 1], [], []>} : vector<8x128xf32>, vector<128x512xf32>, vector<8x512xf32> -> vector<8x512xf32>
    %706 = arith.addf %703, %705 : vector<8x512xf32>
    %707 = vector.extract_strided_slice %701 {offsets = [0, 0], sizes = [8, 128], strides = [1, 1]} : vector<8x512xf32> to vector<8x128xf32>
    %708 = arith.negf %707 : vector<8x128xf32>
    %709 = math.exp %708 : vector<8x128xf32>
    %cst_313 = arith.constant 1.000000e+00 : f32
    %710 = vector.broadcast %cst_313 : f32 to vector<8x128xf32>
    %711 = arith.addf %710, %709 : vector<8x128xf32>
    %712 = arith.divf %710, %711 : vector<8x128xf32>
    %713 = vector.extract_strided_slice %701 {offsets = [0, 128], sizes = [8, 128], strides = [1, 1]} : vector<8x512xf32> to vector<8x128xf32>
    %714 = arith.negf %713 : vector<8x128xf32>
    %715 = math.exp %714 : vector<8x128xf32>
    %cst_314 = arith.constant 1.000000e+00 : f32
    %716 = vector.broadcast %cst_314 : f32 to vector<8x128xf32>
    %717 = arith.addf %716, %715 : vector<8x128xf32>
    %718 = arith.divf %716, %717 : vector<8x128xf32>
    %719 = vector.extract_strided_slice %701 {offsets = [0, 256], sizes = [8, 128], strides = [1, 1]} : vector<8x512xf32> to vector<8x128xf32>
    %720 = math.tanh %719 : vector<8x128xf32>
    %721 = vector.extract_strided_slice %701 {offsets = [0, 384], sizes = [8, 128], strides = [1, 1]} : vector<8x512xf32> to vector<8x128xf32>
    %722 = arith.negf %721 : vector<8x128xf32>
    %723 = math.exp %722 : vector<8x128xf32>
    %cst_315 = arith.constant 1.000000e+00 : f32
    %724 = vector.broadcast %cst_315 : f32 to vector<8x128xf32>
    %725 = arith.addf %724, %723 : vector<8x128xf32>
    %726 = arith.divf %724, %725 : vector<8x128xf32>
    %727 = arith.mulf %718, %695 : vector<8x128xf32>
    %728 = arith.mulf %712, %720 : vector<8x128xf32>
    %729 = arith.addf %727, %728 : vector<8x128xf32>
    %730 = math.tanh %729 : vector<8x128xf32>
    %731 = arith.mulf %726, %730 : vector<8x128xf32>
    %732 = vector.extract_strided_slice %706 {offsets = [0, 0], sizes = [8, 128], strides = [1, 1]} : vector<8x512xf32> to vector<8x128xf32>
    %733 = arith.negf %732 : vector<8x128xf32>
    %734 = math.exp %733 : vector<8x128xf32>
    %cst_316 = arith.constant 1.000000e+00 : f32
    %735 = vector.broadcast %cst_316 : f32 to vector<8x128xf32>
    %736 = arith.addf %735, %734 : vector<8x128xf32>
    %737 = arith.divf %735, %736 : vector<8x128xf32>
    %738 = vector.extract_strided_slice %706 {offsets = [0, 128], sizes = [8, 128], strides = [1, 1]} : vector<8x512xf32> to vector<8x128xf32>
    %739 = arith.negf %738 : vector<8x128xf32>
    %740 = math.exp %739 : vector<8x128xf32>
    %cst_317 = arith.constant 1.000000e+00 : f32
    %741 = vector.broadcast %cst_317 : f32 to vector<8x128xf32>
    %742 = arith.addf %741, %740 : vector<8x128xf32>
    %743 = arith.divf %741, %742 : vector<8x128xf32>
    %744 = vector.extract_strided_slice %706 {offsets = [0, 256], sizes = [8, 128], strides = [1, 1]} : vector<8x512xf32> to vector<8x128xf32>
    %745 = math.tanh %744 : vector<8x128xf32>
    %746 = vector.extract_strided_slice %706 {offsets = [0, 384], sizes = [8, 128], strides = [1, 1]} : vector<8x512xf32> to vector<8x128xf32>
    %747 = arith.negf %746 : vector<8x128xf32>
    %748 = math.exp %747 : vector<8x128xf32>
    %cst_318 = arith.constant 1.000000e+00 : f32
    %749 = vector.broadcast %cst_318 : f32 to vector<8x128xf32>
    %750 = arith.addf %749, %748 : vector<8x128xf32>
    %751 = arith.divf %749, %750 : vector<8x128xf32>
    %752 = arith.mulf %743, %696 : vector<8x128xf32>
    %753 = arith.mulf %737, %745 : vector<8x128xf32>
    %754 = arith.addf %752, %753 : vector<8x128xf32>
    %755 = math.tanh %754 : vector<8x128xf32>
    %756 = arith.mulf %751, %755 : vector<8x128xf32>
    %757 = arith.index_cast %c6_i32 : i32 to index
    %c0_319 = arith.constant 0 : index
    %c0_320 = arith.constant 0 : index
    %758 = vector.load %arg2[%757, %c0_319, %c0_320] : memref<8x8x1xf32, #tpu.memory_space<vmem>>, vector<1x8x1xf32>
    %759 = vector.shape_cast %758 : vector<1x8x1xf32> to vector<8x1xf32>
    %cst_321 = arith.constant 0.000000e+00 : f32
    %760 = vector.broadcast %cst_321 : f32 to vector<8x1xf32>
    %761 = arith.cmpf ogt, %759, %760 : vector<8x1xf32>
    %762 = arith.index_cast %688 : i32 to index
    %c0_322 = arith.constant 0 : index
    %c0_323 = arith.constant 0 : index
    %763 = vector.load %arg2[%762, %c0_322, %c0_323] : memref<8x8x1xf32, #tpu.memory_space<vmem>>, vector<1x8x1xf32>
    %764 = vector.shape_cast %763 : vector<1x8x1xf32> to vector<8x1xf32>
    %cst_324 = arith.constant 0.000000e+00 : f32
    %765 = vector.broadcast %cst_324 : f32 to vector<8x1xf32>
    %766 = arith.cmpf ogt, %764, %765 : vector<8x1xf32>
    %767 = vector.shape_cast %761 : vector<8x1xi1> to vector<8x1xi1>
    %768 = vector.broadcast %767 : vector<8x1xi1> to vector<8x128xi1>
    %769 = arith.select %768, %731, %693 : vector<8x128xi1>, vector<8x128xf32>
    %c0_325 = arith.constant 0 : index
    %c0_326 = arith.constant 0 : index
    %770 = vector.load %arg11[%c0_325, %c0_326] : memref<8x128xf32, #tpu.memory_space<vmem>>, vector<8x128xf32>
    tpu.vector_store %arg11[%c0_325, %c0_326], %769 {strides = array<i32>} : memref<8x128xf32, #tpu.memory_space<vmem>>, vector<8x128xf32>,
    %771 = vector.shape_cast %761 : vector<8x1xi1> to vector<8x1xi1>
    %772 = vector.broadcast %771 : vector<8x1xi1> to vector<8x128xi1>
    %773 = arith.select %772, %729, %695 : vector<8x128xi1>, vector<8x128xf32>
    %c0_327 = arith.constant 0 : index
    %c0_328 = arith.constant 0 : index
    %774 = vector.load %arg13[%c0_327, %c0_328] : memref<8x128xf32, #tpu.memory_space<vmem>>, vector<8x128xf32>
    tpu.vector_store %arg13[%c0_327, %c0_328], %773 {strides = array<i32>} : memref<8x128xf32, #tpu.memory_space<vmem>>, vector<8x128xf32>,
    %775 = vector.shape_cast %766 : vector<8x1xi1> to vector<8x1xi1>
    %776 = vector.broadcast %775 : vector<8x1xi1> to vector<8x128xi1>
    %777 = arith.select %776, %756, %694 : vector<8x128xi1>, vector<8x128xf32>
    %c0_329 = arith.constant 0 : index
    %c0_330 = arith.constant 0 : index
    %778 = vector.load %arg12[%c0_329, %c0_330] : memref<8x128xf32, #tpu.memory_space<vmem>>, vector<8x128xf32>
    tpu.vector_store %arg12[%c0_329, %c0_330], %777 {strides = array<i32>} : memref<8x128xf32, #tpu.memory_space<vmem>>, vector<8x128xf32>,
    %779 = vector.shape_cast %766 : vector<8x1xi1> to vector<8x1xi1>
    %780 = vector.broadcast %779 : vector<8x1xi1> to vector<8x128xi1>
    %781 = arith.select %780, %754, %696 : vector<8x128xi1>, vector<8x128xf32>
    %c0_331 = arith.constant 0 : index
    %c0_332 = arith.constant 0 : index
    %782 = vector.load %arg14[%c0_331, %c0_332] : memref<8x128xf32, #tpu.memory_space<vmem>>, vector<8x128xf32>
    tpu.vector_store %arg14[%c0_331, %c0_332], %781 {strides = array<i32>} : memref<8x128xf32, #tpu.memory_space<vmem>>, vector<8x128xf32>,
    %cst_333 = arith.constant 0.000000e+00 : f32
    %783 = vector.shape_cast %761 : vector<8x1xi1> to vector<8x1xi1>
    %784 = vector.broadcast %783 : vector<8x1xi1> to vector<8x128xi1>
    %785 = vector.broadcast %cst_333 : f32 to vector<8x128xf32>
    %786 = arith.select %784, %731, %785 : vector<8x128xi1>, vector<8x128xf32>
    %787 = arith.index_cast %c6_i32 : i32 to index
    %c0_334 = arith.constant 0 : index
    %c0_335 = arith.constant 0 : index
    %788 = vector.load %arg9[%787, %c0_334, %c0_335] : memref<8x8x128xf32, #tpu.memory_space<vmem>>, vector<1x8x128xf32>
    %789 = vector.shape_cast %788 : vector<1x8x128xf32> to vector<8x128xf32>
    %790 = vector.shape_cast %786 : vector<8x128xf32> to vector<1x8x128xf32>
    tpu.vector_store %arg9[%787, %c0_334, %c0_335], %790 {strides = array<i32>} : memref<8x8x128xf32, #tpu.memory_space<vmem>>, vector<1x8x128xf32>,
    %cst_336 = arith.constant 0.000000e+00 : f32
    %791 = vector.shape_cast %766 : vector<8x1xi1> to vector<8x1xi1>
    %792 = vector.broadcast %791 : vector<8x1xi1> to vector<8x128xi1>
    %793 = vector.broadcast %cst_336 : f32 to vector<8x128xf32>
    %794 = arith.select %792, %756, %793 : vector<8x128xi1>, vector<8x128xf32>
    %795 = arith.index_cast %688 : i32 to index
    %c0_337 = arith.constant 0 : index
    %c0_338 = arith.constant 0 : index
    %796 = vector.load %arg10[%795, %c0_337, %c0_338] : memref<8x8x128xf32, #tpu.memory_space<vmem>>, vector<1x8x128xf32>
    %797 = vector.shape_cast %796 : vector<1x8x128xf32> to vector<8x128xf32>
    %798 = vector.shape_cast %794 : vector<8x128xf32> to vector<1x8x128xf32>
    tpu.vector_store %arg10[%795, %c0_337, %c0_338], %798 {strides = array<i32>} : memref<8x8x128xf32, #tpu.memory_space<vmem>>, vector<1x8x128xf32>,
    %c7_i32_339 = arith.constant 7 : i32
    %c7_i32_340 = arith.constant 7 : i32
    %799 = arith.subi %c7_i32_340, %c7_i32_339 : i32
    %c8_i32_341 = arith.constant 8 : i32
    %800 = arith.muli %c7_i32_339, %c8_i32_341 : i32
    %801 = tpu.assume_multiple %800, 8 : i32
    %c8_i32_342 = arith.constant 8 : i32
    %802 = arith.muli %799, %c8_i32_342 : i32
    %803 = tpu.assume_multiple %802, 8 : i32
    %c0_343 = arith.constant 0 : index
    %c0_344 = arith.constant 0 : index
    %804 = vector.load %arg11[%c0_343, %c0_344] : memref<8x128xf32, #tpu.memory_space<vmem>>, vector<8x128xf32>
    %c0_345 = arith.constant 0 : index
    %c0_346 = arith.constant 0 : index
    %805 = vector.load %arg12[%c0_345, %c0_346] : memref<8x128xf32, #tpu.memory_space<vmem>>, vector<8x128xf32>
    %c0_347 = arith.constant 0 : index
    %c0_348 = arith.constant 0 : index
    %806 = vector.load %arg13[%c0_347, %c0_348] : memref<8x128xf32, #tpu.memory_space<vmem>>, vector<8x128xf32>
    %c0_349 = arith.constant 0 : index
    %c0_350 = arith.constant 0 : index
    %807 = vector.load %arg14[%c0_349, %c0_350] : memref<8x128xf32, #tpu.memory_space<vmem>>, vector<8x128xf32>
    %808 = arith.index_cast %801 : i32 to index
    %c0_351 = arith.constant 0 : index
    %809 = vector.load %arg15[%808, %c0_351] : memref<64x512xf32, #tpu.memory_space<vmem>>, vector<8x512xf32>
    %c0_352 = arith.constant 0 : index
    %c0_353 = arith.constant 0 : index
    %810 = vector.load %arg5[%c0_352, %c0_353] : memref<128x512xf32, #tpu.memory_space<vmem>>, vector<128x512xf32>
    %cst_354 = arith.constant dense<0.000000e+00> : vector<8x512xf32>
    %811 = tpu.matmul %804, %810, %cst_354 {dimension_numbers = #tpu.dot_dimension_numbers<[1], [0], [0], [1], [0, 0, 1, 1], [], []>} : vector<8x128xf32>, vector<128x512xf32>, vector<8x512xf32> -> vector<8x512xf32>
    %812 = arith.addf %809, %811 : vector<8x512xf32>
    %813 = arith.index_cast %803 : i32 to index
    %c0_355 = arith.constant 0 : index
    %814 = vector.load %arg16[%813, %c0_355] : memref<64x512xf32, #tpu.memory_space<vmem>>, vector<8x512xf32>
    %c0_356 = arith.constant 0 : index
    %c0_357 = arith.constant 0 : index
    %815 = vector.load %arg6[%c0_356, %c0_357] : memref<128x512xf32, #tpu.memory_space<vmem>>, vector<128x512xf32>
    %cst_358 = arith.constant dense<0.000000e+00> : vector<8x512xf32>
    %816 = tpu.matmul %805, %815, %cst_358 {dimension_numbers = #tpu.dot_dimension_numbers<[1], [0], [0], [1], [0, 0, 1, 1], [], []>} : vector<8x128xf32>, vector<128x512xf32>, vector<8x512xf32> -> vector<8x512xf32>
    %817 = arith.addf %814, %816 : vector<8x512xf32>
    %818 = vector.extract_strided_slice %812 {offsets = [0, 0], sizes = [8, 128], strides = [1, 1]} : vector<8x512xf32> to vector<8x128xf32>
    %819 = arith.negf %818 : vector<8x128xf32>
    %820 = math.exp %819 : vector<8x128xf32>
    %cst_359 = arith.constant 1.000000e+00 : f32
    %821 = vector.broadcast %cst_359 : f32 to vector<8x128xf32>
    %822 = arith.addf %821, %820 : vector<8x128xf32>
    %823 = arith.divf %821, %822 : vector<8x128xf32>
    %824 = vector.extract_strided_slice %812 {offsets = [0, 128], sizes = [8, 128], strides = [1, 1]} : vector<8x512xf32> to vector<8x128xf32>
    %825 = arith.negf %824 : vector<8x128xf32>
    %826 = math.exp %825 : vector<8x128xf32>
    %cst_360 = arith.constant 1.000000e+00 : f32
    %827 = vector.broadcast %cst_360 : f32 to vector<8x128xf32>
    %828 = arith.addf %827, %826 : vector<8x128xf32>
    %829 = arith.divf %827, %828 : vector<8x128xf32>
    %830 = vector.extract_strided_slice %812 {offsets = [0, 256], sizes = [8, 128], strides = [1, 1]} : vector<8x512xf32> to vector<8x128xf32>
    %831 = math.tanh %830 : vector<8x128xf32>
    %832 = vector.extract_strided_slice %812 {offsets = [0, 384], sizes = [8, 128], strides = [1, 1]} : vector<8x512xf32> to vector<8x128xf32>
    %833 = arith.negf %832 : vector<8x128xf32>
    %834 = math.exp %833 : vector<8x128xf32>
    %cst_361 = arith.constant 1.000000e+00 : f32
    %835 = vector.broadcast %cst_361 : f32 to vector<8x128xf32>
    %836 = arith.addf %835, %834 : vector<8x128xf32>
    %837 = arith.divf %835, %836 : vector<8x128xf32>
    %838 = arith.mulf %829, %806 : vector<8x128xf32>
    %839 = arith.mulf %823, %831 : vector<8x128xf32>
    %840 = arith.addf %838, %839 : vector<8x128xf32>
    %841 = math.tanh %840 : vector<8x128xf32>
    %842 = arith.mulf %837, %841 : vector<8x128xf32>
    %843 = vector.extract_strided_slice %817 {offsets = [0, 0], sizes = [8, 128], strides = [1, 1]} : vector<8x512xf32> to vector<8x128xf32>
    %844 = arith.negf %843 : vector<8x128xf32>
    %845 = math.exp %844 : vector<8x128xf32>
    %cst_362 = arith.constant 1.000000e+00 : f32
    %846 = vector.broadcast %cst_362 : f32 to vector<8x128xf32>
    %847 = arith.addf %846, %845 : vector<8x128xf32>
    %848 = arith.divf %846, %847 : vector<8x128xf32>
    %849 = vector.extract_strided_slice %817 {offsets = [0, 128], sizes = [8, 128], strides = [1, 1]} : vector<8x512xf32> to vector<8x128xf32>
    %850 = arith.negf %849 : vector<8x128xf32>
    %851 = math.exp %850 : vector<8x128xf32>
    %cst_363 = arith.constant 1.000000e+00 : f32
    %852 = vector.broadcast %cst_363 : f32 to vector<8x128xf32>
    %853 = arith.addf %852, %851 : vector<8x128xf32>
    %854 = arith.divf %852, %853 : vector<8x128xf32>
    %855 = vector.extract_strided_slice %817 {offsets = [0, 256], sizes = [8, 128], strides = [1, 1]} : vector<8x512xf32> to vector<8x128xf32>
    %856 = math.tanh %855 : vector<8x128xf32>
    %857 = vector.extract_strided_slice %817 {offsets = [0, 384], sizes = [8, 128], strides = [1, 1]} : vector<8x512xf32> to vector<8x128xf32>
    %858 = arith.negf %857 : vector<8x128xf32>
    %859 = math.exp %858 : vector<8x128xf32>
    %cst_364 = arith.constant 1.000000e+00 : f32
    %860 = vector.broadcast %cst_364 : f32 to vector<8x128xf32>
    %861 = arith.addf %860, %859 : vector<8x128xf32>
    %862 = arith.divf %860, %861 : vector<8x128xf32>
    %863 = arith.mulf %854, %807 : vector<8x128xf32>
    %864 = arith.mulf %848, %856 : vector<8x128xf32>
    %865 = arith.addf %863, %864 : vector<8x128xf32>
    %866 = math.tanh %865 : vector<8x128xf32>
    %867 = arith.mulf %862, %866 : vector<8x128xf32>
    %868 = arith.index_cast %c7_i32_339 : i32 to index
    %c0_365 = arith.constant 0 : index
    %c0_366 = arith.constant 0 : index
    %869 = vector.load %arg2[%868, %c0_365, %c0_366] : memref<8x8x1xf32, #tpu.memory_space<vmem>>, vector<1x8x1xf32>
    %870 = vector.shape_cast %869 : vector<1x8x1xf32> to vector<8x1xf32>
    %cst_367 = arith.constant 0.000000e+00 : f32
    %871 = vector.broadcast %cst_367 : f32 to vector<8x1xf32>
    %872 = arith.cmpf ogt, %870, %871 : vector<8x1xf32>
    %873 = arith.index_cast %799 : i32 to index
    %c0_368 = arith.constant 0 : index
    %c0_369 = arith.constant 0 : index
    %874 = vector.load %arg2[%873, %c0_368, %c0_369] : memref<8x8x1xf32, #tpu.memory_space<vmem>>, vector<1x8x1xf32>
    %875 = vector.shape_cast %874 : vector<1x8x1xf32> to vector<8x1xf32>
    %cst_370 = arith.constant 0.000000e+00 : f32
    %876 = vector.broadcast %cst_370 : f32 to vector<8x1xf32>
    %877 = arith.cmpf ogt, %875, %876 : vector<8x1xf32>
    %878 = vector.shape_cast %872 : vector<8x1xi1> to vector<8x1xi1>
    %879 = vector.broadcast %878 : vector<8x1xi1> to vector<8x128xi1>
    %880 = arith.select %879, %842, %804 : vector<8x128xi1>, vector<8x128xf32>
    %c0_371 = arith.constant 0 : index
    %c0_372 = arith.constant 0 : index
    %881 = vector.load %arg11[%c0_371, %c0_372] : memref<8x128xf32, #tpu.memory_space<vmem>>, vector<8x128xf32>
    tpu.vector_store %arg11[%c0_371, %c0_372], %880 {strides = array<i32>} : memref<8x128xf32, #tpu.memory_space<vmem>>, vector<8x128xf32>,
    %882 = vector.shape_cast %872 : vector<8x1xi1> to vector<8x1xi1>
    %883 = vector.broadcast %882 : vector<8x1xi1> to vector<8x128xi1>
    %884 = arith.select %883, %840, %806 : vector<8x128xi1>, vector<8x128xf32>
    %c0_373 = arith.constant 0 : index
    %c0_374 = arith.constant 0 : index
    %885 = vector.load %arg13[%c0_373, %c0_374] : memref<8x128xf32, #tpu.memory_space<vmem>>, vector<8x128xf32>
    tpu.vector_store %arg13[%c0_373, %c0_374], %884 {strides = array<i32>} : memref<8x128xf32, #tpu.memory_space<vmem>>, vector<8x128xf32>,
    %886 = vector.shape_cast %877 : vector<8x1xi1> to vector<8x1xi1>
    %887 = vector.broadcast %886 : vector<8x1xi1> to vector<8x128xi1>
    %888 = arith.select %887, %867, %805 : vector<8x128xi1>, vector<8x128xf32>
    %c0_375 = arith.constant 0 : index
    %c0_376 = arith.constant 0 : index
    %889 = vector.load %arg12[%c0_375, %c0_376] : memref<8x128xf32, #tpu.memory_space<vmem>>, vector<8x128xf32>
    tpu.vector_store %arg12[%c0_375, %c0_376], %888 {strides = array<i32>} : memref<8x128xf32, #tpu.memory_space<vmem>>, vector<8x128xf32>,
    %890 = vector.shape_cast %877 : vector<8x1xi1> to vector<8x1xi1>
    %891 = vector.broadcast %890 : vector<8x1xi1> to vector<8x128xi1>
    %892 = arith.select %891, %865, %807 : vector<8x128xi1>, vector<8x128xf32>
    %c0_377 = arith.constant 0 : index
    %c0_378 = arith.constant 0 : index
    %893 = vector.load %arg14[%c0_377, %c0_378] : memref<8x128xf32, #tpu.memory_space<vmem>>, vector<8x128xf32>
    tpu.vector_store %arg14[%c0_377, %c0_378], %892 {strides = array<i32>} : memref<8x128xf32, #tpu.memory_space<vmem>>, vector<8x128xf32>,
    %cst_379 = arith.constant 0.000000e+00 : f32
    %894 = vector.shape_cast %872 : vector<8x1xi1> to vector<8x1xi1>
    %895 = vector.broadcast %894 : vector<8x1xi1> to vector<8x128xi1>
    %896 = vector.broadcast %cst_379 : f32 to vector<8x128xf32>
    %897 = arith.select %895, %842, %896 : vector<8x128xi1>, vector<8x128xf32>
    %898 = arith.index_cast %c7_i32_339 : i32 to index
    %c0_380 = arith.constant 0 : index
    %c0_381 = arith.constant 0 : index
    %899 = vector.load %arg9[%898, %c0_380, %c0_381] : memref<8x8x128xf32, #tpu.memory_space<vmem>>, vector<1x8x128xf32>
    %900 = vector.shape_cast %899 : vector<1x8x128xf32> to vector<8x128xf32>
    %901 = vector.shape_cast %897 : vector<8x128xf32> to vector<1x8x128xf32>
    tpu.vector_store %arg9[%898, %c0_380, %c0_381], %901 {strides = array<i32>} : memref<8x8x128xf32, #tpu.memory_space<vmem>>, vector<1x8x128xf32>,
    %cst_382 = arith.constant 0.000000e+00 : f32
    %902 = vector.shape_cast %877 : vector<8x1xi1> to vector<8x1xi1>
    %903 = vector.broadcast %902 : vector<8x1xi1> to vector<8x128xi1>
    %904 = vector.broadcast %cst_382 : f32 to vector<8x128xf32>
    %905 = arith.select %903, %867, %904 : vector<8x128xi1>, vector<8x128xf32>
    %906 = arith.index_cast %799 : i32 to index
    %c0_383 = arith.constant 0 : index
    %c0_384 = arith.constant 0 : index
    %907 = vector.load %arg10[%906, %c0_383, %c0_384] : memref<8x8x128xf32, #tpu.memory_space<vmem>>, vector<1x8x128xf32>
    %908 = vector.shape_cast %907 : vector<1x8x128xf32> to vector<8x128xf32>
    %909 = vector.shape_cast %905 : vector<8x128xf32> to vector<1x8x128xf32>
    tpu.vector_store %arg10[%906, %c0_383, %c0_384], %909 {strides = array<i32>} : memref<8x8x128xf32, #tpu.memory_space<vmem>>, vector<1x8x128xf32>,
    %c8_i32_385 = arith.constant 8 : i32
    return
  }
  func.func @transform_0(%arg0: i32) -> (i32, i32) {
    %c0_i32 = arith.constant 0 : i32
    %c0_i32_0 = arith.constant 0 : i32
    %c0_i32_1 = arith.constant 0 : i32
    return %c0_i32, %c0_i32_0 : i32, i32
  }
  func.func @transform_1(%arg0: i32) -> (i32, i32, i32) {
    %c0_i32 = arith.constant 0 : i32
    %c0_i32_0 = arith.constant 0 : i32
    %c0_i32_1 = arith.constant 0 : i32
    %c0_i32_2 = arith.constant 0 : i32
    return %c0_i32, %c0_i32_0, %c0_i32_1 : i32, i32, i32
  }
  func.func @transform_2(%arg0: i32) -> (i32, i32) {
    %c0_i32 = arith.constant 0 : i32
    %c0_i32_0 = arith.constant 0 : i32
    %c0_i32_1 = arith.constant 0 : i32
    return %c0_i32, %c0_i32_0 : i32, i32
  }
  func.func @transform_3(%arg0: i32) -> (i32, i32) {
    %c0_i32 = arith.constant 0 : i32
    %c0_i32_0 = arith.constant 0 : i32
    %c0_i32_1 = arith.constant 0 : i32
    return %c0_i32, %c0_i32_0 : i32, i32
  }
  func.func @transform_4(%arg0: i32) -> (i32, i32) {
    %c0_i32 = arith.constant 0 : i32
    %c0_i32_0 = arith.constant 0 : i32
    %c0_i32_1 = arith.constant 0 : i32
    return %c0_i32, %c0_i32_0 : i32, i32
  }
  func.func @transform_5(%arg0: i32) -> (i32, i32) {
    %c0_i32 = arith.constant 0 : i32
    %c0_i32_0 = arith.constant 0 : i32
    %c0_i32_1 = arith.constant 0 : i32
    return %c0_i32, %c0_i32_0 : i32, i32
  }
  func.func @transform_6(%arg0: i32) -> (i32, i32) {
    %c0_i32 = arith.constant 0 : i32
    %c0_i32_0 = arith.constant 0 : i32
    %c0_i32_1 = arith.constant 0 : i32
    return %c0_i32, %c0_i32_0 : i32, i32
  }
  func.func @transform_7(%arg0: i32) -> (i32, i32) {
    %c0_i32 = arith.constant 0 : i32
    %c0_i32_0 = arith.constant 0 : i32
    %c0_i32_1 = arith.constant 0 : i32
    return %c0_i32, %c0_i32_0 : i32, i32
  }
  func.func @transform_8(%arg0: i32) -> (i32, i32, i32) {
    %c0_i32 = arith.constant 0 : i32
    %c0_i32_0 = arith.constant 0 : i32
    %c0_i32_1 = arith.constant 0 : i32
    %c0_i32_2 = arith.constant 0 : i32
    return %c0_i32, %c0_i32_0, %c0_i32_1 : i32, i32, i32
  }
  func.func @transform_9(%arg0: i32) -> (i32, i32, i32) {
    %c0_i32 = arith.constant 0 : i32
    %c0_i32_0 = arith.constant 0 : i32
    %c0_i32_1 = arith.constant 0 : i32
    %c0_i32_2 = arith.constant 0 : i32
    return %c0_i32, %c0_i32_0, %c0_i32_1 : i32, i32, i32
  }
}

</mosaic_0001>

<bundles_post_ra>
// kernel: tpu_custom_call.1
= control target key start
LH: loop header
LB: loop body
LE: loop exit
PB: predicated region body
PF: predicated region fallthrough
CT: control target
= control target key end

     0   :  { %15 = vsyncpa [#allocation9], 0  ;;  %s8030_s0 = inlined_call_operand.vmem [shape: f32[64,32], index: 0, kind: input, shape index: {}]   ;;  %s8031_s1 = inlined_call_operand.vmem [shape: f32[8,8,1], index: 1, kind: input, shape index: {}]   ;;  %s8032_s2 = inlined_call_operand.vmem [shape: bf16[32,512], index: 2, kind: input, shape index: {}]   ;;  %s8033_s3 = inlined_call_operand.vmem [shape: bf16[32,512], index: 3, kind: input, shape index: {}]   ;;  %s8034_s4 = inlined_call_operand.hbm [shape: f32[128,512], index: 4, kind: input, shape index: {}]   ;;  %s8035_s5 = inlined_call_operand.hbm [shape: f32[128,512], index: 5, kind: input, shape index: {}]   ;;  %s8036_s6 = inlined_call_operand.vmem [shape: f32[1,512], index: 6, kind: input, shape index: {}]   ;;  %s8037_s7 = inlined_call_operand.vmem [shape: f32[1,512], index: 7, kind: input, shape index: {}]   ;;  %s8038_s8 = inlined_call_operand.hbm [shape: f32[8,8,128], index: 8, kind: output, shape index: {0}]   ;;  %s8039_s9 = inlined_call_operand.hbm [shape: f32[8,8,128], index: 9, kind: output, shape index: {1}]  }
   0x1   :  { %16 = vsyncpa [#allocation12], 0 }
   0x2   :  { %17 = vsyncpa [#allocation10], 0 }
   0x3   :  { %18 = vsyncpa [#allocation15], 0  ;;  %s31_s11 = sshll.u32 %s8034_s4, 4  ;;  %s4855_s12 = smov [#allocation8]   ;;  %s32_s11 = int_to_ptr.hbm [resolvable:$true] %s31_s11 }
   0x4   :  { %s33_s13 = sshll.u32 %s4855_s12, 4  ;;  %s44_s16 = sshll.u32 %s8035_s5, 4  ;;  %s34_s13 = int_to_ptr.vmem [resolvable:$true] %s33_s13  ;;  %s45_s16 = int_to_ptr.hbm [resolvable:$true] %s44_s16 }
   0x5   :  { %s4856_s17 = smov 512   ;;  %s4857_s18 = smov 32  }
   0x6   :  { %39 = dma.hbm_to_vmem [thread:$0]  %s32_s11, 8192, %s34_s13, [#allocation9], %s4856_s17, %s4856_s17, %s4857_s18  }
   0x7   :  { %s4858_s19 = smov [#allocation11]  }
   0x8   :  { %s46_s20 = sshll.u32 %s4858_s19, 4  ;;  %s47_s20 = int_to_ptr.vmem [resolvable:$true] %s46_s20 }
   0x9   :  { %52 = dma.hbm_to_vmem [thread:$0]  %s45_s16, 8192, %s47_s20, [#allocation12], %s4856_s17, %s4856_s17, %s4857_s18  }
   0xa   :  { %4847 = dma.done.wait [#allocation9], 8192  }
   0xb   :  { %4848 = vsyncadd [#allocation9], 4294959104 }
   0xc   :  { %4849 = dma.done.wait [#allocation12], 8192  }
   0xd   :  { %4850 = vsyncadd [#allocation12], 4294959104  ;;  %v4318_v0 = vld [vmem:[%s8032_s2 + $0x20] sm:$0xf]  ;;  %v4464_v1 = vld [vmem:[%s8032_s2 + $0x2c] sm:$0xf0] }
   0xe   :  { %v4462_v2 = vld [vmem:[%s8032_s2 + $0x24] sm:$0xf]  ;;  %v4319_v3 = vor.u32 %v4464_v1, %v4318_v0  ;;  %v4320_v4 = vld [vmem:[%s8032_s2 + $0x30] sm:$0xf0]  ;;  %v4326_v5 = vld [vmem:[%s8032_s2 + $0x28] sm:$0xf] }
   0xf   :  { %v4465_v6 = vld [vmem:[%s8032_s2 + $0x34] sm:$0xf0]  ;;  %v4323_v7 = vor.u32 %v4462_v2, %v4320_v4  ;;  %v4463_v9 = vld [vmem:[%s8032_s2 + $0x2c] sm:$0xf]  ;;  %v4328_v10 = vld [vmem:[%s8032_s2 + $0x38] sm:$0xf0] }
  0x10   :  { %v4327_v8 = vor.u32 %v4465_v6, %v4326_v5  ;;  %v4302_v11 = vld [vmem:[%s8032_s2] sm:$0xf]  ;;  %155 = vmatpush.bf16.msra.mxu0 %v4319_v3  ;;  %v4331_v12 = vor.u32 %v4463_v9, %v4328_v10  ;;  %v4460_v13 = vld [vmem:[%s8032_s2 + $0xc] sm:$0xf0]  ;;  %v4458_v14 = vld [vmem:[%s8032_s2 + $0x4] sm:$0xf] }
  0x11   :  { %v4304_v15 = vld [vmem:[%s8032_s2 + $0x10] sm:$0xf0]  ;;  %184 = vmatpush.bf16.msra.mxu1 %v4323_v7  ;;  %v4303_v16 = vor.u32 %v4460_v13, %v4302_v11  ;;  %v4310_v18 = vld [vmem:[%s8032_s2 + $0x8] sm:$0xf]  ;;  %v4461_v19 = vld [vmem:[%s8032_s2 + $0x14] sm:$0xf0] }
  0x12   :  { %213 = vmatpush.bf16.msra.mxu2 %v4327_v8  ;;  %v4307_v17 = vor.u32 %v4458_v14, %v4304_v15  ;;  %v4459_v20 = vld [vmem:[%s8032_s2 + $0xc] sm:$0xf]  ;;  %242 = vmatpush.bf16.msra.mxu3 %v4331_v12  ;;  %v4311_v21 = vor.u32 %v4461_v19, %v4310_v18  ;;  %v4312_v22 = vld [vmem:[%s8032_s2 + $0x18] sm:$0xf0]  ;;  %v66_v23 = vld [vmem:[%s8030_s0] sm:$0xff]  ;;  %vm136_vm0 = vcmask 261120  }
  0x13   :  { %v67_v24 = vld [vmem:[%s8030_s0 + $0x8] sm:$0xff]  ;;  %v4315_v25 = vor.u32 %v4459_v20, %v4312_v22  ;;  %v4366_v27 = vld [vmem:[%s8033_s3 + $0x20] sm:$0xf]  ;;  %v4472_v28 = vld [vmem:[%s8033_s3 + $0x2c] sm:$0xf0]  ;;  %s4254_s24 = sshll.u32 %s8038_s8, 4  ;;  %s4255_s24 = int_to_ptr.hbm [resolvable:$true] %s4254_s24 }
  0x14   :  { %v4975_v26 = vpack.c.bf16 %v67_v24, %v66_v23  ;;  %v4470_v29 = vld [vmem:[%s8033_s3 + $0x24] sm:$0xf]  ;;  %156 = vmatpush.bf16.msra.mxu0 %v4303_v16  ;;  %v4367_v30 = vor.u32 %v4472_v28, %v4366_v27  ;;  %v4368_v31 = vld [vmem:[%s8033_s3 + $0x30] sm:$0xf0]  ;;  %v4471_v32 = vld [vmem:[%s8033_s3 + $0x2c] sm:$0xf] }
  0x15   :  { %v4376_v33 = vld [vmem:[%s8033_s3 + $0x38] sm:$0xf0]  ;;  %185 = vmatpush.bf16.msra.mxu1 %v4307_v17  ;;  %v4371_v34 = vor.u32 %v4470_v29, %v4368_v31  ;;  %v4374_v35 = vld [vmem:[%s8033_s3 + $0x28] sm:$0xf]  ;;  %v4473_v36 = vld [vmem:[%s8033_s3 + $0x34] sm:$0xf0] }
  0x16   :  { %214 = vmatpush.bf16.msra.mxu2 %v4311_v21  ;;  %243 = vmatpush.bf16.msra.mxu3 %v4315_v25  ;;  %v4379_v37 = vor.u32 %v4471_v32, %v4376_v33  ;;  %v4375_v38 = vor.u32 %v4473_v36, %v4374_v35  ;;  %v4350_v39 = vld [vmem:[%s8033_s3] sm:$0xf]  ;;  %v4468_v40 = vld [vmem:[%s8033_s3 + $0xc] sm:$0xf0]  ;;  %v4466_v41 = vld [vmem:[%s8033_s3 + $0x4] sm:$0xf] }
  0x17   :  { %4332 = vmatmul.msk.bf16.vlgmr.msra.gmra.mxu0 %vm136_vm0, %v4975_v26  ;;  %v4351_v42 = vor.u32 %v4468_v40, %v4350_v39  ;;  %v4352_v43 = vld [vmem:[%s8033_s3 + $0x10] sm:$0xf0]  ;;  %v4467_v44 = vld [vmem:[%s8033_s3 + $0xc] sm:$0xf]  ;;  %v4360_v45 = vld [vmem:[%s8033_s3 + $0x18] sm:$0xf0] }
  0x18   :  { %361 = vmatpush.bf16.msrb.mxu0 %v4367_v30  ;;  %4336 = vmatmul.msk.bf16.vlgmr.msra.gmra.mxu1 %vm136_vm0, %v4975_v26  ;;  %v4355_v46 = vor.u32 %v4466_v41, %v4352_v43  ;;  %v4363_v47 = vor.u32 %v4467_v44, %v4360_v45  ;;  %v4358_v48 = vld [vmem:[%s8033_s3 + $0x8] sm:$0xf]  ;;  %v4469_v49 = vld [vmem:[%s8033_s3 + $0x14] sm:$0xf0]  ;;  %v68_v51 = vld [vmem:[%s8030_s0 + $0x10] sm:$0xff]  ;;  %s4862_s8 = smov 128  }
  0x19   :  { %390 = vmatpush.bf16.msrb.mxu1 %v4371_v34  ;;  %4340 = vmatmul.msk.bf16.vlgmr.msra.gmra.mxu2 %vm136_vm0, %v4975_v26  ;;  %v4359_v50 = vor.u32 %v4469_v49, %v4358_v48  ;;  %v69_v52 = vld [vmem:[%s8030_s0 + $0x18] sm:$0xff]  ;;  %v70_v54 = vld [vmem:[%s8030_s0 + $0x20] sm:$0xff]  ;;  %v71_v55 = vld [vmem:[%s8030_s0 + $0x28] sm:$0xff]  ;;  %s4863_s25 = smov 8   ;;  %s4864_s26 = smov [#allocation14]  }
  0x1a   :  { %4344 = vmatmul.msk.bf16.vlgmr.msra.gmra.mxu3 %vm136_vm0, %v4975_v26  ;;  %419 = vmatpush.bf16.msrb.mxu2 %v4375_v38  ;;  %v5039_v53 = vpack.c.bf16 %v69_v52, %v68_v51  ;;  %v5055_v56 = vpack.c.bf16 %v71_v55, %v70_v54  ;;  %v5065_v57 = vld [vmem:[#allocation8 + $0x1e0] sm:$0xff]  ;;  %v5067_v58 = vld [vmem:[#allocation8 + $0x1e8] sm:$0xff]  ;;  %v5075_v61 = vld [vmem:[#allocation8 + $0x1f8] sm:$0xff]  ;;  %s4267_s29 = sshll.u32 %s8039_s9, 4  ;;  %s4268_s29 = int_to_ptr.hbm [resolvable:$true] %s4267_s29 }
  0x1b   :  { %448 = vmatpush.bf16.msrb.mxu3 %v4379_v37  ;;  %v5069_v59 = vld [vmem:[#allocation8 + $0x1c0] sm:$0xff]  ;;  %v5073_v60 = vld [vmem:[#allocation8 + $0x1c8] sm:$0xff]  ;;  %v5082_v0 = vld [vmem:[#allocation8 + $0x1d8] sm:$0xff] }
  0x1c   :  { %362 = vmatpush.bf16.msrb.mxu0 %v4351_v42  ;;  %v5077_v62 = vld [vmem:[#allocation8 + $0x1a0] sm:$0xff]  ;;  %v5080_v63 = vld [vmem:[#allocation8 + $0x1a8] sm:$0xff]  ;;  %v5084_v1 = vld [vmem:[#allocation8 + $0x1f0] sm:$0xff] }
  0x1d   :  { %391 = vmatpush.bf16.msrb.mxu1 %v4355_v46  ;;  %v5088_v2 = vld [vmem:[#allocation8 + $0x1d0] sm:$0xff]  ;;  %v5092_v3 = vld [vmem:[#allocation8 + $0x180] sm:$0xff]  ;;  %v5094_v4 = vld [vmem:[#allocation8 + $0x188] sm:$0xff] }
  0x1e   :  { %420 = vmatpush.bf16.msrb.mxu2 %v4359_v50  ;;  %v5096_v5 = vld [vmem:[#allocation8 + $0x1b8] sm:$0xff]  ;;  %v5100_v6 = vld [vmem:[#allocation8 + $0x1b0] sm:$0xff]  ;;  %v5127_v12 = vld [vmem:[#allocation8 + $0x160] sm:$0xff] }
  0x1f   :  { %449 = vmatpush.bf16.msrb.mxu3 %v4363_v47  ;;  %v72_v7 = vld [vmem:[%s8030_s0 + $0x30] sm:$0xff]  ;;  %v73_v8 = vld [vmem:[%s8030_s0 + $0x38] sm:$0xff]  ;;  %v5129_v13 = vld [vmem:[#allocation8 + $0x168] sm:$0xff]  ;;  %s4265_s0 = sshll.u32 %s4864_s26, 4  ;;  %s4266_s0 = int_to_ptr.vmem [resolvable:$true] %s4265_s0 }
  0x20   :  { %582 = vmatpush.msra.mxu0 %v5065_v57  ;;  %v5113_v9 = vpack.c.bf16 %v73_v8, %v72_v7  ;;  %v5121_v10 = vld [vmem:[#allocation8 + $0x190] sm:$0xff]  ;;  %v5123_v11 = vld [vmem:[#allocation8 + $0x198] sm:$0xff]  ;;  %v5138_v16 = vld [vmem:[#allocation8 + $0x140] sm:$0xff] }
  0x21   :  { %602 = vmatpush.msra.mxu1 %v5067_v58  ;;  %v5132_v14 = vld [vmem:[#allocation8 + $0x170] sm:$0xff]  ;;  %v5136_v15 = vld [vmem:[#allocation8 + $0x178] sm:$0xff]  ;;  %v5140_v17 = vld [vmem:[#allocation8 + $0x148] sm:$0xff] }
  0x22   :  { %583 = vmatpush.msra.mxu0 %v5069_v59  ;;  %622 = vmatpush.msra.mxu2 %v5084_v1  ;;  %v5144_v18 = vld [vmem:[#allocation8 + $0x150] sm:$0xff]  ;;  %v5146_v19 = vld [vmem:[#allocation8 + $0x120] sm:$0xff]  ;;  %v5150_v20 = vld [vmem:[#allocation8 + $0x158] sm:$0xff] }
  0x23   :  { %642 = vmatpush.msra.mxu3 %v5075_v61  ;;  %603 = vmatpush.msra.mxu1 %v5073_v60  ;;  %v5152_v21 = vld [vmem:[#allocation8 + $0x128] sm:$0xff]  ;;  %v5154_v22 = vld [vmem:[#allocation8 + $0x130] sm:$0xff]  ;;  %v5158_v23 = vld [vmem:[#allocation8 + $0x100] sm:$0xff] }
  0x24   :  { %584 = vmatpush.msra.mxu0 %v5077_v62  ;;  %623 = vmatpush.msra.mxu2 %v5088_v2  ;;  %v5160_v24 = vld [vmem:[#allocation8 + $0x108] sm:$0xff]  ;;  %v5164_v25 = vld [vmem:[#allocation8 + $0x138] sm:$0xff]  ;;  %v5166_v27 = vld [vmem:[#allocation8 + $0x110] sm:$0xff] }
  0x25   :  { %643 = vmatpush.msra.mxu3 %v5082_v0  ;;  %604 = vmatpush.msra.mxu1 %v5080_v63  ;;  %v5170_v28 = vld [vmem:[#allocation8 + $0xe0] sm:$0xff]  ;;  %v5172_v29 = vld [vmem:[#allocation8 + $0xe8] sm:$0xff]  ;;  %v5176_v30 = vld [vmem:[#allocation8 + $0x118] sm:$0xff] }
  0x26   :  { %585 = vmatpush.msra.mxu0 %v5092_v3  ;;  %624 = vmatpush.msra.mxu2 %v5100_v6  ;;  %v5178_v31 = vld [vmem:[#allocation8 + $0xf0] sm:$0xff]  ;;  %v542_v32 = vld [vmem:[#allocation8 + $0xc0] sm:$0xff]  ;;  %v543_v33 = vld [vmem:[#allocation8 + $0xc8] sm:$0xff] }
  0x27   :  { %4333 = vmatmul.msk.bf16.gmra.mxu0 %vm136_vm0, %v5039_v53  ;;  %644 = vmatpush.msra.mxu3 %v5096_v5  ;;  %v5184_v34 = vld [vmem:[#allocation8 + $0xf8] sm:$0xff]  ;;  %v544_v35 = vld [vmem:[#allocation8 + $0xd0] sm:$0xff]  ;;  %v538_v36 = vld [vmem:[#allocation8 + $0xa0] sm:$0xff] }
  0x28   :  { %4337 = vmatmul.msk.bf16.gmra.mxu1 %vm136_vm0, %v5039_v53  ;;  %625 = vmatpush.msra.mxu2 %v5121_v10  ;;  %v539_v37 = vld [vmem:[#allocation8 + $0xa8] sm:$0xff]  ;;  %v545_v38 = vld [vmem:[#allocation8 + $0xd8] sm:$0xff]  ;;  %v540_v39 = vld [vmem:[#allocation8 + $0xb0] sm:$0xff] }
  0x29   :  { %4341 = vmatmul.msk.bf16.gmra.mxu2 %vm136_vm0, %v5039_v53  ;;  %605 = vmatpush.msra.mxu1 %v5094_v4  ;;  %v541_v40 = vld [vmem:[#allocation8 + $0xb8] sm:$0xff]  ;;  %v534_v41 = vld [vmem:[#allocation8 + $0x80] sm:$0xff]  ;;  %v535_v42 = vld [vmem:[#allocation8 + $0x88] sm:$0xff] }
  0x2a   :  { %4345 = vmatmul.msk.bf16.gmra.mxu3 %vm136_vm0, %v5039_v53  ;;  %586 = vmatpush.msra.mxu0 %v5127_v12  ;;  %v536_v43 = vld [vmem:[#allocation8 + $0x90] sm:$0xff]  ;;  %v537_v44 = vld [vmem:[#allocation8 + $0x98] sm:$0xff]  ;;  %v530_v45 = vld [vmem:[#allocation8 + $0x60] sm:$0xff] }
  0x2b   :  { %606 = vmatpush.msra.mxu1 %v5129_v13  ;;  %645 = vmatpush.msra.mxu3 %v5123_v11  ;;  %v531_v46 = vld [vmem:[#allocation8 + $0x68] sm:$0xff]  ;;  %v532_v47 = vld [vmem:[#allocation8 + $0x70] sm:$0xff]  ;;  %v533_v48 = vld [vmem:[#allocation8 + $0x78] sm:$0xff] }
  0x2c   :  { %626 = vmatpush.msra.mxu2 %v5132_v14  ;;  %587 = vmatpush.msra.mxu0 %v5138_v16  ;;  %v526_v49 = vld [vmem:[#allocation8 + $0x40] sm:$0xff]  ;;  %v527_v50 = vld [vmem:[#allocation8 + $0x48] sm:$0xff]  ;;  %v528_v51 = vld [vmem:[#allocation8 + $0x50] sm:$0xff] }
  0x2d   :  { %607 = vmatpush.msra.mxu1 %v5140_v17  ;;  %646 = vmatpush.msra.mxu3 %v5136_v15  ;;  %v529_v52 = vld [vmem:[#allocation8 + $0x58] sm:$0xff]  ;;  %v522_v54 = vld [vmem:[#allocation8 + $0x20] sm:$0xff]  ;;  %v524_v55 = vld [vmem:[#allocation8 + $0x30] sm:$0xff] }
  0x2e   :  { %627 = vmatpush.msra.mxu2 %v5144_v18  ;;  %588 = vmatpush.msra.mxu0 %v5146_v19  ;;  %v525_v7 = vld [vmem:[#allocation8 + $0x38] sm:$0xff]  ;;  %v518_v8 = vld [vmem:[#allocation8] sm:$0xff] }
  0x2f   :  { %608 = vmatpush.msra.mxu1 %v5152_v21  ;;  %647 = vmatpush.msra.mxu3 %v5150_v20 }
  0x30   :  { %628 = vmatpush.msra.mxu2 %v5154_v22  ;;  %589 = vmatpush.msra.mxu0 %v5158_v23 }
  0x31   :  { %609 = vmatpush.msra.mxu1 %v5160_v24  ;;  %648 = vmatpush.msra.mxu3 %v5164_v25 }
  0x32   :  { %629 = vmatpush.msra.mxu2 %v5166_v27  ;;  %590 = vmatpush.msra.mxu0 %v5170_v28 }
  0x33   :  { %610 = vmatpush.msra.mxu1 %v5172_v29  ;;  %649 = vmatpush.msra.mxu3 %v5176_v30 }
  0x34   :  { %630 = vmatpush.msra.mxu2 %v5178_v31  ;;  %591 = vmatpush.msra.mxu0 %v542_v32  ;;  %v519_v32 = vld [vmem:[#allocation8 + $0x8] sm:$0xff] }
  0x35   :  { %611 = vmatpush.msra.mxu1 %v543_v33  ;;  %650 = vmatpush.msra.mxu3 %v5184_v34  ;;  %v520_v33 = vld [vmem:[#allocation8 + $0x10] sm:$0xff] }
  0x36   :  { %631 = vmatpush.msra.mxu2 %v544_v35  ;;  %592 = vmatpush.msra.mxu0 %v538_v36  ;;  %v521_v35 = vld [vmem:[#allocation8 + $0x18] sm:$0xff]  ;;  %v733_v36 = vld [vmem:[#allocation11 + $0x1e0] sm:$0xff] }
  0x37   :  { %4334 = vmatmul.msk.bf16.gmra.mxu0 %vm136_vm0, %v5055_v56  ;;  %612 = vmatpush.msra.mxu1 %v539_v37  ;;  %v734_v37 = vld [vmem:[#allocation11 + $0x1e8] sm:$0xff] }
  0x38   :  { %4338 = vmatmul.msk.bf16.gmra.mxu1 %vm136_vm0, %v5055_v56  ;;  %651 = vmatpush.msra.mxu3 %v545_v38  ;;  %v735_v38 = vld [vmem:[#allocation11 + $0x1f0] sm:$0xff] }
  0x39   :  { %4342 = vmatmul.msk.bf16.gmra.mxu2 %vm136_vm0, %v5055_v56  ;;  %593 = vmatpush.msra.mxu0 %v534_v41  ;;  %v730_v41 = vld [vmem:[#allocation11 + $0x1c8] sm:$0xff] }
  0x3a   :  { %4346 = vmatmul.msk.bf16.gmra.mxu3 %vm136_vm0, %v5055_v56  ;;  %632 = vmatpush.msra.mxu2 %v540_v39  ;;  %v736_v39 = vld [vmem:[#allocation11 + $0x1f8] sm:$0xff] }
  0x3b   :  { %652 = vmatpush.msra.mxu3 %v541_v40  ;;  %613 = vmatpush.msra.mxu1 %v535_v42  ;;  %v729_v40 = vld [vmem:[#allocation11 + $0x1c0] sm:$0xff]  ;;  %v731_v42 = vld [vmem:[#allocation11 + $0x1d0] sm:$0xff] }
  0x3c   :  { %633 = vmatpush.msra.mxu2 %v536_v43  ;;  %594 = vmatpush.msra.mxu0 %v530_v45  ;;  %v732_v43 = vld [vmem:[#allocation11 + $0x1d8] sm:$0xff]  ;;  %v726_v45 = vld [vmem:[#allocation11 + $0x1a8] sm:$0xff] }
  0x3d   :  { %653 = vmatpush.msra.mxu3 %v537_v44  ;;  %614 = vmatpush.msra.mxu1 %v531_v46  ;;  %v725_v44 = vld [vmem:[#allocation11 + $0x1a0] sm:$0xff]  ;;  %v727_v46 = vld [vmem:[#allocation11 + $0x1b0] sm:$0xff] }
  0x3e   :  { %634 = vmatpush.msra.mxu2 %v532_v47  ;;  %595 = vmatpush.msra.mxu0 %v526_v49  ;;  %v728_v47 = vld [vmem:[#allocation11 + $0x1b8] sm:$0xff]  ;;  %v722_v49 = vld [vmem:[#allocation11 + $0x188] sm:$0xff] }
  0x3f   :  { %654 = vmatpush.msra.mxu3 %v533_v48  ;;  %615 = vmatpush.msra.mxu1 %v527_v50  ;;  %v721_v48 = vld [vmem:[#allocation11 + $0x180] sm:$0xff]  ;;  %v723_v50 = vld [vmem:[#allocation11 + $0x190] sm:$0xff] }
  0x40   :  { %635 = vmatpush.msra.mxu2 %v528_v51  ;;  %596 = vmatpush.msra.mxu0 %v522_v54  ;;  %v724_v51 = vld [vmem:[#allocation11 + $0x198] sm:$0xff]  ;;  %v718_v54 = vld [vmem:[#allocation11 + $0x168] sm:$0xff] }
  0x41   :  { %655 = vmatpush.msra.mxu3 %v529_v52  ;;  %v717_v52 = vld [vmem:[#allocation11 + $0x160] sm:$0xff] }
  0x42   :  { %636 = vmatpush.msra.mxu2 %v524_v55  ;;  %597 = vmatpush.msra.mxu0 %v518_v8  ;;  %v720_v55 = vld [vmem:[#allocation11 + $0x178] sm:$0xff]  ;;  %v715_v8 = vld [vmem:[#allocation11 + $0x150] sm:$0xff] }
  0x43   :  { %656 = vmatpush.msra.mxu3 %v525_v7  ;;  %v713_v7 = vld [vmem:[#allocation11 + $0x140] sm:$0xff] }
  0x44   :  { %637 = vmatpush.msra.mxu2 %v520_v33  ;;  %v709_v33 = vld [vmem:[#allocation11 + $0x120] sm:$0xff] }
  0x45   :  { %657 = vmatpush.msra.mxu3 %v521_v35  ;;  %v710_v35 = vld [vmem:[#allocation11 + $0x128] sm:$0xff] }
  0x47   :  { %4335 = vmatmul.msk.bf16.gmra.mxu0 %vm136_vm0, %v5113_v9 }
  0x48   :  { %4339 = vmatmul.msk.bf16.gmra.mxu1 %vm136_vm0, %v5113_v9 }
  0x49   :  { %4343 = vmatmul.msk.bf16.gmra.mxu2 %vm136_vm0, %v5113_v9 }
  0x4a   :  { %4347 = vmatmul.msk.bf16.gmra.mxu3 %vm136_vm0, %v5113_v9 }
  0x57   :  { %4380 = vmatmul.msk.bf16.vlgmr.msrb.gmra.mxu0 %vm136_vm0, %v4975_v26 }
  0x58   :  { %4384 = vmatmul.msk.bf16.vlgmr.msrb.gmra.mxu1 %vm136_vm0, %v4975_v26  ;;  %737 = vmatpush.msrb.mxu0 %v733_v36  ;;  %v711_v36 = vld [vmem:[#allocation11 + $0x130] sm:$0xff] }
  0x59   :  { %4388 = vmatmul.msk.bf16.vlgmr.msrb.gmra.mxu2 %vm136_vm0, %v4975_v26 }
  0x5a   :  { %4392 = vmatmul.msk.bf16.vlgmr.msrb.gmra.mxu3 %vm136_vm0, %v4975_v26  ;;  %v523_v26 = vld [vmem:[#allocation8 + $0x28] sm:$0xff]  ;;  %777 = vmatpush.msrb.mxu2 %v735_v38  ;;  %v705_v38 = vld [vmem:[#allocation11 + $0x100] sm:$0xff] }
  0x5b   :  { %616 = vmatpush.msra.mxu1 %v523_v26  ;;  %797 = vmatpush.msrb.mxu3 %v736_v39  ;;  %v719_v26 = vld [vmem:[#allocation11 + $0x170] sm:$0xff]  ;;  %v706_v39 = vld [vmem:[#allocation11 + $0x108] sm:$0xff] }
  0x5c   :  { %738 = vmatpush.msrb.mxu0 %v729_v40  ;;  %778 = vmatpush.msrb.mxu2 %v731_v42  ;;  %v707_v40 = vld [vmem:[#allocation11 + $0x110] sm:$0xff]  ;;  %v701_v42 = vld [vmem:[#allocation11 + $0xe0] sm:$0xff] }
  0x5d   :  { %617 = vmatpush.msra.mxu1 %v519_v32  ;;  %798 = vmatpush.msrb.mxu3 %v732_v43  ;;  %v716_v32 = vld [vmem:[#allocation11 + $0x158] sm:$0xff]  ;;  %v702_v43 = vld [vmem:[#allocation11 + $0xe8] sm:$0xff] }
  0x5e   :  { %739 = vmatpush.msrb.mxu0 %v725_v44  ;;  %779 = vmatpush.msrb.mxu2 %v727_v46  ;;  %v703_v44 = vld [vmem:[#allocation11 + $0xf0] sm:$0xff]  ;;  %v697_v46 = vld [vmem:[#allocation11 + $0xc0] sm:$0xff] }
  0x5f   :  { %757 = vmatpush.msrb.mxu1 %v734_v37  ;;  %799 = vmatpush.msrb.mxu3 %v728_v47  ;;  %v712_v37 = vld [vmem:[#allocation11 + $0x138] sm:$0xff]  ;;  %v698_v47 = vld [vmem:[#allocation11 + $0xc8] sm:$0xff] }
  0x60   :  { %740 = vmatpush.msrb.mxu0 %v721_v48  ;;  %780 = vmatpush.msrb.mxu2 %v723_v50  ;;  %v699_v48 = vld [vmem:[#allocation11 + $0xd0] sm:$0xff]  ;;  %v693_v50 = vld [vmem:[#allocation11 + $0xa0] sm:$0xff] }
  0x61   :  { %758 = vmatpush.msrb.mxu1 %v730_v41  ;;  %800 = vmatpush.msrb.mxu3 %v724_v51  ;;  %v708_v41 = vld [vmem:[#allocation11 + $0x118] sm:$0xff]  ;;  %v694_v51 = vld [vmem:[#allocation11 + $0xa8] sm:$0xff] }
  0x62   :  { %741 = vmatpush.msrb.mxu0 %v717_v52  ;;  %781 = vmatpush.msrb.mxu2 %v719_v26  ;;  %v695_v52 = vld [vmem:[#allocation11 + $0xb0] sm:$0xff]  ;;  %v689_v26 = vld [vmem:[#allocation11 + $0x80] sm:$0xff] }
  0x63   :  { %759 = vmatpush.msrb.mxu1 %v726_v45  ;;  %801 = vmatpush.msrb.mxu3 %v720_v55  ;;  %v704_v45 = vld [vmem:[#allocation11 + $0xf8] sm:$0xff]  ;;  %v690_v55 = vld [vmem:[#allocation11 + $0x88] sm:$0xff] }
  0x64   :  { %742 = vmatpush.msrb.mxu0 %v713_v7  ;;  %782 = vmatpush.msrb.mxu2 %v715_v8  ;;  %v691_v7 = vld [vmem:[#allocation11 + $0x90] sm:$0xff]  ;;  %v685_v8 = vld [vmem:[#allocation11 + $0x60] sm:$0xff] }
  0x65   :  { %760 = vmatpush.msrb.mxu1 %v722_v49  ;;  %802 = vmatpush.msrb.mxu3 %v716_v32  ;;  %v700_v49 = vld [vmem:[#allocation11 + $0xd8] sm:$0xff]  ;;  %v687_v32 = vld [vmem:[#allocation11 + $0x70] sm:$0xff] }
  0x66   :  { %743 = vmatpush.msrb.mxu0 %v709_v33  ;;  %783 = vmatpush.msrb.mxu2 %v711_v36  ;;  %v688_v33 = vld [vmem:[#allocation11 + $0x78] sm:$0xff]  ;;  %v682_v36 = vld [vmem:[#allocation11 + $0x48] sm:$0xff] }
  0x67   :  { %4381 = vmatmul.msk.bf16.gmra.mxu0 %vm136_vm0, %v5039_v53  ;;  %761 = vmatpush.msrb.mxu1 %v718_v54  ;;  %v696_v54 = vld [vmem:[#allocation11 + $0xb8] sm:$0xff] }
  0x68   :  { %4385 = vmatmul.msk.bf16.gmra.mxu1 %vm136_vm0, %v5039_v53  ;;  %803 = vmatpush.msrb.mxu3 %v712_v37  ;;  %v683_v37 = vld [vmem:[#allocation11 + $0x50] sm:$0xff] }
  0x69   :  { %4389 = vmatmul.msk.bf16.gmra.mxu2 %vm136_vm0, %v5039_v53  ;;  %744 = vmatpush.msrb.mxu0 %v705_v38  ;;  %v684_v38 = vld [vmem:[#allocation11 + $0x58] sm:$0xff] }
  0x6a   :  { %4393 = vmatmul.msk.bf16.gmra.mxu3 %vm136_vm0, %v5039_v53  ;;  %v714_v53 = vld [vmem:[#allocation11 + $0x148] sm:$0xff]  ;;  %784 = vmatpush.msrb.mxu2 %v707_v40 }
  0x6b   :  { %762 = vmatpush.msrb.mxu1 %v714_v53  ;;  %804 = vmatpush.msrb.mxu3 %v708_v41  ;;  %v692_v53 = vld [vmem:[#allocation11 + $0x98] sm:$0xff]  ;;  %v678_v40 = vld [vmem:[#allocation11 + $0x28] sm:$0xff]  ;;  %v679_v41 = vld [vmem:[#allocation11 + $0x30] sm:$0xff] }
  0x6c   :  { %745 = vmatpush.msrb.mxu0 %v701_v42  ;;  %785 = vmatpush.msrb.mxu2 %v703_v44  ;;  %v680_v42 = vld [vmem:[#allocation11 + $0x38] sm:$0xff]  ;;  %v947_v44 = vld [vmem:[%s8031_s1] sm:$0xff] }
  0x6d   :  { %763 = vmatpush.msrb.mxu1 %v710_v35  ;;  %805 = vmatpush.msrb.mxu3 %v704_v45  ;;  %v681_v35 = vld [vmem:[#allocation11 + $0x40] sm:$0xff]  ;;  %v674_v45 = vld [vmem:[#allocation11 + $0x8] sm:$0xff]  ;;  %vm948_vm1 = vcmp.gt.f32.partialorder %v947_v44, 0.0 }
  0x6e   :  { %746 = vmatpush.msrb.mxu0 %v697_v46  ;;  %786 = vmatpush.msrb.mxu2 %v699_v48  ;;  %v675_v46 = vld [vmem:[#allocation11 + $0x10] sm:$0xff]  ;;  %v8040_v48 = vmov 0  }
  0x6f   :  { %764 = vmatpush.msrb.mxu1 %v706_v39  ;;  %806 = vmatpush.msrb.mxu3 %v700_v49  ;;  %v677_v39 = vld [vmem:[#allocation11 + $0x20] sm:$0xff]  ;;  %v5223_v49 = vsel %vm948_vm1, 1, %v8040_v48 }
  0x70   :  { %747 = vmatpush.msrb.mxu0 %v693_v50  ;;  %787 = vmatpush.msrb.mxu2 %v695_v52  ;;  %v4402_v50 = vld [vmem:[%s8031_s1 + $0x38] sm:$0xff] }
  0x71   :  { %765 = vmatpush.msrb.mxu1 %v702_v43  ;;  %807 = vmatpush.msrb.mxu3 %v696_v54  ;;  %v673_v43 = vld [vmem:[#allocation11] sm:$0xff]  ;;  %vm951_vm2 = vcmp.gt.f32.partialorder %v4402_v50, 0.0 }
  0x72   :  { %748 = vmatpush.msrb.mxu0 %v689_v26  ;;  %788 = vmatpush.msrb.mxu2 %v691_v7  ;;  %v4860_v26 = vmov 0.0  }
  0x73   :  { %766 = vmatpush.msrb.mxu1 %v698_v47  ;;  %808 = vmatpush.msrb.mxu3 %v692_v53  ;;  %v676_v47 = vld [vmem:[#allocation11 + $0x18] sm:$0xff] }
  0x74   :  { %749 = vmatpush.msrb.mxu0 %v685_v8  ;;  %789 = vmatpush.msrb.mxu2 %v687_v32 }
  0x75   :  { %767 = vmatpush.msrb.mxu1 %v694_v51  ;;  %809 = vmatpush.msrb.mxu3 %v688_v33  ;;  %v961_v51 = vsel %vm951_vm2, 1, %v8040_v48 }
  0x76   :  { %750 = vmatpush.msrb.mxu0 %v681_v35  ;;  %790 = vmatpush.msrb.mxu2 %v683_v37 }
  0x77   :  { %4382 = vmatmul.msk.bf16.gmra.mxu0 %vm136_vm0, %v5055_v56  ;;  %768 = vmatpush.msrb.mxu1 %v690_v55 }
  0x78   :  { %4386 = vmatmul.msk.bf16.gmra.mxu1 %vm136_vm0, %v5055_v56  ;;  %810 = vmatpush.msrb.mxu3 %v684_v38 }
  0x79   :  { %4390 = vmatmul.msk.bf16.gmra.mxu2 %vm136_vm0, %v5055_v56  ;;  %751 = vmatpush.msrb.mxu0 %v677_v39 }
  0x7a   :  { %4394 = vmatmul.msk.bf16.gmra.mxu3 %vm136_vm0, %v5055_v56  ;;  %v686_v56 = vld [vmem:[#allocation11 + $0x68] sm:$0xff]  ;;  %791 = vmatpush.msrb.mxu2 %v679_v41 }
  0x7b   :  { %769 = vmatpush.msrb.mxu1 %v686_v56  ;;  %811 = vmatpush.msrb.mxu3 %v680_v42 }
  0x7c   :  { %752 = vmatpush.msrb.mxu0 %v673_v43  ;;  %792 = vmatpush.msrb.mxu2 %v675_v46 }
  0x7d   :  { %770 = vmatpush.msrb.mxu1 %v682_v36  ;;  %812 = vmatpush.msrb.mxu3 %v676_v47 }
  0x7e   :  { %4492 = vset.pattern.permute.xlu0 %v8040_v48  ;;  %4493 = vset.pattern.permute.xlu1 %v8040_v48 }
  0x7f   :  { %771 = vmatpush.msrb.mxu1 %v678_v40  ;;  %954 = vperm.xlu0 %4492, %v5223_v49  }
  0x80   :  { %4494 = vset.pattern.permute.xlu2 %v8040_v48 }
  0x81   :  { %772 = vmatpush.msrb.mxu1 %v674_v45 }
  0x87   :  { %4383 = vmatmul.msk.bf16.gmra.mxu0 %vm136_vm0, %v5113_v9  ;;  %963 = vperm.xlu0 %4492, %v961_v51  }
  0x88   :  { %4387 = vmatmul.msk.bf16.gmra.mxu1 %vm136_vm0, %v5113_v9 }
  0x89   :  { %4391 = vmatmul.msk.bf16.gmra.mxu2 %vm136_vm0, %v5113_v9 }
  0x8a   :  { %4395 = vmatmul.msk.bf16.gmra.mxu3 %vm136_vm0, %v5113_v9  ;;  %v4425_v9 = vld [vmem:[%s8031_s1 + $0x18] sm:$0xff] }
  0x8b   :  { %vm2357_vm3 = vcmp.gt.f32.partialorder %v4425_v9, 0.0 }
  0x8c   :  { %v2361_v55 = vsel %vm2357_vm3, 1, %v8040_v48 }
  0x8f   :  { %2363 = vperm.xlu0 %4492, %v2361_v55  }
  0x94   :  { %v5238_v52 = vpop.f32.mrf.mxu0 }
  0x95   :  { %v5240_v54 = vpop.f32.mrf.mxu1 }
  0x97   :  { %598 = vmatmul.f32.vlgmr.msra.gmra.mxu0 %v4860_v26  ;;  %2838 = vperm.xlu0 %4492, %v2361_v55  }
  0x98   :  { %618 = vmatmul.f32.vlgmr.msra.gmra.mxu1 %v4860_v26  ;;  %1050 = vmatpush.msra.mxu0 %v5065_v57 }
  0x99   :  { %638 = vmatmul.f32.vlgmr.msra.gmra.mxu2 %v4860_v26  ;;  %1070 = vmatpush.msra.mxu1 %v5067_v58  ;;  %v4449_v58 = vld [vmem:[%s8031_s1 + $0x30] sm:$0xff] }
  0x9a   :  { %658 = vmatmul.f32.vlgmr.msra.gmra.mxu3 %v4860_v26  ;;  %1090 = vmatpush.msra.mxu2 %v5084_v1  ;;  %vm3756_vm4 = vcmp.gt.f32.partialorder %v4449_v58, 0.0 }
  0x9b   :  { %1110 = vmatpush.msra.mxu3 %v5075_v61  ;;  %1051 = vmatpush.msra.mxu0 %v5069_v59 }
  0x9c   :  { %v5246_v7 = vpop.f32.mrf.mxu2  ;;  %v5251_v8 = vpop.f32.mrf.mxu0  ;;  %1071 = vmatpush.msra.mxu1 %v5073_v60  ;;  %1091 = vmatpush.msra.mxu2 %v5088_v2 }
  0x9d   :  { %v5249_v53 = vpop.f32.mrf.mxu3  ;;  %8263 = vst [vmem:[#allocation20_spill] sm:$0xff] %v5251_v8  ;;  %v5255_v56 = vpop.f32.mrf.mxu1  ;;  %1111 = vmatpush.msra.mxu3 %v5082_v0  ;;  %1052 = vmatpush.msra.mxu0 %v5077_v62  ;;  %v5286_v62 = vsel %vm3756_vm4, 1, %v8040_v48 }
  0x9e   :  { %8264 = vst [vmem:[#allocation21_spill] sm:$0xff] %v5255_v56  ;;  %1072 = vmatpush.msra.mxu1 %v5080_v63  ;;  %1092 = vmatpush.msra.mxu2 %v5100_v6 }
  0x9f   :  { %753 = vmatmul.f32.vlgmr.msrb.gmra.mxu0 %v4860_v26  ;;  %1112 = vmatpush.msra.mxu3 %v5096_v5 }
  0xa0   :  { %773 = vmatmul.f32.vlgmr.msrb.gmra.mxu1 %v4860_v26  ;;  %1053 = vmatpush.msra.mxu0 %v5092_v3 }
  0xa1   :  { %793 = vmatmul.f32.vlgmr.msrb.gmra.mxu2 %v4860_v26  ;;  %1073 = vmatpush.msra.mxu1 %v5094_v4 }
  0xa2   :  { %813 = vmatmul.f32.vlgmr.msrb.gmra.mxu3 %v4860_v26  ;;  %1093 = vmatpush.msra.mxu2 %v5121_v10 }
  0xa3   :  { %1113 = vmatpush.msra.mxu3 %v5123_v11  ;;  %1054 = vmatpush.msra.mxu0 %v5127_v12 }
  0xa4   :  { %v5265_v57 = vpop.f32.mrf.mxu2  ;;  %v5273_v60 = vpop.f32.mrf.mxu0  ;;  %1074 = vmatpush.msra.mxu1 %v5129_v13  ;;  %1094 = vmatpush.msra.mxu2 %v5132_v14 }
  0xa5   :  { %8265 = vst [vmem:[#allocation22_spill] sm:$0xff] %v5265_v57  ;;  %v5271_v59 = vpop.f32.mrf.mxu3  ;;  %v5277_v61 = vpop.f32.mrf.mxu1  ;;  %1114 = vmatpush.msra.mxu3 %v5136_v15  ;;  %1055 = vmatpush.msra.mxu0 %v5138_v16  ;;  %v5581_v57 = vld [vmem:[#allocation11 + $0x180] sm:$0xff] }
  0xa6   :  { %8266 = vst [vmem:[#allocation23_spill] sm:$0xff] %v5271_v59  ;;  %1075 = vmatpush.msra.mxu1 %v5140_v17  ;;  %1095 = vmatpush.msra.mxu2 %v5144_v18 }
  0xa7   :  { %8267 = vst [vmem:[#allocation24_spill] sm:$0xff] %v5273_v60  ;;  %1115 = vmatpush.msra.mxu3 %v5150_v20  ;;  %1056 = vmatpush.msra.mxu0 %v5146_v19 }
  0xa8   :  { %8268 = vst [vmem:[#allocation25_spill] sm:$0xff] %v5277_v61  ;;  %1076 = vmatpush.msra.mxu1 %v5152_v21  ;;  %1096 = vmatpush.msra.mxu2 %v5154_v22  ;;  %v305_v22 = vld [vmem:[%s8037_s7] sm:$0xf]  ;;  %v5573_v61 = vld [vmem:[#allocation11 + $0x1b8] sm:$0xff] }
  0xa9   :  { %1116 = vmatpush.msra.mxu3 %v5164_v25  ;;  %1057 = vmatpush.msra.mxu0 %v5158_v23  ;;  %v5346_v23 = vperm.slane %v305_v22, 0  ;;  %v5362_v32 = vperm.slane %v305_v22, 3  ;;  %8328 = vst [vmem:[#allocation85_spill] sm:$0xff] %v5573_v61 }
  0xaa   :  { %3761 = vperm.xlu0 %4492, %v5286_v62   ;;  %1077 = vmatpush.msra.mxu1 %v5160_v24  ;;  %v5348_v24 = vperm.slane %v305_v22, 1  ;;  %8329 = vst [vmem:[#allocation86_spill] sm:$0xff] %v5581_v57 }
  0xab   :  { %1097 = vmatpush.msra.mxu2 %v5166_v27  ;;  %1117 = vmatpush.msra.mxu3 %v5176_v30 }
  0xac   :  { %v5294_v63 = vpop.f32.mrf.mxu2  ;;  %v5300_v1 = vpop.f32.mrf.mxu0  ;;  %1058 = vmatpush.msra.mxu0 %v5170_v28  ;;  %1078 = vmatpush.msra.mxu1 %v5172_v29 }
  0xad   :  { %8269 = vst [vmem:[#allocation26_spill] sm:$0xff] %v5294_v63  ;;  %v5298_v0 = vpop.f32.mrf.mxu3  ;;  %v5304_v2 = vpop.f32.mrf.mxu1  ;;  %1098 = vmatpush.msra.mxu2 %v5178_v31  ;;  %1118 = vmatpush.msra.mxu3 %v5184_v34  ;;  %v5360_v34 = vperm.slane %v305_v22, 2  ;;  %v5563_v63 = vld [vmem:[#allocation11 + $0x1a0] sm:$0xff] }
  0xae   :  { %8270 = vst [vmem:[#allocation27_spill] sm:$0xff] %v5298_v0 }
  0xaf   :  { %8271 = vst [vmem:[#allocation28_spill] sm:$0xff] %v5300_v1  ;;  %v5553_v1 = vld [vmem:[#allocation11 + $0x1c8] sm:$0xff] }
  0xb0   :  { %8272 = vst [vmem:[#allocation29_spill] sm:$0xff] %v5304_v2  ;;  %v5551_v2 = vld [vmem:[#allocation11 + $0x1c0] sm:$0xff] }
  0xb1   :  { %8321 = vst [vmem:[#allocation78_spill] sm:$0xff] %v5551_v2 }
  0xb2   :  { %4236 = vperm.xlu0 %4492, %v5223_v49   ;;  %8322 = vst [vmem:[#allocation79_spill] sm:$0xff] %v5553_v1 }
  0xb3   :  { %8325 = vst [vmem:[#allocation82_spill] sm:$0xff] %v5563_v63 }
  0xb4   :  { %v5310_v3 = vpop.f32.mrf.mxu2  ;;  %v5315_v5 = vpop.f32.mrf.mxu0 }
  0xb5   :  { %8273 = vst [vmem:[#allocation30_spill] sm:$0xff] %v5310_v3  ;;  %v5313_v4 = vpop.f32.mrf.mxu3  ;;  %v5317_v6 = vpop.f32.mrf.mxu1 }
  0xb6   :  { %8274 = vst [vmem:[#allocation31_spill] sm:$0xff] %v5313_v4 }
  0xb7   :  { %8275 = vst [vmem:[#allocation32_spill] sm:$0xff] %v5315_v5  ;;  %v5527_v5 = vld [vmem:[#allocation8 + $0x10] sm:$0xff] }
  0xb8   :  { %8276 = vst [vmem:[#allocation33_spill] sm:$0xff] %v5317_v6  ;;  %v5525_v6 = vld [vmem:[#allocation8 + $0x8] sm:$0xff] }
  0xbc   :  { %v5319_v10 = vpop.f32.mrf.mxu2  ;;  %v5323_v12 = vpop.f32.mrf.mxu0 }
  0xbd   :  { %8277 = vst [vmem:[#allocation34_spill] sm:$0xff] %v5319_v10  ;;  %v5321_v11 = vpop.f32.mrf.mxu3  ;;  %v5325_v13 = vpop.f32.mrf.mxu1 }
  0xbe   :  { %8278 = vst [vmem:[#allocation35_spill] sm:$0xff] %v5321_v11 }
  0xbf   :  { %8279 = vst [vmem:[#allocation36_spill] sm:$0xff] %v5323_v12  ;;  %v5505_v12 = vld [vmem:[%s8036_s6] sm:$0xf] }
  0xc0   :  { %8280 = vst [vmem:[#allocation37_spill] sm:$0xff] %v5325_v13  ;;  %v5500_v13 = vld [vmem:[#allocation8 + $0x30] sm:$0xff]  ;;  %v5538_v3 = vperm.slane %v5505_v12, 0  ;;  %v5547_v4 = vperm.slane %v5505_v12, 1 }
  0xc2   :  { %8319 = vst [vmem:[#allocation76_spill] sm:$0xff] %v5538_v3  ;;  %v159_v0 = vadd.f32 %v5238_v52, %v5538_v3  ;;  %v188_v60 = vadd.f32 %v5240_v54, %v5547_v4  ;;  %v5585_v52 = vld [vmem:[#allocation11 + $0x190] sm:$0xff]  ;;  %v5589_v54 = vld [vmem:[#allocation11 + $0x198] sm:$0xff] }
  0xc3   :  { %8320 = vst [vmem:[#allocation77_spill] sm:$0xff] %v5547_v4 }
  0xc4   :  { %v5327_v14 = vpop.f32.mrf.mxu2  ;;  %v5331_v16 = vpop.f32.mrf.mxu0  ;;  %8331 = vst [vmem:[#allocation88_spill] sm:$0xff] %v5585_v52 }
  0xc5   :  { %8281 = vst [vmem:[#allocation38_spill] sm:$0xff] %v5327_v14  ;;  %v5329_v15 = vpop.f32.mrf.mxu3  ;;  %v5333_v17 = vpop.f32.mrf.mxu1  ;;  %v5492_v14 = vld [vmem:[#allocation8 + $0x58] sm:$0xff] }
  0xc6   :  { %8282 = vst [vmem:[#allocation39_spill] sm:$0xff] %v5329_v15  ;;  %v5498_v15 = vld [vmem:[#allocation8 + $0x28] sm:$0xff] }
  0xc7   :  { %8283 = vst [vmem:[#allocation40_spill] sm:$0xff] %v5331_v16  ;;  %v5474_v16 = vld [vmem:[#allocation8 + $0x68] sm:$0xff] }
  0xc8   :  { %8284 = vst [vmem:[#allocation41_spill] sm:$0xff] %v5333_v17  ;;  %v5472_v17 = vld [vmem:[#allocation8 + $0x60] sm:$0xff] }
  0xc9   :  { %8332 = vst [vmem:[#allocation89_spill] sm:$0xff] %v5589_v54 }
  0xcc   :  { %v5335_v18 = vpop.f32.mrf.mxu2  ;;  %v5339_v20 = vpop.f32.mrf.mxu0 }
  0xcd   :  { %8285 = vst [vmem:[#allocation42_spill] sm:$0xff] %v5335_v18  ;;  %v5337_v19 = vpop.f32.mrf.mxu3  ;;  %v5341_v21 = vpop.f32.mrf.mxu1 }
  0xce   :  { %8286 = vst [vmem:[#allocation43_spill] sm:$0xff] %v5337_v19 }
  0xcf   :  { %8287 = vst [vmem:[#allocation44_spill] sm:$0xff] %v5339_v20 }
  0xd0   :  { %8288 = vst [vmem:[#allocation45_spill] sm:$0xff] %v5341_v21  ;;  %v5452_v21 = vld [vmem:[#allocation8 + $0x90] sm:$0xff] }
  0xd4   :  { %v5350_v25 = vpop.f32.mrf.mxu2  ;;  %v364_v28 = vpop.f32.mrf.mxu0 }
  0xd5   :  { %8289 = vst [vmem:[#allocation46_spill] sm:$0xff] %v5350_v25  ;;  %v5352_v27 = vpop.f32.mrf.mxu3  ;;  %v5355_v29 = vadd.f32 %v364_v28, %v5346_v23  ;;  %v393_v30 = vpop.f32.mrf.mxu1  ;;  %v5448_v25 = vld [vmem:[#allocation8 + $0x80] sm:$0xff] }
  0xd6   :  { %8290 = vst [vmem:[#allocation47_spill] sm:$0xff] %v5352_v27  ;;  %v5358_v31 = vadd.f32 %v393_v30, %v5348_v24  ;;  %v5450_v27 = vld [vmem:[#allocation8 + $0x88] sm:$0xff] }
  0xd7   :  { %8291 = vst [vmem:[#allocation48_spill] sm:$0xff] %v5355_v29 }
  0xd8   :  { %8292 = vst [vmem:[#allocation49_spill] sm:$0xff] %v5358_v31  ;;  %v5444_v31 = vld [vmem:[#allocation8 + $0xb8] sm:$0xff] }
  0xdc   :  { %v422_v33 = vpop.f32.mrf.mxu2  ;;  %v366_v37 = vpop.f32.mrf.mxu0 }
  0xdd   :  { %v5365_v35 = vadd.f32 %v422_v33, %v5360_v34  ;;  %v451_v36 = vpop.f32.mrf.mxu3  ;;  %v5371_v39 = vadd.f32 %v366_v37, %v5346_v23  ;;  %v395_v40 = vpop.f32.mrf.mxu1 }
  0xde   :  { %v5368_v38 = vadd.f32 %v451_v36, %v5362_v32  ;;  %v5374_v41 = vadd.f32 %v395_v40, %v5348_v24 }
  0xdf   :  { %8293 = vst [vmem:[#allocation50_spill] sm:$0xff] %v5365_v35  ;;  %v5424_v35 = vld [vmem:[#allocation8 + $0xc0] sm:$0xff] }
  0xe0   :  { %8294 = vst [vmem:[#allocation51_spill] sm:$0xff] %v5368_v38  ;;  %v5428_v38 = vld [vmem:[#allocation8 + $0xd0] sm:$0xff]  ;;  %1059 = vmatpush.msra.mxu0 %v5424_v35 }
  0xe1   :  { %8295 = vst [vmem:[#allocation52_spill] sm:$0xff] %v5371_v39  ;;  %1099 = vmatpush.msra.mxu2 %v5428_v38 }
  0xe2   :  { %8296 = vst [vmem:[#allocation53_spill] sm:$0xff] %v5374_v41  ;;  %v5459_v41 = vld [vmem:[#allocation8 + $0x98] sm:$0xff] }
  0xe4   :  { %v424_v42 = vpop.f32.mrf.mxu2  ;;  %v369_v45 = vpop.f32.mrf.mxu0 }
  0xe5   :  { %v5377_v43 = vadd.f32 %v424_v42, %v5360_v34  ;;  %v453_v44 = vpop.f32.mrf.mxu3  ;;  %v5383_v47 = vadd.f32 %v369_v45, %v5346_v23  ;;  %v398_v49 = vpop.f32.mrf.mxu1 }
  0xe6   :  { %v5380_v46 = vadd.f32 %v453_v44, %v5362_v32  ;;  %v5386_v50 = vadd.f32 %v398_v49, %v5348_v24 }
  0xe7   :  { %8297 = vst [vmem:[#allocation54_spill] sm:$0xff] %v5377_v43 }
  0xe8   :  { %8298 = vst [vmem:[#allocation55_spill] sm:$0xff] %v5380_v46 }
  0xe9   :  { %8299 = vst [vmem:[#allocation56_spill] sm:$0xff] %v5383_v47  ;;  %v5496_v47 = vld [vmem:[#allocation8 + $0x20] sm:$0xff] }
  0xea   :  { %8300 = vst [vmem:[#allocation57_spill] sm:$0xff] %v5386_v50 }
  0xec   :  { %v427_v51 = vpop.f32.mrf.mxu2  ;;  %v371_v55 = vpop.f32.mrf.mxu0 }
  0xed   :  { %v5389_v9 = vadd.f32 %v427_v51, %v5360_v34  ;;  %v456_v26 = vpop.f32.mrf.mxu3  ;;  %v5395_v22 = vadd.f32 %v371_v55, %v5346_v23  ;;  %v400_v28 = vpop.f32.mrf.mxu1 }
  0xee   :  { %v5392_v58 = vadd.f32 %v456_v26, %v5362_v32  ;;  %v5398_v30 = vadd.f32 %v400_v28, %v5348_v24 }
  0xef   :  { %8301 = vst [vmem:[#allocation58_spill] sm:$0xff] %v5389_v9  ;;  %v5476_v9 = vld [vmem:[#allocation8 + $0x70] sm:$0xff] }
  0xf0   :  { %8302 = vst [vmem:[#allocation59_spill] sm:$0xff] %v5392_v58  ;;  %v5488_v58 = vld [vmem:[#allocation8 + $0x50] sm:$0xff] }
  0xf1   :  { %8303 = vst [vmem:[#allocation60_spill] sm:$0xff] %v5395_v22 }
  0xf2   :  { %8304 = vst [vmem:[#allocation61_spill] sm:$0xff] %v5398_v30  ;;  %v5514_v30 = vld [vmem:[#allocation8 + $0x38] sm:$0xff] }
  0xf4   :  { %v429_v33 = vpop.f32.mrf.mxu2  ;;  %v374_v40 = vpop.f32.mrf.mxu0 }
  0xf5   :  { %v5401_v36 = vadd.f32 %v429_v33, %v5360_v34  ;;  %v458_v37 = vpop.f32.mrf.mxu3  ;;  %v5407_v44 = vadd.f32 %v374_v40, %v5346_v23  ;;  %v403_v45 = vpop.f32.mrf.mxu1 }
  0xf6   :  { %v5404_v42 = vadd.f32 %v458_v37, %v5362_v32  ;;  %v5410_v49 = vadd.f32 %v403_v45, %v5348_v24  ;;  %v5426_v45 = vld [vmem:[#allocation8 + $0xc8] sm:$0xff] }
  0xf7   :  { %8305 = vst [vmem:[#allocation62_spill] sm:$0xff] %v5401_v36  ;;  %1079 = vmatpush.msra.mxu1 %v5426_v45 }
  0xf8   :  { %8306 = vst [vmem:[#allocation63_spill] sm:$0xff] %v5404_v42 }
  0xf9   :  { %8307 = vst [vmem:[#allocation64_spill] sm:$0xff] %v5407_v44  ;;  %v5544_v44 = vld [vmem:[#allocation11 + $0x1f8] sm:$0xff] }
  0xfa   :  { %8308 = vst [vmem:[#allocation65_spill] sm:$0xff] %v5410_v49  ;;  %v5542_v49 = vld [vmem:[#allocation11 + $0x1f0] sm:$0xff] }
  0xfc   :  { %v432_v51 = vpop.f32.mrf.mxu2  ;;  %v376_v28 = vpop.f32.mrf.mxu0 }
  0xfd   :  { %v5413_v26 = vadd.f32 %v432_v51, %v5360_v34  ;;  %v461_v55 = vpop.f32.mrf.mxu3  ;;  %v5419_v48 = vadd.f32 %v376_v28, %v5346_v23  ;;  %v405_v37 = vpop.f32.mrf.mxu1  ;;  %v5432_v51 = vld [vmem:[#allocation8 + $0xd8] sm:$0xff]  ;;  %v5438_v28 = vld [vmem:[#allocation8 + $0xa8] sm:$0xff] }
  0xfe   :  { %v5416_v33 = vadd.f32 %v461_v55, %v5362_v32  ;;  %v5422_v40 = vadd.f32 %v405_v37, %v5348_v24  ;;  %1119 = vmatpush.msra.mxu3 %v5432_v51  ;;  %v5436_v55 = vld [vmem:[#allocation8 + $0xa0] sm:$0xff]  ;;  %v5440_v37 = vld [vmem:[#allocation8 + $0xb0] sm:$0xff]  ;;  %1080 = vmatpush.msra.mxu1 %v5438_v28 }
  0xff   :  { %8309 = vst [vmem:[#allocation66_spill] sm:$0xff] %v5413_v26  ;;  %1060 = vmatpush.msra.mxu0 %v5436_v55  ;;  %1100 = vmatpush.msra.mxu2 %v5440_v37  ;;  %v5531_v26 = vld [vmem:[#allocation8 + $0x18] sm:$0xff] }
 0x100   :  { %8310 = vst [vmem:[#allocation67_spill] sm:$0xff] %v5416_v33  ;;  %1120 = vmatpush.msra.mxu3 %v5444_v31  ;;  %1081 = vmatpush.msra.mxu1 %v5450_v27  ;;  %v5535_v33 = vld [vmem:[#allocation11 + $0x1e8] sm:$0xff] }
 0x101   :  { %8311 = vst [vmem:[#allocation68_spill] sm:$0xff] %v5419_v48  ;;  %1061 = vmatpush.msra.mxu0 %v5448_v25  ;;  %1101 = vmatpush.msra.mxu2 %v5452_v21  ;;  %v5567_v48 = vld [vmem:[#allocation11 + $0x1b0] sm:$0xff] }
 0x102   :  { %8312 = vst [vmem:[#allocation69_spill] sm:$0xff] %v5422_v40  ;;  %1121 = vmatpush.msra.mxu3 %v5459_v41  ;;  %1082 = vmatpush.msra.mxu1 %v5474_v16  ;;  %v5565_v40 = vld [vmem:[#allocation11 + $0x1a8] sm:$0xff] }
 0x103   :  { %1062 = vmatpush.msra.mxu0 %v5472_v17  ;;  %1102 = vmatpush.msra.mxu2 %v5476_v9  ;;  %8326 = vst [vmem:[#allocation83_spill] sm:$0xff] %v5565_v40 }
 0x104   :  { %v434_v29 = vpop.f32.mrf.mxu2  ;;  %v379_v46 = vpop.f32.mrf.mxu0  ;;  %8327 = vst [vmem:[#allocation84_spill] sm:$0xff] %v5567_v48 }
 0x105   :  { %v5455_v20 = vadd.f32 %v434_v29, %v5360_v34  ;;  %v463_v43 = vpop.f32.mrf.mxu3  ;;  %v5465_v18 = vadd.f32 %v379_v46, %v5346_v23  ;;  %v408_v19 = vpop.f32.mrf.mxu1  ;;  %v5484_v46 = vld [vmem:[#allocation8 + $0x40] sm:$0xff]  ;;  %1103 = vmatpush.msra.mxu2 %v5488_v58 }
 0x106   :  { %v5462_v39 = vadd.f32 %v463_v43, %v5362_v32  ;;  %v5470_v29 = vadd.f32 %v408_v19, %v5348_v24  ;;  %v5480_v43 = vld [vmem:[#allocation8 + $0x78] sm:$0xff]  ;;  %v5486_v19 = vld [vmem:[#allocation8 + $0x48] sm:$0xff]  ;;  %1063 = vmatpush.msra.mxu0 %v5484_v46 }
 0x107   :  { %8313 = vst [vmem:[#allocation70_spill] sm:$0xff] %v5455_v20  ;;  %1122 = vmatpush.msra.mxu3 %v5480_v43  ;;  %1083 = vmatpush.msra.mxu1 %v5486_v19  ;;  %v5555_v20 = vld [vmem:[#allocation11 + $0x1d0] sm:$0xff] }
 0x108   :  { %8314 = vst [vmem:[#allocation71_spill] sm:$0xff] %v5462_v39  ;;  %1064 = vmatpush.msra.mxu0 %v5496_v47  ;;  %1104 = vmatpush.msra.mxu2 %v5500_v13  ;;  %v5559_v39 = vld [vmem:[#allocation11 + $0x1d8] sm:$0xff] }
 0x109   :  { %8315 = vst [vmem:[#allocation72_spill] sm:$0xff] %v5465_v18  ;;  %1123 = vmatpush.msra.mxu3 %v5492_v14  ;;  %1084 = vmatpush.msra.mxu1 %v5498_v15 }
 0x10a   :  { %8316 = vst [vmem:[#allocation73_spill] sm:$0xff] %v5470_v29  ;;  %1105 = vmatpush.msra.mxu2 %v5527_v5  ;;  %v5583_v29 = vld [vmem:[#allocation11 + $0x188] sm:$0xff] }
 0x10b   :  { %1124 = vmatpush.msra.mxu3 %v5514_v30  ;;  %1085 = vmatpush.msra.mxu1 %v5525_v6  ;;  %8323 = vst [vmem:[#allocation80_spill] sm:$0xff] %v5555_v20 }
 0x10c   :  { %v437_v50 = vpop.f32.mrf.mxu2  ;;  %v5510_v10 = vpop.f32.mrf.mxu0  ;;  %1245 = vmatpush.msrb.mxu2 %v5542_v49  ;;  %8324 = vst [vmem:[#allocation81_spill] sm:$0xff] %v5559_v39 }
 0x10d   :  { %v5508_v36 = vadd.f32 %v437_v50, %v5360_v34  ;;  %v466_v42 = vpop.f32.mrf.mxu3  ;;  %v5519_v11 = vpop.f32.mrf.mxu1  ;;  %v5523_v50 = vld [vmem:[#allocation8] sm:$0xff]  ;;  %1125 = vmatpush.msra.mxu3 %v5531_v26  ;;  %1225 = vmatpush.msrb.mxu1 %v5535_v33  ;;  %8330 = vst [vmem:[#allocation87_spill] sm:$0xff] %v5583_v29 }
 0x10e   :  { %v5517_v22 = vadd.f32 %v466_v42, %v5362_v32  ;;  %1065 = vmatpush.msra.mxu0 %v5523_v50  ;;  %v5533_v42 = vld [vmem:[#allocation11 + $0x1e0] sm:$0xff]  ;;  %1246 = vmatpush.msrb.mxu2 %v5555_v20  ;;  %v5597_v20 = vld [vmem:[#allocation11 + $0x170] sm:$0xff] }
 0x10f   :  { %8317 = vst [vmem:[#allocation74_spill] sm:$0xff] %v5508_v36  ;;  %1265 = vmatpush.msrb.mxu3 %v5544_v44  ;;  %1226 = vmatpush.msrb.mxu1 %v5553_v1 }
 0x110   :  { %8318 = vst [vmem:[#allocation75_spill] sm:$0xff] %v5517_v22  ;;  %1205 = vmatpush.msrb.mxu0 %v5533_v42  ;;  %1247 = vmatpush.msrb.mxu2 %v5567_v48 }
 0x111   :  { %1266 = vmatpush.msrb.mxu3 %v5559_v39  ;;  %1227 = vmatpush.msrb.mxu1 %v5565_v40  ;;  %v5593_v40 = vld [vmem:[#allocation11 + $0x160] sm:$0xff]  ;;  %8335 = vst [vmem:[#allocation92_spill] sm:$0xff] %v5597_v20 }
 0x112   :  { %1206 = vmatpush.msrb.mxu0 %v5551_v2  ;;  %8333 = vst [vmem:[#allocation90_spill] sm:$0xff] %v5593_v40  ;;  %1248 = vmatpush.msrb.mxu2 %v5585_v52 }
 0x113   :  { %1267 = vmatpush.msrb.mxu3 %v5573_v61  ;;  %1228 = vmatpush.msrb.mxu1 %v5583_v29  ;;  %v5610_v29 = vld [vmem:[#allocation11 + $0x140] sm:$0xff]  ;;  %v5614_v61 = vld [vmem:[#allocation11 + $0x150] sm:$0xff] }
 0x114   :  { %v599_v22 = vpop.f32.mrf.mxu0  ;;  %1207 = vmatpush.msrb.mxu0 %v5563_v63  ;;  %v5595_v63 = vld [vmem:[#allocation11 + $0x168] sm:$0xff]  ;;  %8338 = vst [vmem:[#allocation95_spill] sm:$0xff] %v5610_v29  ;;  %1249 = vmatpush.msrb.mxu2 %v5597_v20  ;;  %v382_v20 = vadd.f32 %v5510_v10, %v5346_v23  ;;  %v5644_v10 = vld [vmem:[#allocation11 + $0x110] sm:$0xff] }
 0x115   :  { %v5577_v36 = vpop.f32.mrf.mxu3  ;;  %v662_v18 = vadd.f32 %v599_v22, %v159_v0  ;;  %v619_v59 = vpop.f32.mrf.mxu1  ;;  %8334 = vst [vmem:[#allocation91_spill] sm:$0xff] %v5595_v63  ;;  %v5600_v0 = vperm.slane %v5505_v12, 3  ;;  %1268 = vmatpush.msrb.mxu3 %v5589_v54  ;;  %1229 = vmatpush.msrb.mxu1 %v5595_v63  ;;  %v5624_v63 = vld [vmem:[#allocation11 + $0x128] sm:$0xff]  ;;  %v5640_v54 = vld [vmem:[#allocation11 + $0x100] sm:$0xff] }
 0x116   :  { %v663_v39 = vadd.f32 %v619_v59, %v188_v60  ;;  %1208 = vmatpush.msrb.mxu0 %v5581_v57  ;;  %v5602_v22 = vpop.f32.mrf.mxu2  ;;  %v5606_v59 = vld [vmem:[#allocation11 + $0x178] sm:$0xff]  ;;  %v5612_v57 = vld [vmem:[#allocation11 + $0x148] sm:$0xff]  ;;  %8340 = vst [vmem:[#allocation97_spill] sm:$0xff] %v5614_v61  ;;  %1250 = vmatpush.msrb.mxu2 %v5614_v61 }
 0x117   :  { %8336 = vst [vmem:[#allocation93_spill] sm:$0xff] %v5600_v0  ;;  %v4396_v48 = vmul.f32 -1.442695, %v662_v18  ;;  %1269 = vmatpush.msrb.mxu3 %v5606_v59  ;;  %v5618_v18 = vld [vmem:[#allocation11 + $0x158] sm:$0xff]  ;;  %1230 = vmatpush.msrb.mxu1 %v5612_v57 }
 0x118   :  { %8337 = vst [vmem:[#allocation94_spill] sm:$0xff] %v5606_v59  ;;  %v4397_v60 = vmul.f32 -1.442695, %v663_v39  ;;  %1209 = vmatpush.msrb.mxu0 %v5593_v40  ;;  %v5622_v39 = vld [vmem:[#allocation11 + $0x120] sm:$0xff]  ;;  %v5626_v40 = vld [vmem:[#allocation11 + $0x130] sm:$0xff] }
 0x119   :  { %8339 = vst [vmem:[#allocation96_spill] sm:$0xff] %v5612_v57  ;;  %4495 = vpow2.f32 %v4396_v48  ;;  %v246_v48 = vadd.f32 %v5249_v53, %v5600_v0  ;;  %1270 = vmatpush.msrb.mxu3 %v5618_v18  ;;  %v411_v57 = vadd.f32 %v5519_v11, %v5348_v24  ;;  %1231 = vmatpush.msrb.mxu1 %v5624_v63  ;;  %v5642_v53 = vld [vmem:[#allocation11 + $0x108] sm:$0xff]  ;;  %v5648_v11 = vld [vmem:[#allocation11 + $0x118] sm:$0xff]  ;;  %v5656_v0 = vld [vmem:[#allocation11 + $0xf0] sm:$0xff] }
 0x11a   :  { %8341 = vst [vmem:[#allocation98_spill] sm:$0xff] %v5618_v18  ;;  %4497 = vpow2.f32 %v4397_v60  ;;  %1210 = vmatpush.msrb.mxu0 %v5610_v29  ;;  %v5634_v60 = vld [vmem:[#allocation11 + $0x138] sm:$0xff]  ;;  %1251 = vmatpush.msrb.mxu2 %v5626_v40 }
 0x11b   :  { %8342 = vst [vmem:[#allocation99_spill] sm:$0xff] %v5622_v39  ;;  %1271 = vmatpush.msrb.mxu3 %v5634_v60  ;;  %1232 = vmatpush.msrb.mxu1 %v5642_v53 }
 0x11c   :  { %8343 = vst [vmem:[#allocation100_spill] sm:$0xff] %v5624_v63  ;;  %v754_v59 = vpop.f32.mrf.mxu0  ;;  %1211 = vmatpush.msrb.mxu0 %v5622_v39  ;;  %v5652_v63 = vld [vmem:[#allocation11 + $0xe0] sm:$0xff]  ;;  %v5654_v39 = vld [vmem:[#allocation11 + $0xe8] sm:$0xff]  ;;  %1252 = vmatpush.msrb.mxu2 %v5644_v10 }
 0x11d   :  { %8344 = vst [vmem:[#allocation101_spill] sm:$0xff] %v5626_v40  ;;  %v659_v29 = vpop.f32.mrf.mxu3  ;;  %v817_v61 = vadd.f32 %v754_v59, %v382_v20  ;;  %v774_v18 = vpop.f32.mrf.mxu1  ;;  %1272 = vmatpush.msrb.mxu3 %v5648_v11  ;;  %v5660_v59 = vld [vmem:[#allocation11 + $0xf8] sm:$0xff]  ;;  %1233 = vmatpush.msrb.mxu1 %v5654_v39 }
 0x11e   :  { %8345 = vst [vmem:[#allocation102_spill] sm:$0xff] %v5634_v60  ;;  %v665_v23 = vadd.f32 %v659_v29, %v246_v48  ;;  %v818_v24 = vadd.f32 %v774_v18, %v411_v57  ;;  %1212 = vmatpush.msrb.mxu0 %v5640_v54  ;;  %v5670_v60 = vld [vmem:[#allocation11 + $0xd0] sm:$0xff]  ;;  %1253 = vmatpush.msrb.mxu2 %v5656_v0 }
 0x11f   :  { %8346 = vst [vmem:[#allocation103_spill] sm:$0xff] %v5640_v54  ;;  %v4496_v29 = vpop.eup %4495  ;;  %v4399_v18 = vmul.f32 -1.442695, %v817_v61  ;;  %v5668_v54 = vld [vmem:[#allocation11 + $0xc8] sm:$0xff]  ;;  %1273 = vmatpush.msrb.mxu3 %v5660_v59  ;;  %v5679_v61 = vld [vmem:[#allocation11 + $0xd8] sm:$0xff] }
 0x120   :  { %8347 = vst [vmem:[#allocation104_spill] sm:$0xff] %v5642_v53  ;;  %v4398_v20 = vmul.f32 -1.442695, %v665_v23  ;;  %v4498_v48 = vpop.eup %4497  ;;  %v5662_v57 = vadd.f32 1.0, %v4496_v29  ;;  %1213 = vmatpush.msrb.mxu0 %v5652_v63  ;;  %v5666_v53 = vld [vmem:[#allocation11 + $0xc0] sm:$0xff]  ;;  %v5673_v23 = vperm.slane %v5505_v12, 2  ;;  %1234 = vmatpush.msrb.mxu1 %v5668_v54 }
 0x121   :  { %8348 = vst [vmem:[#allocation105_spill] sm:$0xff] %v5644_v10  ;;  %v639_v10 = vpop.f32.mrf.mxu2  ;;  %v4400_v29 = vmul.f32 -1.442695, %v818_v24  ;;  %v5686_v12 = vld [vmem:[#allocation11 + $0xa8] sm:$0xff]  ;;  %v469_v24 = vadd.f32 %v5577_v36, %v5362_v32  ;;  %1254 = vmatpush.msrb.mxu2 %v5670_v60  ;;  %1274 = vmatpush.msrb.mxu3 %v5679_v61  ;;  %v5705_v32 = vld [vmem:[#allocation11 + $0x98] sm:$0xff] }
 0x122   :  { %8349 = vst [vmem:[#allocation106_spill] sm:$0xff] %v5648_v11  ;;  %v5675_v11 = vadd.f32 1.0, %v4498_v48  ;;  %4499 = vpow2.f32 %v4398_v20  ;;  %1214 = vmatpush.msrb.mxu0 %v5666_v53  ;;  %v5688_v48 = vld [vmem:[#allocation11 + $0xb0] sm:$0xff]  ;;  %v5695_v20 = vld [vmem:[#allocation11 + $0xb8] sm:$0xff]  ;;  %1235 = vmatpush.msrb.mxu1 %v5686_v12  ;;  %v217_v36 = vadd.f32 %v5246_v7, %v5673_v23  ;;  %v836_v56 = vand.u32 2147483648, %v5662_v57 }
 0x123   :  { %8350 = vst [vmem:[#allocation107_spill] sm:$0xff] %v5652_v63  ;;  %4501 = vrcp.f32 %v5662_v57  ;;  %1255 = vmatpush.msrb.mxu2 %v5688_v48  ;;  %1275 = vmatpush.msrb.mxu3 %v5695_v20  ;;  %vm830_vm7 = vweird.f32 %v5662_v57 }
 0x124   :  { %8351 = vst [vmem:[#allocation108_spill] sm:$0xff] %v5654_v39  ;;  %v5684_v39 = vld [vmem:[#allocation11 + $0xa0] sm:$0xff]  ;;  %4503 = vrcp.f32 %v5675_v11  ;;  %v664_v7 = vadd.f32 %v639_v10, %v217_v36  ;;  %v5735_v10 = vld [vmem:[#allocation11 + $0x58] sm:$0xff]  ;;  %v855_v52 = vand.u32 2147483648, %v5675_v11  ;;  %vm849_vm8 = vweird.f32 %v5675_v11 }
 0x125   :  { %8352 = vst [vmem:[#allocation109_spill] sm:$0xff] %v5656_v0  ;;  %4505 = vpow2.f32 %v4399_v18  ;;  %1215 = vmatpush.msrb.mxu0 %v5684_v39  ;;  %v5703_v0 = vld [vmem:[#allocation11 + $0x90] sm:$0xff]  ;;  %v5713_v18 = vld [vmem:[#allocation11 + $0x68] sm:$0xff]  ;;  %1276 = vmatpush.msrb.mxu3 %v5705_v32 }
 0x126   :  { %8353 = vst [vmem:[#allocation110_spill] sm:$0xff] %v5660_v59  ;;  %v814_v59 = vpop.f32.mrf.mxu3  ;;  %4507 = vpow2.f32 %v4400_v29  ;;  %1256 = vmatpush.msrb.mxu2 %v5703_v0 }
 0x127   :  { %8354 = vst [vmem:[#allocation111_spill] sm:$0xff] %v5666_v53  ;;  %v5697_v53 = vld [vmem:[#allocation11 + $0x80] sm:$0xff] }
 0x128   :  { %8355 = vst [vmem:[#allocation112_spill] sm:$0xff] %v5668_v54  ;;  %v5699_v54 = vld [vmem:[#allocation11 + $0x88] sm:$0xff]  ;;  %1216 = vmatpush.msrb.mxu0 %v5697_v53  ;;  %v4500_v63 = vpop.eup %4499 }
 0x129   :  { %8356 = vst [vmem:[#allocation113_spill] sm:$0xff] %v5670_v60  ;;  %v5711_v60 = vld [vmem:[#allocation11 + $0x60] sm:$0xff]  ;;  %1236 = vmatpush.msrb.mxu1 %v5699_v54 }
 0x12a   :  { %8357 = vst [vmem:[#allocation114_spill] sm:$0xff] %v5673_v23  ;;  %1217 = vmatpush.msrb.mxu0 %v5711_v60  ;;  %v834_v23 = vand.u32 2147483647, %v5662_v57 }
 0x12b   :  { %8358 = vst [vmem:[#allocation115_spill] sm:$0xff] %v5679_v61  ;;  %v820_v61 = vadd.f32 %v814_v59, %v469_v24  ;;  %v5723_v59 = vld [vmem:[#allocation11 + $0x40] sm:$0xff]  ;;  %v5725_v24 = vld [vmem:[#allocation11 + $0x48] sm:$0xff]  ;;  %1237 = vmatpush.msrb.mxu1 %v5713_v18 }
 0x12c   :  { %8359 = vst [vmem:[#allocation116_spill] sm:$0xff] %v5684_v39  ;;  %v5719_v39 = vld [vmem:[#allocation11 + $0x78] sm:$0xff]  ;;  %1218 = vmatpush.msrb.mxu0 %v5723_v59  ;;  %vm835_vm11 = vcmp.eq.f32.partialorder %v834_v23, 8.507059e+37 }
 0x12d   :  { %8360 = vst [vmem:[#allocation117_spill] sm:$0xff] %v5686_v12  ;;  %v5717_v12 = vld [vmem:[#allocation11 + $0x70] sm:$0xff]  ;;  %v4401_v29 = vmul.f32 -1.442695, %v820_v61  ;;  %1277 = vmatpush.msrb.mxu3 %v5719_v39  ;;  %1238 = vmatpush.msrb.mxu1 %v5725_v24 }
 0x12e   :  { %8361 = vst [vmem:[#allocation118_spill] sm:$0xff] %v5688_v48  ;;  %1257 = vmatpush.msrb.mxu2 %v5717_v12 }
 0x12f   :  { %8362 = vst [vmem:[#allocation119_spill] sm:$0xff] %v5695_v20  ;;  %v5727_v20 = vpop.eup %4501  ;;  %4509 = vpow2.f32 %v4401_v29  ;;  %v5754_v29 = vld [vmem:[#allocation11 + $0x30] sm:$0xff]  ;;  %1278 = vmatpush.msrb.mxu3 %v5735_v10 }
 0x130   :  { %8363 = vst [vmem:[#allocation120_spill] sm:$0xff] %v5697_v53  ;;  %v5729_v53 = vadd.f32 1.0, %v4500_v63  ;;  %v5737_v61 = vpop.eup %4503  ;;  %v826_v36 = vmul.f32 %v5727_v20, %v5662_v57  ;;  %v5743_v63 = vld [vmem:[#allocation11 + $0x20] sm:$0xff]  ;;  %vm831_vm5 = vweird.f32 %v5727_v20  ;;  %v856_v57 = vor.u32 1.1754944e-38, %v855_v52  ;;  %v4409_v52 = vld [vmem:[%s8031_s1 + $0x8] sm:$0xff] }
 0x131   :  { %8364 = vst [vmem:[#allocation121_spill] sm:$0xff] %v5699_v54  ;;  %v5733_v54 = vld [vmem:[#allocation11 + $0x50] sm:$0xff]  ;;  %1219 = vmatpush.msrb.mxu0 %v5743_v63  ;;  %vm850_vm6 = vweird.f32 %v5737_v61  ;;  %vm832_vm10 = vmor %vm830_vm7, %vm831_vm5  ;;  %vm1417_vm15 = vcmp.gt.f32.partialorder %v4409_v52, 0.0 }
 0x132   :  { %8365 = vst [vmem:[#allocation122_spill] sm:$0xff] %v5703_v0  ;;  %v845_v0 = vmul.f32 %v5737_v61, %v5675_v11  ;;  %4511 = vrcp.f32 %v5729_v53  ;;  %v827_v48 = vsub.f32 1.0, %v826_v36  ;;  %1258 = vmatpush.msrb.mxu2 %v5733_v54  ;;  %vm851_vm12 = vmor %vm849_vm8, %vm850_vm6  ;;  %vm869_vm14 = vweird.f32 %v5729_v53 }
 0x133   :  { %8366 = vst [vmem:[#allocation123_spill] sm:$0xff] %v5705_v32  ;;  %v5745_v32 = vld [vmem:[#allocation11 + $0x28] sm:$0xff]  ;;  %4513 = vtanh.f32 %v664_v7  ;;  %v5775_v7 = vld [vmem:[#allocation11 + $0x18] sm:$0xff] }
 0x134   :  { %8367 = vst [vmem:[#allocation124_spill] sm:$0xff] %v5711_v60  ;;  %v4506_v60 = vpop.eup %4505  ;;  %1239 = vmatpush.msrb.mxu1 %v5745_v32  ;;  %1259 = vmatpush.msrb.mxu2 %v5754_v29 }
 0x135   :  { %8368 = vst [vmem:[#allocation125_spill] sm:$0xff] %v5713_v18  ;;  %v440_v18 = vadd.f32 %v5602_v22, %v5360_v34  ;;  %v5759_v40 = vadd.f32 1.0, %v4506_v60  ;;  %v794_v34 = vpop.f32.mrf.mxu2  ;;  %v5763_v22 = vld [vmem:[#allocation11] sm:$0xff]  ;;  %v5773_v60 = vld [vmem:[#allocation11 + $0x10] sm:$0xff] }
 0x136   :  { %8369 = vst [vmem:[#allocation126_spill] sm:$0xff] %v5717_v12  ;;  %v4508_v12 = vpop.eup %4507  ;;  %1220 = vmatpush.msrb.mxu0 %v5763_v22  ;;  %1260 = vmatpush.msrb.mxu2 %v5773_v60 }
 0x137   :  { %8370 = vst [vmem:[#allocation127_spill] sm:$0xff] %v5719_v39  ;;  %v5756_v39 = vld [vmem:[#allocation11 + $0x38] sm:$0xff]  ;;  %v5769_v36 = vadd.f32 1.0, %v4508_v12  ;;  %4515 = vrcp.f32 %v5759_v40  ;;  %v897_v4 = vand.u32 2147483647, %v5759_v40  ;;  %vm893_vm5 = vweird.f32 %v5759_v40 }
 0x138   :  { %8371 = vst [vmem:[#allocation128_spill] sm:$0xff] %v5723_v59  ;;  %v5765_v59 = vld [vmem:[#allocation11 + $0x8] sm:$0xff]  ;;  %1279 = vmatpush.msrb.mxu3 %v5756_v39 }
 0x139   :  { %8372 = vst [vmem:[#allocation129_spill] sm:$0xff] %v5725_v24  ;;  %v846_v24 = vsub.f32 1.0, %v845_v0  ;;  %v853_v0 = vand.u32 2147483647, %v5675_v11  ;;  %4517 = vrcp.f32 %v5769_v36  ;;  %1240 = vmatpush.msrb.mxu1 %v5765_v59  ;;  %vm912_vm4 = vweird.f32 %v5769_v36 }
 0x13a   :  { %8373 = vst [vmem:[#allocation130_spill] sm:$0xff] %v5733_v54  ;;  %1280 = vmatpush.msrb.mxu3 %v5775_v7  ;;  %vm898_vm7 = vcmp.eq.f32.partialorder %v897_v4, 8.507059e+37  ;;  %v4426_v4 = vld [vmem:[%s8031_s1 + $0x20] sm:$0xff] }
 0x13b   :  { %8374 = vst [vmem:[#allocation131_spill] sm:$0xff] %v5735_v10  ;;  %v828_v10 = vmul.f32 %v5727_v20, %v827_v48  ;;  %v847_v12 = vmul.f32 %v5737_v61, %v846_v24  ;;  %v4510_v48 = vpop.eup %4509  ;;  %vm854_vm13 = vcmp.eq.f32.partialorder %v853_v0, 8.507059e+37 }
 0x13c   :  { %8375 = vst [vmem:[#allocation132_spill] sm:$0xff] %v5743_v63  ;;  %v5788_v63 = vpop.permute.xlu0 %954  ;;  %v5794_v24 = vpop.eup %4511 }
 0x13d   :  { %8376 = vst [vmem:[#allocation133_spill] sm:$0xff] %v5745_v32  ;;  %v819_v32 = vadd.f32 %v794_v34, %v440_v18  ;;  %v829_v54 = vadd.f32 %v5727_v20, %v828_v10  ;;  %vm956_vm9 = vcmp.eq.s32.totalorder %v5788_v63, 1  ;;  %v837_v18 = vor.u32 1.1754944e-38, %v836_v56  ;;  %v4514_v10 = vpop.eup %4513  ;;  %v5891_v63 = vld [vmem:[#allocation8 + $0x1d8] sm:$0xff] }
 0x13e   :  { %8377 = vst [vmem:[#allocation134_spill] sm:$0xff] %v5754_v29  ;;  %v848_v34 = vadd.f32 %v5737_v61, %v847_v12  ;;  %v865_v11 = vmul.f32 %v5794_v24, %v5729_v53  ;;  %v4516_v56 = vpop.eup %4515  ;;  %vm870_vm0 = vweird.f32 %v5794_v24 }
 0x13f   :  { %8378 = vst [vmem:[#allocation135_spill] sm:$0xff] %v5756_v39  ;;  %4519 = vtanh.f32 %v819_v32  ;;  %vm894_vm1 = vweird.f32 %v4516_v56  ;;  %vm5835_vm3 = vmor %vm869_vm14, %vm870_vm0  ;;  %vm2360_vm14 = vcmp.gt.f32.partialorder %v4426_v4, 0.0 }
 0x140   :  { %8379 = vst [vmem:[#allocation136_spill] sm:$0xff] %v5763_v22  ;;  %v852_v22 = vsel %vm851_vm12, %v5737_v61, %v848_v34  ;;  %v866_v39 = vsub.f32 1.0, %v865_v11  ;;  %v889_v61 = vmul.f32 %v4516_v56, %v5759_v40  ;;  %v899_v34 = vand.u32 2147483648, %v5759_v40  ;;  %vm895_vm6 = vmor %vm893_vm5, %vm894_vm1 }
 0x141   :  { %8380 = vst [vmem:[#allocation137_spill] sm:$0xff] %v5765_v59  ;;  %v5801_v59 = vadd.f32 1.0, %v4510_v48  ;;  %v857_v12 = vsel %vm854_vm13, %v856_v57, %v852_v22  ;;  %v8383_v11 = vmov 0  }
 0x142   :  { %8381 = vst [vmem:[#allocation138_spill] sm:$0xff] %v5773_v60  ;;  %v833_v60 = vsel %vm832_vm10, %v5727_v20, %v829_v54  ;;  %v4518_v54 = vpop.eup %4517  ;;  %v879_v23 = vmul.f32 0.0, %v857_v12  ;;  %v875_v20 = vand.u32 2147483648, %v5729_v53  ;;  %v867_v32 = vmul.f32 %v5794_v24, %v866_v39 }
 0x143   :  { %8382 = vst [vmem:[#allocation139_spill] sm:$0xff] %v5775_v7  ;;  %v838_v7 = vsel %vm835_vm11, %v837_v18, %v833_v60  ;;  %4521 = vrcp.f32 %v5801_v59  ;;  %v908_v22 = vmul.f32 %v4518_v54, %v5769_v36  ;;  %v918_v60 = vand.u32 2147483648, %v5769_v36 }
 0x144   :  { %v880_v48 = vmul.f32 %v4514_v10, %v838_v7  ;;  %v873_v7 = vand.u32 2147483647, %v5729_v53  ;;  %v890_v18 = vsub.f32 1.0, %v889_v61  ;;  %v868_v57 = vadd.f32 %v5794_v24, %v867_v32 }
 0x145   :  { %v909_v10 = vsub.f32 1.0, %v908_v22  ;;  %v5824_v12 = vsel %vm1417_vm15, 1, %v8383_v11  ;;  %v4520_v39 = vpop.eup %4519  ;;  %vm913_vm2 = vweird.f32 %v4518_v54  ;;  %v916_v61 = vand.u32 2147483647, %v5769_v36 }
 0x146   :  { %v881_v0 = vadd.f32 %v880_v48, %v879_v23  ;;  %v891_v29 = vmul.f32 %v4516_v56, %v890_v18  ;;  %1423 = vperm.xlu1 %4493, %v5824_v12   ;;  %v876_v23 = vor.u32 1.1754944e-38, %v875_v20  ;;  %v900_v18 = vor.u32 1.1754944e-38, %v899_v34  ;;  %vm914_vm8 = vmor %vm912_vm4, %vm913_vm2 }
 0x147   :  { %v910_v52 = vmul.f32 %v4518_v54, %v909_v10  ;;  %v872_v8 = vsel %vm5835_vm3, %v5794_v24, %v868_v57  ;;  %v919_v3 = vor.u32 1.1754944e-38, %v918_v60  ;;  %vm917_vm10 = vcmp.eq.f32.partialorder %v916_v61, 8.507059e+37  ;;  %v5852_v57 = vpop.permute.xlu0 %963 }
 0x148   :  { %4523 = vtanh.f32 %v881_v0  ;;  %v892_v22 = vadd.f32 %v4516_v56, %v891_v29  ;;  %v5848_v53 = vsel %vm956_vm9, %v881_v0, 0.0  ;;  %vm874_vm11 = vcmp.eq.f32.partialorder %v873_v7, 8.507059e+37  ;;  %v5883_v7 = vld [vmem:[#allocation8 + $0x1c8] sm:$0xff] }
 0x149   :  { %v5828_v48 = vpop.eup %4521  ;;  %v911_v10 = vadd.f32 %v4518_v54, %v910_v52  ;;  %8386 = vst [vmem:[#allocation140_spill] sm:$0xff] %v5848_v53  ;;  %v877_v24 = vsel %vm874_vm11, %v876_v23, %v872_v8  ;;  %vm965_vm12 = vcmp.eq.s32.totalorder %v5852_v57, 1  ;;  %v5867_v8 = vld [vmem:[#allocation8 + $0x1f0] sm:$0xff] }
 0x14a   :  { %v928_v20 = vmul.f32 %v5828_v48, %v5801_v59  ;;  %v896_v1 = vsel %vm895_vm6, %v4516_v56, %v892_v22  ;;  %v5861_v56 = vld [vmem:[#allocation8 + $0x1e8] sm:$0xff]  ;;  %vm933_vm13 = vweird.f32 %v5828_v48  ;;  %v5889_v23 = vld [vmem:[#allocation8 + $0x1d0] sm:$0xff]  ;;  %v936_v22 = vand.u32 2147483647, %v5801_v59 }
 0x14b   :  { %v901_v29 = vsel %vm898_vm7, %v900_v18, %v896_v1  ;;  %v915_v36 = vsel %vm914_vm8, %v4518_v54, %v911_v10  ;;  %v5859_v1 = vld [vmem:[#allocation8 + $0x1e0] sm:$0xff]  ;;  %v5869_v54 = vld [vmem:[#allocation8 + $0x1f8] sm:$0xff]  ;;  %v5903_v18 = vld [vmem:[#allocation8 + $0x1a8] sm:$0xff] }
 0x14c   :  { %v929_v40 = vsub.f32 1.0, %v928_v20  ;;  %v920_v52 = vsel %vm917_vm10, %v919_v3, %v915_v36  ;;  %v943_v2 = vmul.f32 %v4520_v39, %v901_v29  ;;  %v938_v39 = vand.u32 2147483648, %v5801_v59  ;;  %v5901_v20 = vld [vmem:[#allocation8 + $0x1a0] sm:$0xff]  ;;  %v5924_v29 = vld [vmem:[#allocation8 + $0x1b8] sm:$0xff]  ;;  %v5980_v57 = vld [vmem:[#allocation8 + $0x150] sm:$0xff] }
 0x14d   :  { %v942_v0 = vmul.f32 0.0, %v920_v52  ;;  %v5926_v36 = vld [vmem:[#allocation8 + $0x180] sm:$0xff]  ;;  %v4441_v52 = vld [vmem:[%s8031_s1 + $0x28] sm:$0xff]  ;;  %vm937_vm0 = vcmp.eq.f32.partialorder %v936_v22, 8.507059e+37  ;;  %v5951_v22 = vld [vmem:[#allocation8 + $0x170] sm:$0xff]  ;;  %8393 = vst [vmem:[#allocation145_spill] sm:$0xff] %v5980_v57 }
 0x14e   :  { %v4524_v34 = vpop.eup %4523  ;;  %v930_v32 = vmul.f32 %v5828_v48, %v929_v40  ;;  %1432 = vperm.xlu1 %4493, %v5286_v62   ;;  %vm3290_vm1 = vcmp.gt.f32.partialorder %v4441_v52, 0.0  ;;  %8389 = vst [vmem:[#allocation141_spill] sm:$0xff] %v5951_v22  ;;  %v5957_v10 = vld [vmem:[#allocation8 + $0x178] sm:$0xff]  ;;  %v5976_v52 = vld [vmem:[#allocation8 + $0x140] sm:$0xff] }
 0x14f   :  { %v883_v53 = vmul.f32 %v4524_v34, %v877_v24  ;;  %v944_v3 = vadd.f32 %v943_v2, %v942_v0  ;;  %v5881_v2 = vld [vmem:[#allocation8 + $0x1c0] sm:$0xff]  ;;  %v939_v34 = vor.u32 1.1754944e-38, %v938_v39  ;;  %v5939_v24 = vld [vmem:[#allocation8 + $0x198] sm:$0xff]  ;;  %v5949_v39 = vld [vmem:[#allocation8 + $0x168] sm:$0xff]  ;;  %8390 = vst [vmem:[#allocation142_spill] sm:$0xff] %v5957_v10 }
 0x150   :  { %v931_v62 = vadd.f32 %v5828_v48, %v930_v32  ;;  %v5933_v32 = vld [vmem:[#allocation8 + $0x188] sm:$0xff]  ;;  %v5941_v0 = vld [vmem:[#allocation8 + $0x160] sm:$0xff]  ;;  %8391 = vst [vmem:[#allocation143_spill] sm:$0xff] %v5976_v52 }
 0x151   :  { %4474 = vmatmul.msk.f32.vlgmr.msra.gmra.mxu0 %vm956_vm9, %v883_v53  ;;  %4475 = vmatmul.msk.f32.vlgmr.msra.gmra.mxu1 %vm956_vm9, %v883_v53  ;;  %v5873_v60 = vsel %vm956_vm9, %v883_v53, 0.0  ;;  %4525 = vtanh.f32 %v944_v3  ;;  %v5895_v61 = vsel %vm965_vm12, %v944_v3, 0.0 }
 0x152   :  { %4476 = vmatmul.msk.f32.vlgmr.msra.gmra.mxu2 %vm956_vm9, %v883_v53  ;;  %4477 = vmatmul.msk.f32.vlgmr.msra.gmra.mxu3 %vm956_vm9, %v883_v53  ;;  %971 = vst [vmem:[#allocation13] sm:$0xff] %v5873_v60  ;;  %vm932_vm9 = vweird.f32 %v5801_v59  ;;  %v5913_v53 = vsel %vm2360_vm14, 1, %v8383_v11  ;;  %v5917_v59 = vld [vmem:[#allocation8 + $0x1b0] sm:$0xff] }
 0x153   :  { %1520 = vmatpush.msra.mxu0 %v5859_v1  ;;  %1540 = vmatpush.msra.mxu1 %v5861_v56  ;;  %vm5907_vm15 = vmor %vm932_vm9, %vm933_vm13 }
 0x154   :  { %1560 = vmatpush.msra.mxu2 %v5867_v8  ;;  %1580 = vmatpush.msra.mxu3 %v5869_v54  ;;  %v935_v40 = vsel %vm5907_vm15, %v5828_v48, %v931_v62  ;;  %v5935_v48 = vld [vmem:[#allocation8 + $0x190] sm:$0xff] }
 0x155   :  { %1521 = vmatpush.msra.mxu0 %v5881_v2  ;;  %1541 = vmatpush.msra.mxu1 %v5883_v7  ;;  %v940_v3 = vsel %vm937_vm0, %v939_v34, %v935_v40  ;;  %v5968_v34 = vsel %vm3290_vm1, 1, %v8383_v11 }
 0x156   :  { %1561 = vmatpush.msra.mxu2 %v5889_v23  ;;  %1581 = vmatpush.msra.mxu3 %v5891_v63 }
 0x157   :  { %1522 = vmatpush.msra.mxu0 %v5901_v20  ;;  %1542 = vmatpush.msra.mxu1 %v5903_v18  ;;  %v4526_v4 = vpop.eup %4525 }
 0x158   :  { %2372 = vperm.xlu1 %4493, %v5913_v53   ;;  %1562 = vmatpush.msra.mxu2 %v5917_v59  ;;  %v946_v62 = vmul.f32 %v4526_v4, %v940_v3  ;;  %v5978_v4 = vld [vmem:[#allocation8 + $0x148] sm:$0xff]  ;;  %v5984_v3 = vld [vmem:[#allocation8 + $0x158] sm:$0xff] }
 0x159   :  { %1582 = vmatpush.msra.mxu3 %v5924_v29  ;;  %1523 = vmatpush.msra.mxu0 %v5926_v36  ;;  %8392 = vst [vmem:[#allocation144_spill] sm:$0xff] %v5978_v4 }
 0x15a   :  { %1543 = vmatpush.msra.mxu1 %v5933_v32  ;;  %1563 = vmatpush.msra.mxu2 %v5935_v48  ;;  %v5961_v40 = vsel %vm965_vm12, %v946_v62, 0.0  ;;  %8394 = vst [vmem:[#allocation146_spill] sm:$0xff] %v5984_v3 }
 0x15b   :  { %1583 = vmatpush.msra.mxu3 %v5939_v24  ;;  %1524 = vmatpush.msra.mxu0 %v5941_v0  ;;  %974 = vst [vmem:[#allocation14 + $0x38] sm:$0xff] %v5961_v40 }
 0x15c   :  { %4478 = vmatmul.msk.f32.vlgmr.msrb.gmra.mxu0 %vm965_vm12, %v946_v62  ;;  %4479 = vmatmul.msk.f32.vlgmr.msrb.gmra.mxu1 %vm965_vm12, %v946_v62 }
 0x15d   :  { %4480 = vmatmul.msk.f32.vlgmr.msrb.gmra.mxu2 %vm965_vm12, %v946_v62  ;;  %4481 = vmatmul.msk.f32.vlgmr.msrb.gmra.mxu3 %vm965_vm12, %v946_v62  ;;  %v5988_v62 = vld [vmem:[#allocation8 + $0x120] sm:$0xff] }
 0x15e   :  { %1544 = vmatpush.msra.mxu1 %v5949_v39  ;;  %1564 = vmatpush.msra.mxu2 %v5951_v22  ;;  %8395 = vst [vmem:[#allocation147_spill] sm:$0xff] %v5988_v62  ;;  %v5996_v22 = vld [vmem:[#allocation8 + $0x138] sm:$0xff] }
 0x15f   :  { %1584 = vmatpush.msra.mxu3 %v5957_v10  ;;  %1525 = vmatpush.msra.mxu0 %v5976_v52  ;;  %v5990_v10 = vld [vmem:[#allocation8 + $0x128] sm:$0xff]  ;;  %8398 = vst [vmem:[#allocation150_spill] sm:$0xff] %v5996_v22  ;;  %v6008_v52 = vld [vmem:[#allocation8 + $0x118] sm:$0xff] }
 0x160   :  { %3295 = vperm.xlu1 %4493, %v5968_v34   ;;  %1545 = vmatpush.msra.mxu1 %v5978_v4  ;;  %8396 = vst [vmem:[#allocation148_spill] sm:$0xff] %v5990_v10  ;;  %v6000_v4 = vld [vmem:[#allocation8 + $0x100] sm:$0xff] }
 0x161   :  { %1565 = vmatpush.msra.mxu2 %v5980_v57  ;;  %1585 = vmatpush.msra.mxu3 %v5984_v3  ;;  %v6002_v57 = vld [vmem:[#allocation8 + $0x108] sm:$0xff]  ;;  %v6004_v3 = vld [vmem:[#allocation8 + $0x110] sm:$0xff] }
 0x162   :  { %1526 = vmatpush.msra.mxu0 %v5988_v62  ;;  %1546 = vmatpush.msra.mxu1 %v5990_v10  ;;  %v6012_v10 = vld [vmem:[#allocation8 + $0xe0] sm:$0xff]  ;;  %v6020_v62 = vld [vmem:[#allocation8 + $0xf8] sm:$0xff] }
 0x163   :  { %1586 = vmatpush.msra.mxu3 %v5996_v22  ;;  %v6016_v22 = vld [vmem:[#allocation8 + $0xf0] sm:$0xff] }
 0x164   :  { %1527 = vmatpush.msra.mxu0 %v6000_v4  ;;  %1547 = vmatpush.msra.mxu1 %v6002_v57 }
 0x165   :  { %1587 = vmatpush.msra.mxu3 %v6008_v52 }
 0x166   :  { %1528 = vmatpush.msra.mxu0 %v6012_v10 }
 0x167   :  { %1588 = vmatpush.msra.mxu3 %v6020_v62 }
 0x168   :  { %3770 = vperm.xlu1 %4493, %v5824_v12   ;;  %v5992_v12 = vld [vmem:[#allocation8 + $0x130] sm:$0xff]  ;;  %1529 = vmatpush.msra.mxu0 %v5424_v35 }
 0x169   :  { %8397 = vst [vmem:[#allocation149_spill] sm:$0xff] %v5992_v12  ;;  %1566 = vmatpush.msra.mxu2 %v5992_v12  ;;  %v6014_v12 = vld [vmem:[#allocation8 + $0xe8] sm:$0xff]  ;;  %1589 = vmatpush.msra.mxu3 %v5432_v51 }
 0x16a   :  { %1548 = vmatpush.msra.mxu1 %v6014_v12  ;;  %1530 = vmatpush.msra.mxu0 %v5436_v55  ;;  %v8414_v51 = vld [vmem:[#allocation89_spill] sm:$0xff]  ;;  %v8415_v55 = vld [vmem:[#allocation90_spill] sm:$0xff] }
 0x16b   :  { %1567 = vmatpush.msra.mxu2 %v6004_v3  ;;  %1590 = vmatpush.msra.mxu3 %v5444_v31 }
 0x16c   :  { %1549 = vmatpush.msra.mxu1 %v5426_v45  ;;  %1531 = vmatpush.msra.mxu0 %v5448_v25  ;;  %v8405_v25 = vld [vmem:[#allocation80_spill] sm:$0xff] }
 0x16d   :  { %1568 = vmatpush.msra.mxu2 %v6016_v22  ;;  %1591 = vmatpush.msra.mxu3 %v5459_v41  ;;  %v8408_v41 = vld [vmem:[#allocation83_spill] sm:$0xff]  ;;  %v8413_v45 = vld [vmem:[#allocation88_spill] sm:$0xff] }
 0x16e   :  { %1550 = vmatpush.msra.mxu1 %v5438_v28  ;;  %1532 = vmatpush.msra.mxu0 %v5472_v17  ;;  %v8416_v28 = vld [vmem:[#allocation91_spill] sm:$0xff] }
 0x16f   :  { %1569 = vmatpush.msra.mxu2 %v5428_v38  ;;  %1592 = vmatpush.msra.mxu3 %v5480_v43  ;;  %v8407_v38 = vld [vmem:[#allocation82_spill] sm:$0xff] }
 0x170   :  { %1551 = vmatpush.msra.mxu1 %v5450_v27  ;;  %1533 = vmatpush.msra.mxu0 %v5484_v46  ;;  %v8406_v27 = vld [vmem:[#allocation81_spill] sm:$0xff]  ;;  %v8418_v43 = vld [vmem:[#allocation94_spill] sm:$0xff] }
 0x171   :  { %1570 = vmatpush.msra.mxu2 %v5440_v37  ;;  %1593 = vmatpush.msra.mxu3 %v5492_v14  ;;  %v8399_v14 = vld [vmem:[#allocation78_spill] sm:$0xff]  ;;  %v8417_v37 = vld [vmem:[#allocation92_spill] sm:$0xff]  ;;  %v8419_v46 = vld [vmem:[#allocation93_spill] sm:$0xff] }
 0x172   :  { %1552 = vmatpush.msra.mxu1 %v5474_v16  ;;  %1534 = vmatpush.msra.mxu0 %v5496_v47  ;;  %v8402_v16 = vld [vmem:[#allocation20_spill] sm:$0xff] }
 0x173   :  { %1571 = vmatpush.msra.mxu2 %v5452_v21  ;;  %1594 = vmatpush.msra.mxu3 %v5514_v30  ;;  %v8404_v21 = vld [vmem:[#allocation21_spill] sm:$0xff] }
 0x174   :  { %1553 = vmatpush.msra.mxu1 %v5486_v19  ;;  %1535 = vmatpush.msra.mxu0 %v5523_v50  ;;  %v8410_v30 = vld [vmem:[#allocation85_spill] sm:$0xff]  ;;  %v8420_v19 = vld [vmem:[#allocation23_spill] sm:$0xff] }
 0x175   :  { %1572 = vmatpush.msra.mxu2 %v5476_v9  ;;  %1595 = vmatpush.msra.mxu3 %v5531_v26  ;;  %v248_v50 = vadd.f32 %v8420_v19, %v8419_v46  ;;  %v8437_v19 = vld [vmem:[#allocation109_spill] sm:$0xff]  ;;  %v8471_v46 = vld [vmem:[#allocation140_spill] sm:$0xff] }
 0x176   :  { %1554 = vmatpush.msra.mxu1 %v5498_v15  ;;  %1675 = vmatpush.msrb.mxu0 %v5533_v42  ;;  %v8401_v15 = vld [vmem:[#allocation76_spill] sm:$0xff]  ;;  %v8421_v42 = vld [vmem:[#allocation95_spill] sm:$0xff] }
 0x177   :  { %1573 = vmatpush.msra.mxu2 %v5488_v58  ;;  %1735 = vmatpush.msrb.mxu3 %v5544_v44  ;;  %v161_v17 = vadd.f32 %v8402_v16, %v8401_v15  ;;  %v8409_v58 = vld [vmem:[#allocation84_spill] sm:$0xff]  ;;  %v8411_v44 = vld [vmem:[#allocation86_spill] sm:$0xff]  ;;  %v8423_v16 = vld [vmem:[#allocation97_spill] sm:$0xff] }
 0x178   :  { %1555 = vmatpush.msra.mxu1 %v5525_v6  ;;  %1676 = vmatpush.msrb.mxu0 %v8399_v14  ;;  %v8403_v6 = vld [vmem:[#allocation77_spill] sm:$0xff]  ;;  %v8422_v14 = vld [vmem:[#allocation96_spill] sm:$0xff] }
 0x179   :  { %1574 = vmatpush.msra.mxu2 %v5500_v13  ;;  %v8400_v13 = vld [vmem:[#allocation79_spill] sm:$0xff]  ;;  %1736 = vmatpush.msrb.mxu3 %v8406_v27  ;;  %v8427_v27 = vld [vmem:[#allocation101_spill] sm:$0xff] }
 0x17a   :  { %1695 = vmatpush.msrb.mxu1 %v5535_v33  ;;  %1677 = vmatpush.msrb.mxu0 %v8407_v38  ;;  %v8429_v38 = vld [vmem:[#allocation103_spill] sm:$0xff] }
 0x17b   :  { %1575 = vmatpush.msra.mxu2 %v5527_v5  ;;  %v190_v5 = vadd.f32 %v8404_v21, %v8403_v6  ;;  %1737 = vmatpush.msrb.mxu3 %v8410_v30  ;;  %v8431_v30 = vld [vmem:[#allocation105_spill] sm:$0xff] }
 0x17c   :  { %1696 = vmatpush.msrb.mxu1 %v8400_v13  ;;  %1678 = vmatpush.msrb.mxu0 %v8411_v44  ;;  %v8432_v44 = vld [vmem:[#allocation106_spill] sm:$0xff] }
 0x17d   :  { %1715 = vmatpush.msrb.mxu2 %v5542_v49  ;;  %v8412_v49 = vld [vmem:[#allocation87_spill] sm:$0xff]  ;;  %1738 = vmatpush.msrb.mxu3 %v8414_v51  ;;  %v8434_v51 = vld [vmem:[#allocation73_spill] sm:$0xff] }
 0x17e   :  { %1697 = vmatpush.msrb.mxu1 %v8408_v41  ;;  %1679 = vmatpush.msrb.mxu0 %v8415_v55  ;;  %v8430_v41 = vld [vmem:[#allocation104_spill] sm:$0xff] }
 0x17f   :  { %1716 = vmatpush.msrb.mxu2 %v8405_v25  ;;  %1739 = vmatpush.msrb.mxu3 %v8418_v43  ;;  %v8426_v25 = vld [vmem:[#allocation100_spill] sm:$0xff] }
 0x180   :  { %1698 = vmatpush.msrb.mxu1 %v8412_v49  ;;  %1680 = vmatpush.msrb.mxu0 %v8421_v42  ;;  %v8439_v42 = vld [vmem:[#allocation111_spill] sm:$0xff] }
 0x181   :  { %1717 = vmatpush.msrb.mxu2 %v8409_v58 }
 0x182   :  { %1699 = vmatpush.msrb.mxu1 %v8416_v28  ;;  %v8435_v28 = vld [vmem:[#allocation107_spill] sm:$0xff] }
 0x183   :  { %1718 = vmatpush.msrb.mxu2 %v8413_v45 }
 0x184   :  { %1700 = vmatpush.msrb.mxu1 %v8422_v14  ;;  %v8440_v14 = vld [vmem:[#allocation112_spill] sm:$0xff] }
 0x185   :  { %1719 = vmatpush.msrb.mxu2 %v8417_v37  ;;  %v8436_v37 = vld [vmem:[#allocation108_spill] sm:$0xff] }
 0x186   :  { %1701 = vmatpush.msrb.mxu1 %v8426_v25  ;;  %v8443_v25 = vld [vmem:[#allocation114_spill] sm:$0xff] }
 0x187   :  { %1720 = vmatpush.msrb.mxu2 %v8423_v16 }
 0x188   :  { %1702 = vmatpush.msrb.mxu1 %v8430_v41  ;;  %v8447_v41 = vld [vmem:[#allocation118_spill] sm:$0xff] }
 0x189   :  { %1721 = vmatpush.msrb.mxu2 %v8427_v27  ;;  %v8444_v27 = vld [vmem:[#allocation22_spill] sm:$0xff] }
 0x18a   :  { %1703 = vmatpush.msrb.mxu1 %v8436_v37 }
 0x18b   :  { %1722 = vmatpush.msrb.mxu2 %v8431_v30 }
 0x18c   :  { %1704 = vmatpush.msrb.mxu1 %v8440_v14 }
 0x18d   :  { %1723 = vmatpush.msrb.mxu2 %v8437_v19  ;;  %v8454_v19 = vld [vmem:[#allocation124_spill] sm:$0xff] }
 0x1ce   :  { %v1067_v31 = vpop.f32.mrf.mxu0  ;;  %v1087_v35 = vpop.f32.mrf.mxu1 }
 0x1cf   :  { %v1130_v47 = vadd.f32 %v1067_v31, %v161_v17  ;;  %v1131_v9 = vadd.f32 %v1087_v35, %v190_v5  ;;  %v8424_v17 = vld [vmem:[#allocation98_spill] sm:$0xff]  ;;  %v8425_v5 = vld [vmem:[#allocation99_spill] sm:$0xff] }
 0x1d0   :  { %1740 = vmatpush.msrb.mxu3 %v8424_v17  ;;  %1681 = vmatpush.msrb.mxu0 %v8425_v5  ;;  %v8428_v31 = vld [vmem:[#allocation102_spill] sm:$0xff]  ;;  %v8442_v5 = vld [vmem:[#allocation115_spill] sm:$0xff] }
 0x1d1   :  { %v4403_v26 = vmul.f32 -1.442695, %v1130_v47  ;;  %v4404_v33 = vmul.f32 -1.442695, %v1131_v9 }
 0x1d2   :  { %1741 = vmatpush.msrb.mxu3 %v8428_v31  ;;  %1682 = vmatpush.msrb.mxu0 %v8429_v38  ;;  %v219_v31 = vadd.f32 %v8444_v27, %v8443_v25  ;;  %v8446_v38 = vld [vmem:[#allocation117_spill] sm:$0xff] }
 0x1d3   :  { %4527 = vpow2.f32 %v4403_v26  ;;  %1705 = vmatpush.msrb.mxu1 %v8446_v38 }
 0x1d4   :  { %4529 = vpow2.f32 %v4404_v33  ;;  %1742 = vmatpush.msrb.mxu3 %v8432_v44  ;;  %v8433_v33 = vld [vmem:[#allocation72_spill] sm:$0xff]  ;;  %1683 = vmatpush.msrb.mxu0 %v8435_v28  ;;  %v8453_v28 = vld [vmem:[#allocation123_spill] sm:$0xff] }
 0x1d5   :  { %v1127_v13 = vpop.f32.mrf.mxu3  ;;  %v8449_v44 = vld [vmem:[#allocation120_spill] sm:$0xff] }
 0x1d6   :  { %v1133_v21 = vadd.f32 %v1127_v13, %v248_v50  ;;  %v8438_v50 = vld [vmem:[#allocation110_spill] sm:$0xff]  ;;  %1684 = vmatpush.msrb.mxu0 %v8439_v42  ;;  %v1107_v13 = vpop.f32.mrf.mxu2 }
 0x1d7   :  { %1743 = vmatpush.msrb.mxu3 %v8438_v50  ;;  %v8455_v50 = vld [vmem:[#allocation125_spill] sm:$0xff] }
 0x1d8   :  { %v4405_v35 = vmul.f32 -1.442695, %v1133_v21  ;;  %v8441_v21 = vld [vmem:[#allocation113_spill] sm:$0xff] }
 0x1d9   :  { %v4528_v47 = vpop.eup %4527  ;;  %v1222_v9 = vpop.f32.mrf.mxu0  ;;  %1724 = vmatpush.msrb.mxu2 %v8441_v21  ;;  %1744 = vmatpush.msrb.mxu3 %v8442_v5  ;;  %v8458_v21 = vld [vmem:[#allocation128_spill] sm:$0xff]  ;;  %v8459_v5 = vld [vmem:[#allocation129_spill] sm:$0xff] }
 0x1da   :  { %v1242_v58 = vpop.f32.mrf.mxu1  ;;  %v4530_v49 = vpop.eup %4529  ;;  %v6090_v26 = vadd.f32 1.0, %v4528_v47  ;;  %4531 = vpow2.f32 %v4405_v35  ;;  %v1285_v45 = vadd.f32 %v1222_v9, %v8433_v33  ;;  %v8445_v35 = vld [vmem:[#allocation116_spill] sm:$0xff]  ;;  %v8448_v47 = vld [vmem:[#allocation119_spill] sm:$0xff] }
 0x1db   :  { %v1286_v55 = vadd.f32 %v1242_v58, %v8434_v51  ;;  %v6096_v43 = vadd.f32 1.0, %v4530_v49  ;;  %1685 = vmatpush.msrb.mxu0 %v8445_v35  ;;  %1725 = vmatpush.msrb.mxu2 %v8447_v41  ;;  %v1132_v58 = vadd.f32 %v1107_v13, %v219_v31  ;;  %v8450_v49 = vld [vmem:[#allocation121_spill] sm:$0xff]  ;;  %v8456_v13 = vld [vmem:[#allocation126_spill] sm:$0xff] }
 0x1dc   :  { %4533 = vrcp.f32 %v6090_v26  ;;  %v4406_v16 = vmul.f32 -1.442695, %v1285_v45  ;;  %1745 = vmatpush.msrb.mxu3 %v8448_v47  ;;  %1706 = vmatpush.msrb.mxu1 %v8450_v49  ;;  %v8451_v45 = vld [vmem:[#allocation75_spill] sm:$0xff]  ;;  %v1302_v35 = vand.u32 2147483647, %v6090_v26  ;;  %v1304_v38 = vand.u32 2147483648, %v6090_v26 }
 0x1dd   :  { %4535 = vrcp.f32 %v6096_v43  ;;  %v4407_v17 = vmul.f32 -1.442695, %v1286_v55  ;;  %1686 = vmatpush.msrb.mxu0 %v8449_v44  ;;  %v8452_v55 = vld [vmem:[#allocation122_spill] sm:$0xff]  ;;  %vm1298_vm4 = vweird.f32 %v6090_v26  ;;  %vm1317_vm6 = vweird.f32 %v6096_v43 }
 0x1de   :  { %4537 = vpow2.f32 %v4406_v16  ;;  %1726 = vmatpush.msrb.mxu2 %v8452_v55  ;;  %1746 = vmatpush.msrb.mxu3 %v8453_v28  ;;  %v8457_v16 = vld [vmem:[#allocation127_spill] sm:$0xff]  ;;  %v8460_v47 = vld [vmem:[#allocation130_spill] sm:$0xff]  ;;  %v8462_v55 = vld [vmem:[#allocation132_spill] sm:$0xff]  ;;  %vm1303_vm7 = vcmp.eq.f32.partialorder %v1302_v35, 8.507059e+37 }
 0x1df   :  { %4539 = vpow2.f32 %v4407_v17  ;;  %1687 = vmatpush.msrb.mxu0 %v8454_v19  ;;  %1707 = vmatpush.msrb.mxu1 %v8455_v50  ;;  %v8463_v28 = vld [vmem:[#allocation133_spill] sm:$0xff] }
 0x1e0   :  { %v4532_v9 = vpop.eup %4531  ;;  %v1282_v30 = vpop.f32.mrf.mxu3  ;;  %1727 = vmatpush.msrb.mxu2 %v8456_v13  ;;  %1747 = vmatpush.msrb.mxu3 %v8457_v16  ;;  %v8466_v16 = vld [vmem:[#allocation136_spill] sm:$0xff] }
 0x1e1   :  { %v6114_v33 = vadd.f32 1.0, %v4532_v9  ;;  %v1288_v51 = vadd.f32 %v1282_v30, %v8451_v45  ;;  %1688 = vmatpush.msrb.mxu0 %v8458_v21  ;;  %1708 = vmatpush.msrb.mxu1 %v8459_v5  ;;  %v8461_v9 = vld [vmem:[#allocation131_spill] sm:$0xff]  ;;  %v1323_v45 = vand.u32 2147483648, %v6096_v43 }
 0x1e2   :  { %v4534_v37 = vpop.eup %4533  ;;  %1728 = vmatpush.msrb.mxu2 %v8460_v47  ;;  %1748 = vmatpush.msrb.mxu3 %v8461_v9  ;;  %v1305_v9 = vor.u32 1.1754944e-38, %v1304_v38 }
 0x1e3   :  { %v4536_v42 = vpop.eup %4535  ;;  %v1294_v14 = vmul.f32 %v4534_v37, %v6090_v26  ;;  %4541 = vrcp.f32 %v6114_v33  ;;  %v4408_v41 = vmul.f32 -1.442695, %v1288_v51  ;;  %1689 = vmatpush.msrb.mxu0 %v8462_v55  ;;  %1709 = vmatpush.msrb.mxu1 %v8463_v28  ;;  %vm1299_vm2 = vweird.f32 %v4534_v37  ;;  %v8464_v51 = vld [vmem:[#allocation134_spill] sm:$0xff]  ;;  %v1262_v26 = vpop.f32.mrf.mxu2 }
 0x1e4   :  { %v1313_v17 = vmul.f32 %v4536_v42, %v6096_v43  ;;  %4543 = vtanh.f32 %v1132_v58  ;;  %v4538_v27 = vpop.eup %4537  ;;  %v1321_v58 = vand.u32 2147483647, %v6096_v43  ;;  %1729 = vmatpush.msrb.mxu2 %v8464_v51  ;;  %vm1318_vm3 = vweird.f32 %v4536_v42  ;;  %vm1300_vm5 = vmor %vm1298_vm4, %vm1299_vm2 }
 0x1e5   :  { %v1295_v31 = vsub.f32 1.0, %v1294_v14  ;;  %v4540_v30 = vpop.eup %4539  ;;  %v6132_v49 = vadd.f32 1.0, %v4538_v27  ;;  %4545 = vpow2.f32 %v4408_v41  ;;  %v8465_v14 = vld [vmem:[#allocation135_spill] sm:$0xff]  ;;  %1690 = vmatpush.msrb.mxu0 %v8466_v16  ;;  %v8468_v27 = vld [vmem:[#allocation138_spill] sm:$0xff]  ;;  %vm1319_vm8 = vmor %vm1317_vm6, %vm1318_vm3  ;;  %v1324_v28 = vor.u32 1.1754944e-38, %v1323_v45 }
 0x1e6   :  { %v1314_v44 = vsub.f32 1.0, %v1313_v17  ;;  %v6138_v50 = vadd.f32 1.0, %v4540_v30  ;;  %1749 = vmatpush.msrb.mxu3 %v8465_v14  ;;  %v8467_v17 = vld [vmem:[#allocation137_spill] sm:$0xff]  ;;  %1730 = vmatpush.msrb.mxu2 %v8468_v27  ;;  %v4417_v41 = vld [vmem:[%s8031_s1 + $0x10] sm:$0xff]  ;;  %vm1322_vm10 = vcmp.eq.f32.partialorder %v1321_v58, 8.507059e+37  ;;  %vm1337_vm12 = vweird.f32 %v6114_v33 }
 0x1e7   :  { %v1296_v19 = vmul.f32 %v4534_v37, %v1295_v31  ;;  %4547 = vrcp.f32 %v6132_v49  ;;  %1710 = vmatpush.msrb.mxu1 %v8467_v17  ;;  %v8469_v31 = vld [vmem:[#allocation139_spill] sm:$0xff]  ;;  %vm1887_vm11 = vcmp.gt.f32.partialorder %v4417_v41, 0.0  ;;  %v8470_v27 = vld [vmem:[#allocation74_spill] sm:$0xff]  ;;  %vm1361_vm2 = vweird.f32 %v6132_v49 }
 0x1e8   :  { %v1315_v13 = vmul.f32 %v4536_v42, %v1314_v44  ;;  %4549 = vrcp.f32 %v6138_v50  ;;  %1750 = vmatpush.msrb.mxu3 %v8469_v31  ;;  %v1287_v31 = vadd.f32 %v1262_v26, %v8470_v27  ;;  %v6165_v58 = vsel %vm1887_vm11, 1, %v8383_v11  ;;  %v6312_v27 = vld [vmem:[#allocation8 + $0x70] sm:$0xff] }
 0x1e9   :  { %v6145_v21 = vpop.eup %4541  ;;  %v1297_v5 = vadd.f32 %v4534_v37, %v1296_v19  ;;  %1893 = vperm.xlu2 %4494, %v6165_v58   ;;  %vm1380_vm4 = vweird.f32 %v6138_v50 }
 0x1ea   :  { %v4544_v47 = vpop.eup %4543  ;;  %v1333_v30 = vmul.f32 %v6145_v21, %v6114_v33  ;;  %v1316_v44 = vadd.f32 %v4536_v42, %v1315_v13  ;;  %v1424_v13 = vpop.permute.xlu1 %1423  ;;  %vm1338_vm14 = vweird.f32 %v6145_v21 }
 0x1eb   :  { %v1301_v55 = vsel %vm1300_vm5, %v4534_v37, %v1297_v5  ;;  %v4546_v16 = vpop.eup %4545  ;;  %v1341_v5 = vand.u32 2147483647, %v6114_v33  ;;  %vm1425_vm13 = vcmp.eq.s32.totalorder %v1424_v13, 1  ;;  %vm6185_vm15 = vmor %vm1337_vm12, %vm1338_vm14 }
 0x1ec   :  { %v1306_v19 = vsel %vm1303_vm7, %v1305_v9, %v1301_v55  ;;  %v1334_v51 = vsub.f32 1.0, %v1333_v30  ;;  %v1320_v14 = vsel %vm1319_vm8, %v4536_v42, %v1316_v44  ;;  %v6162_v35 = vadd.f32 1.0, %v4546_v16 }
 0x1ed   :  { %v1348_v17 = vmul.f32 %v4544_v47, %v1306_v19  ;;  %v1325_v38 = vsel %vm1322_vm10, %v1324_v28, %v1320_v14  ;;  %v4548_v25 = vpop.eup %4547  ;;  %v1343_v47 = vand.u32 2147483648, %v6114_v33  ;;  %v1367_v28 = vand.u32 2147483648, %v6132_v49 }
 0x1ee   :  { %v1335_v43 = vmul.f32 %v6145_v21, %v1334_v51  ;;  %v1347_v37 = vmul.f32 %v1325_v38, %v8471_v46  ;;  %v4550_v45 = vpop.eup %4549  ;;  %v1357_v42 = vmul.f32 %v4548_v25, %v6132_v49  ;;  %4551 = vrcp.f32 %v6162_v35 }
 0x1ef   :  { %v1376_v41 = vmul.f32 %v4550_v45, %v6138_v50  ;;  %4553 = vtanh.f32 %v1287_v31  ;;  %vm1362_vm9 = vweird.f32 %v4548_v25  ;;  %v1365_v51 = vand.u32 2147483647, %v6132_v49 }
 0x1f0   :  { %v1349_v9 = vadd.f32 %v1348_v17, %v1347_v37  ;;  %v1358_v30 = vsub.f32 1.0, %v1357_v42  ;;  %v1336_v44 = vadd.f32 %v6145_v21, %v1335_v43  ;;  %v1386_v14 = vand.u32 2147483648, %v6138_v50  ;;  %vm1363_vm3 = vmor %vm1361_vm2, %vm1362_vm9 }
 0x1f1   :  { %v1377_v26 = vsub.f32 1.0, %v1376_v41  ;;  %vm1381_vm0 = vweird.f32 %v4550_v45  ;;  %v1384_v38 = vand.u32 2147483647, %v6138_v50  ;;  %vm6193_vm1 = vcmp.eq.f32.partialorder %v1341_v5, 8.507059e+37  ;;  %1902 = vperm.xlu2 %4494, %v5968_v34  }
 0x1f2   :  { %4555 = vtanh.f32 %v1349_v9  ;;  %v6178_v55 = vsel %vm1425_vm13, %v1349_v9, %v8471_v46  ;;  %v1359_v19 = vmul.f32 %v4548_v25, %v1358_v30  ;;  %v1340_v46 = vsel %vm6185_vm15, %v6145_v21, %v1336_v44  ;;  %vm1382_vm6 = vmor %vm1380_vm4, %vm1381_vm0 }
 0x1f3   :  { %v1378_v17 = vmul.f32 %v4550_v45, %v1377_v26  ;;  %v1344_v43 = vor.u32 1.1754944e-38, %v1343_v47  ;;  %v1368_v37 = vor.u32 1.1754944e-38, %v1367_v28  ;;  %vm1366_vm5 = vcmp.eq.f32.partialorder %v1365_v51, 8.507059e+37 }
 0x1f4   :  { %v1360_v31 = vadd.f32 %v4548_v25, %v1359_v19  ;;  %v4552_v33 = vpop.eup %4551  ;;  %v1387_v21 = vor.u32 1.1754944e-38, %v1386_v14  ;;  %vm1385_vm7 = vcmp.eq.f32.partialorder %v1384_v38, 8.507059e+37  ;;  %v1406_v38 = vand.u32 2147483648, %v6162_v35 }
 0x1f5   :  { %v1379_v42 = vadd.f32 %v4550_v45, %v1378_v17  ;;  %v4554_v41 = vpop.eup %4553  ;;  %v1396_v30 = vmul.f32 %v4552_v33, %v6162_v35  ;;  %v1345_v49 = vsel %vm6193_vm1, %v1344_v43, %v1340_v46  ;;  %vm1401_vm10 = vweird.f32 %v4552_v33  ;;  %v6322_v43 = vld [vmem:[#allocation8 + $0x48] sm:$0xff] }
 0x1f6   :  { %v1364_v9 = vsel %vm1363_vm3, %v4548_v25, %v1360_v31  ;;  %v1433_v25 = vpop.permute.xlu1 %1432  ;;  %vm1400_vm11 = vweird.f32 %v6162_v35  ;;  %v1404_v13 = vand.u32 2147483647, %v6162_v35  ;;  %v6308_v35 = vld [vmem:[#allocation8 + $0x60] sm:$0xff]  ;;  %v6316_v31 = vld [vmem:[#allocation8 + $0x78] sm:$0xff] }
 0x1f7   :  { %v1369_v47 = vsel %vm1366_vm5, %v1368_v37, %v1364_v9  ;;  %v1383_v44 = vsel %vm1382_vm6, %v4550_v45, %v1379_v42  ;;  %v1397_v50 = vsub.f32 1.0, %v1396_v30  ;;  %vm1434_vm8 = vcmp.eq.s32.totalorder %v1433_v25, 1  ;;  %vm1402_vm12 = vmor %vm1400_vm11, %vm1401_vm10  ;;  %v6324_v37 = vld [vmem:[#allocation8 + $0x50] sm:$0xff]  ;;  %v6328_v42 = vld [vmem:[#allocation8 + $0x58] sm:$0xff] }
 0x1f8   :  { %v4556_v5 = vpop.eup %4555  ;;  %v1411_v28 = vmul.f32 %v4554_v41, %v1369_v47  ;;  %v1388_v19 = vsel %vm1385_vm7, %v1387_v21, %v1383_v44  ;;  %v6332_v41 = vld [vmem:[#allocation8 + $0x20] sm:$0xff]  ;;  %v6334_v9 = vld [vmem:[#allocation8 + $0x28] sm:$0xff]  ;;  %v6336_v30 = vld [vmem:[#allocation8 + $0x30] sm:$0xff] }
 0x1f9   :  { %v1351_v26 = vmul.f32 %v4556_v5, %v1345_v49  ;;  %v1410_v51 = vmul.f32 %v1388_v19, %v5895_v61  ;;  %v1398_v14 = vmul.f32 %v4552_v33, %v1397_v50  ;;  %2829 = vperm.xlu2 %4494, %v5913_v53   ;;  %v6340_v21 = vld [vmem:[#allocation8 + $0x38] sm:$0xff]  ;;  %v6344_v5 = vld [vmem:[#allocation8] sm:$0xff]  ;;  %v6346_v49 = vld [vmem:[#allocation8 + $0x8] sm:$0xff] }
 0x1fa   :  { %v6348_v47 = vld [vmem:[#allocation8 + $0x10] sm:$0xff]  ;;  %v6352_v44 = vld [vmem:[#allocation8 + $0x18] sm:$0xff]  ;;  %v8486_v50 = vld [vmem:[#allocation24_spill] sm:$0xff] }
 0x1fb   :  { %v6207_v16 = vsel %vm1425_vm13, %v1351_v26, %v5873_v60  ;;  %v1439_v34 = vsel %vm1425_vm13, %v1351_v26, 0.0  ;;  %v1412_v17 = vadd.f32 %v1411_v28, %v1410_v51  ;;  %v1399_v45 = vadd.f32 %v4552_v33, %v1398_v14  ;;  %v6354_v26 = vld [vmem:[#allocation11 + $0x1e0] sm:$0xff]  ;;  %v6356_v28 = vld [vmem:[#allocation11 + $0x1e8] sm:$0xff]  ;;  %v6366_v14 = vld [vmem:[#allocation11 + $0x1f8] sm:$0xff] }
 0x1fc   :  { %1441 = vst [vmem:[#allocation13 + $0x8] sm:$0xff] %v1439_v34  ;;  %1536 = vmatmul.f32.vlgmr.msra.gmra.mxu0 %v6207_v16  ;;  %1556 = vmatmul.f32.vlgmr.msra.gmra.mxu1 %v6207_v16  ;;  %vm1405_vm13 = vcmp.eq.f32.partialorder %v1404_v13, 8.507059e+37  ;;  %v164_v19 = vadd.f32 %v8486_v50, %v8401_v15  ;;  %v8487_v25 = vld [vmem:[#allocation25_spill] sm:$0xff]  ;;  %v6364_v34 = vld [vmem:[#allocation11 + $0x1f0] sm:$0xff] }
 0x1fd   :  { %1576 = vmatmul.f32.vlgmr.msra.gmra.mxu2 %v6207_v16  ;;  %1596 = vmatmul.f32.vlgmr.msra.gmra.mxu3 %v6207_v16  ;;  %4557 = vtanh.f32 %v1412_v17  ;;  %v6217_v60 = vsel %vm1434_vm8, %v1412_v17, %v5895_v61  ;;  %v1403_v46 = vsel %vm1402_vm12, %v4552_v33, %v1399_v45  ;;  %v8477_v61 = vld [vmem:[#allocation142_spill] sm:$0xff]  ;;  %v6320_v33 = vld [vmem:[#allocation8 + $0x40] sm:$0xff]  ;;  %v193_v51 = vadd.f32 %v8487_v25, %v8403_v6  ;;  %v6372_v13 = vld [vmem:[#allocation11 + $0x1c8] sm:$0xff] }
 0x1fe   :  { %1990 = vmatpush.msra.mxu0 %v5859_v1  ;;  %2010 = vmatpush.msra.mxu1 %v5861_v56  ;;  %v1407_v1 = vor.u32 1.1754944e-38, %v1406_v38  ;;  %8488 = vst [vmem:[#allocation78_spill] sm:$0xff] %v6364_v34  ;;  %v6370_v38 = vld [vmem:[#allocation11 + $0x1c0] sm:$0xff]  ;;  %v6410_v50 = vld [vmem:[#allocation11 + $0x168] sm:$0xff] }
 0x1ff   :  { %2030 = vmatpush.msra.mxu2 %v5867_v8  ;;  %2050 = vmatpush.msra.mxu3 %v5869_v54  ;;  %8489 = vst [vmem:[#allocation79_spill] sm:$0xff] %v6366_v14 }
 0x200   :  { %1991 = vmatpush.msra.mxu0 %v5881_v2  ;;  %2011 = vmatpush.msra.mxu1 %v5883_v7  ;;  %v1408_v8 = vsel %vm1405_vm13, %v1407_v1, %v1403_v46  ;;  %v4457_v2 = vld [vmem:[%s8031_s1 + $0x38] sm:$0xff]  ;;  %8490 = vst [vmem:[#allocation76_spill] sm:$0xff] %v6370_v38  ;;  %v6374_v46 = vld [vmem:[#allocation11 + $0x1d0] sm:$0xff]  ;;  %s4861_s1 = smov [#allocation13]  }
 0x201   :  { %2031 = vmatpush.msra.mxu2 %v5889_v23  ;;  %2051 = vmatpush.msra.mxu3 %v5891_v63  ;;  %vm4222_vm14 = vcmp.gt.f32.partialorder %v4457_v2, 0.0  ;;  %v8476_v63 = vld [vmem:[#allocation141_spill] sm:$0xff]  ;;  %8491 = vst [vmem:[#allocation20_spill] sm:$0xff] %v6372_v13  ;;  %s8004_s22 = sshll.u32 %s4861_s1, 4  ;;  %s4253_s22 = int_to_ptr.vmem [resolvable:$true] %s8004_s22 }
 0x202   :  { %1992 = vmatpush.msra.mxu0 %v5901_v20  ;;  %2012 = vmatpush.msra.mxu1 %v5903_v18  ;;  %v8478_v20 = vld [vmem:[#allocation143_spill] sm:$0xff]  ;;  %v8479_v18 = vld [vmem:[#allocation144_spill] sm:$0xff]  ;;  %v4225_v53 = vsel %vm4222_vm14, 1, %v8383_v11  ;;  %8492 = vst [vmem:[#allocation77_spill] sm:$0xff] %v6374_v46  ;;  %v6384_v2 = vld [vmem:[#allocation11 + $0x1a8] sm:$0xff] }
 0x203   :  { %2032 = vmatpush.msra.mxu2 %v5917_v59  ;;  %v4558_v56 = vpop.eup %4557  ;;  %2052 = vmatpush.msra.mxu3 %v5924_v29  ;;  %v8480_v59 = vld [vmem:[#allocation145_spill] sm:$0xff]  ;;  %v8481_v29 = vld [vmem:[#allocation146_spill] sm:$0xff]  ;;  %v6272_v11 = vld [vmem:[#allocation8 + $0xc0] sm:$0xff]  ;;  %8495 = vst [vmem:[#allocation81_spill] sm:$0xff] %v6384_v2 }
 0x204   :  { %1993 = vmatpush.msra.mxu0 %v5926_v36  ;;  %v1414_v54 = vmul.f32 %v4558_v56, %v1408_v8  ;;  %2013 = vmatpush.msra.mxu1 %v5933_v32  ;;  %v8482_v36 = vld [vmem:[#allocation147_spill] sm:$0xff]  ;;  %v8483_v32 = vld [vmem:[#allocation148_spill] sm:$0xff]  ;;  %8505 = vst [vmem:[#allocation89_spill] sm:$0xff] %v6410_v50 }
 0x205   :  { %2033 = vmatpush.msra.mxu2 %v5935_v48  ;;  %2053 = vmatpush.msra.mxu3 %v5939_v24  ;;  %v8484_v48 = vld [vmem:[#allocation149_spill] sm:$0xff]  ;;  %v8485_v24 = vld [vmem:[#allocation150_spill] sm:$0xff]  ;;  %v6378_v8 = vld [vmem:[#allocation11 + $0x1d8] sm:$0xff] }
 0x206   :  { %1994 = vmatpush.msra.mxu0 %v5941_v0  ;;  %v6244_v7 = vsel %vm1434_vm8, %v1414_v54, %v5961_v40  ;;  %v1442_v23 = vsel %vm1434_vm8, %v1414_v54, 0.0  ;;  %3304 = vperm.xlu2 %4494, %v6165_v58   ;;  %v6274_v0 = vld [vmem:[#allocation8 + $0xc8] sm:$0xff]  ;;  %v6280_v40 = vld [vmem:[#allocation8 + $0xd8] sm:$0xff]  ;;  %8493 = vst [vmem:[#allocation21_spill] sm:$0xff] %v6378_v8  ;;  %v6382_v54 = vld [vmem:[#allocation11 + $0x1a0] sm:$0xff] }
 0x207   :  { %2014 = vmatpush.msra.mxu1 %v5949_v39  ;;  %1444 = vst [vmem:[#allocation14 + $0x30] sm:$0xff] %v1442_v23  ;;  %1691 = vmatmul.f32.vlgmr.msrb.gmra.mxu0 %v6244_v7  ;;  %v6276_v39 = vld [vmem:[#allocation8 + $0xd0] sm:$0xff]  ;;  %v6310_v58 = vld [vmem:[#allocation8 + $0x68] sm:$0xff] }
 0x208   :  { %1711 = vmatmul.f32.vlgmr.msrb.gmra.mxu1 %v6244_v7  ;;  %1731 = vmatmul.f32.vlgmr.msrb.gmra.mxu2 %v6244_v7  ;;  %8494 = vst [vmem:[#allocation80_spill] sm:$0xff] %v6382_v54  ;;  %v6386_v23 = vld [vmem:[#allocation11 + $0x1b0] sm:$0xff] }
 0x209   :  { %1751 = vmatmul.f32.vlgmr.msrb.gmra.mxu3 %v6244_v7  ;;  %2034 = vmatpush.msra.mxu2 %v8476_v63  ;;  %8496 = vst [vmem:[#allocation82_spill] sm:$0xff] %v6386_v23 }
 0x20a   :  { %2054 = vmatpush.msra.mxu3 %v8477_v61  ;;  %1995 = vmatpush.msra.mxu0 %v8478_v20  ;;  %v6390_v20 = vld [vmem:[#allocation11 + $0x1b8] sm:$0xff] }
 0x20b   :  { %2015 = vmatpush.msra.mxu1 %v8479_v18  ;;  %2035 = vmatpush.msra.mxu2 %v8480_v59  ;;  %8497 = vst [vmem:[#allocation83_spill] sm:$0xff] %v6390_v20  ;;  %v6394_v18 = vld [vmem:[#allocation11 + $0x180] sm:$0xff]  ;;  %v6398_v59 = vld [vmem:[#allocation11 + $0x190] sm:$0xff] }
 0x20c   :  { %2055 = vmatpush.msra.mxu3 %v8481_v29  ;;  %1996 = vmatpush.msra.mxu0 %v8482_v36  ;;  %8498 = vst [vmem:[#allocation84_spill] sm:$0xff] %v6394_v18  ;;  %v6402_v29 = vld [vmem:[#allocation11 + $0x198] sm:$0xff]  ;;  %v8502_v36 = vld [vmem:[#allocation93_spill] sm:$0xff] }
 0x20d   :  { %2016 = vmatpush.msra.mxu1 %v8483_v32  ;;  %2036 = vmatpush.msra.mxu2 %v8484_v48  ;;  %8500 = vst [vmem:[#allocation86_spill] sm:$0xff] %v6398_v59  ;;  %v8503_v32 = vld [vmem:[#allocation27_spill] sm:$0xff] }
 0x20e   :  { %2056 = vmatpush.msra.mxu3 %v8485_v24  ;;  %4227 = vperm.xlu2 %4494, %v4225_v53   ;;  %v6396_v53 = vld [vmem:[#allocation11 + $0x188] sm:$0xff]  ;;  %8501 = vst [vmem:[#allocation87_spill] sm:$0xff] %v6402_v29  ;;  %v251_v48 = vadd.f32 %v8503_v32, %v8502_v36  ;;  %v6408_v24 = vld [vmem:[#allocation11 + $0x160] sm:$0xff] }
 0x20f   :  { %1997 = vmatpush.msra.mxu0 %v6000_v4  ;;  %2017 = vmatpush.msra.mxu1 %v6002_v57  ;;  %v6292_v4 = vld [vmem:[#allocation8 + $0xb8] sm:$0xff]  ;;  %v6296_v57 = vld [vmem:[#allocation8 + $0x80] sm:$0xff]  ;;  %8499 = vst [vmem:[#allocation85_spill] sm:$0xff] %v6396_v53 }
 0x210   :  { %2037 = vmatpush.msra.mxu2 %v6004_v3  ;;  %2057 = vmatpush.msra.mxu3 %v6008_v52  ;;  %v6288_v52 = vld [vmem:[#allocation8 + $0xb0] sm:$0xff]  ;;  %v6298_v3 = vld [vmem:[#allocation8 + $0x88] sm:$0xff]  ;;  %8504 = vst [vmem:[#allocation88_spill] sm:$0xff] %v6408_v24  ;;  %v6432_v32 = vld [vmem:[#allocation11 + $0x120] sm:$0xff] }
 0x211   :  { %1998 = vmatpush.msra.mxu0 %v6012_v10  ;;  %2018 = vmatpush.msra.mxu1 %v6014_v12  ;;  %v6284_v10 = vld [vmem:[#allocation8 + $0xa0] sm:$0xff]  ;;  %v6304_v12 = vld [vmem:[#allocation8 + $0x98] sm:$0xff]  ;;  %8512 = vst [vmem:[#allocation96_spill] sm:$0xff] %v6432_v32 }
 0x212   :  { %2038 = vmatpush.msra.mxu2 %v6016_v22  ;;  %2058 = vmatpush.msra.mxu3 %v6020_v62  ;;  %v6286_v22 = vld [vmem:[#allocation8 + $0xa8] sm:$0xff]  ;;  %v6300_v62 = vld [vmem:[#allocation8 + $0x90] sm:$0xff] }
 0x213   :  { %1999 = vmatpush.msra.mxu0 %v6272_v11  ;;  %2019 = vmatpush.msra.mxu1 %v6274_v0 }
 0x214   :  { %2039 = vmatpush.msra.mxu2 %v6276_v39  ;;  %2059 = vmatpush.msra.mxu3 %v6280_v40 }
 0x215   :  { %2000 = vmatpush.msra.mxu0 %v6284_v10  ;;  %2020 = vmatpush.msra.mxu1 %v6286_v22 }
 0x216   :  { %2040 = vmatpush.msra.mxu2 %v6288_v52  ;;  %2060 = vmatpush.msra.mxu3 %v6292_v4 }
 0x217   :  { %2001 = vmatpush.msra.mxu0 %v6296_v57  ;;  %2021 = vmatpush.msra.mxu1 %v6298_v3 }
 0x218   :  { %2041 = vmatpush.msra.mxu2 %v6300_v62  ;;  %2061 = vmatpush.msra.mxu3 %v6304_v12 }
 0x219   :  { %2002 = vmatpush.msra.mxu0 %v6308_v35  ;;  %2022 = vmatpush.msra.mxu1 %v6310_v58 }
 0x21a   :  { %2042 = vmatpush.msra.mxu2 %v6312_v27  ;;  %2062 = vmatpush.msra.mxu3 %v6316_v31 }
 0x21b   :  { %2003 = vmatpush.msra.mxu0 %v6320_v33  ;;  %2023 = vmatpush.msra.mxu1 %v6322_v43 }
 0x21c   :  { %2043 = vmatpush.msra.mxu2 %v6324_v37  ;;  %2063 = vmatpush.msra.mxu3 %v6328_v42 }
 0x21d   :  { %2004 = vmatpush.msra.mxu0 %v6332_v41  ;;  %2024 = vmatpush.msra.mxu1 %v6334_v9 }
 0x21e   :  { %2044 = vmatpush.msra.mxu2 %v6336_v30  ;;  %2064 = vmatpush.msra.mxu3 %v6340_v21 }
 0x21f   :  { %2005 = vmatpush.msra.mxu0 %v6344_v5  ;;  %2025 = vmatpush.msra.mxu1 %v6346_v49 }
 0x220   :  { %2045 = vmatpush.msra.mxu2 %v6348_v47  ;;  %2065 = vmatpush.msra.mxu3 %v6352_v44 }
 0x221   :  { %2145 = vmatpush.msrb.mxu0 %v6354_v26  ;;  %2165 = vmatpush.msrb.mxu1 %v6356_v28 }
 0x222   :  { %2185 = vmatpush.msrb.mxu2 %v6364_v34  ;;  %2205 = vmatpush.msrb.mxu3 %v6366_v14 }
 0x223   :  { %2146 = vmatpush.msrb.mxu0 %v6370_v38  ;;  %2166 = vmatpush.msrb.mxu1 %v6372_v13  ;;  %v6594_v13 = vld [vmem:[#allocation11 + $0x10] sm:$0xff]  ;;  %v6596_v38 = vld [vmem:[#allocation11 + $0x18] sm:$0xff] }
 0x224   :  { %2186 = vmatpush.msrb.mxu2 %v6374_v46  ;;  %2206 = vmatpush.msrb.mxu3 %v6378_v8  ;;  %8555 = vst [vmem:[#allocation129_spill] sm:$0xff] %v6594_v13 }
 0x225   :  { %2147 = vmatpush.msrb.mxu0 %v6382_v54  ;;  %2167 = vmatpush.msrb.mxu1 %v6384_v2  ;;  %v6535_v2 = vld [vmem:[#allocation11 + $0x78] sm:$0xff]  ;;  %8556 = vst [vmem:[#allocation130_spill] sm:$0xff] %v6596_v38 }
 0x226   :  { %2187 = vmatpush.msrb.mxu2 %v6386_v23  ;;  %2207 = vmatpush.msrb.mxu3 %v6390_v20  ;;  %8544 = vst [vmem:[#allocation121_spill] sm:$0xff] %v6535_v2 }
 0x227   :  { %2148 = vmatpush.msrb.mxu0 %v6394_v18  ;;  %2168 = vmatpush.msrb.mxu1 %v6396_v53  ;;  %v8520_v53 = vld [vmem:[#allocation69_spill] sm:$0xff]  ;;  %v6507_v18 = vld [vmem:[#allocation11 + $0x80] sm:$0xff] }
 0x228   :  { %2188 = vmatpush.msrb.mxu2 %v6398_v59  ;;  %2208 = vmatpush.msrb.mxu3 %v6402_v29  ;;  %v6448_v29 = vld [vmem:[#allocation11 + $0x108] sm:$0xff]  ;;  %v6450_v59 = vld [vmem:[#allocation11 + $0x110] sm:$0xff]  ;;  %8537 = vst [vmem:[#allocation115_spill] sm:$0xff] %v6507_v18 }
 0x229   :  { %2149 = vmatpush.msrb.mxu0 %v6408_v24  ;;  %2169 = vmatpush.msrb.mxu1 %v6410_v50  ;;  %8517 = vst [vmem:[#allocation101_spill] sm:$0xff] %v6448_v29 }
 0x22a   :  { %8518 = vst [vmem:[#allocation102_spill] sm:$0xff] %v6450_v59 }
 0x279   :  { %v1537_v17 = vpop.f32.mrf.mxu0  ;;  %v1557_v45 = vpop.f32.mrf.mxu1 }
 0x27a   :  { %v1600_v1 = vadd.f32 %v1537_v17, %v164_v19  ;;  %v1601_v56 = vadd.f32 %v1557_v45, %v193_v51  ;;  %v6412_v19 = vld [vmem:[#allocation11 + $0x170] sm:$0xff]  ;;  %v6416_v51 = vld [vmem:[#allocation11 + $0x178] sm:$0xff]  ;;  %v6420_v45 = vld [vmem:[#allocation11 + $0x140] sm:$0xff] }
 0x27b   :  { %8506 = vst [vmem:[#allocation90_spill] sm:$0xff] %v6412_v19  ;;  %2189 = vmatpush.msrb.mxu2 %v6412_v19  ;;  %2209 = vmatpush.msrb.mxu3 %v6416_v51  ;;  %v6440_v19 = vld [vmem:[#allocation11 + $0x138] sm:$0xff] }
 0x27c   :  { %v4411_v63 = vmul.f32 -1.442695, %v1600_v1  ;;  %v4412_v61 = vmul.f32 -1.442695, %v1601_v56  ;;  %8507 = vst [vmem:[#allocation91_spill] sm:$0xff] %v6416_v51  ;;  %v6422_v1 = vld [vmem:[#allocation11 + $0x148] sm:$0xff]  ;;  %2150 = vmatpush.msrb.mxu0 %v6420_v45 }
 0x27d   :  { %8508 = vst [vmem:[#allocation92_spill] sm:$0xff] %v6420_v45  ;;  %v6424_v56 = vld [vmem:[#allocation11 + $0x150] sm:$0xff]  ;;  %2170 = vmatpush.msrb.mxu1 %v6422_v1 }
 0x27e   :  { %4559 = vpow2.f32 %v4411_v63  ;;  %8509 = vst [vmem:[#allocation94_spill] sm:$0xff] %v6422_v1  ;;  %v6428_v63 = vld [vmem:[#allocation11 + $0x158] sm:$0xff]  ;;  %2190 = vmatpush.msrb.mxu2 %v6424_v56  ;;  %2151 = vmatpush.msrb.mxu0 %v6432_v32  ;;  %v6446_v1 = vld [vmem:[#allocation11 + $0x100] sm:$0xff]  ;;  %v6467_v32 = vld [vmem:[#allocation11 + $0xf0] sm:$0xff] }
 0x27f   :  { %4561 = vpow2.f32 %v4412_v61  ;;  %8510 = vst [vmem:[#allocation23_spill] sm:$0xff] %v6424_v56  ;;  %2210 = vmatpush.msrb.mxu3 %v6428_v63 }
 0x280   :  { %v1597_v25 = vpop.f32.mrf.mxu3  ;;  %8511 = vst [vmem:[#allocation95_spill] sm:$0xff] %v6428_v63  ;;  %v8519_v63 = vld [vmem:[#allocation68_spill] sm:$0xff]  ;;  %2152 = vmatpush.msrb.mxu0 %v6446_v1 }
 0x281   :  { %v1603_v17 = vadd.f32 %v1597_v25, %v251_v48  ;;  %v6434_v48 = vld [vmem:[#allocation11 + $0x128] sm:$0xff]  ;;  %v6436_v25 = vld [vmem:[#allocation11 + $0x130] sm:$0xff]  ;;  %8515 = vst [vmem:[#allocation99_spill] sm:$0xff] %v6440_v19  ;;  %2211 = vmatpush.msrb.mxu3 %v6440_v19 }
 0x282   :  { %8513 = vst [vmem:[#allocation97_spill] sm:$0xff] %v6434_v48  ;;  %2171 = vmatpush.msrb.mxu1 %v6434_v48  ;;  %2191 = vmatpush.msrb.mxu2 %v6436_v25  ;;  %v6463_v48 = vld [vmem:[#allocation11 + $0xe0] sm:$0xff]  ;;  %v8528_v19 = vld [vmem:[#allocation26_spill] sm:$0xff] }
 0x283   :  { %v4413_v61 = vmul.f32 -1.442695, %v1603_v17  ;;  %8514 = vst [vmem:[#allocation98_spill] sm:$0xff] %v6436_v25  ;;  %2153 = vmatpush.msrb.mxu0 %v6463_v48 }
 0x284   :  { %v4560_v50 = vpop.eup %4559  ;;  %v1692_v17 = vpop.f32.mrf.mxu0  ;;  %8516 = vst [vmem:[#allocation100_spill] sm:$0xff] %v6446_v1  ;;  %2172 = vmatpush.msrb.mxu1 %v6448_v29  ;;  %2192 = vmatpush.msrb.mxu2 %v6450_v59  ;;  %v6476_v29 = vld [vmem:[#allocation11 + $0xc0] sm:$0xff]  ;;  %v8527_v1 = vld [vmem:[#allocation114_spill] sm:$0xff] }
 0x285   :  { %v4562_v51 = vpop.eup %4561  ;;  %v6442_v24 = vadd.f32 1.0, %v4560_v50  ;;  %4563 = vpow2.f32 %v4413_v61  ;;  %v1712_v45 = vpop.f32.mrf.mxu1  ;;  %v1755_v36 = vadd.f32 %v1692_v17, %v8519_v63  ;;  %v6458_v61 = vld [vmem:[#allocation11 + $0x118] sm:$0xff]  ;;  %8522 = vst [vmem:[#allocation104_spill] sm:$0xff] %v6463_v48  ;;  %v222_v25 = vadd.f32 %v8528_v19, %v8527_v1  ;;  %2154 = vmatpush.msrb.mxu0 %v6476_v29  ;;  %v6492_v19 = vld [vmem:[#allocation11 + $0xa8] sm:$0xff] }
 0x286   :  { %v6452_v56 = vadd.f32 1.0, %v4562_v51  ;;  %v1756_v50 = vadd.f32 %v1712_v45, %v8520_v53  ;;  %8521 = vst [vmem:[#allocation103_spill] sm:$0xff] %v6458_v61  ;;  %v6465_v51 = vld [vmem:[#allocation11 + $0xe8] sm:$0xff]  ;;  %2212 = vmatpush.msrb.mxu3 %v6458_v61  ;;  %v6472_v63 = vld [vmem:[#allocation11 + $0xf8] sm:$0xff]  ;;  %v1577_v17 = vpop.f32.mrf.mxu2  ;;  %2193 = vmatpush.msrb.mxu2 %v6467_v32 }
 0x287   :  { %4565 = vrcp.f32 %v6442_v24  ;;  %8523 = vst [vmem:[#allocation105_spill] sm:$0xff] %v6465_v51  ;;  %v4414_v53 = vmul.f32 -1.442695, %v1755_v36  ;;  %2173 = vmatpush.msrb.mxu1 %v6465_v51  ;;  %v6482_v36 = vld [vmem:[#allocation11 + $0xc8] sm:$0xff]  ;;  %v6486_v61 = vld [vmem:[#allocation11 + $0xd8] sm:$0xff]  ;;  %v6490_v51 = vld [vmem:[#allocation11 + $0xa0] sm:$0xff]  ;;  %v1602_v1 = vadd.f32 %v1577_v17, %v222_v25  ;;  %vm1768_vm0 = vweird.f32 %v6442_v24 }
 0x288   :  { %8524 = vst [vmem:[#allocation106_spill] sm:$0xff] %v6467_v32  ;;  %4567 = vrcp.f32 %v6452_v56  ;;  %v4415_v45 = vmul.f32 -1.442695, %v1756_v50  ;;  %2213 = vmatpush.msrb.mxu3 %v6472_v63  ;;  %v6484_v50 = vld [vmem:[#allocation11 + $0xd0] sm:$0xff]  ;;  %v6500_v48 = vld [vmem:[#allocation11 + $0xb8] sm:$0xff]  ;;  %2155 = vmatpush.msrb.mxu0 %v6490_v51  ;;  %v6509_v25 = vld [vmem:[#allocation11 + $0x88] sm:$0xff]  ;;  %vm1787_vm2 = vweird.f32 %v6452_v56 }
 0x289   :  { %8525 = vst [vmem:[#allocation72_spill] sm:$0xff] %v6472_v63  ;;  %4569 = vpow2.f32 %v4414_v53  ;;  %2174 = vmatpush.msrb.mxu1 %v6482_v36  ;;  %v6494_v53 = vld [vmem:[#allocation11 + $0xb0] sm:$0xff]  ;;  %2194 = vmatpush.msrb.mxu2 %v6484_v50  ;;  %v1793_v46 = vand.u32 2147483648, %v6452_v56 }
 0x28a   :  { %8526 = vst [vmem:[#allocation73_spill] sm:$0xff] %v6476_v29  ;;  %4571 = vpow2.f32 %v4415_v45  ;;  %2214 = vmatpush.msrb.mxu3 %v6486_v61  ;;  %v8536_v29 = vld [vmem:[#allocation71_spill] sm:$0xff]  ;;  %2156 = vmatpush.msrb.mxu0 %v6507_v18 }
 0x28b   :  { %8529 = vst [vmem:[#allocation107_spill] sm:$0xff] %v6482_v36  ;;  %v4564_v59 = vpop.eup %4563  ;;  %2175 = vmatpush.msrb.mxu1 %v6492_v19  ;;  %2195 = vmatpush.msrb.mxu2 %v6494_v53 }
 0x28c   :  { %8530 = vst [vmem:[#allocation108_spill] sm:$0xff] %v6484_v50  ;;  %v6496_v63 = vadd.f32 1.0, %v4564_v59  ;;  %v1752_v32 = vpop.f32.mrf.mxu3  ;;  %v6511_v59 = vld [vmem:[#allocation11 + $0x90] sm:$0xff]  ;;  %2215 = vmatpush.msrb.mxu3 %v6500_v48  ;;  %v6529_v50 = vld [vmem:[#allocation11 + $0x68] sm:$0xff] }
 0x28d   :  { %8531 = vst [vmem:[#allocation109_spill] sm:$0xff] %v6486_v61  ;;  %v6502_v45 = vpop.eup %4565  ;;  %v1758_v36 = vadd.f32 %v1752_v32, %v8536_v29  ;;  %v6520_v29 = vld [vmem:[#allocation11 + $0x98] sm:$0xff]  ;;  %2176 = vmatpush.msrb.mxu1 %v6509_v25  ;;  %2196 = vmatpush.msrb.mxu2 %v6511_v59 }
 0x28e   :  { %8532 = vst [vmem:[#allocation110_spill] sm:$0xff] %v6490_v51  ;;  %v6513_v17 = vpop.eup %4567  ;;  %v1764_v61 = vmul.f32 %v6502_v45, %v6442_v24  ;;  %4573 = vrcp.f32 %v6496_v63  ;;  %v6527_v51 = vld [vmem:[#allocation11 + $0x60] sm:$0xff]  ;;  %2216 = vmatpush.msrb.mxu3 %v6520_v29  ;;  %vm1769_vm9 = vweird.f32 %v6502_v45  ;;  %vm1807_vm6 = vweird.f32 %v6496_v63 }
 0x28f   :  { %8533 = vst [vmem:[#allocation111_spill] sm:$0xff] %v6492_v19  ;;  %v1783_v32 = vmul.f32 %v6513_v17, %v6452_v56  ;;  %v1772_v19 = vand.u32 2147483647, %v6442_v24  ;;  %v4570_v20 = vpop.eup %4569  ;;  %4575 = vtanh.f32 %v1602_v1  ;;  %2157 = vmatpush.msrb.mxu0 %v6527_v51  ;;  %2177 = vmatpush.msrb.mxu1 %v6529_v50  ;;  %v6543_v1 = vld [vmem:[#allocation11 + $0x40] sm:$0xff]  ;;  %vm1788_vm15 = vweird.f32 %v6513_v17  ;;  %vm6584_vm1 = vmor %vm1768_vm0, %vm1769_vm9 }
 0x290   :  { %8534 = vst [vmem:[#allocation112_spill] sm:$0xff] %v6494_v53  ;;  %v1765_v23 = vsub.f32 1.0, %v1764_v61  ;;  %v4416_v53 = vmul.f32 -1.442695, %v1758_v36  ;;  %v4572_v54 = vpop.eup %4571  ;;  %v6538_v8 = vadd.f32 1.0, %v4570_v20  ;;  %v6545_v61 = vld [vmem:[#allocation11 + $0x48] sm:$0xff]  ;;  %2217 = vmatpush.msrb.mxu3 %v6535_v2  ;;  %vm1789_vm4 = vmor %vm1787_vm2, %vm1788_vm15 }
 0x291   :  { %8535 = vst [vmem:[#allocation113_spill] sm:$0xff] %v6500_v48  ;;  %v6533_v48 = vld [vmem:[#allocation11 + $0x70] sm:$0xff]  ;;  %v1784_v18 = vsub.f32 1.0, %v1783_v32  ;;  %v6555_v32 = vld [vmem:[#allocation11 + $0x58] sm:$0xff]  ;;  %2158 = vmatpush.msrb.mxu0 %v6543_v1  ;;  %2178 = vmatpush.msrb.mxu1 %v6545_v61  ;;  %vm1773_vm3 = vcmp.eq.f32.partialorder %v1772_v19, 8.507059e+37 }
 0x292   :  { %8538 = vst [vmem:[#allocation22_spill] sm:$0xff] %v6509_v25  ;;  %v1774_v25 = vand.u32 2147483648, %v6442_v24  ;;  %v1766_v36 = vmul.f32 %v6502_v45, %v1765_v23  ;;  %4577 = vpow2.f32 %v4416_v53  ;;  %2197 = vmatpush.msrb.mxu2 %v6533_v48  ;;  %v6553_v20 = vld [vmem:[#allocation11 + $0x50] sm:$0xff]  ;;  %v1791_v23 = vand.u32 2147483647, %v6452_v56  ;;  %v6565_v53 = vld [vmem:[#allocation11 + $0x28] sm:$0xff]  ;;  %2218 = vmatpush.msrb.mxu3 %v6555_v32 }
 0x293   :  { %8539 = vst [vmem:[#allocation116_spill] sm:$0xff] %v6511_v59  ;;  %4579 = vrcp.f32 %v6538_v8  ;;  %v6567_v2 = vld [vmem:[#allocation11 + $0x30] sm:$0xff]  ;;  %2179 = vmatpush.msrb.mxu1 %v6565_v53  ;;  %vm1831_vm14 = vweird.f32 %v6538_v8 }
 0x294   :  { %8540 = vst [vmem:[#allocation117_spill] sm:$0xff] %v6520_v29  ;;  %v6549_v29 = vadd.f32 1.0, %v4572_v54  ;;  %v6563_v54 = vld [vmem:[#allocation11 + $0x20] sm:$0xff]  ;;  %2198 = vmatpush.msrb.mxu2 %v6553_v20  ;;  %vm1792_vm5 = vcmp.eq.f32.partialorder %v1791_v23, 8.507059e+37 }
 0x295   :  { %8541 = vst [vmem:[#allocation118_spill] sm:$0xff] %v6527_v51  ;;  %v6580_v51 = vld [vmem:[#allocation11 + $0x8] sm:$0xff]  ;;  %2159 = vmatpush.msrb.mxu0 %v6563_v54 }
 0x296   :  { %8542 = vst [vmem:[#allocation119_spill] sm:$0xff] %v6529_v50  ;;  %v1785_v50 = vmul.f32 %v6513_v17, %v1784_v18  ;;  %v1767_v18 = vadd.f32 %v6502_v45, %v1766_v36  ;;  %4581 = vrcp.f32 %v6549_v29  ;;  %v1775_v36 = vor.u32 1.1754944e-38, %v1774_v25  ;;  %2199 = vmatpush.msrb.mxu2 %v6567_v2  ;;  %2180 = vmatpush.msrb.mxu1 %v6580_v51 }
 0x297   :  { %8543 = vst [vmem:[#allocation120_spill] sm:$0xff] %v6533_v48  ;;  %v6569_v48 = vpop.eup %4573  ;;  %vm1850_vm15 = vweird.f32 %v6549_v29 }
 0x298   :  { %8545 = vst [vmem:[#allocation75_spill] sm:$0xff] %v6543_v1  ;;  %v6576_v1 = vld [vmem:[#allocation11 + $0x38] sm:$0xff]  ;;  %v1803_v24 = vmul.f32 %v6569_v48, %v6496_v63  ;;  %v4576_v14 = vpop.eup %4575  ;;  %v1771_v25 = vsel %vm6584_vm1, %v6502_v45, %v1767_v18  ;;  %v8557_v18 = vld [vmem:[#allocation70_spill] sm:$0xff]  ;;  %2200 = vmatpush.msrb.mxu2 %v6594_v13  ;;  %vm1808_vm8 = vweird.f32 %v6569_v48 }
 0x299   :  { %8546 = vst [vmem:[#allocation122_spill] sm:$0xff] %v6545_v61  ;;  %v6578_v61 = vld [vmem:[#allocation11] sm:$0xff]  ;;  %2219 = vmatpush.msrb.mxu3 %v6576_v1  ;;  %v1776_v56 = vsel %vm1773_vm3, %v1775_v36, %v1771_v25  ;;  %v4578_v59 = vpop.eup %4577  ;;  %vm6632_vm11 = vmor %vm1807_vm6, %vm1808_vm8 }
 0x29a   :  { %8547 = vst [vmem:[#allocation123_spill] sm:$0xff] %v6553_v20  ;;  %v1786_v20 = vadd.f32 %v6513_v17, %v1785_v50  ;;  %v1794_v50 = vor.u32 1.1754944e-38, %v1793_v46  ;;  %2160 = vmatpush.msrb.mxu0 %v6578_v61  ;;  %v1818_v45 = vmul.f32 %v4576_v14, %v1776_v56  ;;  %v4580_v46 = vpop.eup %4579  ;;  %v1811_v14 = vand.u32 2147483647, %v6496_v63 }
 0x29b   :  { %8548 = vst [vmem:[#allocation124_spill] sm:$0xff] %v6555_v32  ;;  %v1732_v32 = vpop.f32.mrf.mxu2  ;;  %2220 = vmatpush.msrb.mxu3 %v6596_v38  ;;  %vm1832_vm10 = vweird.f32 %v4580_v46 }
 0x29c   :  { %8549 = vst [vmem:[#allocation125_spill] sm:$0xff] %v6563_v54  ;;  %v1790_v54 = vsel %vm1789_vm4, %v6513_v17, %v1786_v20  ;;  %v1757_v34 = vadd.f32 %v1732_v32, %v8557_v18  ;;  %v6613_v20 = vadd.f32 1.0, %v4578_v59  ;;  %v4582_v23 = vpop.eup %4581  ;;  %vm6640_vm13 = vcmp.eq.f32.partialorder %v1811_v14, 8.507059e+37  ;;  %vm1833_vm9 = vmor %vm1831_vm14, %vm1832_vm10 }
 0x29d   :  { %8550 = vst [vmem:[#allocation126_spill] sm:$0xff] %v6565_v53  ;;  %v1804_v53 = vsub.f32 1.0, %v1803_v24  ;;  %v1795_v19 = vsel %vm1792_vm5, %v1794_v50, %v1790_v54  ;;  %v1827_v24 = vmul.f32 %v4580_v46, %v6538_v8  ;;  %v1846_v32 = vmul.f32 %v4582_v23, %v6549_v29 }
 0x29e   :  { %8551 = vst [vmem:[#allocation127_spill] sm:$0xff] %v6576_v1  ;;  %v1894_v1 = vpop.permute.xlu2 %1893  ;;  %v1817_v17 = vmul.f32 %v1795_v19, %v6178_v55  ;;  %v1813_v54 = vand.u32 2147483648, %v6496_v63  ;;  %4583 = vrcp.f32 %v6613_v20  ;;  %v1837_v19 = vand.u32 2147483648, %v6538_v8 }
 0x29f   :  { %8552 = vst [vmem:[#allocation128_spill] sm:$0xff] %v6580_v51  ;;  %v1805_v36 = vmul.f32 %v6569_v48, %v1804_v53  ;;  %vm1895_vm7 = vcmp.eq.s32.totalorder %v1894_v1, 1  ;;  %v1828_v53 = vsub.f32 1.0, %v1827_v24  ;;  %4585 = vtanh.f32 %v1757_v34 }
 0x2a0   :  { %v1819_v25 = vadd.f32 %v1818_v45, %v1817_v17  ;;  %v1847_v56 = vsub.f32 1.0, %v1846_v32  ;;  %v1835_v45 = vand.u32 2147483647, %v6538_v8  ;;  %v1856_v17 = vand.u32 2147483648, %v6549_v29 }
 0x2a1   :  { %v1806_v50 = vadd.f32 %v6569_v48, %v1805_v36  ;;  %v1829_v18 = vmul.f32 %v4580_v46, %v1828_v53  ;;  %vm1851_vm12 = vweird.f32 %v4582_v23  ;;  %v1854_v34 = vand.u32 2147483647, %v6549_v29 }
 0x2a2   :  { %4587 = vtanh.f32 %v1819_v25  ;;  %v6625_v59 = vsel %vm1895_vm7, %v1819_v25, %v6178_v55  ;;  %v1848_v24 = vmul.f32 %v4582_v23, %v1847_v56  ;;  %v1814_v63 = vor.u32 1.1754944e-38, %v1813_v54  ;;  %vm1852_vm1 = vmor %vm1850_vm15, %vm1851_vm12 }
 0x2a3   :  { %8558 = vst [vmem:[#allocation131_spill] sm:$0xff] %v6625_v59  ;;  %v1810_v55 = vsel %vm6632_vm11, %v6569_v48, %v1806_v50  ;;  %v1830_v25 = vadd.f32 %v4580_v46, %v1829_v18  ;;  %v1838_v56 = vor.u32 1.1754944e-38, %v1837_v19  ;;  %vm1836_vm0 = vcmp.eq.f32.partialorder %v1835_v45, 8.507059e+37 }
 0x2a4   :  { %v6645_v53 = vpop.eup %4583  ;;  %v1849_v59 = vadd.f32 %v4582_v23, %v1848_v24  ;;  %v1857_v14 = vor.u32 1.1754944e-38, %v1856_v17  ;;  %v1815_v8 = vsel %vm6640_vm13, %v1814_v63, %v1810_v55  ;;  %vm1855_vm2 = vcmp.eq.f32.partialorder %v1854_v34, 8.507059e+37  ;;  %v6677_v34 = vld [vmem:[#allocation8 + $0x1c0] sm:$0xff]  ;;  %v6679_v55 = vld [vmem:[#allocation8 + $0x1c8] sm:$0xff] }
 0x2a5   :  { %v4586_v38 = vpop.eup %4585  ;;  %v1834_v13 = vsel %vm1833_vm9, %v4580_v46, %v1830_v25  ;;  %v1866_v48 = vmul.f32 %v6645_v53, %v6613_v20  ;;  %vm1871_vm4 = vweird.f32 %v6645_v53  ;;  %v1876_v25 = vand.u32 2147483648, %v6613_v20 }
 0x2a6   :  { %v1839_v18 = vsel %vm1836_vm0, %v1838_v56, %v1834_v13  ;;  %v1853_v54 = vsel %vm1852_vm1, %v4582_v23, %v1849_v59  ;;  %v6653_v51 = vpop.permute.xlu2 %1902  ;;  %v6663_v13 = vld [vmem:[#allocation8 + $0x1e0] sm:$0xff]  ;;  %v6665_v23 = vld [vmem:[#allocation8 + $0x1e8] sm:$0xff]  ;;  %v6669_v59 = vld [vmem:[#allocation8 + $0x1f0] sm:$0xff]  ;;  %vm1870_vm5 = vweird.f32 %v6613_v20 }
 0x2a7   :  { %v1881_v24 = vmul.f32 %v4586_v38, %v1839_v18  ;;  %v1867_v36 = vsub.f32 1.0, %v1866_v48  ;;  %v1858_v29 = vsel %vm1855_vm2, %v1857_v14, %v1853_v54  ;;  %vm1904_vm3 = vcmp.eq.s32.totalorder %v6653_v51, 1  ;;  %v6689_v56 = vld [vmem:[#allocation8 + $0x1d0] sm:$0xff]  ;;  %v6691_v48 = vld [vmem:[#allocation8 + $0x1d8] sm:$0xff]  ;;  %vm6703_vm6 = vmor %vm1870_vm5, %vm1871_vm4 }
 0x2a8   :  { %v4588_v50 = vpop.eup %4587  ;;  %v1880_v46 = vmul.f32 %v1858_v29, %v6217_v60  ;;  %v1874_v14 = vand.u32 2147483647, %v6613_v20  ;;  %v6709_v18 = vld [vmem:[#allocation8 + $0x1b0] sm:$0xff]  ;;  %v6711_v20 = vld [vmem:[#allocation8 + $0x1b8] sm:$0xff] }
 0x2a9   :  { %v1821_v19 = vmul.f32 %v4588_v50, %v1815_v8  ;;  %v1868_v32 = vmul.f32 %v6645_v53, %v1867_v36  ;;  %v6697_v50 = vld [vmem:[#allocation8 + $0x1a0] sm:$0xff]  ;;  %v1877_v36 = vor.u32 1.1754944e-38, %v1876_v25  ;;  %v6724_v29 = vld [vmem:[#allocation8 + $0x190] sm:$0xff]  ;;  %v6738_v25 = vld [vmem:[#allocation8 + $0x178] sm:$0xff] }
 0x2aa   :  { %v1882_v38 = vadd.f32 %v1881_v24, %v1880_v46  ;;  %v6720_v24 = vld [vmem:[#allocation8 + $0x188] sm:$0xff]  ;;  %v6726_v46 = vld [vmem:[#allocation8 + $0x198] sm:$0xff] }
 0x2ab   :  { %v6658_v45 = vsel %vm1895_vm7, %v1821_v19, %v6207_v16  ;;  %v1909_v17 = vsel %vm1895_vm7, %v1821_v19, 0.0  ;;  %v6671_v16 = vld [vmem:[#allocation8 + $0x1f8] sm:$0xff]  ;;  %v1869_v1 = vadd.f32 %v6645_v53, %v1868_v32  ;;  %v6718_v19 = vld [vmem:[#allocation8 + $0x180] sm:$0xff]  ;;  %vm1875_vm7 = vcmp.eq.f32.partialorder %v1874_v14, 8.507059e+37 }
 0x2ac   :  { %1911 = vst [vmem:[#allocation13 + $0x10] sm:$0xff] %v1909_v17  ;;  %2006 = vmatmul.f32.vlgmr.msra.gmra.mxu0 %v6658_v45  ;;  %2026 = vmatmul.f32.vlgmr.msra.gmra.mxu1 %v6658_v45  ;;  %4589 = vtanh.f32 %v1882_v38  ;;  %v6685_v63 = vsel %vm1904_vm3, %v1882_v38, %v6217_v60  ;;  %v6699_v60 = vld [vmem:[#allocation8 + $0x1a8] sm:$0xff]  ;;  %v6765_v51 = vld [vmem:[#allocation8 + $0x158] sm:$0xff] }
 0x2ad   :  { %2046 = vmatmul.f32.vlgmr.msra.gmra.mxu2 %v6658_v45  ;;  %2066 = vmatmul.f32.vlgmr.msra.gmra.mxu3 %v6658_v45  ;;  %v1873_v54 = vsel %vm6703_vm6, %v6645_v53, %v1869_v1  ;;  %v6730_v53 = vld [vmem:[#allocation8 + $0x160] sm:$0xff]  ;;  %v6732_v17 = vld [vmem:[#allocation8 + $0x168] sm:$0xff]  ;;  %v6736_v1 = vld [vmem:[#allocation8 + $0x170] sm:$0xff]  ;;  %8569 = vst [vmem:[#allocation136_spill] sm:$0xff] %v6765_v51 }
 0x2ae   :  { %2459 = vmatpush.msra.mxu0 %v6663_v13  ;;  %2479 = vmatpush.msra.mxu1 %v6665_v23  ;;  %v1878_v38 = vsel %vm1875_vm7, %v1877_v36, %v1873_v54  ;;  %v6757_v36 = vld [vmem:[#allocation8 + $0x140] sm:$0xff] }
 0x2af   :  { %2499 = vmatpush.msra.mxu2 %v6669_v59  ;;  %2519 = vmatpush.msra.mxu3 %v6671_v16  ;;  %8566 = vst [vmem:[#allocation133_spill] sm:$0xff] %v6757_v36 }
 0x2b0   :  { %2460 = vmatpush.msra.mxu0 %v6677_v34  ;;  %2480 = vmatpush.msra.mxu1 %v6679_v55 }
 0x2b1   :  { %2500 = vmatpush.msra.mxu2 %v6689_v56  ;;  %2520 = vmatpush.msra.mxu3 %v6691_v48 }
 0x2b2   :  { %2461 = vmatpush.msra.mxu0 %v6697_v50  ;;  %2481 = vmatpush.msra.mxu1 %v6699_v60  ;;  %v4590_v32 = vpop.eup %4589 }
 0x2b3   :  { %2501 = vmatpush.msra.mxu2 %v6709_v18  ;;  %2521 = vmatpush.msra.mxu3 %v6711_v20  ;;  %v1884_v8 = vmul.f32 %v4590_v32, %v1878_v38  ;;  %v6761_v32 = vld [vmem:[#allocation8 + $0x150] sm:$0xff]  ;;  %v6769_v38 = vld [vmem:[#allocation8 + $0x120] sm:$0xff] }
 0x2b4   :  { %2462 = vmatpush.msra.mxu0 %v6718_v19  ;;  %2482 = vmatpush.msra.mxu1 %v6720_v24  ;;  %8568 = vst [vmem:[#allocation135_spill] sm:$0xff] %v6761_v32 }
 0x2b5   :  { %2502 = vmatpush.msra.mxu2 %v6724_v29  ;;  %2522 = vmatpush.msra.mxu3 %v6726_v46  ;;  %v6747_v14 = vsel %vm1904_vm3, %v1884_v8, %v6244_v7  ;;  %v1912_v54 = vsel %vm1904_vm3, %v1884_v8, 0.0  ;;  %v6759_v7 = vld [vmem:[#allocation8 + $0x148] sm:$0xff]  ;;  %8570 = vst [vmem:[#allocation137_spill] sm:$0xff] %v6769_v38 }
 0x2b6   :  { %2463 = vmatpush.msra.mxu0 %v6730_v53  ;;  %2483 = vmatpush.msra.mxu1 %v6732_v17  ;;  %8565 = vst [vmem:[#allocation132_spill] sm:$0xff] %v6747_v14  ;;  %v6771_v8 = vld [vmem:[#allocation8 + $0x128] sm:$0xff] }
 0x2b7   :  { %2503 = vmatpush.msra.mxu2 %v6736_v1  ;;  %2523 = vmatpush.msra.mxu3 %v6738_v25  ;;  %1914 = vst [vmem:[#allocation14 + $0x28] sm:$0xff] %v1912_v54  ;;  %v6773_v54 = vld [vmem:[#allocation8 + $0x130] sm:$0xff] }
 0x2b8   :  { %2161 = vmatmul.f32.vlgmr.msrb.gmra.mxu0 %v6747_v14  ;;  %2181 = vmatmul.f32.vlgmr.msrb.gmra.mxu1 %v6747_v14  ;;  %8567 = vst [vmem:[#allocation134_spill] sm:$0xff] %v6759_v7 }
 0x2b9   :  { %2201 = vmatmul.f32.vlgmr.msrb.gmra.mxu2 %v6747_v14  ;;  %2221 = vmatmul.f32.vlgmr.msrb.gmra.mxu3 %v6747_v14  ;;  %8571 = vst [vmem:[#allocation138_spill] sm:$0xff] %v6771_v8  ;;  %v6777_v14 = vld [vmem:[#allocation8 + $0x138] sm:$0xff] }
 0x2ba   :  { %2464 = vmatpush.msra.mxu0 %v6757_v36  ;;  %2484 = vmatpush.msra.mxu1 %v6759_v7  ;;  %8572 = vst [vmem:[#allocation139_spill] sm:$0xff] %v6773_v54  ;;  %v6781_v7 = vld [vmem:[#allocation8 + $0x100] sm:$0xff]  ;;  %v6789_v36 = vld [vmem:[#allocation8 + $0x118] sm:$0xff] }
 0x2bb   :  { %2504 = vmatpush.msra.mxu2 %v6761_v32  ;;  %2524 = vmatpush.msra.mxu3 %v6765_v51  ;;  %8573 = vst [vmem:[#allocation74_spill] sm:$0xff] %v6777_v14  ;;  %v6783_v32 = vld [vmem:[#allocation8 + $0x108] sm:$0xff]  ;;  %v6785_v51 = vld [vmem:[#allocation8 + $0x110] sm:$0xff] }
 0x2bc   :  { %2465 = vmatpush.msra.mxu0 %v6769_v38  ;;  %2485 = vmatpush.msra.mxu1 %v6771_v8  ;;  %v6793_v8 = vld [vmem:[#allocation8 + $0xe0] sm:$0xff]  ;;  %v6801_v38 = vld [vmem:[#allocation8 + $0xf8] sm:$0xff] }
 0x2bd   :  { %2505 = vmatpush.msra.mxu2 %v6773_v54  ;;  %2525 = vmatpush.msra.mxu3 %v6777_v14  ;;  %v6795_v54 = vld [vmem:[#allocation8 + $0xe8] sm:$0xff]  ;;  %v6797_v14 = vld [vmem:[#allocation8 + $0xf0] sm:$0xff] }
 0x2be   :  { %2466 = vmatpush.msra.mxu0 %v6781_v7  ;;  %2486 = vmatpush.msra.mxu1 %v6783_v32 }
 0x2bf   :  { %2506 = vmatpush.msra.mxu2 %v6785_v51  ;;  %2526 = vmatpush.msra.mxu3 %v6789_v36 }
 0x2c0   :  { %2467 = vmatpush.msra.mxu0 %v6793_v8  ;;  %2487 = vmatpush.msra.mxu1 %v6795_v54 }
 0x2c1   :  { %2507 = vmatpush.msra.mxu2 %v6797_v14  ;;  %2527 = vmatpush.msra.mxu3 %v6801_v38 }
 0x2c2   :  { %2468 = vmatpush.msra.mxu0 %v6272_v11  ;;  %2488 = vmatpush.msra.mxu1 %v6274_v0  ;;  %v8574_v11 = vld [vmem:[#allocation28_spill] sm:$0xff] }
 0x2c3   :  { %2508 = vmatpush.msra.mxu2 %v6276_v39  ;;  %2528 = vmatpush.msra.mxu3 %v6280_v40  ;;  %v166_v0 = vadd.f32 %v8574_v11, %v8401_v15  ;;  %v8575_v39 = vld [vmem:[#allocation29_spill] sm:$0xff] }
 0x2c4   :  { %2469 = vmatpush.msra.mxu0 %v6284_v10  ;;  %2489 = vmatpush.msra.mxu1 %v6286_v22  ;;  %v195_v40 = vadd.f32 %v8575_v39, %v8403_v6  ;;  %v8595_v39 = vld [vmem:[#allocation91_spill] sm:$0xff] }
 0x2c5   :  { %2509 = vmatpush.msra.mxu2 %v6288_v52  ;;  %2529 = vmatpush.msra.mxu3 %v6292_v4  ;;  %v8576_v52 = vld [vmem:[#allocation78_spill] sm:$0xff]  ;;  %v8577_v4 = vld [vmem:[#allocation79_spill] sm:$0xff] }
 0x2c6   :  { %2470 = vmatpush.msra.mxu0 %v6296_v57  ;;  %2490 = vmatpush.msra.mxu1 %v6298_v3 }
 0x2c7   :  { %2510 = vmatpush.msra.mxu2 %v6300_v62  ;;  %2530 = vmatpush.msra.mxu3 %v6304_v12  ;;  %v8578_v62 = vld [vmem:[#allocation76_spill] sm:$0xff] }
 0x2c8   :  { %2471 = vmatpush.msra.mxu0 %v6308_v35  ;;  %2491 = vmatpush.msra.mxu1 %v6310_v58  ;;  %v8579_v12 = vld [vmem:[#allocation20_spill] sm:$0xff]  ;;  %v8580_v35 = vld [vmem:[#allocation77_spill] sm:$0xff] }
 0x2c9   :  { %2511 = vmatpush.msra.mxu2 %v6312_v27  ;;  %2531 = vmatpush.msra.mxu3 %v6316_v31  ;;  %v8581_v58 = vld [vmem:[#allocation21_spill] sm:$0xff] }
 0x2ca   :  { %2472 = vmatpush.msra.mxu0 %v6320_v33  ;;  %2492 = vmatpush.msra.mxu1 %v6322_v43  ;;  %v8582_v33 = vld [vmem:[#allocation80_spill] sm:$0xff]  ;;  %v8583_v43 = vld [vmem:[#allocation81_spill] sm:$0xff] }
 0x2cb   :  { %2512 = vmatpush.msra.mxu2 %v6324_v37  ;;  %2532 = vmatpush.msra.mxu3 %v6328_v42  ;;  %v8584_v37 = vld [vmem:[#allocation82_spill] sm:$0xff]  ;;  %v8585_v42 = vld [vmem:[#allocation83_spill] sm:$0xff] }
 0x2cc   :  { %2473 = vmatpush.msra.mxu0 %v6332_v41  ;;  %2493 = vmatpush.msra.mxu1 %v6334_v9  ;;  %v8586_v41 = vld [vmem:[#allocation84_spill] sm:$0xff]  ;;  %v8587_v9 = vld [vmem:[#allocation85_spill] sm:$0xff] }
 0x2cd   :  { %2513 = vmatpush.msra.mxu2 %v6336_v30  ;;  %2533 = vmatpush.msra.mxu3 %v6340_v21  ;;  %v8588_v30 = vld [vmem:[#allocation93_spill] sm:$0xff]  ;;  %v8589_v21 = vld [vmem:[#allocation31_spill] sm:$0xff] }
 0x2ce   :  { %2474 = vmatpush.msra.mxu0 %v6344_v5  ;;  %2494 = vmatpush.msra.mxu1 %v6346_v49  ;;  %v253_v5 = vadd.f32 %v8589_v21, %v8588_v30  ;;  %v8590_v49 = vld [vmem:[#allocation86_spill] sm:$0xff]  ;;  %v8606_v21 = vld [vmem:[#allocation100_spill] sm:$0xff] }
 0x2cf   :  { %2514 = vmatpush.msra.mxu2 %v6348_v47  ;;  %2534 = vmatpush.msra.mxu3 %v6352_v44  ;;  %v8591_v47 = vld [vmem:[#allocation87_spill] sm:$0xff] }
 0x2d0   :  { %2613 = vmatpush.msrb.mxu0 %v6354_v26  ;;  %2633 = vmatpush.msrb.mxu1 %v6356_v28  ;;  %v8592_v26 = vld [vmem:[#allocation88_spill] sm:$0xff]  ;;  %v8593_v28 = vld [vmem:[#allocation89_spill] sm:$0xff] }
 0x2d1   :  { %2653 = vmatpush.msrb.mxu2 %v8576_v52  ;;  %2673 = vmatpush.msrb.mxu3 %v8577_v4  ;;  %v8598_v52 = vld [vmem:[#allocation23_spill] sm:$0xff] }
 0x2d2   :  { %2614 = vmatpush.msrb.mxu0 %v8578_v62  ;;  %2634 = vmatpush.msrb.mxu1 %v8579_v12  ;;  %v8599_v4 = vld [vmem:[#allocation95_spill] sm:$0xff]  ;;  %v8601_v62 = vld [vmem:[#allocation97_spill] sm:$0xff] }
 0x2d3   :  { %2654 = vmatpush.msrb.mxu2 %v8580_v35  ;;  %2674 = vmatpush.msrb.mxu3 %v8581_v58 }
 0x2d4   :  { %2615 = vmatpush.msrb.mxu0 %v8582_v33  ;;  %2635 = vmatpush.msrb.mxu1 %v8583_v43  ;;  %v8603_v33 = vld [vmem:[#allocation99_spill] sm:$0xff] }
 0x2d5   :  { %2655 = vmatpush.msrb.mxu2 %v8584_v37  ;;  %2675 = vmatpush.msrb.mxu3 %v8585_v42  ;;  %v8604_v37 = vld [vmem:[#allocation64_spill] sm:$0xff] }
 0x2d6   :  { %2616 = vmatpush.msrb.mxu0 %v8586_v41  ;;  %2636 = vmatpush.msrb.mxu1 %v8587_v9  ;;  %v8605_v41 = vld [vmem:[#allocation65_spill] sm:$0xff] }
 0x2d7   :  { %2656 = vmatpush.msrb.mxu2 %v8590_v49  ;;  %2676 = vmatpush.msrb.mxu3 %v8591_v47  ;;  %v8608_v49 = vld [vmem:[#allocation102_spill] sm:$0xff]  ;;  %v8609_v47 = vld [vmem:[#allocation103_spill] sm:$0xff] }
 0x2d8   :  { %2617 = vmatpush.msrb.mxu0 %v8592_v26  ;;  %2637 = vmatpush.msrb.mxu1 %v8593_v28  ;;  %v8611_v26 = vld [vmem:[#allocation105_spill] sm:$0xff] }
 0x2d9   :  { %2677 = vmatpush.msrb.mxu3 %v8595_v39  ;;  %v8612_v39 = vld [vmem:[#allocation106_spill] sm:$0xff] }
 0x2db   :  { %2678 = vmatpush.msrb.mxu3 %v8599_v4  ;;  %v8616_v4 = vld [vmem:[#allocation73_spill] sm:$0xff] }
 0x2dd   :  { %2679 = vmatpush.msrb.mxu3 %v8603_v33  ;;  %v8620_v33 = vld [vmem:[#allocation110_spill] sm:$0xff] }
 0x2df   :  { %2680 = vmatpush.msrb.mxu3 %v8609_v47 }
 0x329   :  { %v2007_v10 = vpop.f32.mrf.mxu0  ;;  %v2027_v22 = vpop.f32.mrf.mxu1 }
 0x32a   :  { %v2070_v57 = vadd.f32 %v2007_v10, %v166_v0  ;;  %v2071_v3 = vadd.f32 %v2027_v22, %v195_v40  ;;  %v8594_v0 = vld [vmem:[#allocation90_spill] sm:$0xff]  ;;  %v8596_v40 = vld [vmem:[#allocation92_spill] sm:$0xff] }
 0x32b   :  { %2657 = vmatpush.msrb.mxu2 %v8594_v0  ;;  %2618 = vmatpush.msrb.mxu0 %v8596_v40  ;;  %v8597_v10 = vld [vmem:[#allocation94_spill] sm:$0xff]  ;;  %v8613_v40 = vld [vmem:[#allocation72_spill] sm:$0xff] }
 0x32c   :  { %v4419_v27 = vmul.f32 -1.442695, %v2070_v57  ;;  %v4420_v31 = vmul.f32 -1.442695, %v2071_v3  ;;  %2638 = vmatpush.msrb.mxu1 %v8597_v10  ;;  %v8600_v3 = vld [vmem:[#allocation96_spill] sm:$0xff]  ;;  %2681 = vmatpush.msrb.mxu3 %v8613_v40  ;;  %v8614_v10 = vld [vmem:[#allocation114_spill] sm:$0xff] }
 0x32d   :  { %2658 = vmatpush.msrb.mxu2 %v8598_v52  ;;  %2619 = vmatpush.msrb.mxu0 %v8600_v3 }
 0x32e   :  { %4591 = vpow2.f32 %v4419_v27  ;;  %2639 = vmatpush.msrb.mxu1 %v8601_v62  ;;  %v8618_v62 = vld [vmem:[#allocation108_spill] sm:$0xff] }
 0x32f   :  { %4593 = vpow2.f32 %v4420_v31  ;;  %v8602_v31 = vld [vmem:[#allocation98_spill] sm:$0xff]  ;;  %2620 = vmatpush.msrb.mxu0 %v8606_v21  ;;  %v8623_v21 = vld [vmem:[#allocation112_spill] sm:$0xff] }
 0x330   :  { %v2067_v44 = vpop.f32.mrf.mxu3  ;;  %2659 = vmatpush.msrb.mxu2 %v8602_v31  ;;  %v2047_v28 = vpop.f32.mrf.mxu2 }
 0x331   :  { %v2073_v11 = vadd.f32 %v2067_v44, %v253_v5  ;;  %v8607_v5 = vld [vmem:[#allocation101_spill] sm:$0xff]  ;;  %v8610_v44 = vld [vmem:[#allocation104_spill] sm:$0xff] }
 0x332   :  { %2640 = vmatpush.msrb.mxu1 %v8607_v5  ;;  %2660 = vmatpush.msrb.mxu2 %v8608_v49  ;;  %v8624_v5 = vld [vmem:[#allocation113_spill] sm:$0xff] }
 0x333   :  { %v4421_v22 = vmul.f32 -1.442695, %v2073_v11  ;;  %2621 = vmatpush.msrb.mxu0 %v8610_v44  ;;  %v8625_v44 = vld [vmem:[#allocation115_spill] sm:$0xff] }
 0x334   :  { %v4592_v57 = vpop.eup %4591  ;;  %2641 = vmatpush.msrb.mxu1 %v8611_v26  ;;  %2661 = vmatpush.msrb.mxu2 %v8612_v39  ;;  %v8626_v26 = vld [vmem:[#allocation22_spill] sm:$0xff] }
 0x335   :  { %v4594_v12 = vpop.eup %4593  ;;  %v6865_v35 = vadd.f32 1.0, %v4592_v57  ;;  %4595 = vpow2.f32 %v4421_v22  ;;  %v2162_v58 = vpop.f32.mrf.mxu0  ;;  %v8615_v22 = vld [vmem:[#allocation30_spill] sm:$0xff]  ;;  %2622 = vmatpush.msrb.mxu0 %v8616_v4  ;;  %v8617_v57 = vld [vmem:[#allocation107_spill] sm:$0xff] }
 0x336   :  { %v2182_v27 = vpop.f32.mrf.mxu1  ;;  %v6869_v43 = vadd.f32 1.0, %v4594_v12  ;;  %v2225_v42 = vadd.f32 %v2162_v58, %v8604_v37  ;;  %v224_v52 = vadd.f32 %v8615_v22, %v8614_v10  ;;  %2642 = vmatpush.msrb.mxu1 %v8617_v57  ;;  %2662 = vmatpush.msrb.mxu2 %v8618_v62  ;;  %v8619_v12 = vld [vmem:[#allocation109_spill] sm:$0xff]  ;;  %v8621_v37 = vld [vmem:[#allocation111_spill] sm:$0xff]  ;;  %v8629_v22 = vld [vmem:[#allocation118_spill] sm:$0xff] }
 0x337   :  { %v2226_v9 = vadd.f32 %v2182_v27, %v8605_v41  ;;  %4597 = vrcp.f32 %v6865_v35  ;;  %2682 = vmatpush.msrb.mxu3 %v8619_v12  ;;  %2623 = vmatpush.msrb.mxu0 %v8620_v33  ;;  %v8622_v41 = vld [vmem:[#allocation67_spill] sm:$0xff]  ;;  %v2242_v62 = vand.u32 2147483647, %v6865_v35  ;;  %v2244_v12 = vand.u32 2147483648, %v6865_v35  ;;  %v8632_v33 = vld [vmem:[#allocation121_spill] sm:$0xff] }
 0x338   :  { %4599 = vrcp.f32 %v6869_v43  ;;  %v4422_v11 = vmul.f32 -1.442695, %v2225_v42  ;;  %v2072_v58 = vadd.f32 %v2047_v28, %v224_v52  ;;  %2643 = vmatpush.msrb.mxu1 %v8621_v37  ;;  %2663 = vmatpush.msrb.mxu2 %v8623_v21  ;;  %v8630_v52 = vld [vmem:[#allocation119_spill] sm:$0xff]  ;;  %v8634_v21 = vld [vmem:[#allocation122_spill] sm:$0xff]  ;;  %vm2257_vm11 = vweird.f32 %v6869_v43 }
 0x339   :  { %v4423_v0 = vmul.f32 -1.442695, %v2226_v9  ;;  %2683 = vmatpush.msrb.mxu3 %v8624_v5  ;;  %2624 = vmatpush.msrb.mxu0 %v8625_v44  ;;  %vm2238_vm12 = vweird.f32 %v6865_v35  ;;  %vm2243_vm9 = vcmp.eq.f32.partialorder %v2242_v62, 8.507059e+37  ;;  %v8646_v62 = vld [vmem:[#allocation131_spill] sm:$0xff] }
 0x33a   :  { %4601 = vpow2.f32 %v4422_v11  ;;  %2644 = vmatpush.msrb.mxu1 %v8626_v26  ;;  %v8627_v11 = vld [vmem:[#allocation116_spill] sm:$0xff]  ;;  %v8635_v26 = vld [vmem:[#allocation123_spill] sm:$0xff] }
 0x33b   :  { %v4596_v3 = vpop.eup %4595  ;;  %4603 = vpow2.f32 %v4423_v0  ;;  %2664 = vmatpush.msrb.mxu2 %v8627_v11  ;;  %v8628_v0 = vld [vmem:[#allocation117_spill] sm:$0xff]  ;;  %2625 = vmatpush.msrb.mxu0 %v8629_v22 }
 0x33c   :  { %v6889_v27 = vadd.f32 1.0, %v4596_v3  ;;  %v2222_v31 = vpop.f32.mrf.mxu3  ;;  %2684 = vmatpush.msrb.mxu3 %v8628_v0  ;;  %2645 = vmatpush.msrb.mxu1 %v8630_v52  ;;  %v2263_v3 = vand.u32 2147483648, %v6869_v43  ;;  %v2245_v52 = vor.u32 1.1754944e-38, %v2244_v12 }
 0x33d   :  { %v4598_v42 = vpop.eup %4597  ;;  %v2228_v9 = vadd.f32 %v2222_v31, %v8622_v41  ;;  %v8631_v31 = vld [vmem:[#allocation120_spill] sm:$0xff] }
 0x33e   :  { %v6896_v49 = vpop.eup %4599  ;;  %v2234_v47 = vmul.f32 %v4598_v42, %v6865_v35  ;;  %4605 = vrcp.f32 %v6889_v27  ;;  %2665 = vmatpush.msrb.mxu2 %v8631_v31  ;;  %2685 = vmatpush.msrb.mxu3 %v8632_v33  ;;  %vm2239_vm8 = vweird.f32 %v4598_v42  ;;  %v2202_v35 = vpop.f32.mrf.mxu2  ;;  %v8641_v31 = vld [vmem:[#allocation127_spill] sm:$0xff]  ;;  %vm2277_vm1 = vweird.f32 %v6889_v27 }
 0x33f   :  { %v2253_v28 = vmul.f32 %v6896_v49, %v6869_v43  ;;  %4607 = vtanh.f32 %v2072_v58  ;;  %v4424_v40 = vmul.f32 -1.442695, %v2228_v9  ;;  %v8633_v9 = vld [vmem:[#allocation75_spill] sm:$0xff]  ;;  %2646 = vmatpush.msrb.mxu1 %v8634_v21  ;;  %vm2258_vm10 = vweird.f32 %v6896_v49  ;;  %vm6932_vm13 = vmor %vm2238_vm12, %vm2239_vm8 }
 0x340   :  { %v2235_v39 = vsub.f32 1.0, %v2234_v47  ;;  %v4602_v4 = vpop.eup %4601  ;;  %2626 = vmatpush.msrb.mxu0 %v8633_v9  ;;  %v2261_v47 = vand.u32 2147483647, %v6869_v43  ;;  %2666 = vmatpush.msrb.mxu2 %v8635_v26  ;;  %vm2259_vm14 = vmor %vm2257_vm11, %vm2258_vm10  ;;  %v8644_v26 = vld [vmem:[#allocation130_spill] sm:$0xff] }
 0x341   :  { %v2254_v57 = vsub.f32 1.0, %v2253_v28  ;;  %v4604_v37 = vpop.eup %4603  ;;  %v6913_v58 = vadd.f32 1.0, %v4602_v4  ;;  %4609 = vpow2.f32 %v4424_v40  ;;  %v8636_v28 = vld [vmem:[#allocation124_spill] sm:$0xff]  ;;  %v8638_v40 = vld [vmem:[#allocation126_spill] sm:$0xff] }
 0x342   :  { %v2236_v41 = vmul.f32 %v4598_v42, %v2235_v39  ;;  %v6920_v44 = vadd.f32 1.0, %v4604_v37  ;;  %2686 = vmatpush.msrb.mxu3 %v8636_v28  ;;  %v8637_v39 = vld [vmem:[#allocation125_spill] sm:$0xff]  ;;  %2647 = vmatpush.msrb.mxu1 %v8638_v40  ;;  %v2264_v37 = vor.u32 1.1754944e-38, %v2263_v3  ;;  %vm2262_vm15 = vcmp.eq.f32.partialorder %v2261_v47, 8.507059e+37 }
 0x343   :  { %v2255_v5 = vmul.f32 %v6896_v49, %v2254_v57  ;;  %4611 = vrcp.f32 %v6913_v58  ;;  %2627 = vmatpush.msrb.mxu0 %v8637_v39  ;;  %2667 = vmatpush.msrb.mxu2 %v6567_v2  ;;  %v8645_v39 = vld [vmem:[#allocation66_spill] sm:$0xff]  ;;  %vm2301_vm7 = vweird.f32 %v6913_v58 }
 0x344   :  { %v6924_v11 = vpop.eup %4605  ;;  %v2237_v0 = vadd.f32 %v4598_v42, %v2236_v41  ;;  %4613 = vrcp.f32 %v6920_v44  ;;  %2687 = vmatpush.msrb.mxu3 %v8641_v31  ;;  %v8642_v41 = vld [vmem:[#allocation128_spill] sm:$0xff]  ;;  %v2227_v40 = vadd.f32 %v2202_v35, %v8645_v39  ;;  %vm2320_vm6 = vweird.f32 %v6920_v44 }
 0x345   :  { %v2256_v4 = vadd.f32 %v6896_v49, %v2255_v5  ;;  %v2273_v57 = vmul.f32 %v6924_v11, %v6889_v27  ;;  %v4608_v33 = vpop.eup %4607  ;;  %2628 = vmatpush.msrb.mxu0 %v6578_v61  ;;  %2648 = vmatpush.msrb.mxu1 %v8642_v41  ;;  %v8643_v5 = vld [vmem:[#allocation129_spill] sm:$0xff]  ;;  %vm2278_vm2 = vweird.f32 %v6924_v11  ;;  %v2305_v41 = vand.u32 2147483647, %v6913_v58 }
 0x346   :  { %v2241_v12 = vsel %vm6932_vm13, %v4598_v42, %v2237_v0  ;;  %2668 = vmatpush.msrb.mxu2 %v8643_v5  ;;  %2688 = vmatpush.msrb.mxu3 %v8644_v26  ;;  %v2364_v42 = vpop.permute.xlu0 %2363  ;;  %v2324_v26 = vand.u32 2147483647, %v6920_v44  ;;  %vm6976_vm4 = vmor %vm2277_vm1, %vm2278_vm2 }
 0x347   :  { %v2246_v9 = vsel %vm2243_vm9, %v2245_v52, %v2241_v12  ;;  %v2260_v2 = vsel %vm2259_vm14, %v6896_v49, %v2256_v4  ;;  %v2274_v21 = vsub.f32 1.0, %v2273_v57  ;;  %v4610_v43 = vpop.eup %4609  ;;  %vm2365_vm0 = vcmp.eq.s32.totalorder %v2364_v42, 1 }
 0x348   :  { %v2265_v28 = vsel %vm2262_vm15, %v2264_v37, %v2260_v2  ;;  %v2288_v3 = vmul.f32 %v4608_v33, %v2246_v9  ;;  %v6956_v22 = vadd.f32 1.0, %v4610_v43  ;;  %v2283_v57 = vand.u32 2147483648, %v6889_v27 }
 0x349   :  { %v2287_v0 = vmul.f32 %v2265_v28, %v8646_v62  ;;  %v2275_v61 = vmul.f32 %v6924_v11, %v2274_v21  ;;  %v4612_v52 = vpop.eup %4611  ;;  %v2281_v37 = vand.u32 2147483647, %v6889_v27  ;;  %v2307_v9 = vand.u32 2147483648, %v6913_v58 }
 0x34a   :  { %v4614_v49 = vpop.eup %4613  ;;  %v2297_v4 = vmul.f32 %v4612_v52, %v6913_v58  ;;  %4615 = vrcp.f32 %v6956_v22  ;;  %v2326_v21 = vand.u32 2147483648, %v6920_v44  ;;  %vm2302_vm3 = vweird.f32 %v4612_v52 }
 0x34b   :  { %v2289_v47 = vadd.f32 %v2288_v3, %v2287_v0  ;;  %v2316_v35 = vmul.f32 %v4614_v49, %v6920_v44  ;;  %4617 = vtanh.f32 %v2227_v40  ;;  %v2276_v33 = vadd.f32 %v6924_v11, %v2275_v61  ;;  %vm2303_vm10 = vmor %vm2301_vm7, %vm2302_vm3 }
 0x34c   :  { %v2298_v31 = vsub.f32 1.0, %v2297_v4  ;;  %vm2321_vm5 = vweird.f32 %v4614_v49  ;;  %v2284_v39 = vor.u32 1.1754944e-38, %v2283_v57  ;;  %vm2282_vm8 = vcmp.eq.f32.partialorder %v2281_v37, 8.507059e+37 }
 0x34d   :  { %4619 = vtanh.f32 %v2289_v47  ;;  %v2317_v12 = vsub.f32 1.0, %v2316_v35  ;;  %v6970_v2 = vsel %vm2365_vm0, %v2289_v47, %v8646_v62  ;;  %v2280_v3 = vsel %vm6976_vm4, %v6924_v11, %v2276_v33  ;;  %vm2322_vm12 = vmor %vm2320_vm6, %vm2321_vm5 }
 0x34e   :  { %v2299_v5 = vmul.f32 %v4612_v52, %v2298_v31  ;;  %vm2306_vm11 = vcmp.eq.f32.partialorder %v2305_v41, 8.507059e+37  ;;  %v2308_v0 = vor.u32 1.1754944e-38, %v2307_v9  ;;  %v2327_v11 = vor.u32 1.1754944e-38, %v2326_v21 }
 0x34f   :  { %v2318_v28 = vmul.f32 %v4614_v49, %v2317_v12  ;;  %vm2325_vm13 = vcmp.eq.f32.partialorder %v2324_v26, 8.507059e+37  ;;  %v2285_v35 = vsel %vm2282_vm8, %v2284_v39, %v2280_v3  ;;  %vm2340_vm15 = vweird.f32 %v6956_v22  ;;  %v7100_v3 = vld [vmem:[#allocation8 + $0x78] sm:$0xff]  ;;  %v7104_v39 = vld [vmem:[#allocation8 + $0x40] sm:$0xff] }
 0x350   :  { %v6983_v40 = vpop.eup %4615  ;;  %v2300_v62 = vadd.f32 %v4612_v52, %v2299_v5  ;;  %v2344_v26 = vand.u32 2147483647, %v6956_v22 }
 0x351   :  { %v4618_v27 = vpop.eup %4617  ;;  %v2319_v61 = vadd.f32 %v4614_v49, %v2318_v28  ;;  %v2336_v47 = vmul.f32 %v6983_v40, %v6956_v22  ;;  %vm2341_vm9 = vweird.f32 %v6983_v40  ;;  %v7096_v28 = vld [vmem:[#allocation8 + $0x70] sm:$0xff] }
 0x352   :  { %v2304_v57 = vsel %vm2303_vm10, %v4612_v52, %v2300_v62  ;;  %v2373_v52 = vpop.permute.xlu1 %2372  ;;  %vm2345_vm1 = vcmp.eq.f32.partialorder %v2344_v26, 8.507059e+37  ;;  %v7108_v62 = vld [vmem:[#allocation8 + $0x50] sm:$0xff]  ;;  %v7154_v26 = vld [vmem:[#allocation11 + $0x1c0] sm:$0xff] }
 0x353   :  { %v4620_v4 = vpop.eup %4619  ;;  %v2309_v44 = vsel %vm2306_vm11, %v2308_v0, %v2304_v57  ;;  %v2323_v31 = vsel %vm2322_vm12, %v4614_v49, %v2319_v61  ;;  %v2337_v33 = vsub.f32 1.0, %v2336_v47  ;;  %vm2374_vm14 = vcmp.eq.s32.totalorder %v2373_v52, 1  ;;  %v7116_v0 = vld [vmem:[#allocation8 + $0x20] sm:$0xff]  ;;  %v7118_v61 = vld [vmem:[#allocation8 + $0x28] sm:$0xff]  ;;  %v7120_v47 = vld [vmem:[#allocation8 + $0x30] sm:$0xff]  ;;  %8661 = vst [vmem:[#allocation141_spill] sm:$0xff] %v7154_v26 }
 0x354   :  { %v2291_v58 = vmul.f32 %v4620_v4, %v2285_v35  ;;  %v2328_v37 = vsel %vm2325_vm13, %v2327_v11, %v2323_v31  ;;  %v2351_v12 = vmul.f32 %v4618_v27, %v2309_v44  ;;  %v7112_v27 = vld [vmem:[#allocation8 + $0x58] sm:$0xff]  ;;  %v8658_v11 = vld [vmem:[#allocation32_spill] sm:$0xff]  ;;  %v8659_v35 = vld [vmem:[#allocation33_spill] sm:$0xff] }
 0x355   :  { %v2350_v41 = vmul.f32 %v2328_v37, %v6685_v63  ;;  %v2338_v9 = vmul.f32 %v6983_v40, %v2337_v33  ;;  %v7124_v4 = vld [vmem:[#allocation8 + $0x38] sm:$0xff]  ;;  %v169_v57 = vadd.f32 %v8658_v11, %v8401_v15  ;;  %v198_v44 = vadd.f32 %v8659_v35, %v8403_v6  ;;  %v7132_v31 = vld [vmem:[#allocation8] sm:$0xff]  ;;  %v7134_v33 = vld [vmem:[#allocation8 + $0x8] sm:$0xff] }
 0x356   :  { %v6994_v5 = vsel %vm2365_vm0, %v2291_v58, %v6658_v45  ;;  %v2379_v43 = vsel %vm2365_vm0, %v2291_v58, 0.0  ;;  %v2346_v45 = vand.u32 2147483648, %v6956_v22  ;;  %vm2342_vm0 = vmor %vm2340_vm15, %vm2341_vm9  ;;  %v7094_v22 = vld [vmem:[#allocation8 + $0x68] sm:$0xff]  ;;  %v7136_v58 = vld [vmem:[#allocation8 + $0x10] sm:$0xff] }
 0x357   :  { %2381 = vst [vmem:[#allocation13 + $0x18] sm:$0xff] %v2379_v43  ;;  %2475 = vmatmul.f32.vlgmr.msra.gmra.mxu0 %v6994_v5  ;;  %2495 = vmatmul.f32.vlgmr.msra.gmra.mxu1 %v6994_v5  ;;  %v2352_v49 = vadd.f32 %v2351_v12, %v2350_v41  ;;  %v2339_v21 = vadd.f32 %v6983_v40, %v2338_v9  ;;  %v7140_v41 = vld [vmem:[#allocation8 + $0x18] sm:$0xff]  ;;  %v7142_v9 = vld [vmem:[#allocation11 + $0x1e0] sm:$0xff]  ;;  %v7144_v43 = vld [vmem:[#allocation11 + $0x1e8] sm:$0xff] }
 0x358   :  { %2515 = vmatmul.f32.vlgmr.msra.gmra.mxu2 %v6994_v5  ;;  %2535 = vmatmul.f32.vlgmr.msra.gmra.mxu3 %v6994_v5  ;;  %v7188_v11 = vld [vmem:[#allocation11 + $0x198] sm:$0xff]  ;;  %v7192_v35 = vld [vmem:[#allocation11 + $0x160] sm:$0xff] }
 0x359   :  { %2925 = vmatpush.msra.mxu0 %v6663_v13  ;;  %2945 = vmatpush.msra.mxu1 %v6665_v23  ;;  %4621 = vtanh.f32 %v2352_v49  ;;  %v7010_v42 = vsel %vm2374_vm14, %v2352_v49, %v6685_v63  ;;  %v2343_v13 = vsel %vm2342_vm0, %v6983_v40, %v2339_v21  ;;  %v2347_v23 = vor.u32 1.1754944e-38, %v2346_v45  ;;  %v7106_v40 = vld [vmem:[#allocation8 + $0x48] sm:$0xff]  ;;  %v7148_v21 = vld [vmem:[#allocation11 + $0x1f0] sm:$0xff]  ;;  %v7150_v45 = vld [vmem:[#allocation11 + $0x1f8] sm:$0xff]  ;;  %8673 = vst [vmem:[#allocation25_spill] sm:$0xff] %v7188_v11 }
 0x35a   :  { %2965 = vmatpush.msra.mxu2 %v6669_v59  ;;  %2985 = vmatpush.msra.mxu3 %v6671_v16  ;;  %8660 = vst [vmem:[#allocation140_spill] sm:$0xff] %v7150_v45 }
 0x35b   :  { %2926 = vmatpush.msra.mxu0 %v6677_v34  ;;  %2946 = vmatpush.msra.mxu1 %v6679_v55  ;;  %v2348_v16 = vsel %vm2345_vm1, %v2347_v23, %v2343_v13  ;;  %v8649_v55 = vld [vmem:[#allocation132_spill] sm:$0xff]  ;;  %v7156_v13 = vld [vmem:[#allocation11 + $0x1c8] sm:$0xff]  ;;  %v7158_v23 = vld [vmem:[#allocation11 + $0x1d0] sm:$0xff]  ;;  %8674 = vst [vmem:[#allocation27_spill] sm:$0xff] %v7192_v35 }
 0x35c   :  { %2966 = vmatpush.msra.mxu2 %v6689_v56  ;;  %2986 = vmatpush.msra.mxu3 %v6691_v48  ;;  %v8650_v48 = vld [vmem:[#allocation133_spill] sm:$0xff]  ;;  %8662 = vst [vmem:[#allocation142_spill] sm:$0xff] %v7156_v13 }
 0x35d   :  { %2927 = vmatpush.msra.mxu0 %v6697_v50  ;;  %2947 = vmatpush.msra.mxu1 %v6699_v60  ;;  %v8651_v50 = vld [vmem:[#allocation134_spill] sm:$0xff]  ;;  %v8652_v60 = vld [vmem:[#allocation135_spill] sm:$0xff]  ;;  %8663 = vst [vmem:[#allocation143_spill] sm:$0xff] %v7158_v23 }
 0x35e   :  { %2967 = vmatpush.msra.mxu2 %v6709_v18  ;;  %2987 = vmatpush.msra.mxu3 %v6711_v20  ;;  %v8653_v18 = vld [vmem:[#allocation136_spill] sm:$0xff]  ;;  %v8654_v20 = vld [vmem:[#allocation137_spill] sm:$0xff] }
 0x35f   :  { %2928 = vmatpush.msra.mxu0 %v6718_v19  ;;  %2948 = vmatpush.msra.mxu1 %v6720_v24  ;;  %v4622_v59 = vpop.eup %4621  ;;  %v8655_v19 = vld [vmem:[#allocation138_spill] sm:$0xff]  ;;  %v8656_v24 = vld [vmem:[#allocation139_spill] sm:$0xff] }
 0x360   :  { %2968 = vmatpush.msra.mxu2 %v6724_v29  ;;  %2988 = vmatpush.msra.mxu3 %v6726_v46  ;;  %v2354_v34 = vmul.f32 %v4622_v59, %v2348_v16  ;;  %v8657_v29 = vld [vmem:[#allocation74_spill] sm:$0xff]  ;;  %v7056_v46 = vld [vmem:[#allocation8 + $0xc0] sm:$0xff] }
 0x361   :  { %2929 = vmatpush.msra.mxu0 %v6730_v53  ;;  %2949 = vmatpush.msra.mxu1 %v6732_v17  ;;  %v7058_v53 = vld [vmem:[#allocation8 + $0xc8] sm:$0xff]  ;;  %v7060_v17 = vld [vmem:[#allocation8 + $0xd0] sm:$0xff] }
 0x362   :  { %2969 = vmatpush.msra.mxu2 %v6736_v1  ;;  %2989 = vmatpush.msra.mxu3 %v6738_v25  ;;  %v7033_v63 = vsel %vm2374_vm14, %v2354_v34, %v8649_v55  ;;  %v2382_v56 = vsel %vm2374_vm14, %v2354_v34, 0.0  ;;  %v7064_v1 = vld [vmem:[#allocation8 + $0xd8] sm:$0xff]  ;;  %v7068_v25 = vld [vmem:[#allocation8 + $0xa0] sm:$0xff] }
 0x363   :  { %2930 = vmatpush.msra.mxu0 %v8650_v48  ;;  %2950 = vmatpush.msra.mxu1 %v8651_v50  ;;  %2384 = vst [vmem:[#allocation14 + $0x20] sm:$0xff] %v2382_v56  ;;  %v7162_v34 = vld [vmem:[#allocation11 + $0x1d8] sm:$0xff]  ;;  %v7166_v55 = vld [vmem:[#allocation11 + $0x1a0] sm:$0xff]  ;;  %v7168_v56 = vld [vmem:[#allocation11 + $0x1a8] sm:$0xff] }
 0x364   :  { %2629 = vmatmul.f32.vlgmr.msrb.gmra.mxu0 %v7033_v63  ;;  %2649 = vmatmul.f32.vlgmr.msrb.gmra.mxu1 %v7033_v63  ;;  %8664 = vst [vmem:[#allocation144_spill] sm:$0xff] %v7162_v34  ;;  %v7170_v48 = vld [vmem:[#allocation11 + $0x1b0] sm:$0xff]  ;;  %v7174_v50 = vld [vmem:[#allocation11 + $0x1b8] sm:$0xff] }
 0x365   :  { %2669 = vmatmul.f32.vlgmr.msrb.gmra.mxu2 %v7033_v63  ;;  %2689 = vmatmul.f32.vlgmr.msrb.gmra.mxu3 %v7033_v63  ;;  %8665 = vst [vmem:[#allocation145_spill] sm:$0xff] %v7166_v55 }
 0x366   :  { %2970 = vmatpush.msra.mxu2 %v8652_v60  ;;  %2990 = vmatpush.msra.mxu3 %v8653_v18  ;;  %8666 = vst [vmem:[#allocation146_spill] sm:$0xff] %v7168_v56  ;;  %v8669_v60 = vld [vmem:[#allocation35_spill] sm:$0xff] }
 0x367   :  { %2931 = vmatpush.msra.mxu0 %v8654_v20  ;;  %2951 = vmatpush.msra.mxu1 %v8655_v19  ;;  %8667 = vst [vmem:[#allocation147_spill] sm:$0xff] %v7170_v48  ;;  %v256_v18 = vadd.f32 %v8669_v60, %v8588_v30  ;;  %v7180_v20 = vld [vmem:[#allocation11 + $0x180] sm:$0xff]  ;;  %v7182_v19 = vld [vmem:[#allocation11 + $0x188] sm:$0xff] }
 0x368   :  { %2971 = vmatpush.msra.mxu2 %v8656_v24  ;;  %2991 = vmatpush.msra.mxu3 %v8657_v29  ;;  %8668 = vst [vmem:[#allocation148_spill] sm:$0xff] %v7174_v50  ;;  %v7184_v24 = vld [vmem:[#allocation11 + $0x190] sm:$0xff] }
 0x369   :  { %2932 = vmatpush.msra.mxu0 %v6781_v7  ;;  %2952 = vmatpush.msra.mxu1 %v6783_v32  ;;  %v7076_v7 = vld [vmem:[#allocation8 + $0xb8] sm:$0xff]  ;;  %v7080_v32 = vld [vmem:[#allocation8 + $0x80] sm:$0xff]  ;;  %8670 = vst [vmem:[#allocation149_spill] sm:$0xff] %v7180_v20 }
 0x36a   :  { %2972 = vmatpush.msra.mxu2 %v6785_v51  ;;  %2992 = vmatpush.msra.mxu3 %v6789_v36  ;;  %v7072_v36 = vld [vmem:[#allocation8 + $0xb0] sm:$0xff]  ;;  %v7082_v51 = vld [vmem:[#allocation8 + $0x88] sm:$0xff]  ;;  %8671 = vst [vmem:[#allocation150_spill] sm:$0xff] %v7182_v19 }
 0x36b   :  { %2933 = vmatpush.msra.mxu0 %v6793_v8  ;;  %2953 = vmatpush.msra.mxu1 %v6795_v54  ;;  %v7088_v8 = vld [vmem:[#allocation8 + $0x98] sm:$0xff]  ;;  %v7092_v54 = vld [vmem:[#allocation8 + $0x60] sm:$0xff]  ;;  %8672 = vst [vmem:[#allocation24_spill] sm:$0xff] %v7184_v24 }
 0x36c   :  { %2973 = vmatpush.msra.mxu2 %v6797_v14  ;;  %2993 = vmatpush.msra.mxu3 %v6801_v38  ;;  %v7070_v14 = vld [vmem:[#allocation8 + $0xa8] sm:$0xff]  ;;  %v7084_v38 = vld [vmem:[#allocation8 + $0x90] sm:$0xff] }
 0x36d   :  { %2934 = vmatpush.msra.mxu0 %v7056_v46  ;;  %2954 = vmatpush.msra.mxu1 %v7058_v53 }
 0x36e   :  { %2974 = vmatpush.msra.mxu2 %v7060_v17  ;;  %2994 = vmatpush.msra.mxu3 %v7064_v1 }
 0x36f   :  { %2935 = vmatpush.msra.mxu0 %v7068_v25  ;;  %2955 = vmatpush.msra.mxu1 %v7070_v14 }
 0x370   :  { %2975 = vmatpush.msra.mxu2 %v7072_v36  ;;  %2995 = vmatpush.msra.mxu3 %v7076_v7 }
 0x371   :  { %2936 = vmatpush.msra.mxu0 %v7080_v32  ;;  %2956 = vmatpush.msra.mxu1 %v7082_v51 }
 0x372   :  { %2976 = vmatpush.msra.mxu2 %v7084_v38  ;;  %2996 = vmatpush.msra.mxu3 %v7088_v8 }
 0x373   :  { %2937 = vmatpush.msra.mxu0 %v7092_v54  ;;  %2957 = vmatpush.msra.mxu1 %v7094_v22 }
 0x374   :  { %2977 = vmatpush.msra.mxu2 %v7096_v28  ;;  %2997 = vmatpush.msra.mxu3 %v7100_v3 }
 0x375   :  { %2938 = vmatpush.msra.mxu0 %v7104_v39  ;;  %2958 = vmatpush.msra.mxu1 %v7106_v40 }
 0x376   :  { %2978 = vmatpush.msra.mxu2 %v7108_v62  ;;  %2998 = vmatpush.msra.mxu3 %v7112_v27 }
 0x377   :  { %2939 = vmatpush.msra.mxu0 %v7116_v0  ;;  %2959 = vmatpush.msra.mxu1 %v7118_v61 }
 0x378   :  { %2979 = vmatpush.msra.mxu2 %v7120_v47  ;;  %2999 = vmatpush.msra.mxu3 %v7124_v4 }
 0x379   :  { %2940 = vmatpush.msra.mxu0 %v7132_v31  ;;  %2960 = vmatpush.msra.mxu1 %v7134_v33 }
 0x37a   :  { %2980 = vmatpush.msra.mxu2 %v7136_v58  ;;  %3000 = vmatpush.msra.mxu3 %v7140_v41 }
 0x37b   :  { %3079 = vmatpush.msrb.mxu0 %v7142_v9  ;;  %3099 = vmatpush.msrb.mxu1 %v7144_v43 }
 0x37c   :  { %3119 = vmatpush.msrb.mxu2 %v7148_v21  ;;  %3139 = vmatpush.msrb.mxu3 %v7150_v45 }
 0x37d   :  { %3080 = vmatpush.msrb.mxu0 %v7154_v26  ;;  %3100 = vmatpush.msrb.mxu1 %v7156_v13 }
 0x37e   :  { %3120 = vmatpush.msrb.mxu2 %v7158_v23  ;;  %3140 = vmatpush.msrb.mxu3 %v7162_v34  ;;  %v7310_v34 = vld [vmem:[#allocation11 + $0x68] sm:$0xff] }
 0x37f   :  { %3081 = vmatpush.msrb.mxu0 %v7166_v55  ;;  %3101 = vmatpush.msrb.mxu1 %v7168_v56  ;;  %v7308_v55 = vld [vmem:[#allocation11 + $0x60] sm:$0xff]  ;;  %8711 = vst [vmem:[#allocation98_spill] sm:$0xff] %v7310_v34 }
 0x380   :  { %3121 = vmatpush.msrb.mxu2 %v7170_v48  ;;  %3141 = vmatpush.msrb.mxu3 %v7174_v50  ;;  %v7252_v50 = vld [vmem:[#allocation11 + $0xf0] sm:$0xff]  ;;  %8710 = vst [vmem:[#allocation97_spill] sm:$0xff] %v7308_v55 }
 0x381   :  { %3082 = vmatpush.msrb.mxu0 %v7180_v20  ;;  %3102 = vmatpush.msrb.mxu1 %v7182_v19  ;;  %v8691_v19 = vld [vmem:[#allocation61_spill] sm:$0xff]  ;;  %8694 = vst [vmem:[#allocation84_spill] sm:$0xff] %v7252_v50 }
 0x382   :  { %3122 = vmatpush.msrb.mxu2 %v7184_v24  ;;  %3142 = vmatpush.msrb.mxu3 %v7188_v11  ;;  %v7250_v20 = vld [vmem:[#allocation11 + $0xe8] sm:$0xff] }
 0x383   :  { %3083 = vmatpush.msrb.mxu0 %v7192_v35  ;;  %v7222_v35 = vld [vmem:[#allocation11 + $0x130] sm:$0xff]  ;;  %8693 = vst [vmem:[#allocation83_spill] sm:$0xff] %v7250_v20 }
 0x384   :  { %8684 = vst [vmem:[#allocation76_spill] sm:$0xff] %v7222_v35 }
 0x3d4   :  { %v2476_v37 = vpop.f32.mrf.mxu0  ;;  %v2496_v12 = vpop.f32.mrf.mxu1 }
 0x3d5   :  { %v2539_v52 = vadd.f32 %v2476_v37, %v169_v57  ;;  %v2540_v49 = vadd.f32 %v2496_v12, %v198_v44  ;;  %v7194_v44 = vld [vmem:[#allocation11 + $0x168] sm:$0xff]  ;;  %v7196_v37 = vld [vmem:[#allocation11 + $0x170] sm:$0xff]  ;;  %v7200_v12 = vld [vmem:[#allocation11 + $0x178] sm:$0xff] }
 0x3d6   :  { %8675 = vst [vmem:[#allocation68_spill] sm:$0xff] %v7194_v44  ;;  %3103 = vmatpush.msrb.mxu1 %v7194_v44  ;;  %3123 = vmatpush.msrb.mxu2 %v7196_v37  ;;  %v7220_v44 = vld [vmem:[#allocation11 + $0x128] sm:$0xff] }
 0x3d7   :  { %v4427_v59 = vmul.f32 -1.442695, %v2539_v52  ;;  %v4428_v16 = vmul.f32 -1.442695, %v2540_v49  ;;  %8676 = vst [vmem:[#allocation69_spill] sm:$0xff] %v7196_v37  ;;  %v7204_v49 = vld [vmem:[#allocation11 + $0x140] sm:$0xff]  ;;  %3143 = vmatpush.msrb.mxu3 %v7200_v12 }
 0x3d8   :  { %8677 = vst [vmem:[#allocation26_spill] sm:$0xff] %v7200_v12  ;;  %3084 = vmatpush.msrb.mxu0 %v7204_v49 }
 0x3d9   :  { %4623 = vpow2.f32 %v4427_v59  ;;  %8678 = vst [vmem:[#allocation71_spill] sm:$0xff] %v7204_v49  ;;  %v7206_v59 = vld [vmem:[#allocation11 + $0x148] sm:$0xff] }
 0x3da   :  { %4625 = vpow2.f32 %v4428_v16  ;;  %8679 = vst [vmem:[#allocation70_spill] sm:$0xff] %v7206_v59  ;;  %v7208_v16 = vld [vmem:[#allocation11 + $0x150] sm:$0xff]  ;;  %3104 = vmatpush.msrb.mxu1 %v7206_v59  ;;  %v7235_v59 = vld [vmem:[#allocation11 + $0x108] sm:$0xff] }
 0x3db   :  { %v2536_v29 = vpop.f32.mrf.mxu3  ;;  %8680 = vst [vmem:[#allocation28_spill] sm:$0xff] %v7208_v16  ;;  %3124 = vmatpush.msrb.mxu2 %v7208_v16  ;;  %v8690_v16 = vld [vmem:[#allocation60_spill] sm:$0xff]  ;;  %v2516_v48 = vpop.f32.mrf.mxu2 }
 0x3dc   :  { %v2542_v57 = vadd.f32 %v2536_v29, %v256_v18  ;;  %v7212_v18 = vld [vmem:[#allocation11 + $0x158] sm:$0xff]  ;;  %8683 = vst [vmem:[#allocation79_spill] sm:$0xff] %v7220_v44  ;;  %3105 = vmatpush.msrb.mxu1 %v7220_v44  ;;  %v7248_v44 = vld [vmem:[#allocation11 + $0xe0] sm:$0xff] }
 0x3dd   :  { %8681 = vst [vmem:[#allocation29_spill] sm:$0xff] %v7212_v18  ;;  %3144 = vmatpush.msrb.mxu3 %v7212_v18  ;;  %3125 = vmatpush.msrb.mxu2 %v7222_v35  ;;  %v7242_v18 = vld [vmem:[#allocation11 + $0x118] sm:$0xff]  ;;  %v7264_v35 = vld [vmem:[#allocation11 + $0xc8] sm:$0xff] }
 0x3de   :  { %v4429_v52 = vmul.f32 -1.442695, %v2542_v57  ;;  %v7218_v57 = vld [vmem:[#allocation11 + $0x120] sm:$0xff]  ;;  %8687 = vst [vmem:[#allocation21_spill] sm:$0xff] %v7235_v59  ;;  %3106 = vmatpush.msrb.mxu1 %v7235_v59 }
 0x3df   :  { %v4624_v60 = vpop.eup %4623  ;;  %8682 = vst [vmem:[#allocation78_spill] sm:$0xff] %v7218_v57  ;;  %3085 = vmatpush.msrb.mxu0 %v7218_v57  ;;  %v7262_v59 = vld [vmem:[#allocation11 + $0xc0] sm:$0xff] }
 0x3e0   :  { %v4626_v29 = vpop.eup %4625  ;;  %v7214_v11 = vadd.f32 1.0, %v4624_v60  ;;  %4627 = vpow2.f32 %v4429_v52  ;;  %v7228_v60 = vld [vmem:[#allocation11 + $0x138] sm:$0xff]  ;;  %v7233_v52 = vld [vmem:[#allocation11 + $0x100] sm:$0xff]  ;;  %8689 = vst [vmem:[#allocation81_spill] sm:$0xff] %v7242_v18  ;;  %3107 = vmatpush.msrb.mxu1 %v7250_v20 }
 0x3e1   :  { %v7224_v24 = vadd.f32 1.0, %v4626_v29  ;;  %v2630_v37 = vpop.f32.mrf.mxu0  ;;  %v2650_v12 = vpop.f32.mrf.mxu1  ;;  %8685 = vst [vmem:[#allocation20_spill] sm:$0xff] %v7228_v60  ;;  %v7237_v29 = vld [vmem:[#allocation11 + $0x110] sm:$0xff]  ;;  %3145 = vmatpush.msrb.mxu3 %v7228_v60  ;;  %3086 = vmatpush.msrb.mxu0 %v7233_v52  ;;  %v7256_v60 = vld [vmem:[#allocation11 + $0xf8] sm:$0xff] }
 0x3e2   :  { %4629 = vrcp.f32 %v7214_v11  ;;  %8686 = vst [vmem:[#allocation77_spill] sm:$0xff] %v7233_v52  ;;  %v2693_v49 = vadd.f32 %v2630_v37, %v8690_v16  ;;  %v2694_v57 = vadd.f32 %v2650_v12, %v8691_v19  ;;  %3126 = vmatpush.msrb.mxu2 %v7237_v29  ;;  %v8696_v19 = vld [vmem:[#allocation34_spill] sm:$0xff]  ;;  %3108 = vmatpush.msrb.mxu1 %v7264_v35  ;;  %vm2706_vm4 = vweird.f32 %v7214_v11 }
 0x3e3   :  { %8688 = vst [vmem:[#allocation80_spill] sm:$0xff] %v7237_v29  ;;  %4631 = vrcp.f32 %v7224_v24  ;;  %3146 = vmatpush.msrb.mxu3 %v7242_v18  ;;  %v227_v12 = vadd.f32 %v8696_v19, %v8614_v10  ;;  %3087 = vmatpush.msrb.mxu0 %v7248_v44  ;;  %v7270_v18 = vld [vmem:[#allocation11 + $0xd0] sm:$0xff]  ;;  %v7272_v29 = vld [vmem:[#allocation11 + $0xd8] sm:$0xff]  ;;  %v7278_v10 = vld [vmem:[#allocation11 + $0xa0] sm:$0xff]  ;;  %vm2725_vm5 = vweird.f32 %v7224_v24 }
 0x3e4   :  { %8692 = vst [vmem:[#allocation82_spill] sm:$0xff] %v7248_v44  ;;  %v4430_v16 = vmul.f32 -1.442695, %v2693_v49  ;;  %v4431_v52 = vmul.f32 -1.442695, %v2694_v57  ;;  %3127 = vmatpush.msrb.mxu2 %v7252_v50  ;;  %v7282_v50 = vld [vmem:[#allocation11 + $0xb0] sm:$0xff] }
 0x3e5   :  { %8695 = vst [vmem:[#allocation85_spill] sm:$0xff] %v7256_v60  ;;  %3147 = vmatpush.msrb.mxu3 %v7256_v60  ;;  %v2541_v57 = vadd.f32 %v2516_v48, %v227_v12  ;;  %3088 = vmatpush.msrb.mxu0 %v7262_v59  ;;  %v7291_v48 = vld [vmem:[#allocation11 + $0xb8] sm:$0xff]  ;;  %v7293_v12 = vld [vmem:[#allocation11 + $0x80] sm:$0xff] }
 0x3e6   :  { %v4628_v37 = vpop.eup %4627  ;;  %8697 = vst [vmem:[#allocation31_spill] sm:$0xff] %v7262_v59  ;;  %4633 = vpow2.f32 %v4430_v16  ;;  %3128 = vmatpush.msrb.mxu2 %v7270_v18  ;;  %v7295_v16 = vld [vmem:[#allocation11 + $0x88] sm:$0xff]  ;;  %v7301_v59 = vld [vmem:[#allocation11 + $0x90] sm:$0xff]  ;;  %v7303_v44 = vld [vmem:[#allocation11 + $0x98] sm:$0xff] }
 0x3e7   :  { %8698 = vst [vmem:[#allocation86_spill] sm:$0xff] %v7264_v35  ;;  %v7266_v30 = vadd.f32 1.0, %v4628_v37  ;;  %v7280_v37 = vld [vmem:[#allocation11 + $0xa8] sm:$0xff]  ;;  %3148 = vmatpush.msrb.mxu3 %v7272_v29  ;;  %3089 = vmatpush.msrb.mxu0 %v7278_v10 }
 0x3e8   :  { %8699 = vst [vmem:[#allocation87_spill] sm:$0xff] %v7270_v18  ;;  %v7274_v49 = vpop.eup %4629  ;;  %v2690_v19 = vpop.f32.mrf.mxu3  ;;  %3109 = vmatpush.msrb.mxu1 %v7280_v37  ;;  %3129 = vmatpush.msrb.mxu2 %v7282_v50 }
 0x3e9   :  { %8700 = vst [vmem:[#allocation88_spill] sm:$0xff] %v7272_v29  ;;  %v7284_v60 = vpop.eup %4631  ;;  %v2702_v20 = vmul.f32 %v7274_v49, %v7214_v11  ;;  %4635 = vrcp.f32 %v7266_v30  ;;  %v8709_v29 = vld [vmem:[#allocation63_spill] sm:$0xff]  ;;  %3149 = vmatpush.msrb.mxu3 %v7291_v48  ;;  %3090 = vmatpush.msrb.mxu0 %v7293_v12  ;;  %vm2707_vm2 = vweird.f32 %v7274_v49  ;;  %vm2745_vm12 = vweird.f32 %v7266_v30 }
 0x3ea   :  { %8701 = vst [vmem:[#allocation89_spill] sm:$0xff] %v7278_v10  ;;  %v2721_v35 = vmul.f32 %v7284_v60, %v7224_v24  ;;  %4637 = vpow2.f32 %v4431_v52  ;;  %v2696_v56 = vadd.f32 %v2690_v19, %v8709_v29  ;;  %v2710_v10 = vand.u32 2147483647, %v7214_v11  ;;  %3110 = vmatpush.msrb.mxu1 %v7295_v16  ;;  %v7318_v29 = vld [vmem:[#allocation11 + $0x78] sm:$0xff]  ;;  %3130 = vmatpush.msrb.mxu2 %v7301_v59  ;;  %vm7355_vm6 = vmor %vm2706_vm4, %vm2707_vm2 }
 0x3eb   :  { %8702 = vst [vmem:[#allocation90_spill] sm:$0xff] %v7280_v37  ;;  %v2703_v18 = vsub.f32 1.0, %v2702_v20  ;;  %v2712_v37 = vand.u32 2147483648, %v7214_v11  ;;  %4639 = vtanh.f32 %v2541_v57  ;;  %v7316_v20 = vld [vmem:[#allocation11 + $0x70] sm:$0xff]  ;;  %v2731_v19 = vand.u32 2147483648, %v7224_v24  ;;  %3150 = vmatpush.msrb.mxu3 %v7303_v44  ;;  %v7325_v57 = vld [vmem:[#allocation11 + $0x40] sm:$0xff]  ;;  %3091 = vmatpush.msrb.mxu0 %v7308_v55 }
 0x3ec   :  { %8703 = vst [vmem:[#allocation91_spill] sm:$0xff] %v7282_v50  ;;  %v2722_v52 = vsub.f32 1.0, %v2721_v35  ;;  %v4432_v35 = vmul.f32 -1.442695, %v2696_v56  ;;  %vm2726_vm3 = vweird.f32 %v7284_v60  ;;  %3111 = vmatpush.msrb.mxu1 %v7310_v34  ;;  %v7335_v56 = vld [vmem:[#allocation11 + $0x50] sm:$0xff]  ;;  %3131 = vmatpush.msrb.mxu2 %v7316_v20  ;;  %v7347_v55 = vld [vmem:[#allocation11 + $0x20] sm:$0xff] }
 0x3ed   :  { %8704 = vst [vmem:[#allocation92_spill] sm:$0xff] %v7291_v48  ;;  %v2704_v48 = vmul.f32 %v7274_v49, %v2703_v18  ;;  %v2729_v18 = vand.u32 2147483647, %v7224_v24  ;;  %3151 = vmatpush.msrb.mxu3 %v7318_v29  ;;  %v7349_v34 = vld [vmem:[#allocation11 + $0x28] sm:$0xff]  ;;  %vm7359_vm7 = vcmp.eq.f32.partialorder %v2710_v10, 8.507059e+37  ;;  %3092 = vmatpush.msrb.mxu0 %v7325_v57  ;;  %v7370_v11 = vld [vmem:[#allocation11 + $0x38] sm:$0xff]  ;;  %vm7376_vm8 = vmor %vm2725_vm5, %vm2726_vm3 }
 0x3ee   :  { %8705 = vst [vmem:[#allocation94_spill] sm:$0xff] %v7293_v12  ;;  %v7327_v12 = vld [vmem:[#allocation11 + $0x48] sm:$0xff]  ;;  %v2723_v50 = vmul.f32 %v7284_v60, %v2722_v52  ;;  %4641 = vpow2.f32 %v4432_v35  ;;  %3132 = vmatpush.msrb.mxu2 %v7335_v56 }
 0x3ef   :  { %8706 = vst [vmem:[#allocation23_spill] sm:$0xff] %v7295_v16  ;;  %v4634_v16 = vpop.eup %4633  ;;  %v2705_v52 = vadd.f32 %v7274_v49, %v2704_v48  ;;  %3112 = vmatpush.msrb.mxu1 %v7327_v12  ;;  %v7390_v24 = vld [vmem:[#allocation11 + $0x8] sm:$0xff]  ;;  %vm2730_vm10 = vcmp.eq.f32.partialorder %v2729_v18, 8.507059e+37  ;;  %3093 = vmatpush.msrb.mxu0 %v7347_v55  ;;  %v2670_v18 = vpop.f32.mrf.mxu2 }
 0x3f0   :  { %8707 = vst [vmem:[#allocation95_spill] sm:$0xff] %v7301_v59  ;;  %v7339_v59 = vpop.eup %4635  ;;  %v7343_v23 = vadd.f32 1.0, %v4634_v16  ;;  %v2713_v16 = vor.u32 1.1754944e-38, %v2712_v37  ;;  %v2724_v35 = vadd.f32 %v7284_v60, %v2723_v50  ;;  %v2732_v50 = vor.u32 1.1754944e-38, %v2731_v19 }
 0x3f1   :  { %8708 = vst [vmem:[#allocation96_spill] sm:$0xff] %v7303_v44  ;;  %v7337_v44 = vld [vmem:[#allocation11 + $0x58] sm:$0xff]  ;;  %v4638_v13 = vpop.eup %4637  ;;  %v2709_v37 = vsel %vm7355_vm6, %v7274_v49, %v2705_v52  ;;  %3113 = vmatpush.msrb.mxu1 %v7349_v34  ;;  %vm2746_vm11 = vweird.f32 %v7339_v59 }
 0x3f2   :  { %8712 = vst [vmem:[#allocation99_spill] sm:$0xff] %v7316_v20  ;;  %v7368_v20 = vld [vmem:[#allocation11 + $0x30] sm:$0xff]  ;;  %4643 = vrcp.f32 %v7343_v23  ;;  %3152 = vmatpush.msrb.mxu3 %v7337_v44  ;;  %v4640_v45 = vpop.eup %4639  ;;  %v2714_v19 = vsel %vm7359_vm7, %v2713_v16, %v2709_v37  ;;  %v2728_v26 = vsel %vm7376_vm8, %v7284_v60, %v2724_v35  ;;  %v7401_v52 = vld [vmem:[#allocation11 + $0x18] sm:$0xff]  ;;  %v2751_v16 = vand.u32 2147483648, %v7266_v30  ;;  %vm7423_vm14 = vmor %vm2745_vm12, %vm2746_vm11 }
 0x3f3   :  { %8713 = vst [vmem:[#allocation64_spill] sm:$0xff] %v7318_v29  ;;  %v2741_v29 = vmul.f32 %v7339_v59, %v7266_v30  ;;  %3133 = vmatpush.msrb.mxu2 %v7368_v20  ;;  %3114 = vmatpush.msrb.mxu1 %v7390_v24  ;;  %vm2769_vm15 = vweird.f32 %v7343_v23 }
 0x3f4   :  { %8714 = vst [vmem:[#allocation65_spill] sm:$0xff] %v7325_v57  ;;  %v7388_v57 = vld [vmem:[#allocation11] sm:$0xff]  ;;  %3153 = vmatpush.msrb.mxu3 %v7370_v11  ;;  %v4642_v48 = vpop.eup %4641 }
 0x3f5   :  { %8715 = vst [vmem:[#allocation100_spill] sm:$0xff] %v7327_v12  ;;  %v7384_v12 = vadd.f32 1.0, %v4638_v13  ;;  %v2742_v49 = vsub.f32 1.0, %v2741_v29  ;;  %v7399_v13 = vld [vmem:[#allocation11 + $0x10] sm:$0xff]  ;;  %3094 = vmatpush.msrb.mxu0 %v7388_v57  ;;  %v7413_v35 = vadd.f32 1.0, %v4642_v48 }
 0x3f6   :  { %8716 = vst [vmem:[#allocation101_spill] sm:$0xff] %v7335_v56  ;;  %v2756_v56 = vmul.f32 %v4640_v45, %v2714_v19  ;;  %3134 = vmatpush.msrb.mxu2 %v7399_v13  ;;  %3154 = vmatpush.msrb.mxu3 %v7401_v52 }
 0x3f7   :  { %8717 = vst [vmem:[#allocation102_spill] sm:$0xff] %v7337_v44  ;;  %v2733_v44 = vsel %vm2730_vm10, %v2732_v50, %v2728_v26  ;;  %4645 = vrcp.f32 %v7384_v12  ;;  %v2743_v29 = vmul.f32 %v7339_v59, %v2742_v49  ;;  %v8729_v50 = vld [vmem:[#allocation62_spill] sm:$0xff]  ;;  %v2830_v49 = vpop.permute.xlu2 %2829  ;;  %vm2788_vm2 = vweird.f32 %v7384_v12 }
 0x3f8   :  { %8722 = vst [vmem:[#allocation103_spill] sm:$0xff] %v7370_v11  ;;  %v2755_v60 = vmul.f32 %v2733_v44, %v6970_v2  ;;  %v4644_v10 = vpop.eup %4643  ;;  %v2695_v44 = vadd.f32 %v2670_v18, %v8729_v50  ;;  %vm2831_vm13 = vcmp.eq.s32.totalorder %v2830_v49, 1  ;;  %v2775_v50 = vand.u32 2147483648, %v7343_v23 }
 0x3f9   :  { %8725 = vst [vmem:[#allocation104_spill] sm:$0xff] %v7388_v57  ;;  %v2744_v37 = vadd.f32 %v7339_v59, %v2743_v29  ;;  %v2765_v19 = vmul.f32 %v4644_v10, %v7343_v23  ;;  %v2752_v29 = vor.u32 1.1754944e-38, %v2751_v16  ;;  %vm2770_vm9 = vweird.f32 %v4644_v10 }
 0x3fa   :  { %8726 = vst [vmem:[#allocation105_spill] sm:$0xff] %v7390_v24  ;;  %v2757_v45 = vadd.f32 %v2756_v56, %v2755_v60  ;;  %v2749_v56 = vand.u32 2147483647, %v7266_v30  ;;  %v2773_v24 = vand.u32 2147483647, %v7343_v23  ;;  %v2794_v57 = vand.u32 2147483648, %v7384_v12  ;;  %vm2771_vm3 = vmor %vm2769_vm15, %vm2770_vm9 }
 0x3fb   :  { %8727 = vst [vmem:[#allocation106_spill] sm:$0xff] %v7399_v13  ;;  %v2766_v60 = vsub.f32 1.0, %v2765_v19  ;;  %v2792_v16 = vand.u32 2147483647, %v7384_v12  ;;  %vm2808_vm10 = vweird.f32 %v7413_v35 }
 0x3fc   :  { %8728 = vst [vmem:[#allocation72_spill] sm:$0xff] %v7401_v52  ;;  %4647 = vtanh.f32 %v2757_v45  ;;  %v2748_v52 = vsel %vm7423_vm14, %v7339_v59, %v2744_v37  ;;  %v7433_v13 = vsel %vm2831_vm13, %v2757_v45, %v6970_v2  ;;  %vm2750_vm0 = vcmp.eq.f32.partialorder %v2749_v56, 8.507059e+37  ;;  %v7489_v56 = vld [vmem:[#allocation8 + $0x1b8] sm:$0xff] }
 0x3fd   :  { %v4646_v26 = vpop.eup %4645  ;;  %4649 = vrcp.f32 %v7413_v35  ;;  %8732 = vst [vmem:[#allocation30_spill] sm:$0xff] %v7433_v13  ;;  %v2767_v19 = vmul.f32 %v4644_v10, %v2766_v60  ;;  %v2753_v37 = vsel %vm2750_vm0, %v2752_v29, %v2748_v52  ;;  %v2776_v2 = vor.u32 1.1754944e-38, %v2775_v50  ;;  %v7453_v50 = vld [vmem:[#allocation8 + $0x1e0] sm:$0xff] }
 0x3fe   :  { %v2784_v48 = vmul.f32 %v4646_v26, %v7384_v12  ;;  %4651 = vtanh.f32 %v2695_v44  ;;  %vm2789_vm1 = vweird.f32 %v4646_v26  ;;  %vm2774_vm4 = vcmp.eq.f32.partialorder %v2773_v24, 8.507059e+37  ;;  %v7455_v24 = vld [vmem:[#allocation8 + $0x1e8] sm:$0xff]  ;;  %8738 = vst [vmem:[#allocation109_spill] sm:$0xff] %v7489_v56 }
 0x3ff   :  { %v2768_v59 = vadd.f32 %v4644_v10, %v2767_v19  ;;  %vm7444_vm5 = vmor %vm2788_vm2, %vm2789_vm1  ;;  %vm2793_vm6 = vcmp.eq.f32.partialorder %v2792_v16, 8.507059e+37 }
 0x400   :  { %v2785_v30 = vsub.f32 1.0, %v2784_v48 }
 0x401   :  { %v2772_v60 = vsel %vm2771_vm3, %v4644_v10, %v2768_v59  ;;  %v7475_v59 = vld [vmem:[#allocation8 + $0x1d0] sm:$0xff] }
 0x402   :  { %v4648_v44 = vpop.eup %4647  ;;  %v2786_v11 = vmul.f32 %v4646_v26, %v2785_v30  ;;  %v2795_v30 = vor.u32 1.1754944e-38, %v2794_v57  ;;  %v2777_v52 = vsel %vm2774_vm4, %v2776_v2, %v2772_v60  ;;  %v7461_v57 = vld [vmem:[#allocation8 + $0x1f0] sm:$0xff]  ;;  %v7481_v2 = vld [vmem:[#allocation8 + $0x1a0] sm:$0xff]  ;;  %v2839_v60 = vpop.permute.xlu0 %2838 }
 0x403   :  { %v7439_v18 = vpop.eup %4649  ;;  %v2759_v45 = vmul.f32 %v4648_v44, %v2753_v37  ;;  %v7467_v44 = vld [vmem:[#allocation8 + $0x1c0] sm:$0xff]  ;;  %v7477_v37 = vld [vmem:[#allocation8 + $0x1d8] sm:$0xff]  ;;  %8735 = vst [vmem:[#allocation73_spill] sm:$0xff] %v7481_v2  ;;  %vm2840_vm7 = vcmp.eq.s32.totalorder %v2839_v60, 1 }
 0x404   :  { %v2787_v48 = vadd.f32 %v4646_v26, %v2786_v11  ;;  %v2804_v23 = vmul.f32 %v7439_v18, %v7413_v35  ;;  %v4652_v13 = vpop.eup %4651  ;;  %vm2809_vm8 = vweird.f32 %v7439_v18  ;;  %v7560_v60 = vld [vmem:[#allocation8 + $0x120] sm:$0xff] }
 0x405   :  { %v7450_v29 = vsel %vm2831_vm13, %v2759_v45, %v6994_v5  ;;  %v2845_v12 = vsel %vm2831_vm13, %v2759_v45, 0.0  ;;  %v2819_v10 = vmul.f32 %v4652_v13, %v2777_v52  ;;  %v7463_v5 = vld [vmem:[#allocation8 + $0x1f8] sm:$0xff]  ;;  %v7483_v45 = vld [vmem:[#allocation8 + $0x1a8] sm:$0xff]  ;;  %v7495_v52 = vld [vmem:[#allocation8 + $0x180] sm:$0xff]  ;;  %8744 = vst [vmem:[#allocation112_spill] sm:$0xff] %v7560_v60 }
 0x406   :  { %v2791_v11 = vsel %vm7444_vm5, %v4646_v26, %v2787_v48  ;;  %v2805_v19 = vsub.f32 1.0, %v2804_v23  ;;  %2847 = vst [vmem:[#allocation13 + $0x20] sm:$0xff] %v2845_v12  ;;  %2941 = vmatmul.f32.vlgmr.msra.gmra.mxu0 %v7450_v29  ;;  %2961 = vmatmul.f32.vlgmr.msra.gmra.mxu1 %v7450_v29  ;;  %v7469_v26 = vld [vmem:[#allocation8 + $0x1c8] sm:$0xff]  ;;  %v7487_v23 = vld [vmem:[#allocation8 + $0x1b0] sm:$0xff]  ;;  %vm7520_vm11 = vmor %vm2808_vm10, %vm2809_vm8 }
 0x407   :  { %v2796_v49 = vsel %vm2793_vm6, %v2795_v30, %v2791_v11  ;;  %2981 = vmatmul.f32.vlgmr.msra.gmra.mxu2 %v7450_v29  ;;  %3001 = vmatmul.f32.vlgmr.msra.gmra.mxu3 %v7450_v29  ;;  %8736 = vst [vmem:[#allocation107_spill] sm:$0xff] %v7483_v45  ;;  %v7497_v12 = vld [vmem:[#allocation8 + $0x188] sm:$0xff]  ;;  %v2814_v11 = vand.u32 2147483648, %v7413_v35 }
 0x408   :  { %v2818_v13 = vmul.f32 %v2796_v49, %v7010_v42  ;;  %v2806_v16 = vmul.f32 %v7439_v18, %v2805_v19  ;;  %3391 = vmatpush.msra.mxu0 %v7453_v50  ;;  %3411 = vmatpush.msra.mxu1 %v7455_v24  ;;  %8737 = vst [vmem:[#allocation108_spill] sm:$0xff] %v7487_v23  ;;  %v7504_v19 = vld [vmem:[#allocation8 + $0x198] sm:$0xff] }
 0x409   :  { %3431 = vmatpush.msra.mxu2 %v7461_v57  ;;  %3451 = vmatpush.msra.mxu3 %v7463_v5  ;;  %8739 = vst [vmem:[#allocation110_spill] sm:$0xff] %v7495_v52 }
 0x40a   :  { %v2820_v48 = vadd.f32 %v2819_v10, %v2818_v13  ;;  %3392 = vmatpush.msra.mxu0 %v7467_v44  ;;  %3412 = vmatpush.msra.mxu1 %v7469_v26  ;;  %v2807_v30 = vadd.f32 %v7439_v18, %v2806_v16  ;;  %8740 = vst [vmem:[#allocation111_spill] sm:$0xff] %v7497_v12  ;;  %v7502_v10 = vld [vmem:[#allocation8 + $0x190] sm:$0xff]  ;;  %v2812_v13 = vand.u32 2147483647, %v7413_v35  ;;  %v7514_v16 = vld [vmem:[#allocation8 + $0x160] sm:$0xff]  ;;  %v7528_v35 = vld [vmem:[#allocation8 + $0x178] sm:$0xff] }
 0x40b   :  { %3432 = vmatpush.msra.mxu2 %v7475_v59  ;;  %3452 = vmatpush.msra.mxu3 %v7477_v37 }
 0x40c   :  { %4653 = vtanh.f32 %v2820_v48  ;;  %3393 = vmatpush.msra.mxu0 %v7481_v2  ;;  %3413 = vmatpush.msra.mxu1 %v7483_v45  ;;  %v7508_v49 = vsel %vm2840_vm7, %v2820_v48, %v7010_v42  ;;  %v7516_v2 = vld [vmem:[#allocation8 + $0x168] sm:$0xff]  ;;  %v7526_v42 = vld [vmem:[#allocation8 + $0x170] sm:$0xff]  ;;  %v2811_v48 = vsel %vm7520_vm11, %v7439_v18, %v2807_v30  ;;  %vm2813_vm12 = vcmp.eq.f32.partialorder %v2812_v13, 8.507059e+37  ;;  %v7548_v30 = vld [vmem:[#allocation8 + $0x140] sm:$0xff] }
 0x40d   :  { %3433 = vmatpush.msra.mxu2 %v7487_v23  ;;  %3453 = vmatpush.msra.mxu3 %v7489_v56  ;;  %v2815_v56 = vor.u32 1.1754944e-38, %v2814_v11  ;;  %v7550_v11 = vld [vmem:[#allocation8 + $0x148] sm:$0xff]  ;;  %v7572_v13 = vld [vmem:[#allocation8 + $0x100] sm:$0xff] }
 0x40e   :  { %3394 = vmatpush.msra.mxu0 %v7495_v52  ;;  %3414 = vmatpush.msra.mxu1 %v7497_v12 }
 0x40f   :  { %3434 = vmatpush.msra.mxu2 %v7502_v10  ;;  %3454 = vmatpush.msra.mxu3 %v7504_v19  ;;  %v2816_v52 = vsel %vm2813_vm12, %v2815_v56, %v2811_v48  ;;  %v7552_v56 = vld [vmem:[#allocation8 + $0x150] sm:$0xff]  ;;  %v7574_v48 = vld [vmem:[#allocation8 + $0x108] sm:$0xff] }
 0x410   :  { %3395 = vmatpush.msra.mxu0 %v7514_v16  ;;  %3415 = vmatpush.msra.mxu1 %v7516_v2 }
 0x411   :  { %3435 = vmatpush.msra.mxu2 %v7526_v42  ;;  %3455 = vmatpush.msra.mxu3 %v7528_v35 }
 0x412   :  { %v4654_v12 = vpop.eup %4653  ;;  %3396 = vmatpush.msra.mxu0 %v7548_v30  ;;  %3416 = vmatpush.msra.mxu1 %v7550_v11 }
 0x413   :  { %v2822_v23 = vmul.f32 %v4654_v12, %v2816_v52  ;;  %3436 = vmatpush.msra.mxu2 %v7552_v56  ;;  %v7564_v52 = vld [vmem:[#allocation8 + $0x130] sm:$0xff]  ;;  %v7568_v12 = vld [vmem:[#allocation8 + $0x138] sm:$0xff] }
 0x414   :  { %8746 = vst [vmem:[#allocation115_spill] sm:$0xff] %v7564_v52  ;;  %3397 = vmatpush.msra.mxu0 %v7560_v60  ;;  %v7592_v60 = vld [vmem:[#allocation8 + $0xf8] sm:$0xff] }
 0x415   :  { %v7541_v18 = vsel %vm2840_vm7, %v2822_v23, %v7033_v63  ;;  %v2848_v45 = vsel %vm2840_vm7, %v2822_v23, 0.0  ;;  %v7556_v63 = vld [vmem:[#allocation8 + $0x158] sm:$0xff]  ;;  %v7562_v23 = vld [vmem:[#allocation8 + $0x128] sm:$0xff]  ;;  %8747 = vst [vmem:[#allocation22_spill] sm:$0xff] %v7568_v12  ;;  %3437 = vmatpush.msra.mxu2 %v7564_v52 }
 0x416   :  { %8743 = vst [vmem:[#allocation67_spill] sm:$0xff] %v7541_v18  ;;  %3095 = vmatmul.f32.vlgmr.msrb.gmra.mxu0 %v7541_v18  ;;  %3115 = vmatmul.f32.vlgmr.msrb.gmra.mxu1 %v7541_v18  ;;  %v7586_v52 = vld [vmem:[#allocation8 + $0xe8] sm:$0xff] }
 0x417   :  { %2850 = vst [vmem:[#allocation14 + $0x18] sm:$0xff] %v2848_v45  ;;  %3135 = vmatmul.f32.vlgmr.msrb.gmra.mxu2 %v7541_v18  ;;  %3155 = vmatmul.f32.vlgmr.msrb.gmra.mxu3 %v7541_v18  ;;  %v7576_v45 = vld [vmem:[#allocation8 + $0x110] sm:$0xff]  ;;  %v7580_v18 = vld [vmem:[#allocation8 + $0x118] sm:$0xff] }
 0x418   :  { %3456 = vmatpush.msra.mxu3 %v7556_v63  ;;  %8745 = vst [vmem:[#allocation113_spill] sm:$0xff] %v7562_v23  ;;  %3417 = vmatpush.msra.mxu1 %v7562_v23  ;;  %v7584_v23 = vld [vmem:[#allocation8 + $0xe0] sm:$0xff] }
 0x419   :  { %3398 = vmatpush.msra.mxu0 %v7572_v13  ;;  %3438 = vmatpush.msra.mxu2 %v7576_v45 }
 0x41a   :  { %3457 = vmatpush.msra.mxu3 %v7568_v12  ;;  %3418 = vmatpush.msra.mxu1 %v7574_v48  ;;  %v7588_v12 = vld [vmem:[#allocation8 + $0xf0] sm:$0xff] }
 0x41b   :  { %3399 = vmatpush.msra.mxu0 %v7584_v23  ;;  %3439 = vmatpush.msra.mxu2 %v7588_v12 }
 0x41c   :  { %3458 = vmatpush.msra.mxu3 %v7580_v18  ;;  %3419 = vmatpush.msra.mxu1 %v7586_v52 }
 0x41d   :  { %3400 = vmatpush.msra.mxu0 %v7056_v46  ;;  %3440 = vmatpush.msra.mxu2 %v7060_v17  ;;  %v8748_v46 = vld [vmem:[#allocation36_spill] sm:$0xff]  ;;  %v8749_v17 = vld [vmem:[#allocation37_spill] sm:$0xff] }
 0x41e   :  { %3459 = vmatpush.msra.mxu3 %v7592_v60  ;;  %3420 = vmatpush.msra.mxu1 %v7058_v53  ;;  %v171_v53 = vadd.f32 %v8748_v46, %v8401_v15  ;;  %v8767_v46 = vld [vmem:[#allocation69_spill] sm:$0xff] }
 0x41f   :  { %3401 = vmatpush.msra.mxu0 %v7068_v25  ;;  %3441 = vmatpush.msra.mxu2 %v7072_v36 }
 0x420   :  { %3460 = vmatpush.msra.mxu3 %v7064_v1  ;;  %3421 = vmatpush.msra.mxu1 %v7070_v14  ;;  %v200_v1 = vadd.f32 %v8749_v17, %v8403_v6 }
 0x421   :  { %3402 = vmatpush.msra.mxu0 %v7080_v32  ;;  %3442 = vmatpush.msra.mxu2 %v7084_v38  ;;  %v8750_v32 = vld [vmem:[#allocation140_spill] sm:$0xff] }
 0x422   :  { %3461 = vmatpush.msra.mxu3 %v7076_v7  ;;  %3422 = vmatpush.msra.mxu1 %v7082_v51 }
 0x423   :  { %3403 = vmatpush.msra.mxu0 %v7092_v54  ;;  %3443 = vmatpush.msra.mxu2 %v7096_v28  ;;  %v8752_v54 = vld [vmem:[#allocation142_spill] sm:$0xff]  ;;  %v8754_v28 = vld [vmem:[#allocation144_spill] sm:$0xff] }
 0x424   :  { %3462 = vmatpush.msra.mxu3 %v7088_v8  ;;  %3423 = vmatpush.msra.mxu1 %v7094_v22  ;;  %v8751_v8 = vld [vmem:[#allocation141_spill] sm:$0xff]  ;;  %v8753_v22 = vld [vmem:[#allocation143_spill] sm:$0xff] }
 0x425   :  { %3404 = vmatpush.msra.mxu0 %v7104_v39  ;;  %3444 = vmatpush.msra.mxu2 %v7108_v62  ;;  %v8756_v39 = vld [vmem:[#allocation146_spill] sm:$0xff]  ;;  %v8758_v62 = vld [vmem:[#allocation39_spill] sm:$0xff] }
 0x426   :  { %3463 = vmatpush.msra.mxu3 %v7100_v3  ;;  %3424 = vmatpush.msra.mxu1 %v7106_v40  ;;  %v8755_v3 = vld [vmem:[#allocation145_spill] sm:$0xff] }
 0x427   :  { %3405 = vmatpush.msra.mxu0 %v7116_v0  ;;  %3445 = vmatpush.msra.mxu2 %v7120_v47  ;;  %v8757_v40 = vld [vmem:[#allocation93_spill] sm:$0xff]  ;;  %v8759_v0 = vld [vmem:[#allocation147_spill] sm:$0xff] }
 0x428   :  { %3464 = vmatpush.msra.mxu3 %v7112_v27  ;;  %3425 = vmatpush.msra.mxu1 %v7118_v61  ;;  %v258_v27 = vadd.f32 %v8758_v62, %v8757_v40  ;;  %v8760_v61 = vld [vmem:[#allocation148_spill] sm:$0xff] }
 0x429   :  { %3406 = vmatpush.msra.mxu0 %v7132_v31  ;;  %3446 = vmatpush.msra.mxu2 %v7136_v58  ;;  %v8762_v31 = vld [vmem:[#allocation150_spill] sm:$0xff]  ;;  %v8763_v58 = vld [vmem:[#allocation24_spill] sm:$0xff] }
 0x42a   :  { %3465 = vmatpush.msra.mxu3 %v7124_v4  ;;  %3426 = vmatpush.msra.mxu1 %v7134_v33  ;;  %v8761_v4 = vld [vmem:[#allocation149_spill] sm:$0xff] }
 0x42b   :  { %3545 = vmatpush.msrb.mxu0 %v7142_v9  ;;  %3585 = vmatpush.msrb.mxu2 %v7148_v21  ;;  %v8765_v9 = vld [vmem:[#allocation27_spill] sm:$0xff] }
 0x42c   :  { %3466 = vmatpush.msra.mxu3 %v7140_v41  ;;  %3565 = vmatpush.msrb.mxu1 %v7144_v43  ;;  %v8764_v41 = vld [vmem:[#allocation25_spill] sm:$0xff]  ;;  %v8766_v43 = vld [vmem:[#allocation68_spill] sm:$0xff] }
 0x42d   :  { %3546 = vmatpush.msrb.mxu0 %v8751_v8  ;;  %3586 = vmatpush.msrb.mxu2 %v8753_v22  ;;  %v8774_v8 = vld [vmem:[#allocation79_spill] sm:$0xff]  ;;  %v8776_v22 = vld [vmem:[#allocation20_spill] sm:$0xff] }
 0x42e   :  { %3605 = vmatpush.msrb.mxu3 %v8750_v32  ;;  %3566 = vmatpush.msrb.mxu1 %v8752_v54  ;;  %v8772_v32 = vld [vmem:[#allocation29_spill] sm:$0xff]  ;;  %v8775_v54 = vld [vmem:[#allocation76_spill] sm:$0xff] }
 0x42f   :  { %3547 = vmatpush.msrb.mxu0 %v8755_v3  ;;  %3587 = vmatpush.msrb.mxu2 %v8759_v0  ;;  %v8778_v3 = vld [vmem:[#allocation21_spill] sm:$0xff] }
 0x430   :  { %3606 = vmatpush.msrb.mxu3 %v8754_v28  ;;  %3567 = vmatpush.msrb.mxu1 %v8756_v39  ;;  %v8777_v28 = vld [vmem:[#allocation77_spill] sm:$0xff] }
 0x431   :  { %3548 = vmatpush.msrb.mxu0 %v8761_v4  ;;  %3588 = vmatpush.msrb.mxu2 %v8763_v58  ;;  %v8780_v0 = vld [vmem:[#allocation81_spill] sm:$0xff]  ;;  %v8783_v58 = vld [vmem:[#allocation82_spill] sm:$0xff] }
 0x432   :  { %3607 = vmatpush.msrb.mxu3 %v8760_v61  ;;  %3568 = vmatpush.msrb.mxu1 %v8762_v31  ;;  %v8782_v31 = vld [vmem:[#allocation57_spill] sm:$0xff] }
 0x433   :  { %3549 = vmatpush.msrb.mxu0 %v8765_v9  ;;  %3589 = vmatpush.msrb.mxu2 %v8767_v46 }
 0x434   :  { %3608 = vmatpush.msrb.mxu3 %v8764_v41  ;;  %3569 = vmatpush.msrb.mxu1 %v8766_v43  ;;  %v8784_v41 = vld [vmem:[#allocation83_spill] sm:$0xff]  ;;  %v8785_v43 = vld [vmem:[#allocation114_spill] sm:$0xff] }
 0x483   :  { %v2942_v25 = vpop.f32.mrf.mxu0  ;;  %v2962_v14 = vpop.f32.mrf.mxu1 }
 0x484   :  { %v3005_v36 = vadd.f32 %v2942_v25, %v171_v53  ;;  %v3006_v7 = vadd.f32 %v2962_v14, %v200_v1  ;;  %v8768_v53 = vld [vmem:[#allocation26_spill] sm:$0xff]  ;;  %v8769_v1 = vld [vmem:[#allocation71_spill] sm:$0xff] }
 0x485   :  { %3609 = vmatpush.msrb.mxu3 %v8768_v53  ;;  %3550 = vmatpush.msrb.mxu0 %v8769_v1  ;;  %v8770_v25 = vld [vmem:[#allocation70_spill] sm:$0xff]  ;;  %v8787_v53 = vld [vmem:[#allocation84_spill] sm:$0xff] }
 0x486   :  { %v4435_v51 = vmul.f32 -1.442695, %v3005_v36  ;;  %v4436_v38 = vmul.f32 -1.442695, %v3006_v7  ;;  %3570 = vmatpush.msrb.mxu1 %v8770_v25  ;;  %v8771_v7 = vld [vmem:[#allocation28_spill] sm:$0xff] }
 0x487   :  { %3590 = vmatpush.msrb.mxu2 %v8771_v7  ;;  %3610 = vmatpush.msrb.mxu3 %v8772_v32  ;;  %v8789_v7 = vld [vmem:[#allocation31_spill] sm:$0xff]  ;;  %v8790_v32 = vld [vmem:[#allocation86_spill] sm:$0xff] }
 0x488   :  { %4655 = vpow2.f32 %v4435_v51  ;;  %3571 = vmatpush.msrb.mxu1 %v8774_v8 }
 0x489   :  { %4657 = vpow2.f32 %v4436_v38  ;;  %v8773_v38 = vld [vmem:[#allocation78_spill] sm:$0xff]  ;;  %3591 = vmatpush.msrb.mxu2 %v8775_v54  ;;  %3611 = vmatpush.msrb.mxu3 %v8776_v22  ;;  %v8791_v54 = vld [vmem:[#allocation87_spill] sm:$0xff]  ;;  %v8792_v22 = vld [vmem:[#allocation88_spill] sm:$0xff] }
 0x48a   :  { %v3002_v47 = vpop.f32.mrf.mxu3  ;;  %3551 = vmatpush.msrb.mxu0 %v8773_v38  ;;  %3572 = vmatpush.msrb.mxu1 %v8778_v3  ;;  %v2982_v61 = vpop.f32.mrf.mxu2 }
 0x48b   :  { %v3008_v33 = vadd.f32 %v3002_v47, %v258_v27  ;;  %v8779_v27 = vld [vmem:[#allocation80_spill] sm:$0xff]  ;;  %3612 = vmatpush.msrb.mxu3 %v8780_v0  ;;  %v8795_v0 = vld [vmem:[#allocation91_spill] sm:$0xff] }
 0x48c   :  { %3552 = vmatpush.msrb.mxu0 %v8777_v28  ;;  %3592 = vmatpush.msrb.mxu2 %v8779_v27  ;;  %v8781_v47 = vld [vmem:[#allocation56_spill] sm:$0xff] }
 0x48d   :  { %v4437_v21 = vmul.f32 -1.442695, %v3008_v33  ;;  %3573 = vmatpush.msrb.mxu1 %v8784_v41 }
 0x48e   :  { %v4656_v17 = vpop.eup %4655  ;;  %3553 = vmatpush.msrb.mxu0 %v8783_v58  ;;  %3593 = vmatpush.msrb.mxu2 %v8787_v53  ;;  %v8798_v58 = vld [vmem:[#allocation23_spill] sm:$0xff] }
 0x48f   :  { %v4658_v14 = vpop.eup %4657  ;;  %v7652_v36 = vadd.f32 1.0, %v4656_v17  ;;  %4659 = vpow2.f32 %v4437_v21  ;;  %v8786_v21 = vld [vmem:[#allocation38_spill] sm:$0xff]  ;;  %v8788_v17 = vld [vmem:[#allocation85_spill] sm:$0xff]  ;;  %3574 = vmatpush.msrb.mxu1 %v8790_v32  ;;  %v8800_v53 = vld [vmem:[#allocation95_spill] sm:$0xff] }
 0x490   :  { %v7656_v51 = vadd.f32 1.0, %v4658_v14  ;;  %v229_v46 = vadd.f32 %v8786_v21, %v8785_v43  ;;  %3613 = vmatpush.msrb.mxu3 %v8788_v17  ;;  %3554 = vmatpush.msrb.mxu0 %v8789_v7  ;;  %v8799_v21 = vld [vmem:[#allocation59_spill] sm:$0xff]  ;;  %v8801_v17 = vld [vmem:[#allocation96_spill] sm:$0xff]  ;;  %v8802_v32 = vld [vmem:[#allocation97_spill] sm:$0xff] }
 0x491   :  { %4661 = vrcp.f32 %v7652_v36  ;;  %3594 = vmatpush.msrb.mxu2 %v8791_v54  ;;  %v8803_v54 = vld [vmem:[#allocation98_spill] sm:$0xff]  ;;  %vm3172_vm15 = vweird.f32 %v7652_v36 }
 0x492   :  { %4663 = vrcp.f32 %v7656_v51  ;;  %v3007_v8 = vadd.f32 %v2982_v61, %v229_v46  ;;  %3614 = vmatpush.msrb.mxu3 %v8792_v22  ;;  %v8796_v61 = vld [vmem:[#allocation92_spill] sm:$0xff]  ;;  %vm3191_vm9 = vweird.f32 %v7656_v51 }
 0x493   :  { %v3096_v39 = vpop.f32.mrf.mxu0  ;;  %v3116_v62 = vpop.f32.mrf.mxu1  ;;  %3595 = vmatpush.msrb.mxu2 %v8795_v0 }
 0x494   :  { %v3159_v4 = vadd.f32 %v3096_v39, %v8781_v47  ;;  %v3160_v33 = vadd.f32 %v3116_v62, %v8782_v31  ;;  %v8793_v39 = vld [vmem:[#allocation89_spill] sm:$0xff]  ;;  %v8794_v62 = vld [vmem:[#allocation90_spill] sm:$0xff]  ;;  %3615 = vmatpush.msrb.mxu3 %v8796_v61  ;;  %v3296_v0 = vpop.permute.xlu1 %3295 }
 0x495   :  { %v4660_v9 = vpop.eup %4659  ;;  %3555 = vmatpush.msrb.mxu0 %v8793_v39  ;;  %3575 = vmatpush.msrb.mxu1 %v8794_v62  ;;  %v8805_v39 = vld [vmem:[#allocation64_spill] sm:$0xff]  ;;  %v8808_v61 = vld [vmem:[#allocation65_spill] sm:$0xff]  ;;  %vm3297_vm4 = vcmp.eq.s32.totalorder %v3296_v0, 1 }
 0x496   :  { %v7676_v1 = vadd.f32 1.0, %v4660_v9  ;;  %v4438_v25 = vmul.f32 -1.442695, %v3159_v4  ;;  %v4439_v14 = vmul.f32 -1.442695, %v3160_v33  ;;  %v8797_v33 = vld [vmem:[#allocation94_spill] sm:$0xff]  ;;  %3596 = vmatpush.msrb.mxu2 %v8800_v53  ;;  %3616 = vmatpush.msrb.mxu3 %v8801_v17 }
 0x497   :  { %v4662_v38 = vpop.eup %4661  ;;  %v3176_v4 = vand.u32 2147483647, %v7652_v36  ;;  %3556 = vmatpush.msrb.mxu0 %v8797_v33  ;;  %3576 = vmatpush.msrb.mxu1 %v8798_v58  ;;  %v3178_v9 = vand.u32 2147483648, %v7652_v36 }
 0x498   :  { %v7682_v28 = vpop.eup %4663  ;;  %v3168_v3 = vmul.f32 %v4662_v38, %v7652_v36  ;;  %4665 = vrcp.f32 %v7676_v1  ;;  %vm3173_vm13 = vweird.f32 %v4662_v38  ;;  %3617 = vmatpush.msrb.mxu3 %v8805_v39  ;;  %v3217_v33 = vand.u32 2147483648, %v7676_v1 }
 0x499   :  { %v3187_v27 = vmul.f32 %v7682_v28, %v7656_v51  ;;  %4667 = vpow2.f32 %v4438_v25  ;;  %v3197_v25 = vand.u32 2147483648, %v7656_v51  ;;  %3557 = vmatpush.msrb.mxu0 %v8802_v32  ;;  %3577 = vmatpush.msrb.mxu1 %v8803_v54  ;;  %vm3192_vm14 = vweird.f32 %v7682_v28  ;;  %vm7718_vm1 = vmor %vm3172_vm15, %vm3173_vm13 }
 0x49a   :  { %v3169_v47 = vsub.f32 1.0, %v3168_v3  ;;  %4669 = vpow2.f32 %v4439_v14  ;;  %v3156_v31 = vpop.f32.mrf.mxu3  ;;  %v3195_v14 = vand.u32 2147483647, %v7656_v51  ;;  %v8804_v3 = vld [vmem:[#allocation99_spill] sm:$0xff]  ;;  %vm7711_vm0 = vcmp.eq.f32.partialorder %v3176_v4, 8.507059e+37  ;;  %v8812_v4 = vld [vmem:[#allocation101_spill] sm:$0xff]  ;;  %vm3193_vm2 = vmor %vm3191_vm9, %vm3192_vm14 }
 0x49b   :  { %v3188_v41 = vsub.f32 1.0, %v3187_v27  ;;  %4671 = vtanh.f32 %v3007_v8  ;;  %v3162_v46 = vadd.f32 %v3156_v31, %v8799_v21  ;;  %3597 = vmatpush.msrb.mxu2 %v8804_v3  ;;  %3558 = vmatpush.msrb.mxu0 %v8808_v61  ;;  %v3179_v58 = vor.u32 1.1754944e-38, %v3178_v9  ;;  %v8813_v21 = vld [vmem:[#allocation102_spill] sm:$0xff] }
 0x49c   :  { %v3170_v7 = vmul.f32 %v4662_v38, %v3169_v47  ;;  %v8809_v47 = vld [vmem:[#allocation100_spill] sm:$0xff]  ;;  %3618 = vmatpush.msrb.mxu3 %v8813_v21  ;;  %v3198_v53 = vor.u32 1.1754944e-38, %v3197_v25  ;;  %vm3196_vm3 = vcmp.eq.f32.partialorder %v3195_v14, 8.507059e+37  ;;  %v8814_v25 = vld [vmem:[#allocation103_spill] sm:$0xff]  ;;  %vm3211_vm6 = vweird.f32 %v7676_v1 }
 0x49d   :  { %v3189_v22 = vmul.f32 %v7682_v28, %v3188_v41  ;;  %v4440_v8 = vmul.f32 -1.442695, %v3162_v46  ;;  %3578 = vmatpush.msrb.mxu1 %v8809_v47  ;;  %3598 = vmatpush.msrb.mxu2 %v8812_v4  ;;  %v3136_v47 = vpop.f32.mrf.mxu2  ;;  %v8820_v4 = vld [vmem:[#allocation58_spill] sm:$0xff] }
 0x49e   :  { %v7707_v62 = vpop.eup %4665  ;;  %v3171_v27 = vadd.f32 %v4662_v38, %v3170_v7  ;;  %3559 = vmatpush.msrb.mxu0 %v7347_v55  ;;  %3619 = vmatpush.msrb.mxu3 %v8814_v25  ;;  %v8815_v55 = vld [vmem:[#allocation104_spill] sm:$0xff]  ;;  %v3161_v21 = vadd.f32 %v3136_v47, %v8820_v4  ;;  %v3218_v25 = vor.u32 1.1754944e-38, %v3217_v33 }
 0x49f   :  { %v4668_v31 = vpop.eup %4667  ;;  %v3190_v41 = vadd.f32 %v7682_v28, %v3189_v22  ;;  %v3207_v36 = vmul.f32 %v7707_v62, %v7676_v1  ;;  %4673 = vpow2.f32 %v4440_v8  ;;  %3579 = vmatpush.msrb.mxu1 %v7349_v34  ;;  %3599 = vmatpush.msrb.mxu2 %v7368_v20  ;;  %v8816_v34 = vld [vmem:[#allocation105_spill] sm:$0xff]  ;;  %v8817_v8 = vld [vmem:[#allocation30_spill] sm:$0xff]  ;;  %vm3212_vm5 = vweird.f32 %v7707_v62 }
 0x4a0   :  { %v4670_v46 = vpop.eup %4669  ;;  %v3175_v9 = vsel %vm7718_vm1, %v4662_v38, %v3171_v27  ;;  %v7733_v17 = vadd.f32 1.0, %v4668_v31  ;;  %3560 = vmatpush.msrb.mxu0 %v8815_v55  ;;  %v8819_v27 = vld [vmem:[#allocation72_spill] sm:$0xff]  ;;  %vm3213_vm7 = vmor %vm3211_vm6, %vm3212_vm5 }
 0x4a1   :  { %v4672_v7 = vpop.eup %4671  ;;  %v3180_v32 = vsel %vm7711_vm0, %v3179_v58, %v3175_v9  ;;  %v3194_v54 = vsel %vm3193_vm2, %v7682_v28, %v3190_v41  ;;  %v3208_v22 = vsub.f32 1.0, %v3207_v36  ;;  %v7740_v51 = vadd.f32 1.0, %v4670_v46  ;;  %3580 = vmatpush.msrb.mxu1 %v8816_v34  ;;  %v8818_v28 = vld [vmem:[#allocation106_spill] sm:$0xff]  ;;  %3620 = vmatpush.msrb.mxu3 %v8819_v27 }
 0x4a2   :  { %v3199_v38 = vsel %vm3196_vm3, %v3198_v53, %v3194_v54  ;;  %v3222_v14 = vmul.f32 %v4672_v7, %v3180_v32  ;;  %4675 = vrcp.f32 %v7733_v17  ;;  %3600 = vmatpush.msrb.mxu2 %v8818_v28  ;;  %v3215_v46 = vand.u32 2147483647, %v7676_v1 }
 0x4a3   :  { %v3221_v3 = vmul.f32 %v3199_v38, %v8817_v8  ;;  %v3209_v39 = vmul.f32 %v7707_v62, %v3208_v22  ;;  %4677 = vrcp.f32 %v7740_v51  ;;  %v3241_v22 = vand.u32 2147483648, %v7733_v17 }
 0x4a4   :  { %vm3216_vm8 = vcmp.eq.f32.partialorder %v3215_v46, 8.507059e+37  ;;  %v3239_v34 = vand.u32 2147483647, %v7733_v17  ;;  %vm3254_vm12 = vweird.f32 %v7740_v51  ;;  %vm3235_vm13 = vweird.f32 %v7733_v17 }
 0x4a5   :  { %v4674_v20 = vpop.eup %4673  ;;  %v3223_v61 = vadd.f32 %v3222_v14, %v3221_v3  ;;  %v3210_v31 = vadd.f32 %v7707_v62, %v3209_v39  ;;  %v3260_v14 = vand.u32 2147483648, %v7740_v51  ;;  %v3258_v39 = vand.u32 2147483647, %v7740_v51 }
 0x4a6   :  { %v7755_v58 = vadd.f32 1.0, %v4674_v20  ;;  %v3242_v20 = vor.u32 1.1754944e-38, %v3241_v22  ;;  %vm3240_vm15 = vcmp.eq.f32.partialorder %v3239_v34, 8.507059e+37  ;;  %v8826_v22 = vld [vmem:[#allocation111_spill] sm:$0xff]  ;;  %v3806_v34 = vld [vmem:[#allocation8 + $0x68] sm:$0xff] }
 0x4a7   :  { %4679 = vtanh.f32 %v3223_v61  ;;  %v7759_v41 = vsel %vm3297_vm4, %v3223_v61, %v8817_v8  ;;  %v3214_v32 = vsel %vm3213_vm7, %v7707_v62, %v3210_v31  ;;  %v3261_v4 = vor.u32 1.1754944e-38, %v3260_v14  ;;  %v3813_v14 = vld [vmem:[#allocation8 + $0xa0] sm:$0xff] }
 0x4a8   :  { %v4676_v36 = vpop.eup %4675  ;;  %4681 = vrcp.f32 %v7755_v58  ;;  %v3219_v8 = vsel %vm3216_vm8, %v3218_v25, %v3214_v32  ;;  %vm3259_vm0 = vcmp.eq.f32.partialorder %v3258_v39, 8.507059e+37  ;;  %vm3274_vm3 = vweird.f32 %v7755_v58  ;;  %v3801_v39 = vld [vmem:[#allocation8 + $0x40] sm:$0xff] }
 0x4a9   :  { %v4678_v53 = vpop.eup %4677  ;;  %v3231_v9 = vmul.f32 %v4676_v36, %v7733_v17  ;;  %4683 = vtanh.f32 %v3161_v21  ;;  %vm3236_vm10 = vweird.f32 %v4676_v36 }
 0x4aa   :  { %v3250_v7 = vmul.f32 %v4678_v53, %v7740_v51  ;;  %vm3255_vm11 = vweird.f32 %v4678_v53  ;;  %vm3237_vm14 = vmor %vm3235_vm13, %vm3236_vm10 }
 0x4ab   :  { %v3232_v54 = vsub.f32 1.0, %v3231_v9  ;;  %vm3256_vm9 = vmor %vm3254_vm12, %vm3255_vm11 }
 0x4ac   :  { %v3251_v38 = vsub.f32 1.0, %v3250_v7 }
 0x4ad   :  { %v4680_v1 = vpop.eup %4679  ;;  %v3233_v55 = vmul.f32 %v4676_v36, %v3232_v54  ;;  %v8825_v54 = vld [vmem:[#allocation110_spill] sm:$0xff] }
 0x4ae   :  { %v3252_v3 = vmul.f32 %v4678_v53, %v3251_v38  ;;  %v3225_v62 = vmul.f32 %v4680_v1, %v3219_v8  ;;  %v7772_v28 = vpop.eup %4681  ;;  %v8829_v38 = vld [vmem:[#allocation115_spill] sm:$0xff]  ;;  %v3815_v1 = vld [vmem:[#allocation8 + $0xb0] sm:$0xff] }
 0x4af   :  { %v3234_v27 = vadd.f32 %v4676_v36, %v3233_v55  ;;  %v3270_v47 = vmul.f32 %v7772_v28, %v7755_v58  ;;  %v4684_v17 = vpop.eup %4683  ;;  %vm3275_vm2 = vweird.f32 %v7772_v28  ;;  %v3805_v55 = vld [vmem:[#allocation8 + $0x60] sm:$0xff]  ;;  %v3807_v8 = vld [vmem:[#allocation8 + $0x70] sm:$0xff] }
 0x4b0   :  { %v3253_v61 = vadd.f32 %v4678_v53, %v3252_v3  ;;  %v7780_v31 = vsel %vm3297_vm4, %v3225_v62, %v7450_v29  ;;  %v3311_v33 = vsel %vm3297_vm4, %v3225_v62, 0.0  ;;  %vm3276_vm4 = vmor %vm3274_vm3, %vm3275_vm2  ;;  %v3808_v3 = vld [vmem:[#allocation8 + $0x78] sm:$0xff]  ;;  %v3802_v62 = vld [vmem:[#allocation8 + $0x48] sm:$0xff] }
 0x4b1   :  { %v3238_v21 = vsel %vm3237_vm14, %v4676_v36, %v3234_v27  ;;  %3313 = vst [vmem:[#allocation13 + $0x28] sm:$0xff] %v3311_v33  ;;  %3407 = vmatmul.f32.vlgmr.msra.gmra.mxu0 %v7780_v31  ;;  %3427 = vmatmul.f32.vlgmr.msra.gmra.mxu1 %v7780_v31  ;;  %v3271_v9 = vsub.f32 1.0, %v3270_v47  ;;  %v3804_v27 = vld [vmem:[#allocation8 + $0x58] sm:$0xff]  ;;  %v3799_v47 = vld [vmem:[#allocation8 + $0x30] sm:$0xff] }
 0x4b2   :  { %v3243_v51 = vsel %vm3240_vm15, %v3242_v20, %v3238_v21  ;;  %v3257_v46 = vsel %vm3256_vm9, %v4678_v53, %v3253_v61  ;;  %3447 = vmatmul.f32.vlgmr.msra.gmra.mxu2 %v7780_v31  ;;  %3467 = vmatmul.f32.vlgmr.msra.gmra.mxu3 %v7780_v31  ;;  %v3305_v53 = vpop.permute.xlu2 %3304  ;;  %v3797_v20 = vld [vmem:[#allocation8 + $0x20] sm:$0xff]  ;;  %v3798_v61 = vld [vmem:[#allocation8 + $0x28] sm:$0xff]  ;;  %v3800_v33 = vld [vmem:[#allocation8 + $0x38] sm:$0xff] }
 0x4b3   :  { %v3262_v29 = vsel %vm3259_vm0, %v3261_v4, %v3257_v46  ;;  %v3285_v0 = vmul.f32 %v4684_v17, %v3243_v51  ;;  %3857 = vmatpush.msra.mxu0 %v7453_v50  ;;  %3877 = vmatpush.msra.mxu1 %v7455_v24  ;;  %v3272_v7 = vmul.f32 %v7772_v28, %v3271_v9  ;;  %vm3306_vm1 = vcmp.eq.s32.totalorder %v3305_v53, 1  ;;  %v8821_v24 = vld [vmem:[#allocation73_spill] sm:$0xff]  ;;  %v8832_v4 = vld [vmem:[#allocation40_spill] sm:$0xff] }
 0x4b4   :  { %v3284_v36 = vmul.f32 %v3262_v29, %v7508_v49  ;;  %3897 = vmatpush.msra.mxu2 %v7461_v57  ;;  %3917 = vmatpush.msra.mxu3 %v7463_v5  ;;  %v8822_v57 = vld [vmem:[#allocation107_spill] sm:$0xff]  ;;  %v3280_v5 = vand.u32 2147483648, %v7755_v58  ;;  %v174_v21 = vadd.f32 %v8832_v4, %v8401_v15  ;;  %v8833_v17 = vld [vmem:[#allocation41_spill] sm:$0xff]  ;;  %v3793_v46 = vld [vmem:[#allocation8] sm:$0xff] }
 0x4b5   :  { %3858 = vmatpush.msra.mxu0 %v7467_v44  ;;  %3878 = vmatpush.msra.mxu1 %v7469_v26  ;;  %v3273_v50 = vadd.f32 %v7772_v28, %v3272_v7  ;;  %v8823_v44 = vld [vmem:[#allocation108_spill] sm:$0xff]  ;;  %v8824_v26 = vld [vmem:[#allocation109_spill] sm:$0xff]  ;;  %v203_v51 = vadd.f32 %v8833_v17, %v8403_v6  ;;  %v3795_v29 = vld [vmem:[#allocation8 + $0x10] sm:$0xff] }
 0x4b6   :  { %v3286_v32 = vadd.f32 %v3285_v0, %v3284_v36  ;;  %3898 = vmatpush.msra.mxu2 %v7475_v59  ;;  %3918 = vmatpush.msra.mxu3 %v7477_v37  ;;  %v3278_v37 = vand.u32 2147483647, %v7755_v58  ;;  %v3794_v9 = vld [vmem:[#allocation8 + $0x8] sm:$0xff]  ;;  %v3796_v7 = vld [vmem:[#allocation8 + $0x18] sm:$0xff]  ;;  %v4007_v53 = vld [vmem:[#allocation11 + $0x1e0] sm:$0xff] }
 0x4b7   :  { %3859 = vmatpush.msra.mxu0 %v8821_v24  ;;  %3879 = vmatpush.msra.mxu1 %v8822_v57  ;;  %v3277_v25 = vsel %vm3276_vm4, %v7772_v28, %v3273_v50  ;;  %v3803_v28 = vld [vmem:[#allocation8 + $0x50] sm:$0xff]  ;;  %v3975_v4 = vld [vmem:[#allocation11 + $0xe0] sm:$0xff] }
 0x4b8   :  { %4685 = vtanh.f32 %v3286_v32  ;;  %3899 = vmatpush.msra.mxu2 %v8823_v44  ;;  %3919 = vmatpush.msra.mxu3 %v8824_v26  ;;  %v7806_v59 = vsel %vm3306_vm1, %v3286_v32, %v7508_v49  ;;  %v3281_v49 = vor.u32 1.1754944e-38, %v3280_v5  ;;  %vm3279_vm5 = vcmp.eq.f32.partialorder %v3278_v37, 8.507059e+37  ;;  %v4008_v32 = vld [vmem:[#allocation11 + $0x1e8] sm:$0xff]  ;;  %v4009_v57 = vld [vmem:[#allocation11 + $0x1f0] sm:$0xff]  ;;  %v4010_v5 = vld [vmem:[#allocation11 + $0x1f8] sm:$0xff] }
 0x4b9   :  { %3860 = vmatpush.msra.mxu0 %v8825_v54  ;;  %3880 = vmatpush.msra.mxu1 %v8826_v22  ;;  %v4003_v44 = vld [vmem:[#allocation11 + $0x1c0] sm:$0xff]  ;;  %v4004_v26 = vld [vmem:[#allocation11 + $0x1c8] sm:$0xff]  ;;  %v4005_v37 = vld [vmem:[#allocation11 + $0x1d0] sm:$0xff] }
 0x4ba   :  { %3900 = vmatpush.msra.mxu2 %v7502_v10  ;;  %3920 = vmatpush.msra.mxu3 %v7504_v19  ;;  %v3282_v10 = vsel %vm3279_vm5, %v3281_v49, %v3277_v25  ;;  %v4006_v25 = vld [vmem:[#allocation11 + $0x1d8] sm:$0xff]  ;;  %v3999_v49 = vld [vmem:[#allocation11 + $0x1a0] sm:$0xff]  ;;  %v3977_v17 = vld [vmem:[#allocation11 + $0xf0] sm:$0xff] }
 0x4bb   :  { %3861 = vmatpush.msra.mxu0 %v7514_v16  ;;  %3881 = vmatpush.msra.mxu1 %v7516_v2  ;;  %v8827_v16 = vld [vmem:[#allocation112_spill] sm:$0xff]  ;;  %v8828_v2 = vld [vmem:[#allocation113_spill] sm:$0xff] }
 0x4bc   :  { %3901 = vmatpush.msra.mxu2 %v7526_v42  ;;  %3921 = vmatpush.msra.mxu3 %v7528_v35  ;;  %v8830_v42 = vld [vmem:[#allocation22_spill] sm:$0xff]  ;;  %v8831_v35 = vld [vmem:[#allocation67_spill] sm:$0xff] }
 0x4bd   :  { %3862 = vmatpush.msra.mxu0 %v7548_v30  ;;  %3882 = vmatpush.msra.mxu1 %v7550_v11 }
 0x4be   :  { %v4686_v58 = vpop.eup %4685  ;;  %3902 = vmatpush.msra.mxu2 %v7552_v56  ;;  %3922 = vmatpush.msra.mxu3 %v7556_v63  ;;  %v3817_v56 = vld [vmem:[#allocation8 + $0xc0] sm:$0xff]  ;;  %v3818_v63 = vld [vmem:[#allocation8 + $0xc8] sm:$0xff] }
 0x4bf   :  { %v3288_v19 = vmul.f32 %v4686_v58, %v3282_v10  ;;  %3863 = vmatpush.msra.mxu0 %v8827_v16  ;;  %3883 = vmatpush.msra.mxu1 %v8828_v2  ;;  %v4000_v58 = vld [vmem:[#allocation11 + $0x1a8] sm:$0xff]  ;;  %v4001_v10 = vld [vmem:[#allocation11 + $0x1b0] sm:$0xff]  ;;  %v8834_v16 = vld [vmem:[#allocation43_spill] sm:$0xff] }
 0x4c0   :  { %3903 = vmatpush.msra.mxu2 %v8829_v38  ;;  %3923 = vmatpush.msra.mxu3 %v8830_v42  ;;  %v261_v2 = vadd.f32 %v8834_v16, %v8757_v40  ;;  %v3995_v38 = vld [vmem:[#allocation11 + $0x180] sm:$0xff]  ;;  %v3996_v42 = vld [vmem:[#allocation11 + $0x188] sm:$0xff]  ;;  %v3969_v16 = vld [vmem:[#allocation11 + $0xb0] sm:$0xff] }
 0x4c1   :  { %v7829_v30 = vsel %vm3306_vm1, %v3288_v19, %v8831_v35  ;;  %v3314_v11 = vsel %vm3306_vm1, %v3288_v19, 0.0  ;;  %3864 = vmatpush.msra.mxu0 %v7572_v13  ;;  %3884 = vmatpush.msra.mxu1 %v7574_v48  ;;  %v3819_v13 = vld [vmem:[#allocation8 + $0xd0] sm:$0xff]  ;;  %v3820_v48 = vld [vmem:[#allocation8 + $0xd8] sm:$0xff] }
 0x4c2   :  { %3316 = vst [vmem:[#allocation14 + $0x10] sm:$0xff] %v3314_v11  ;;  %3561 = vmatmul.f32.vlgmr.msrb.gmra.mxu0 %v7829_v30  ;;  %3581 = vmatmul.f32.vlgmr.msrb.gmra.mxu1 %v7829_v30  ;;  %v4002_v19 = vld [vmem:[#allocation11 + $0x1b8] sm:$0xff]  ;;  %v3997_v35 = vld [vmem:[#allocation11 + $0x190] sm:$0xff] }
 0x4c3   :  { %3601 = vmatmul.f32.vlgmr.msrb.gmra.mxu2 %v7829_v30  ;;  %3621 = vmatmul.f32.vlgmr.msrb.gmra.mxu3 %v7829_v30 }
 0x4c4   :  { %3904 = vmatpush.msra.mxu2 %v7576_v45  ;;  %3924 = vmatpush.msra.mxu3 %v7580_v18  ;;  %v3814_v45 = vld [vmem:[#allocation8 + $0xa8] sm:$0xff]  ;;  %v3816_v18 = vld [vmem:[#allocation8 + $0xb8] sm:$0xff] }
 0x4c5   :  { %3865 = vmatpush.msra.mxu0 %v7584_v23  ;;  %3885 = vmatpush.msra.mxu1 %v7586_v52  ;;  %v3809_v23 = vld [vmem:[#allocation8 + $0x80] sm:$0xff]  ;;  %v3810_v52 = vld [vmem:[#allocation8 + $0x88] sm:$0xff] }
 0x4c6   :  { %3905 = vmatpush.msra.mxu2 %v7588_v12  ;;  %3925 = vmatpush.msra.mxu3 %v7592_v60  ;;  %v3811_v12 = vld [vmem:[#allocation8 + $0x90] sm:$0xff]  ;;  %v3812_v60 = vld [vmem:[#allocation8 + $0x98] sm:$0xff] }
 0x4c7   :  { %3866 = vmatpush.msra.mxu0 %v3817_v56  ;;  %3886 = vmatpush.msra.mxu1 %v3818_v63  ;;  %v3998_v56 = vld [vmem:[#allocation11 + $0x198] sm:$0xff] }
 0x4c8   :  { %3906 = vmatpush.msra.mxu2 %v3819_v13  ;;  %3926 = vmatpush.msra.mxu3 %v3820_v48  ;;  %v3991_v13 = vld [vmem:[#allocation11 + $0x160] sm:$0xff]  ;;  %v3992_v48 = vld [vmem:[#allocation11 + $0x168] sm:$0xff] }
 0x4c9   :  { %3867 = vmatpush.msra.mxu0 %v3813_v14  ;;  %3887 = vmatpush.msra.mxu1 %v3814_v45  ;;  %v3993_v14 = vld [vmem:[#allocation11 + $0x170] sm:$0xff]  ;;  %v3994_v45 = vld [vmem:[#allocation11 + $0x178] sm:$0xff] }
 0x4ca   :  { %3907 = vmatpush.msra.mxu2 %v3815_v1  ;;  %3927 = vmatpush.msra.mxu3 %v3816_v18  ;;  %v3987_v18 = vld [vmem:[#allocation11 + $0x140] sm:$0xff] }
 0x4cb   :  { %3868 = vmatpush.msra.mxu0 %v3809_v23  ;;  %3888 = vmatpush.msra.mxu1 %v3810_v52  ;;  %v3988_v23 = vld [vmem:[#allocation11 + $0x148] sm:$0xff]  ;;  %v3989_v52 = vld [vmem:[#allocation11 + $0x150] sm:$0xff] }
 0x4cc   :  { %3908 = vmatpush.msra.mxu2 %v3811_v12  ;;  %3928 = vmatpush.msra.mxu3 %v3812_v60  ;;  %v3990_v60 = vld [vmem:[#allocation11 + $0x158] sm:$0xff] }
 0x4cd   :  { %3869 = vmatpush.msra.mxu0 %v3805_v55  ;;  %3889 = vmatpush.msra.mxu1 %v3806_v34 }
 0x4ce   :  { %3909 = vmatpush.msra.mxu2 %v3807_v8  ;;  %3929 = vmatpush.msra.mxu3 %v3808_v3  ;;  %v3983_v8 = vld [vmem:[#allocation11 + $0x120] sm:$0xff]  ;;  %v3984_v3 = vld [vmem:[#allocation11 + $0x128] sm:$0xff] }
 0x4cf   :  { %3870 = vmatpush.msra.mxu0 %v3801_v39  ;;  %3890 = vmatpush.msra.mxu1 %v3802_v62  ;;  %v3985_v39 = vld [vmem:[#allocation11 + $0x130] sm:$0xff] }
 0x4d0   :  { %3910 = vmatpush.msra.mxu2 %v3803_v28  ;;  %3930 = vmatpush.msra.mxu3 %v3804_v27  ;;  %v3986_v28 = vld [vmem:[#allocation11 + $0x138] sm:$0xff]  ;;  %v3979_v27 = vld [vmem:[#allocation11 + $0x100] sm:$0xff] }
 0x4d1   :  { %3871 = vmatpush.msra.mxu0 %v3797_v20  ;;  %3891 = vmatpush.msra.mxu1 %v3798_v61  ;;  %v3980_v20 = vld [vmem:[#allocation11 + $0x108] sm:$0xff]  ;;  %v3981_v61 = vld [vmem:[#allocation11 + $0x110] sm:$0xff] }
 0x4d2   :  { %3911 = vmatpush.msra.mxu2 %v3799_v47  ;;  %3931 = vmatpush.msra.mxu3 %v3800_v33  ;;  %v3982_v47 = vld [vmem:[#allocation11 + $0x118] sm:$0xff] }
 0x4d3   :  { %3872 = vmatpush.msra.mxu0 %v3793_v46  ;;  %3892 = vmatpush.msra.mxu1 %v3794_v9  ;;  %v3978_v9 = vld [vmem:[#allocation11 + $0xf8] sm:$0xff] }
 0x4d4   :  { %3912 = vmatpush.msra.mxu2 %v3795_v29  ;;  %3932 = vmatpush.msra.mxu3 %v3796_v7  ;;  %v8836_v7 = vld [vmem:[#allocation52_spill] sm:$0xff] }
 0x4d5   :  { %4011 = vmatpush.msrb.mxu0 %v4007_v53  ;;  %4031 = vmatpush.msrb.mxu1 %v4008_v32  ;;  %v8837_v32 = vld [vmem:[#allocation53_spill] sm:$0xff] }
 0x4d6   :  { %4051 = vmatpush.msrb.mxu2 %v4009_v57  ;;  %4071 = vmatpush.msrb.mxu3 %v4010_v5  ;;  %v3972_v57 = vld [vmem:[#allocation11 + $0xc8] sm:$0xff]  ;;  %v3973_v5 = vld [vmem:[#allocation11 + $0xd0] sm:$0xff] }
 0x4d7   :  { %4012 = vmatpush.msrb.mxu0 %v4003_v44  ;;  %4032 = vmatpush.msrb.mxu1 %v4004_v26  ;;  %v3974_v26 = vld [vmem:[#allocation11 + $0xd8] sm:$0xff] }
 0x4d8   :  { %4052 = vmatpush.msrb.mxu2 %v4005_v37  ;;  %4072 = vmatpush.msrb.mxu3 %v4006_v25 }
 0x4d9   :  { %4013 = vmatpush.msrb.mxu0 %v3999_v49  ;;  %4033 = vmatpush.msrb.mxu1 %v4000_v58  ;;  %v3967_v49 = vld [vmem:[#allocation11 + $0xa0] sm:$0xff]  ;;  %v3968_v58 = vld [vmem:[#allocation11 + $0xa8] sm:$0xff] }
 0x4da   :  { %4053 = vmatpush.msrb.mxu2 %v4001_v10  ;;  %4073 = vmatpush.msrb.mxu3 %v4002_v19 }
 0x4db   :  { %4014 = vmatpush.msrb.mxu0 %v3995_v38  ;;  %4034 = vmatpush.msrb.mxu1 %v3996_v42  ;;  %v3963_v38 = vld [vmem:[#allocation11 + $0x80] sm:$0xff] }
 0x4dc   :  { %4054 = vmatpush.msrb.mxu2 %v3997_v35  ;;  %4074 = vmatpush.msrb.mxu3 %v3998_v56  ;;  %v3964_v35 = vld [vmem:[#allocation11 + $0x88] sm:$0xff] }
 0x4dd   :  { %4015 = vmatpush.msrb.mxu0 %v3991_v13  ;;  %4035 = vmatpush.msrb.mxu1 %v3992_v48  ;;  %v3966_v13 = vld [vmem:[#allocation11 + $0x98] sm:$0xff]  ;;  %v3959_v48 = vld [vmem:[#allocation11 + $0x60] sm:$0xff] }
 0x4de   :  { %4055 = vmatpush.msrb.mxu2 %v3993_v14  ;;  %4075 = vmatpush.msrb.mxu3 %v3994_v45 }
 0x4df   :  { %4016 = vmatpush.msrb.mxu0 %v3987_v18  ;;  %4036 = vmatpush.msrb.mxu1 %v3988_v23  ;;  %v3960_v23 = vld [vmem:[#allocation11 + $0x68] sm:$0xff] }
 0x4e0   :  { %4056 = vmatpush.msrb.mxu2 %v3989_v52  ;;  %4076 = vmatpush.msrb.mxu3 %v3990_v60  ;;  %v3961_v52 = vld [vmem:[#allocation11 + $0x70] sm:$0xff] }
 0x4e1   :  { %4017 = vmatpush.msrb.mxu0 %v3983_v8  ;;  %4037 = vmatpush.msrb.mxu1 %v3984_v3  ;;  %v8838_v8 = vld [vmem:[#allocation55_spill] sm:$0xff] }
 0x4e2   :  { %4057 = vmatpush.msrb.mxu2 %v3985_v39  ;;  %4077 = vmatpush.msrb.mxu3 %v3986_v28  ;;  %v3955_v39 = vld [vmem:[#allocation11 + $0x40] sm:$0xff]  ;;  %v3956_v28 = vld [vmem:[#allocation11 + $0x48] sm:$0xff] }
 0x4e3   :  { %4018 = vmatpush.msrb.mxu0 %v3979_v27  ;;  %4038 = vmatpush.msrb.mxu1 %v3980_v20  ;;  %v3957_v20 = vld [vmem:[#allocation11 + $0x50] sm:$0xff] }
 0x4e4   :  { %4058 = vmatpush.msrb.mxu2 %v3981_v61  ;;  %4078 = vmatpush.msrb.mxu3 %v3982_v47  ;;  %v3958_v61 = vld [vmem:[#allocation11 + $0x58] sm:$0xff] }
 0x4e5   :  { %4019 = vmatpush.msrb.mxu0 %v3975_v4 }
 0x4e6   :  { %4059 = vmatpush.msrb.mxu2 %v3977_v17  ;;  %4079 = vmatpush.msrb.mxu3 %v3978_v9  ;;  %v3951_v17 = vld [vmem:[#allocation11 + $0x20] sm:$0xff] }
 0x4e8   :  { %4060 = vmatpush.msrb.mxu2 %v3973_v5  ;;  %4080 = vmatpush.msrb.mxu3 %v3974_v26  ;;  %v3947_v26 = vld [vmem:[#allocation11] sm:$0xff] }
 0x4ea   :  { %4061 = vmatpush.msrb.mxu2 %v3969_v16 }
 0x52e   :  { %v3408_v0 = vpop.f32.mrf.mxu0  ;;  %v3428_v36 = vpop.f32.mrf.mxu1 }
 0x52f   :  { %v3471_v50 = vadd.f32 %v3408_v0, %v174_v21  ;;  %v3472_v24 = vadd.f32 %v3428_v36, %v203_v51  ;;  %v3976_v21 = vld [vmem:[#allocation11 + $0xe8] sm:$0xff]  ;;  %v8835_v0 = vld [vmem:[#allocation42_spill] sm:$0xff] }
 0x530   :  { %v232_v36 = vadd.f32 %v8835_v0, %v8785_v43  ;;  %4039 = vmatpush.msrb.mxu1 %v3976_v21 }
 0x531   :  { %v4443_v54 = vmul.f32 -1.442695, %v3471_v50  ;;  %v4444_v22 = vmul.f32 -1.442695, %v3472_v24  ;;  %v3971_v24 = vld [vmem:[#allocation11 + $0xc0] sm:$0xff] }
 0x532   :  { %4020 = vmatpush.msrb.mxu0 %v3971_v24  ;;  %4040 = vmatpush.msrb.mxu1 %v3972_v57 }
 0x533   :  { %4687 = vpow2.f32 %v4443_v54 }
 0x534   :  { %4689 = vpow2.f32 %v4444_v22  ;;  %4021 = vmatpush.msrb.mxu0 %v3967_v49  ;;  %4041 = vmatpush.msrb.mxu1 %v3968_v58  ;;  %v3949_v58 = vld [vmem:[#allocation11 + $0x10] sm:$0xff] }
 0x535   :  { %v3468_v11 = vpop.f32.mrf.mxu3  ;;  %v3448_v33 = vpop.f32.mrf.mxu2 }
 0x536   :  { %v3474_v63 = vadd.f32 %v3468_v11, %v261_v2  ;;  %v3473_v54 = vadd.f32 %v3448_v33, %v232_v36  ;;  %v3970_v2 = vld [vmem:[#allocation11 + $0xb8] sm:$0xff]  ;;  %v3965_v11 = vld [vmem:[#allocation11 + $0x90] sm:$0xff]  ;;  %4022 = vmatpush.msrb.mxu0 %v3963_v38  ;;  %4042 = vmatpush.msrb.mxu1 %v3964_v35 }
 0x537   :  { %4081 = vmatpush.msrb.mxu3 %v3970_v2  ;;  %4062 = vmatpush.msrb.mxu2 %v3965_v11 }
 0x538   :  { %v4445_v1 = vmul.f32 -1.442695, %v3474_v63  ;;  %4023 = vmatpush.msrb.mxu0 %v3959_v48  ;;  %4043 = vmatpush.msrb.mxu1 %v3960_v23 }
 0x539   :  { %v4688_v12 = vpop.eup %4687  ;;  %4082 = vmatpush.msrb.mxu3 %v3966_v13  ;;  %4063 = vmatpush.msrb.mxu2 %v3961_v52 }
 0x53a   :  { %v4690_v55 = vpop.eup %4689  ;;  %v7850_v34 = vadd.f32 1.0, %v4688_v12  ;;  %4691 = vpow2.f32 %v4445_v1  ;;  %v3962_v12 = vld [vmem:[#allocation11 + $0x78] sm:$0xff]  ;;  %4024 = vmatpush.msrb.mxu0 %v3955_v39  ;;  %4044 = vmatpush.msrb.mxu1 %v3956_v28 }
 0x53b   :  { %v7852_v62 = vadd.f32 1.0, %v4690_v55  ;;  %4083 = vmatpush.msrb.mxu3 %v3962_v12  ;;  %4064 = vmatpush.msrb.mxu2 %v3957_v20 }
 0x53c   :  { %4693 = vrcp.f32 %v7850_v34  ;;  %v3642_v63 = vand.u32 2147483647, %v7850_v34  ;;  %v3644_v1 = vand.u32 2147483648, %v7850_v34  ;;  %vm3638_vm8 = vweird.f32 %v7850_v34  ;;  %4025 = vmatpush.msrb.mxu0 %v3951_v17 }
 0x53d   :  { %4695 = vrcp.f32 %v7852_v62  ;;  %v3663_v45 = vand.u32 2147483648, %v7852_v62  ;;  %v3661_v55 = vand.u32 2147483647, %v7852_v62  ;;  %vm3657_vm10 = vweird.f32 %v7852_v62  ;;  %4084 = vmatpush.msrb.mxu3 %v3958_v61 }
 0x53e   :  { %vm7885_vm11 = vcmp.eq.f32.partialorder %v3642_v63, 8.507059e+37  ;;  %v3645_v0 = vor.u32 1.1754944e-38, %v3644_v1  ;;  %4026 = vmatpush.msrb.mxu0 %v3947_v26  ;;  %v8847_v1 = vld [vmem:[#allocation54_spill] sm:$0xff] }
 0x53f   :  { %v3562_v51 = vpop.f32.mrf.mxu0  ;;  %v3582_v46 = vpop.f32.mrf.mxu1  ;;  %v3664_v9 = vor.u32 1.1754944e-38, %v3663_v45  ;;  %vm7911_vm14 = vcmp.eq.f32.partialorder %v3661_v55, 8.507059e+37 }
 0x540   :  { %v4692_v29 = vpop.eup %4691  ;;  %v3625_v53 = vadd.f32 %v3562_v51, %v8836_v7  ;;  %v3626_v50 = vadd.f32 %v3582_v46, %v8837_v32  ;;  %v3952_v51 = vld [vmem:[#allocation11 + $0x28] sm:$0xff]  ;;  %v3954_v32 = vld [vmem:[#allocation11 + $0x38] sm:$0xff] }
 0x541   :  { %v7860_v44 = vadd.f32 1.0, %v4692_v29  ;;  %4045 = vmatpush.msrb.mxu1 %v3952_v51  ;;  %4085 = vmatpush.msrb.mxu3 %v3954_v32 }
 0x542   :  { %v7862_v37 = vpop.eup %4693  ;;  %v4446_v22 = vmul.f32 -1.442695, %v3625_v53  ;;  %v4447_v25 = vmul.f32 -1.442695, %v3626_v50  ;;  %v3953_v53 = vld [vmem:[#allocation11 + $0x30] sm:$0xff] }
 0x543   :  { %v7864_v10 = vpop.eup %4695  ;;  %v3634_v19 = vmul.f32 %v7862_v37, %v7850_v34  ;;  %4697 = vrcp.f32 %v7860_v44  ;;  %vm3639_vm6 = vweird.f32 %v7862_v37  ;;  %4065 = vmatpush.msrb.mxu2 %v3953_v53  ;;  %v3683_v13 = vand.u32 2147483648, %v7860_v44 }
 0x544   :  { %v3653_v42 = vmul.f32 %v7864_v10, %v7852_v62  ;;  %4699 = vpow2.f32 %v4446_v22  ;;  %vm3658_vm7 = vweird.f32 %v7864_v10  ;;  %vm7893_vm12 = vmor %vm3638_vm8, %vm3639_vm6  ;;  %vm3677_vm0 = vweird.f32 %v7860_v44 }
 0x545   :  { %v3635_v56 = vsub.f32 1.0, %v3634_v19  ;;  %4701 = vpow2.f32 %v4447_v25  ;;  %vm7904_vm13 = vmor %vm3657_vm10, %vm3658_vm7  ;;  %v3950_v19 = vld [vmem:[#allocation11 + $0x18] sm:$0xff]  ;;  %4066 = vmatpush.msrb.mxu2 %v3949_v58  ;;  %v3681_v23 = vand.u32 2147483647, %v7860_v44 }
 0x546   :  { %v3654_v14 = vsub.f32 1.0, %v3653_v42  ;;  %4703 = vtanh.f32 %v3473_v54  ;;  %v3622_v18 = vpop.f32.mrf.mxu3  ;;  %v3948_v54 = vld [vmem:[#allocation11 + $0x8] sm:$0xff]  ;;  %4086 = vmatpush.msrb.mxu3 %v3950_v19  ;;  %v3602_v11 = vpop.f32.mrf.mxu2 }
 0x547   :  { %v3636_v60 = vmul.f32 %v7862_v37, %v3635_v56  ;;  %v3628_v3 = vadd.f32 %v3622_v18, %v8838_v8  ;;  %4046 = vmatpush.msrb.mxu1 %v3948_v54  ;;  %v3627_v18 = vadd.f32 %v3602_v11, %v8847_v1  ;;  %vm3682_vm2 = vcmp.eq.f32.partialorder %v3681_v23, 8.507059e+37 }
 0x548   :  { %v3655_v27 = vmul.f32 %v7864_v10, %v3654_v14 }
 0x549   :  { %v7881_v47 = vpop.eup %4697  ;;  %v3637_v33 = vadd.f32 %v7862_v37, %v3636_v60  ;;  %v4448_v21 = vmul.f32 -1.442695, %v3628_v3  ;;  %v3684_v3 = vor.u32 1.1754944e-38, %v3683_v13 }
 0x54a   :  { %v4700_v46 = vpop.eup %4699  ;;  %v3656_v36 = vadd.f32 %v7864_v10, %v3655_v27  ;;  %v3673_v7 = vmul.f32 %v7881_v47, %v7860_v44  ;;  %vm3678_vm15 = vweird.f32 %v7881_v47 }
 0x54b   :  { %v4702_v50 = vpop.eup %4701  ;;  %v3641_v24 = vsel %vm7893_vm12, %v7862_v37, %v3637_v33  ;;  %v7915_v5 = vadd.f32 1.0, %v4700_v46  ;;  %4705 = vpow2.f32 %v4448_v21  ;;  %vm3679_vm1 = vmor %vm3677_vm0, %vm3678_vm15 }
 0x54c   :  { %v4704_v62 = vpop.eup %4703  ;;  %v3646_v22 = vsel %vm7885_vm11, %v3645_v0, %v3641_v24  ;;  %v3660_v25 = vsel %vm7904_vm13, %v7864_v10, %v3656_v36  ;;  %v3674_v37 = vsub.f32 1.0, %v3673_v7  ;;  %v7922_v49 = vadd.f32 1.0, %v4702_v50  ;;  %v3762_v10 = vpop.permute.xlu0 %3761 }
 0x54d   :  { %v3665_v16 = vsel %vm7911_vm14, %v3664_v9, %v3660_v25  ;;  %v3688_v2 = vmul.f32 %v4704_v62, %v3646_v22  ;;  %4707 = vrcp.f32 %v7915_v5  ;;  %vm3763_vm9 = vcmp.eq.s32.totalorder %v3762_v10, 1 }
 0x54e   :  { %v3687_v38 = vmul.f32 %v3665_v16, %v7759_v41  ;;  %v3675_v42 = vmul.f32 %v7881_v47, %v3674_v37  ;;  %4709 = vrcp.f32 %v7922_v49  ;;  %v3726_v28 = vand.u32 2147483648, %v7922_v49 }
 0x54f   :  { %v3705_v20 = vand.u32 2147483647, %v7915_v5  ;;  %v3724_v4 = vand.u32 2147483647, %v7922_v49  ;;  %vm3720_vm5 = vweird.f32 %v7922_v49  ;;  %vm3701_vm6 = vweird.f32 %v7915_v5 }
 0x550   :  { %v3689_v35 = vadd.f32 %v3688_v2, %v3687_v38  ;;  %v3676_v63 = vadd.f32 %v7881_v47, %v3675_v42  ;;  %v3727_v36 = vor.u32 1.1754944e-38, %v3726_v28 }
 0x551   :  { %v4706_v56 = vpop.eup %4705  ;;  %vm3706_vm10 = vcmp.eq.f32.partialorder %v3705_v20, 8.507059e+37  ;;  %vm3725_vm11 = vcmp.eq.f32.partialorder %v3724_v4, 8.507059e+37 }
 0x552   :  { %4711 = vtanh.f32 %v3689_v35  ;;  %v7933_v48 = vadd.f32 1.0, %v4706_v56  ;;  %v7937_v14 = vsel %vm3763_vm9, %v3689_v35, %v7759_v41  ;;  %v3680_v55 = vsel %vm3679_vm1, %v7881_v47, %v3676_v63  ;;  %v8849_v35 = vld [vmem:[#allocation45_spill] sm:$0xff] }
 0x553   :  { %v4708_v45 = vpop.eup %4707  ;;  %v3707_v41 = vand.u32 2147483648, %v7915_v5  ;;  %v3685_v61 = vsel %vm3682_vm2, %v3684_v3, %v3680_v55  ;;  %v205_v11 = vadd.f32 %v8849_v35, %v8403_v6 }
 0x554   :  { %v4710_v52 = vpop.eup %4709  ;;  %v3697_v12 = vmul.f32 %v4708_v45, %v7915_v5  ;;  %4713 = vrcp.f32 %v7933_v48  ;;  %vm3702_vm3 = vweird.f32 %v4708_v45  ;;  %v3771_v5 = vpop.permute.xlu1 %3770  ;;  %v3746_v22 = vand.u32 2147483648, %v7933_v48 }
 0x555   :  { %v3716_v60 = vmul.f32 %v4710_v52, %v7922_v49  ;;  %4715 = vtanh.f32 %v3627_v18  ;;  %vm3721_vm4 = vweird.f32 %v4710_v52  ;;  %v3708_v51 = vor.u32 1.1754944e-38, %v3707_v41  ;;  %vm3703_vm7 = vmor %vm3701_vm6, %vm3702_vm3  ;;  %v8851_v41 = vld [vmem:[#allocation46_spill] sm:$0xff] }
 0x556   :  { %v3698_v8 = vsub.f32 1.0, %v3697_v12  ;;  %vm3722_vm8 = vmor %vm3720_vm5, %vm3721_vm4  ;;  %vm3772_vm12 = vcmp.eq.s32.totalorder %v3771_v5, 1  ;;  %vm3740_vm14 = vweird.f32 %v7933_v48  ;;  %v3744_v37 = vand.u32 2147483647, %v7933_v48 }
 0x557   :  { %v3717_v39 = vsub.f32 1.0, %v3716_v60  ;;  %v3747_v58 = vor.u32 1.1754944e-38, %v3746_v22  ;;  %v234_v3 = vadd.f32 %v8851_v41, %v8785_v43 }
 0x558   :  { %v4712_v44 = vpop.eup %4711  ;;  %v3699_v27 = vmul.f32 %v4708_v45, %v3698_v8  ;;  %vm3745_vm15 = vcmp.eq.f32.partialorder %v3744_v37, 8.507059e+37 }
 0x559   :  { %v3718_v33 = vmul.f32 %v4710_v52, %v3717_v39  ;;  %v3691_v47 = vmul.f32 %v4712_v44, %v3685_v61  ;;  %v8853_v61 = vld [vmem:[#allocation49_spill] sm:$0xff] }
 0x55a   :  { %v4714_v21 = vpop.eup %4713  ;;  %v3700_v17 = vadd.f32 %v4708_v45, %v3699_v27 }
 0x55b   :  { %v3719_v46 = vadd.f32 %v4710_v52, %v3718_v33  ;;  %v3736_v9 = vmul.f32 %v4714_v21, %v7933_v48  ;;  %v3764_v29 = vsel %vm3763_vm9, %v3691_v47, %v7780_v31  ;;  %v3777_v0 = vsel %vm3763_vm9, %v3691_v47, 0.0  ;;  %v4716_v53 = vpop.eup %4715 }
 0x55c   :  { %v3704_v7 = vsel %vm3703_vm7, %v4708_v45, %v3700_v17  ;;  %3779 = vst [vmem:[#allocation13 + $0x30] sm:$0xff] %v3777_v0  ;;  %3873 = vmatmul.f32.vlgmr.msra.gmra.mxu0 %v3764_v29  ;;  %3893 = vmatmul.f32.vlgmr.msra.gmra.mxu1 %v3764_v29  ;;  %vm3741_vm13 = vweird.f32 %v4714_v21 }
 0x55d   :  { %v3709_v32 = vsel %vm3706_vm10, %v3708_v51, %v3704_v7  ;;  %v3723_v50 = vsel %vm3722_vm8, %v4710_v52, %v3719_v46  ;;  %v3737_v34 = vsub.f32 1.0, %v3736_v9  ;;  %3913 = vmatmul.f32.vlgmr.msra.gmra.mxu2 %v3764_v29  ;;  %3933 = vmatmul.f32.vlgmr.msra.gmra.mxu3 %v3764_v29  ;;  %vm3742_vm9 = vmor %vm3740_vm14, %vm3741_vm13 }
 0x55e   :  { %v3728_v24 = vsel %vm3725_vm11, %v3727_v36, %v3723_v50  ;;  %v3751_v57 = vmul.f32 %v4716_v53, %v3709_v32 }
 0x55f   :  { %v3750_v31 = vmul.f32 %v3728_v24, %v7806_v59  ;;  %v3738_v26 = vmul.f32 %v4714_v21, %v3737_v34  ;;  %v8854_v34 = vld [vmem:[#allocation51_spill] sm:$0xff] }
 0x561   :  { %v3752_v54 = vadd.f32 %v3751_v57, %v3750_v31  ;;  %v3739_v62 = vadd.f32 %v4714_v21, %v3738_v26 }
 0x563   :  { %4717 = vtanh.f32 %v3752_v54  ;;  %v7960_v25 = vsel %vm3772_vm12, %v3752_v54, %v7806_v59  ;;  %v3743_v49 = vsel %vm3742_vm9, %v4714_v21, %v3739_v62  ;;  %v8848_v59 = vld [vmem:[#allocation44_spill] sm:$0xff] }
 0x564   :  { %v3748_v16 = vsel %vm3745_vm15, %v3747_v58, %v3743_v49  ;;  %v176_v10 = vadd.f32 %v8848_v59, %v8401_v15 }
 0x569   :  { %v4718_v19 = vpop.eup %4717 }
 0x56a   :  { %v3754_v2 = vmul.f32 %v4718_v19, %v3748_v16 }
 0x56c   :  { %v3773_v38 = vsel %vm3772_vm12, %v3754_v2, %v7829_v30  ;;  %v3780_v42 = vsel %vm3772_vm12, %v3754_v2, 0.0  ;;  %v8850_v30 = vld [vmem:[#allocation47_spill] sm:$0xff] }
 0x56d   :  { %3782 = vst [vmem:[#allocation14 + $0x8] sm:$0xff] %v3780_v42  ;;  %4027 = vmatmul.f32.vlgmr.msrb.gmra.mxu0 %v3773_v38  ;;  %4047 = vmatmul.f32.vlgmr.msrb.gmra.mxu1 %v3773_v38  ;;  %v263_v18 = vadd.f32 %v8850_v30, %v8757_v40  ;;  %v8852_v40 = vld [vmem:[#allocation48_spill] sm:$0xff] }
 0x56e   :  { %4067 = vmatmul.f32.vlgmr.msrb.gmra.mxu2 %v3773_v38  ;;  %4087 = vmatmul.f32.vlgmr.msrb.gmra.mxu3 %v3773_v38 }
 0x5d9   :  { %v3874_v56 = vpop.f32.mrf.mxu0  ;;  %v3894_v63 = vpop.f32.mrf.mxu1 }
 0x5da   :  { %v3937_v13 = vadd.f32 %v3874_v56, %v176_v10  ;;  %v3938_v48 = vadd.f32 %v3894_v63, %v205_v11 }
 0x5dc   :  { %v4451_v45 = vmul.f32 -1.442695, %v3937_v13  ;;  %v4452_v1 = vmul.f32 -1.442695, %v3938_v48 }
 0x5de   :  { %4719 = vpow2.f32 %v4451_v45 }
 0x5df   :  { %4721 = vpow2.f32 %v4452_v1 }
 0x5e0   :  { %v3934_v23 = vpop.f32.mrf.mxu3  ;;  %v3914_v6 = vpop.f32.mrf.mxu2 }
 0x5e1   :  { %v3940_v52 = vadd.f32 %v3934_v23, %v263_v18  ;;  %v3939_v27 = vadd.f32 %v3914_v6, %v234_v3  ;;  %v8855_v23 = vld [vmem:[#allocation50_spill] sm:$0xff]  ;;  %v4228_v3 = vpop.permute.xlu2 %4227 }
 0x5e2   :  { %vm4229_vm14 = vcmp.eq.s32.totalorder %v4228_v3, 1 }
 0x5e3   :  { %v4453_v12 = vmul.f32 -1.442695, %v3940_v52 }
 0x5e4   :  { %v4720_v60 = vpop.eup %4719 }
 0x5e5   :  { %v4722_v55 = vpop.eup %4721  ;;  %v4098_v15 = vadd.f32 1.0, %v4720_v60  ;;  %4723 = vpow2.f32 %v4453_v12 }
 0x5e6   :  { %v4117_v8 = vadd.f32 1.0, %v4722_v55 }
 0x5e7   :  { %4725 = vrcp.f32 %v4098_v15  ;;  %v4108_v29 = vand.u32 2147483647, %v4098_v15  ;;  %v4110_v7 = vand.u32 2147483648, %v4098_v15  ;;  %vm4104_vm3 = vweird.f32 %v4098_v15 }
 0x5e8   :  { %4727 = vrcp.f32 %v4117_v8  ;;  %v4129_v36 = vand.u32 2147483648, %v4117_v8  ;;  %v4127_v50 = vand.u32 2147483647, %v4117_v8  ;;  %vm4123_vm2 = vweird.f32 %v4117_v8 }
 0x5e9   :  { %vm4109_vm5 = vcmp.eq.f32.partialorder %v4108_v29, 8.507059e+37  ;;  %v4111_v62 = vor.u32 1.1754944e-38, %v4110_v7 }
 0x5ea   :  { %v4028_v39 = vpop.f32.mrf.mxu0  ;;  %v4048_v28 = vpop.f32.mrf.mxu1  ;;  %v4130_v58 = vor.u32 1.1754944e-38, %v4129_v36  ;;  %vm4128_vm7 = vcmp.eq.f32.partialorder %v4127_v50, 8.507059e+37 }
 0x5eb   :  { %v4724_v44 = vpop.eup %4723  ;;  %v4091_v20 = vadd.f32 %v4028_v39, %v8852_v40  ;;  %v4092_v33 = vadd.f32 %v4048_v28, %v8853_v61 }
 0x5ec   :  { %v7977_v4 = vadd.f32 1.0, %v4724_v44 }
 0x5ed   :  { %v4726_v47 = vpop.eup %4725  ;;  %v4454_v21 = vmul.f32 -1.442695, %v4091_v20  ;;  %v4455_v17 = vmul.f32 -1.442695, %v4092_v33 }
 0x5ee   :  { %v4728_v51 = vpop.eup %4727  ;;  %v4100_v46 = vmul.f32 %v4726_v47, %v4098_v15  ;;  %4729 = vrcp.f32 %v7977_v4  ;;  %vm4105_vm0 = vweird.f32 %v4726_v47  ;;  %v4149_v30 = vand.u32 2147483648, %v7977_v4 }
 0x5ef   :  { %v4119_v9 = vmul.f32 %v4728_v51, %v4117_v8  ;;  %4731 = vtanh.f32 %v3939_v27  ;;  %vm4124_vm1 = vweird.f32 %v4728_v51  ;;  %vm4106_vm4 = vmor %vm4104_vm3, %vm4105_vm0  ;;  %vm4143_vm10 = vweird.f32 %v7977_v4 }
 0x5f0   :  { %v4101_v43 = vsub.f32 1.0, %v4100_v46  ;;  %4733 = vpow2.f32 %v4454_v21  ;;  %vm4125_vm6 = vmor %vm4123_vm2, %vm4124_vm1  ;;  %v4147_v18 = vand.u32 2147483647, %v7977_v4  ;;  %v4150_v6 = vor.u32 1.1754944e-38, %v4149_v30 }
 0x5f1   :  { %v4120_v0 = vsub.f32 1.0, %v4119_v9  ;;  %4735 = vpow2.f32 %v4455_v17  ;;  %v4088_v53 = vpop.f32.mrf.mxu3  ;;  %v4068_v48 = vpop.f32.mrf.mxu2 }
 0x5f2   :  { %v4102_v32 = vmul.f32 %v4726_v47, %v4101_v43  ;;  %v4094_v24 = vadd.f32 %v4088_v53, %v8854_v34  ;;  %v4093_v52 = vadd.f32 %v4068_v48, %v8855_v23  ;;  %vm4148_vm12 = vcmp.eq.f32.partialorder %v4147_v18, 8.507059e+37 }
 0x5f3   :  { %v4121_v57 = vmul.f32 %v4728_v51, %v4120_v0 }
 0x5f4   :  { %v4730_v5 = vpop.eup %4729  ;;  %v4103_v31 = vadd.f32 %v4726_v47, %v4102_v32  ;;  %v4456_v26 = vmul.f32 -1.442695, %v4094_v24 }
 0x5f5   :  { %v4732_v54 = vpop.eup %4731  ;;  %v4122_v22 = vadd.f32 %v4728_v51, %v4121_v57  ;;  %v4139_v37 = vmul.f32 %v4730_v5, %v7977_v4  ;;  %vm4144_vm8 = vweird.f32 %v4730_v5 }
 0x5f6   :  { %v4734_v49 = vpop.eup %4733  ;;  %v4107_v19 = vsel %vm4106_vm4, %v4726_v47, %v4103_v31  ;;  %4737 = vpow2.f32 %v4456_v26  ;;  %vm7995_vm11 = vmor %vm4143_vm10, %vm4144_vm8 }
 0x5f7   :  { %v4736_v16 = vpop.eup %4735  ;;  %v4112_v2 = vsel %vm4109_vm5, %v4111_v62, %v4107_v19  ;;  %v4126_v38 = vsel %vm4125_vm6, %v4728_v51, %v4122_v22  ;;  %v4140_v42 = vsub.f32 1.0, %v4139_v37  ;;  %v7982_v59 = vadd.f32 1.0, %v4734_v49  ;;  %v4237_v49 = vpop.permute.xlu0 %4236 }
 0x5f8   :  { %v4131_v10 = vsel %vm4128_vm7, %v4130_v58, %v4126_v38  ;;  %v4154_v35 = vmul.f32 %v4732_v54, %v4112_v2  ;;  %v7984_v11 = vadd.f32 1.0, %v4736_v16  ;;  %vm4238_vm10 = vcmp.eq.s32.totalorder %v4237_v49, 1 }
 0x5f9   :  { %v4153_v56 = vmul.f32 %v4131_v10, %v7937_v14  ;;  %v4141_v63 = vmul.f32 %v4730_v5, %v4140_v42  ;;  %4739 = vrcp.f32 %v7982_v59  ;;  %v4173_v20 = vand.u32 2147483648, %v7982_v59 }
 0x5fa   :  { %4741 = vrcp.f32 %v7984_v11  ;;  %v4192_v40 = vand.u32 2147483648, %v7984_v11  ;;  %v4171_v4 = vand.u32 2147483647, %v7982_v59  ;;  %v4190_v21 = vand.u32 2147483647, %v7984_v11 }
 0x5fb   :  { %v4155_v13 = vadd.f32 %v4154_v35, %v4153_v56  ;;  %v4142_v1 = vadd.f32 %v4730_v5, %v4141_v63  ;;  %vm4167_vm15 = vweird.f32 %v7982_v59  ;;  %vm4186_vm0 = vweird.f32 %v7984_v11 }
 0x5fc   :  { %v4738_v45 = vpop.eup %4737  ;;  %v4174_v9 = vor.u32 1.1754944e-38, %v4173_v20  ;;  %v4193_v36 = vor.u32 1.1754944e-38, %v4192_v40  ;;  %vm4172_vm3 = vcmp.eq.f32.partialorder %v4171_v4, 8.507059e+37  ;;  %vm4191_vm4 = vcmp.eq.f32.partialorder %v4190_v21, 8.507059e+37 }
 0x5fd   :  { %4743 = vtanh.f32 %v4155_v13  ;;  %v7993_v14 = vadd.f32 1.0, %v4738_v45  ;;  %v4146_v15 = vsel %vm7995_vm11, %v4730_v5, %v4142_v1 }
 0x5fe   :  { %v4151_v44 = vsel %vm4148_vm12, %v4150_v6, %v4146_v15 }
 0x5ff   :  { %v4740_v12 = vpop.eup %4739  ;;  %4745 = vrcp.f32 %v7993_v14  ;;  %v4212_v54 = vand.u32 2147483648, %v7993_v14  ;;  %vm4206_vm6 = vweird.f32 %v7993_v14  ;;  %v4210_v62 = vand.u32 2147483647, %v7993_v14 }
 0x600   :  { %v4742_v55 = vpop.eup %4741  ;;  %v4163_v8 = vmul.f32 %v4740_v12, %v7982_v59  ;;  %4747 = vtanh.f32 %v4093_v52  ;;  %vm4168_vm13 = vweird.f32 %v4740_v12 }
 0x601   :  { %v4182_v41 = vmul.f32 %v4742_v55, %v7984_v11  ;;  %vm4187_vm9 = vweird.f32 %v4742_v55  ;;  %vm4169_vm1 = vmor %vm4167_vm15, %vm4168_vm13  ;;  %v4213_v37 = vor.u32 1.1754944e-38, %v4212_v54  ;;  %vm4211_vm8 = vcmp.eq.f32.partialorder %v4210_v62, 8.507059e+37 }
 0x602   :  { %v4164_v39 = vsub.f32 1.0, %v4163_v8  ;;  %vm4188_vm2 = vmor %vm4186_vm0, %vm4187_vm9 }
 0x603   :  { %v4744_v28 = vpop.eup %4743  ;;  %v4183_v27 = vsub.f32 1.0, %v4182_v41 }
 0x604   :  { %v4157_v61 = vmul.f32 %v4744_v28, %v4151_v44  ;;  %v4165_v33 = vmul.f32 %v4740_v12, %v4164_v39 }
 0x605   :  { %v4184_v47 = vmul.f32 %v4742_v55, %v4183_v27  ;;  %v4746_v17 = vpop.eup %4745 }
 0x606   :  { %v4243_v51 = vsel %vm4229_vm14, %v4157_v61, 0.0  ;;  %v4166_v46 = vadd.f32 %v4740_v12, %v4165_v33  ;;  %v4202_v29 = vmul.f32 %v4746_v17, %v7993_v14  ;;  %v4748_v0 = vpop.eup %4747  ;;  %vm4207_vm5 = vweird.f32 %v4746_v17 }
 0x607   :  { %4245 = vst [vmem:[#allocation13 + $0x38] sm:$0xff] %v4243_v51  ;;  %v4185_v43 = vadd.f32 %v4742_v55, %v4184_v47  ;;  %vm4208_vm7 = vmor %vm4206_vm6, %vm4207_vm5 }
 0x608   :  { %v4170_v7 = vsel %vm4169_vm1, %v4740_v12, %v4166_v46  ;;  %4260 = dma.vmem_to_hbm [thread:$0]  %s4253_s22, 1024, %s4255_s24, [#allocation10], %s4862_s8, %s4862_s8, %s4863_s25   ;;  %v4203_v50 = vsub.f32 1.0, %v4202_v29 }
 0x609   :  { %v4175_v53 = vsel %vm4172_vm3, %v4174_v9, %v4170_v7  ;;  %v4189_v32 = vsel %vm4188_vm2, %v4742_v55, %v4185_v43 }
 0x60a   :  { %v4194_v34 = vsel %vm4191_vm4, %v4193_v36, %v4189_v32  ;;  %v4217_v24 = vmul.f32 %v4748_v0, %v4175_v53  ;;  %v4204_v5 = vmul.f32 %v4746_v17, %v4203_v50 }
 0x60b   :  { %v4216_v57 = vmul.f32 %v4194_v34, %v7960_v25 }
 0x60c   :  { %v4205_v26 = vadd.f32 %v4746_v17, %v4204_v5 }
 0x60d   :  { %v4218_v31 = vadd.f32 %v4217_v24, %v4216_v57 }
 0x60e   :  { %v4209_v22 = vsel %vm4208_vm7, %v4746_v17, %v4205_v26 }
 0x60f   :  { %4749 = vtanh.f32 %v4218_v31  ;;  %v4214_v58 = vsel %vm4211_vm8, %v4213_v37, %v4209_v22 }
 0x615   :  { %v4750_v25 = vpop.eup %4749 }
 0x616   :  { %v4220_v19 = vmul.f32 %v4750_v25, %v4214_v58 }
 0x618   :  { %v4246_v16 = vsel %vm4238_vm10, %v4220_v19, 0.0 }
 0x619   :  { %4247 = vst [vmem:[#allocation14] sm:$0xff] %v4246_v16 }
 0x61a   :  { %4273 = dma.vmem_to_hbm [thread:$0]  %s4266_s0, 1024, %s4268_s29, [#allocation15], %s4862_s8, %s4862_s8, %s4863_s25  }
 0x61b   :  { %4851 = dma.done.wait [#allocation10], 1024  }
 0x61c   :  { %4852 = vsyncadd [#allocation10], 4294966272 }
 0x61d   :  { %4853 = dma.done.wait [#allocation15], 1024  }
 0x61e   :  { %4854 = vsyncadd [#allocation15], 4294966272 }
 0x61f   :  { %4282 = vsyncpa [#allocation9], 1 }
 0x620   :  { %4283 = vsyncpa [#allocation12], 1 }
 0x621   :  { %4284 = vsyncpa [#allocation10], 1 }
 0x622   :  { %4285 = vsyncpa [#allocation15], 1 }

</bundles_post_ra>
